<compile_context>
chip_gen: v7x
topology: tpu7x:2x2x1
jax: 0.10.0
libtpu: 0.0.40
codegen_flags: <defaults>
</compile_context>

<pallas_src>
import functools

import jax
import jax.numpy as jnp
from jax.experimental import pallas as pl
from jax.experimental.pallas import tpu as pltpu


# ----------------------------------------------------------------------------
# Fused GeneratorNetwork kernel (one grid step = TILE samples)
# ----------------------------------------------------------------------------
def _generator_kernel(x_ref, w0_ref, b0_ref,
                      w1_ref, b1_ref,
                      w2_ref, b2_ref,
                      w3_ref, b3_ref,
                      o_ref):
    f32 = jnp.float32
    bf16 = jnp.bfloat16

    # fc0 + ReLU  ([T, 10] @ [10, 1024])
    x = x_ref[...].astype(bf16)
    h0 = jnp.dot(x, w0_ref[...], preferred_element_type=f32) + b0_ref[...]
    h0 = jnp.maximum(h0, 0.0)                                   # [T, 1024] f32
    # h0 is already the PyTorch .view(-1, 64, 4, 4) channel-major flattening.

    # deconv1 (64ch 4x4 -> 32ch 7x7), kron-folded:  [T,1024] @ [1024,1568]
    h1 = jnp.dot(h0.astype(bf16), w1_ref[...],
                 preferred_element_type=f32) + b1_ref[...]
    h1 = jnp.maximum(h1, 0.0)                                   # [T, 1568]

    # deconv2 (32ch 7x7 -> 8ch 14x14):  [T,1568] @ [1568,1568]
    h2 = jnp.dot(h1.astype(bf16), w2_ref[...],
                 preferred_element_type=f32) + b2_ref[...]
    h2 = jnp.maximum(h2, 0.0)                                   # [T, 1568]

    # deconv3 (8ch 14x14 -> 1ch 28x28) + tanh:  [T,1568] @ [1568,784]
    y = jnp.dot(h2.astype(bf16), w3_ref[...],
                preferred_element_type=f32) + b3_ref[...]
    o_ref[...] = jnp.tanh(y)                                    # [T, 784] f32


# ----------------------------------------------------------------------------
# Host-side parameter preparation (done once, outside the jitted forward)
# ----------------------------------------------------------------------------
def _upsample_matrix_t(hin, win, hout, wout, stride):
    """U^T[p, q] = 1 iff flat output q=(oh,ow) receives flat input p=(ih,iw): oh=s*ih, ow=s*iw."""
    ih = jnp.arange(hin)
    iw = jnp.arange(win)
    oh = jnp.arange(hout)
    ow = jnp.arange(wout)
    row = (oh[None, :] == stride * ih[:, None])                  # [hin, hout]
    col = (ow[None, :] == stride * iw[:, None])                  # [win, wout]
    m = row[:, None, :, None] & col[None, :, None, :]            # [hin, win, hout, wout]
    return m.reshape(hin * win, hout * wout).astype(jnp.float32)


def _fold_deconv(w, b, hin, win, hout, wout, stride):
    """ConvTranspose2d(k=1,stride=2) as one dense matrix on channel-major flat activations."""
    ut = _upsample_matrix_t(hin, win, hout, wout, stride)        # [Sin, Sout]
    big_w = jnp.kron(w[:, :, 0, 0], ut)                          # [Cin*Sin, Cout*Sout]
    big_b = jnp.repeat(b, hout * wout).reshape(1, -1)            # [1, Cout*Sout]
    return big_w.astype(jnp.bfloat16), big_b.astype(jnp.float32)


def init_params(key):
    """PyTorch-layout parameters (fc0.weight [1024,10]; ConvTranspose2d weight [Cin,Cout,1,1])."""
    ks = jax.random.split(key, 8)

    def u(k, shape, fan_in):
        bound = 1.0 / jnp.sqrt(fan_in)
        return jax.random.uniform(k, shape, jnp.float32, -bound, bound)

    return {
        "fc0_w": u(ks[0], (1024, 10), 10), "fc0_b": u(ks[1], (1024,), 10),
        "d1_w": u(ks[2], (64, 32, 1, 1), 32), "d1_b": u(ks[3], (32,), 32),
        "d2_w": u(ks[4], (32, 8, 1, 1), 8),   "d2_b": u(ks[5], (8,), 8),
        "d3_w": u(ks[6], (8, 1, 1, 1), 1),    "d3_b": u(ks[7], (1,), 1),
    }


def prepare_kernel_params(params):
    """Kernel-layout weights: bf16 matmul operands, f32 biases, kron-folded deconvs."""
    w1, b1 = _fold_deconv(params["d1_w"], params["d1_b"], 4, 4, 7, 7, 2)
    w2, b2 = _fold_deconv(params["d2_w"], params["d2_b"], 7, 7, 14, 14, 2)
    w3, b3 = _fold_deconv(params["d3_w"], params["d3_b"], 14, 14, 28, 28, 2)
    return {
        "w0": params["fc0_w"].T.astype(jnp.bfloat16),            # [10, 1024]
        "b0": params["fc0_b"].reshape(1, 1024).astype(jnp.float32),
        "w1": w1, "b1": b1,                                      # [1024, 1568], [1, 1568]
        "w2": w2, "b2": b2,                                      # [1568, 1568], [1, 1568]
        "w3": w3, "b3": b3,                                      # [1568, 784],  [1, 784]
    }


# ----------------------------------------------------------------------------
# Fused forward pass (single pallas_call, TILE samples per grid step)
# ----------------------------------------------------------------------------
def _round_up(n, m):
    return ((n + m - 1) // m) * m


@functools.partial(jax.jit, static_argnames=("tile",))
def generator_forward(kp, x, tile=256):
    n = x.shape[0]
    t = min(tile, _round_up(n, 8))           # sublane-aligned tile, >= batch if batch small
    n_pad = _round_up(n, t)
    if n_pad != n:
        x = jnp.pad(x, ((0, n_pad - n), (0, 0)))
    grid = (n_pad // t,)

    const = lambda i: (0, 0)                 # resident weight blocks

    flops_per_row = 2 * (10 * 1024 + 1024 * 1568 + 1568 * 1568 + 1568 * 784)
    weight_bytes = (10 * 1024 + 1024 * 1568 + 1568 * 1568 + 1568 * 784) * 2 \
        + (1024 + 1568 + 1568 + 784) * 4
    cost = pl.CostEstimate(
        flops=flops_per_row * n_pad,
        transcendentals=784 * n_pad,
        bytes_accessed=n_pad * (10 * 4 + 784 * 4) + weight_bytes,
    )

    out = pl.pallas_call(
        _generator_kernel,
        out_shape=jax.ShapeDtypeStruct((n_pad, 784), jnp.float32),
        grid=grid,
        in_specs=[
            pl.BlockSpec((t, 10), lambda i: (i, 0)),             # x
            pl.BlockSpec((10, 1024), const),                     # w0
            pl.BlockSpec((1, 1024), const),                      # b0
            pl.BlockSpec((1024, 1568), const),                   # w1 (kron-folded)
            pl.BlockSpec((1, 1568), const),                      # b1
            pl.BlockSpec((1568, 1568), const),                   # w2 (kron-folded)
            pl.BlockSpec((1, 1568), const),                      # b2
            pl.BlockSpec((1568, 784), const),                    # w3 (kron-folded)
            pl.BlockSpec((1, 784), const),                       # b3
        ],
        out_specs=pl.BlockSpec((t, 784), lambda i: (i, 0)),      # lane/sublane-dense output
        compiler_params=pltpu.CompilerParams(
            dimension_semantics=("parallel",),
            vmem_limit_bytes=48 * 1024 * 1024,
        ),
        cost_estimate=cost,
    )(x, kp["w0"], kp["b0"], kp["w1"], kp["b1"],
      kp["w2"], kp["b2"], kp["w3"], kp["b3"])

    return out[:n].reshape(n, 1, 28, 28)


# ----------------------------------------------------------------------------
# Pure-JAX reference (mirrors the PyTorch module) for correctness checking
# ----------------------------------------------------------------------------
def _deconv_1x1_stride2_ref(x, w, b, output_padding):
    # x: [N, Cin, H, W]; w: [Cin, Cout, 1, 1]; b: [Cout]
    n, cin, h, wd = x.shape
    cout = w.shape[1]
    hout = (h - 1) * 2 + 1 + output_padding
    wout = (wd - 1) * 2 + 1 + output_padding
    mixed = jnp.einsum("nchw,co->nohw", x, w[:, :, 0, 0],
                       precision=jax.lax.Precision.HIGHEST)
    out = jnp.zeros((n, cout, hout, wout), jnp.float32)
    out = out.at[:, :, ::2, ::2].set(mixed)
    return out + b[None, :, None, None]


def generator_forward_ref(params, x):
    h = jax.nn.relu(jnp.dot(x, params["fc0_w"].T,
                            precision=jax.lax.Precision.HIGHEST) + params["fc0_b"])
    h = h.reshape(-1, 64, 4, 4)
    h = jax.nn.relu(_deconv_1x1_stride2_ref(h, params["d1_w"], params["d1_b"], 0))
    h = jax.nn.relu(_deconv_1x1_stride2_ref(h, params["d2_w"], params["d2_b"], 1))
    h = jnp.tanh(_deconv_1x1_stride2_ref(h, params["d3_w"], params["d3_b"], 1))
    return h


if __name__ == "__main__":
    key = jax.random.PRNGKey(0)
    pkey, xkey = jax.random.split(key)
    params = init_params(pkey)
    kparams = prepare_kernel_params(params)

    # GeneratorNetwork input: latent vector of size 10, batch = 2.
    x = jax.random.normal(xkey, (2, 10), dtype=jnp.float32)

    out = generator_forward(kparams, x)
    out = jax.block_until_ready(out)

    ref = generator_forward_ref(params, x)

    assert out.shape == (2, 1, 28, 28)
    assert bool(jnp.all(jnp.isfinite(out)))
    # tolerance covers bf16 matmul operands (f32 accumulation) vs. f32 HIGHEST reference
    assert bool(jnp.allclose(out, ref, atol=2e-2, rtol=2e-2)), \
        float(jnp.max(jnp.abs(out - ref)))
    print("KERNEL_OK")
</pallas_src>

<mosaic_0001>
module attributes {stable_mosaic.version = 11 : i64} {
  func.func @_generator_kernel(%arg0: i32, %arg1: memref<8x10xf32, #tpu.memory_space<vmem>>, %arg2: memref<10x1024xbf16, #tpu.memory_space<vmem>>, %arg3: memref<1x1024xf32, #tpu.memory_space<vmem>>, %arg4: memref<1024x1568xbf16, #tpu.memory_space<vmem>>, %arg5: memref<1x1568xf32, #tpu.memory_space<vmem>>, %arg6: memref<1568x1568xbf16, #tpu.memory_space<vmem>>, %arg7: memref<1x1568xf32, #tpu.memory_space<vmem>>, %arg8: memref<1568x784xbf16, #tpu.memory_space<vmem>>, %arg9: memref<1x784xf32, #tpu.memory_space<vmem>>, %arg10: memref<8x784xf32, #tpu.memory_space<vmem>>) attributes {dimension_semantics = [#tpu.dimension_semantics<parallel>], iteration_bounds = array<i64: 1>, scalar_prefetch = 0 : i64, scratch_operands = 0 : i64, tpu.core_type = #tpu.core_type<tc>, window_params = [{transform_indices = @transform_0, window_bounds = array<i64: 8, 10>}, {pipeline_mode = #tpu.pipeline_mode<synchronous>, transform_indices = @transform_1, window_bounds = array<i64: 10, 1024>}, {pipeline_mode = #tpu.pipeline_mode<synchronous>, transform_indices = @transform_2, window_bounds = array<i64: 1, 1024>}, {pipeline_mode = #tpu.pipeline_mode<synchronous>, transform_indices = @transform_3, window_bounds = array<i64: 1024, 1568>}, {pipeline_mode = #tpu.pipeline_mode<synchronous>, transform_indices = @transform_4, window_bounds = array<i64: 1, 1568>}, {pipeline_mode = #tpu.pipeline_mode<synchronous>, transform_indices = @transform_5, window_bounds = array<i64: 1568, 1568>}, {pipeline_mode = #tpu.pipeline_mode<synchronous>, transform_indices = @transform_6, window_bounds = array<i64: 1, 1568>}, {pipeline_mode = #tpu.pipeline_mode<synchronous>, transform_indices = @transform_7, window_bounds = array<i64: 1568, 784>}, {pipeline_mode = #tpu.pipeline_mode<synchronous>, transform_indices = @transform_8, window_bounds = array<i64: 1, 784>}, {transform_indices = @transform_9, window_bounds = array<i64: 8, 784>}]} {
    %c0 = arith.constant 0 : index
    %c0_0 = arith.constant 0 : index
    %0 = vector.load %arg1[%c0, %c0_0] : memref<8x10xf32, #tpu.memory_space<vmem>>, vector<8x10xf32>
    %1 = arith.truncf %0 : vector<8x10xf32> to vector<8x10xbf16>
    %c0_1 = arith.constant 0 : index
    %c0_2 = arith.constant 0 : index
    %2 = vector.load %arg2[%c0_1, %c0_2] : memref<10x1024xbf16, #tpu.memory_space<vmem>>, vector<10x1024xbf16>
    %cst = arith.constant dense<0.000000e+00> : vector<8x1024xf32>
    %3 = tpu.matmul %1, %2, %cst {dimension_numbers = #tpu.dot_dimension_numbers<[1], [0], [0], [1], [0, 0, 1, 1], [], []>} : vector<8x10xbf16>, vector<10x1024xbf16>, vector<8x1024xf32> -> vector<8x1024xf32>
    %c0_3 = arith.constant 0 : index
    %c0_4 = arith.constant 0 : index
    %4 = vector.load %arg3[%c0_3, %c0_4] : memref<1x1024xf32, #tpu.memory_space<vmem>>, vector<1x1024xf32>
    %5 = vector.broadcast %4 : vector<1x1024xf32> to vector<8x1024xf32>
    %6 = arith.addf %3, %5 : vector<8x1024xf32>
    %cst_5 = arith.constant 0.000000e+00 : f32
    %7 = vector.broadcast %cst_5 : f32 to vector<8x1024xf32>
    %8 = arith.maximumf %6, %7 : vector<8x1024xf32>
    %9 = arith.truncf %8 : vector<8x1024xf32> to vector<8x1024xbf16>
    %c0_6 = arith.constant 0 : index
    %c0_7 = arith.constant 0 : index
    %10 = vector.load %arg4[%c0_6, %c0_7] : memref<1024x1568xbf16, #tpu.memory_space<vmem>>, vector<1024x1568xbf16>
    %cst_8 = arith.constant dense<0.000000e+00> : vector<8x1568xf32>
    %11 = tpu.matmul %9, %10, %cst_8 {dimension_numbers = #tpu.dot_dimension_numbers<[1], [0], [0], [1], [0, 0, 1, 1], [], []>} : vector<8x1024xbf16>, vector<1024x1568xbf16>, vector<8x1568xf32> -> vector<8x1568xf32>
    %c0_9 = arith.constant 0 : index
    %c0_10 = arith.constant 0 : index
    %12 = vector.load %arg5[%c0_9, %c0_10] : memref<1x1568xf32, #tpu.memory_space<vmem>>, vector<1x1568xf32>
    %13 = vector.broadcast %12 : vector<1x1568xf32> to vector<8x1568xf32>
    %14 = arith.addf %11, %13 : vector<8x1568xf32>
    %cst_11 = arith.constant 0.000000e+00 : f32
    %15 = vector.broadcast %cst_11 : f32 to vector<8x1568xf32>
    %16 = arith.maximumf %14, %15 : vector<8x1568xf32>
    %17 = arith.truncf %16 : vector<8x1568xf32> to vector<8x1568xbf16>
    %c0_12 = arith.constant 0 : index
    %c0_13 = arith.constant 0 : index
    %18 = vector.load %arg6[%c0_12, %c0_13] : memref<1568x1568xbf16, #tpu.memory_space<vmem>>, vector<1568x1568xbf16>
    %cst_14 = arith.constant dense<0.000000e+00> : vector<8x1568xf32>
    %19 = tpu.matmul %17, %18, %cst_14 {dimension_numbers = #tpu.dot_dimension_numbers<[1], [0], [0], [1], [0, 0, 1, 1], [], []>} : vector<8x1568xbf16>, vector<1568x1568xbf16>, vector<8x1568xf32> -> vector<8x1568xf32>
    %c0_15 = arith.constant 0 : index
    %c0_16 = arith.constant 0 : index
    %20 = vector.load %arg7[%c0_15, %c0_16] : memref<1x1568xf32, #tpu.memory_space<vmem>>, vector<1x1568xf32>
    %21 = vector.broadcast %20 : vector<1x1568xf32> to vector<8x1568xf32>
    %22 = arith.addf %19, %21 : vector<8x1568xf32>
    %cst_17 = arith.constant 0.000000e+00 : f32
    %23 = vector.broadcast %cst_17 : f32 to vector<8x1568xf32>
    %24 = arith.maximumf %22, %23 : vector<8x1568xf32>
    %25 = arith.truncf %24 : vector<8x1568xf32> to vector<8x1568xbf16>
    %c0_18 = arith.constant 0 : index
    %c0_19 = arith.constant 0 : index
    %26 = vector.load %arg8[%c0_18, %c0_19] : memref<1568x784xbf16, #tpu.memory_space<vmem>>, vector<1568x784xbf16>
    %cst_20 = arith.constant dense<0.000000e+00> : vector<8x784xf32>
    %27 = tpu.matmul %25, %26, %cst_20 {dimension_numbers = #tpu.dot_dimension_numbers<[1], [0], [0], [1], [0, 0, 1, 1], [], []>} : vector<8x1568xbf16>, vector<1568x784xbf16>, vector<8x784xf32> -> vector<8x784xf32>
    %c0_21 = arith.constant 0 : index
    %c0_22 = arith.constant 0 : index
    %28 = vector.load %arg9[%c0_21, %c0_22] : memref<1x784xf32, #tpu.memory_space<vmem>>, vector<1x784xf32>
    %29 = vector.broadcast %28 : vector<1x784xf32> to vector<8x784xf32>
    %30 = arith.addf %27, %29 : vector<8x784xf32>
    %31 = math.tanh %30 : vector<8x784xf32>
    %c0_23 = arith.constant 0 : index
    %c0_24 = arith.constant 0 : index
    %32 = vector.load %arg10[%c0_23, %c0_24] : memref<8x784xf32, #tpu.memory_space<vmem>>, vector<8x784xf32>
    tpu.vector_store %arg10[%c0_23, %c0_24], %31 {strides = array<i32>} : memref<8x784xf32, #tpu.memory_space<vmem>>, vector<8x784xf32>,
    return
  }
  func.func @transform_0(%arg0: i32) -> (i32, i32) {
    %c0_i32 = arith.constant 0 : i32
    %c0_i32_0 = arith.constant 0 : i32
    return %arg0, %c0_i32 : i32, i32
  }
  func.func @transform_1(%arg0: i32) -> (i32, i32) {
    %c0_i32 = arith.constant 0 : i32
    %c0_i32_0 = arith.constant 0 : i32
    %c0_i32_1 = arith.constant 0 : i32
    return %c0_i32, %c0_i32_0 : i32, i32
  }
  func.func @transform_2(%arg0: i32) -> (i32, i32) {
    %c0_i32 = arith.constant 0 : i32
    %c0_i32_0 = arith.constant 0 : i32
    %c0_i32_1 = arith.constant 0 : i32
    return %c0_i32, %c0_i32_0 : i32, i32
  }
  func.func @transform_3(%arg0: i32) -> (i32, i32) {
    %c0_i32 = arith.constant 0 : i32
    %c0_i32_0 = arith.constant 0 : i32
    %c0_i32_1 = arith.constant 0 : i32
    return %c0_i32, %c0_i32_0 : i32, i32
  }
  func.func @transform_4(%arg0: i32) -> (i32, i32) {
    %c0_i32 = arith.constant 0 : i32
    %c0_i32_0 = arith.constant 0 : i32
    %c0_i32_1 = arith.constant 0 : i32
    return %c0_i32, %c0_i32_0 : i32, i32
  }
  func.func @transform_5(%arg0: i32) -> (i32, i32) {
    %c0_i32 = arith.constant 0 : i32
    %c0_i32_0 = arith.constant 0 : i32
    %c0_i32_1 = arith.constant 0 : i32
    return %c0_i32, %c0_i32_0 : i32, i32
  }
  func.func @transform_6(%arg0: i32) -> (i32, i32) {
    %c0_i32 = arith.constant 0 : i32
    %c0_i32_0 = arith.constant 0 : i32
    %c0_i32_1 = arith.constant 0 : i32
    return %c0_i32, %c0_i32_0 : i32, i32
  }
  func.func @transform_7(%arg0: i32) -> (i32, i32) {
    %c0_i32 = arith.constant 0 : i32
    %c0_i32_0 = arith.constant 0 : i32
    %c0_i32_1 = arith.constant 0 : i32
    return %c0_i32, %c0_i32_0 : i32, i32
  }
  func.func @transform_8(%arg0: i32) -> (i32, i32) {
    %c0_i32 = arith.constant 0 : i32
    %c0_i32_0 = arith.constant 0 : i32
    %c0_i32_1 = arith.constant 0 : i32
    return %c0_i32, %c0_i32_0 : i32, i32
  }
  func.func @transform_9(%arg0: i32) -> (i32, i32) {
    %c0_i32 = arith.constant 0 : i32
    %c0_i32_0 = arith.constant 0 : i32
    return %arg0, %c0_i32 : i32, i32
  }
}

</mosaic_0001>

<bundles_post_ra>
// kernel: generator_forward.1
= control target key start
LH: loop header
LB: loop body
LE: loop exit
PB: predicated region body
PF: predicated region fallthrough
CT: control target
= control target key end

     0   :  { %vm121_vm0 = vcmask 1044480   ;;  %v29728_v3 = vmov 0   ;;  %vm117_vm1 = vcmask 80896   ;;  %vm14594_vm2 = vcmask 261120   ;;  %s38767_s1 = inlined_call_operand.vmem [shape: bf16[10,1024], index: 1, kind: input, shape index: {}]   ;;  %s38768_s0 = inlined_call_operand.vmem [shape: f32[8,10], index: 0, kind: input, shape index: {}]   ;;  %s38769_s3 = inlined_call_operand.vmem [shape: bf16[1024,1568], index: 3, kind: input, shape index: {}]   ;;  %s38770_s2 = inlined_call_operand.vmem [shape: f32[1,1024], index: 2, kind: input, shape index: {}]   ;;  %s38771_s4 = inlined_call_operand.vmem [shape: f32[1,1568], index: 4, kind: input, shape index: {}]   ;;  %s38772_s5 = inlined_call_operand.vmem [shape: bf16[1568,1568], index: 5, kind: input, shape index: {}]   ;;  %s38773_s7 = inlined_call_operand.vmem [shape: bf16[1568,784], index: 7, kind: input, shape index: {}]   ;;  %s38774_s6 = inlined_call_operand.vmem [shape: f32[1,1568], index: 6, kind: input, shape index: {}]   ;;  %s38775_s8 = inlined_call_operand.vmem [shape: f32[1,784], index: 8, kind: input, shape index: {}]   ;;  %s38776_s9 = inlined_call_operand.vmem [shape: f32[8,784], index: 9, kind: output, shape index: {}]  }
   0x1   :  { %v35_v0 = vld [vmem:[%s38767_s1] sm:$0xff]  ;;  %v36_v2 = vld [vmem:[%s38767_s1 + $0x8] sm:$0xff]  ;;  %178 = vmatprep.mubr.bf16.mxu0 %v29728_v3  ;;  %219 = vmatprep.mubr.bf16.mxu1 %v29728_v3  ;;  %v37_v8 = vld [vmem:[%s38767_s1 + $0x10] sm:$0xff]  ;;  %vm29730_vm3 = vmmov 0   ;;  %vm22132_vm4 = vcmask 130048  }
   0x2   :  { %v39_v1 = vld [vmem:[%s38767_s1 + $0x20] sm:$0x11]  ;;  %v40_v5 = vld [vmem:[%s38767_s1 + $0x28] sm:$0x11]  ;;  %v41_v12 = vld [vmem:[%s38767_s1 + $0x30] sm:$0x11] }
   0x3   :  { %v22139_v4 = vcombine.high %v35_v0, %v39_v1  ;;  %v22138_v6 = vcombine.low %v35_v0, %v39_v1  ;;  %v33_v7 = vld [vmem:[%s38768_s0] sm:$0xff]  ;;  %v22141_v9 = vcombine.high %v36_v2, %v40_v5  ;;  %v22140_v10 = vcombine.low %v36_v2, %v40_v5  ;;  %v38_v13 = vld [vmem:[%s38767_s1 + $0x18] sm:$0xff]  ;;  %v25661_v28 = vld [vmem:[%s38769_s3 + $0x6f4] ss:$52 sps:$4 sm:$0xff]  }
   0x4   :  { %v34_v11 = vpack.c.bf16 %v33_v7, %v33_v7  ;;  %v42_v14 = vld [vmem:[%s38767_s1 + $0x38] sm:$0x11]  ;;  %v22143_v16 = vcombine.high %v37_v8, %v41_v12  ;;  %v22142_v17 = vcombine.low %v37_v8, %v41_v12  ;;  %v25655_v24 = vld [vmem:[%s38769_s3 + $0x68c] ss:$52 sps:$4 sm:$0xff]   ;;  %v25659_v30 = vld [vmem:[%s38769_s3 + $0x6f0] ss:$52 sps:$4 sm:$0xff]  }
   0x5   :  { %22146 = vmatprep.subr.msk.bf16.mxu0 %vm121_vm0, %v22139_v4  ;;  %v123_v15 = vsel %vm121_vm0, %v22138_v6, 0  ;;  %v22145_v18 = vcombine.high %v38_v13, %v42_v14  ;;  %22148 = vmatprep.subr.msk.bf16.mxu1 %vm121_vm0, %v22141_v9  ;;  %v129_v19 = vsel %vm121_vm0, %v22140_v10, 0  ;;  %v22144_v20 = vcombine.low %v38_v13, %v42_v14  ;;  %v25652_v23 = vld [vmem:[%s38769_s3 + $0x4] ss:$52 sps:$4 sm:$0xff]   ;;  %v25650_v25 = vld [vmem:[%s38769_s3] ss:$52 sps:$4 sm:$0xff]  }
   0x6   :  { %147 = vmatpush1.bf16.msra.mxu0 %v123_v15  ;;  %188 = vmatpush1.bf16.msra.mxu1 %v129_v19  ;;  %v135_v21 = vsel %vm121_vm0, %v22142_v17, 0  ;;  %v25653_v26 = vld [vmem:[%s38769_s3 + $0x688] ss:$52 sps:$4 sm:$0xff]   ;;  %v25658_v27 = vld [vmem:[%s38769_s3 + $0x6c] ss:$52 sps:$4 sm:$0xff]  }
   0x7   :  { %22150 = vmatprep.subr.msk.bf16.mxu0 %vm121_vm0, %v22143_v16  ;;  %22152 = vmatprep.subr.msk.bf16.mxu1 %vm121_vm0, %v22145_v18  ;;  %v141_v22 = vsel %vm121_vm0, %v22144_v20, 0  ;;  %v25656_v29 = vld [vmem:[%s38769_s3 + $0x68] ss:$52 sps:$4 sm:$0xff]   ;;  %v25662_v33 = vld [vmem:[%s38769_s3 + $0xd0] ss:$52 sps:$4 sm:$0xff]  }
   0x8   :  { %v25664_v31 = vld [vmem:[%s38769_s3 + $0xd4] ss:$52 sps:$4 sm:$0xff]   ;;  %v25667_v32 = vld [vmem:[%s38769_s3 + $0x75c] ss:$52 sps:$4 sm:$0xff]   ;;  %v25665_v34 = vld [vmem:[%s38769_s3 + $0x758] ss:$52 sps:$4 sm:$0xff]  }
   0x9   :  { %22147 = vmatmul.mubr.msk.bf16.vlgmr.msra.gmra.mrb[0].mxu0 %vm117_vm1, %v34_v11  ;;  %22149 = vmatmul.mubr.msk.bf16.vlgmr.msra.gmra.mrb[0].mxu1 %vm117_vm1, %v34_v11  ;;  %v25670_v35 = vld [vmem:[%s38769_s3 + $0x13c] ss:$52 sps:$4 sm:$0xff]   ;;  %v25673_v36 = vld [vmem:[%s38769_s3 + $0x7c4] ss:$52 sps:$4 sm:$0xff]   ;;  %v25671_v38 = vld [vmem:[%s38769_s3 + $0x7c0] ss:$52 sps:$4 sm:$0xff]  }
   0xa   :  { %229 = vmatpush1.bf16.msra.mxu0 %v135_v21  ;;  %260 = vmatprep.mubr.bf16.mxu0 %v29728_v3  ;;  %v25668_v37 = vld [vmem:[%s38769_s3 + $0x138] ss:$52 sps:$4 sm:$0xff]   ;;  %v25674_v41 = vld [vmem:[%s38769_s3 + $0x1a0] ss:$52 sps:$4 sm:$0xff]   ;;  %v25677_v42 = vld [vmem:[%s38769_s3 + $0x828] ss:$52 sps:$4 sm:$0xff]  }
   0xb   :  { %270 = vmatpush1.bf16.msra.mxu1 %v141_v22  ;;  %301 = vmatprep.mubr.bf16.mxu1 %v29728_v3  ;;  %v25676_v39 = vld [vmem:[%s38769_s3 + $0x1a4] ss:$52 sps:$4 sm:$0xff]   ;;  %v25679_v40 = vld [vmem:[%s38769_s3 + $0x82c] ss:$52 sps:$4 sm:$0xff]   ;;  %v25685_v44 = vld [vmem:[%s38769_s3 + $0x894] ss:$52 sps:$4 sm:$0xff]  }
   0xc   :  { %5515 = vmatprep.subr.bf16.mxu0 %v25652_v23  ;;  %5720 = vmatprep.subr.bf16.mxu1 %v25655_v24  ;;  %v25682_v43 = vld [vmem:[%s38769_s3 + $0x20c] ss:$52 sps:$4 sm:$0xff]   ;;  %v25680_v45 = vld [vmem:[%s38769_s3 + $0x208] ss:$52 sps:$4 sm:$0xff]   ;;  %v25683_v46 = vld [vmem:[%s38769_s3 + $0x890] ss:$52 sps:$4 sm:$0xff]  }
   0xd   :  { %v25688_v47 = vld [vmem:[%s38769_s3 + $0x274] ss:$52 sps:$4 sm:$0xff]   ;;  %v25691_v48 = vld [vmem:[%s38769_s3 + $0x8fc] ss:$52 sps:$4 sm:$0xff]   ;;  %v25689_v50 = vld [vmem:[%s38769_s3 + $0x8f8] ss:$52 sps:$4 sm:$0xff]  }
   0xe   :  { %v25686_v49 = vld [vmem:[%s38769_s3 + $0x270] ss:$52 sps:$4 sm:$0xff]   ;;  %v25692_v52 = vld [vmem:[%s38769_s3 + $0x2d8] ss:$52 sps:$4 sm:$0xff]   ;;  %v25695_v54 = vld [vmem:[%s38769_s3 + $0x960] ss:$52 sps:$4 sm:$0xff]  }
   0xf   :  { %v25694_v51 = vld [vmem:[%s38769_s3 + $0x2dc] ss:$52 sps:$4 sm:$0xff]   ;;  %v25697_v53 = vld [vmem:[%s38769_s3 + $0x964] ss:$52 sps:$4 sm:$0xff]   ;;  %v25703_v56 = vld [vmem:[%s38769_s3 + $0x9cc] ss:$52 sps:$4 sm:$0xff]  }
  0x10   :  { %v25700_v55 = vld [vmem:[%s38769_s3 + $0x344] ss:$52 sps:$4 sm:$0xff]   ;;  %v25698_v57 = vld [vmem:[%s38769_s3 + $0x340] ss:$52 sps:$4 sm:$0xff]   ;;  %v25701_v58 = vld [vmem:[%s38769_s3 + $0x9c8] ss:$52 sps:$4 sm:$0xff]  }
  0x11   :  { %22151 = vmatmul.mubr.msk.bf16.vlgmr.msra.gmra.mrb[4].mxu0 %vm117_vm1, %v34_v11  ;;  %22153 = vmatmul.mubr.msk.bf16.vlgmr.msra.gmra.mrb[4].mxu1 %vm117_vm1, %v34_v11  ;;  %v25706_v59 = vld [vmem:[%s38769_s3 + $0x3ac] ss:$52 sps:$4 sm:$0xff]   ;;  %v25709_v60 = vld [vmem:[%s38769_s3 + $0xa34] ss:$52 sps:$4 sm:$0xff]   ;;  %v25707_v62 = vld [vmem:[%s38769_s3 + $0xa30] ss:$52 sps:$4 sm:$0xff]  }
  0x12   :  { %5516 = vmatpush1.bf16.msra.mxu0 %v25650_v25  ;;  %5721 = vmatpush1.bf16.msra.mxu1 %v25653_v26  ;;  %v25704_v61 = vld [vmem:[%s38769_s3 + $0x3a8] ss:$52 sps:$4 sm:$0xff]   ;;  %v25710_v1 = vld [vmem:[%s38769_s3 + $0x410] ss:$52 sps:$4 sm:$0xff]   ;;  %v25713_v2 = vld [vmem:[%s38769_s3 + $0xa98] ss:$52 sps:$4 sm:$0xff]   ;;  %v45_v26 = vlaneseq }
  0x13   :  { %5517 = vmatprep.subr.bf16.mxu0 %v25658_v27  ;;  %5722 = vmatprep.subr.bf16.mxu1 %v25661_v28  ;;  %v25712_v63 = vld [vmem:[%s38769_s3 + $0x414] ss:$52 sps:$4 sm:$0xff]   ;;  %v25715_v0 = vld [vmem:[%s38769_s3 + $0xa9c] ss:$52 sps:$4 sm:$0xff]   ;;  %v25721_v5 = vld [vmem:[%s38769_s3 + $0xb04] ss:$52 sps:$4 sm:$0xff]  }
  0x14   :  { %v25718_v4 = vld [vmem:[%s38769_s3 + $0x47c] ss:$52 sps:$4 sm:$0xff]   ;;  %v25716_v6 = vld [vmem:[%s38769_s3 + $0x478] ss:$52 sps:$4 sm:$0xff]   ;;  %v25719_v7 = vld [vmem:[%s38769_s3 + $0xb00] ss:$52 sps:$4 sm:$0xff]  }
  0x15   :  { %v25724_v8 = vld [vmem:[%s38769_s3 + $0x4e4] ss:$52 sps:$4 sm:$0xff]   ;;  %v25727_v9 = vld [vmem:[%s38769_s3 + $0xb6c] ss:$52 sps:$4 sm:$0xff]   ;;  %v25725_v11 = vld [vmem:[%s38769_s3 + $0xb68] ss:$52 sps:$4 sm:$0xff]  }
  0x16   :  { %5518 = vmatpush1.bf16.msra.mxu0 %v25656_v29  ;;  %5723 = vmatpush1.bf16.msra.mxu1 %v25659_v30  ;;  %v25722_v10 = vld [vmem:[%s38769_s3 + $0x4e0] ss:$52 sps:$4 sm:$0xff]   ;;  %v25728_v14 = vld [vmem:[%s38769_s3 + $0x548] ss:$52 sps:$4 sm:$0xff]   ;;  %v25731_v15 = vld [vmem:[%s38769_s3 + $0xbd0] ss:$52 sps:$4 sm:$0xff]  }
  0x17   :  { %5519 = vmatprep.subr.bf16.mxu0 %v25664_v31  ;;  %5724 = vmatprep.subr.bf16.mxu1 %v25667_v32  ;;  %v25730_v12 = vld [vmem:[%s38769_s3 + $0x54c] ss:$52 sps:$4 sm:$0xff]   ;;  %v25733_v13 = vld [vmem:[%s38769_s3 + $0xbd4] ss:$52 sps:$4 sm:$0xff]   ;;  %v25739_v17 = vld [vmem:[%s38769_s3 + $0xc3c] ss:$52 sps:$4 sm:$0xff]  }
  0x18   :  { %v25736_v16 = vld [vmem:[%s38769_s3 + $0x5b4] ss:$52 sps:$4 sm:$0xff]   ;;  %v25734_v18 = vld [vmem:[%s38769_s3 + $0x5b0] ss:$52 sps:$4 sm:$0xff]   ;;  %v25737_v19 = vld [vmem:[%s38769_s3 + $0xc38] ss:$52 sps:$4 sm:$0xff]  }
  0x19   :  { %v25742_v20 = vld [vmem:[%s38769_s3 + $0x61c] ss:$52 sps:$4 sm:$0xff]   ;;  %v25745_v21 = vld [vmem:[%s38769_s3 + $0xca4] ss:$52 sps:$4 sm:$0xff]   ;;  %v25743_v23 = vld [vmem:[%s38769_s3 + $0xca0] ss:$52 sps:$4 sm:$0xff]  }
  0x1a   :  { %5520 = vmatpush1.bf16.msra.mxu0 %v25662_v33  ;;  %5725 = vmatpush1.bf16.msra.mxu1 %v25665_v34  ;;  %v25740_v22 = vld [vmem:[%s38769_s3 + $0x618] ss:$52 sps:$4 sm:$0xff]   ;;  %v30022_v27 = vshrl.u32 %v45_v26, 7  ;;  %v30027_v28 = vld [vmem:[%s38770_s2] sm:$0xff]  ;;  %v25776_v26 = vld [vmem:[%s38769_s3 + $0x888] ss:$52 sps:$4 sm:$0xff]  }
  0x1b   :  { %5521 = vmatprep.subr.bf16.mxu0 %v25670_v35  ;;  %5726 = vmatprep.subr.bf16.mxu1 %v25673_v36  ;;  %v25748_v24 = vld [vmem:[%s38769_s3 + $0x684] ss:$52 sps:$4 sm:$0xff]   ;;  %v25751_v25 = vld [vmem:[%s38769_s3 + $0xd0c] ss:$52 sps:$4 sm:$0xff]  }
  0x1c   :  { %v30030_v29 = vsub.s32 0, %v30022_v27  ;;  %v30033_v30 = vsub.s32 2, %v30022_v27  ;;  %v30036_v31 = vsub.s32 1, %v30022_v27  ;;  %v30039_v32 = vsub.s32 3, %v30022_v27 }
  0x1e   :  { %5522 = vmatpush1.bf16.msra.mxu0 %v25668_v37  ;;  %5727 = vmatpush1.bf16.msra.mxu1 %v25671_v38  ;;  %v48_v33 = vrot.slane %v30027_v28, %v30030_v29  ;;  %v56_v34 = vrot.slane %v30027_v28, %v30033_v30  ;;  %v52_v35 = vrot.slane %v30027_v28, %v30036_v31 }
  0x1f   :  { %5523 = vmatprep.subr.bf16.mxu0 %v25676_v39  ;;  %5728 = vmatprep.subr.bf16.mxu1 %v25679_v40  ;;  %v60_v36 = vrot.slane %v30027_v28, %v30039_v32 }
  0x22   :  { %5524 = vmatpush1.bf16.msra.mxu0 %v25674_v41  ;;  %5729 = vmatpush1.bf16.msra.mxu1 %v25677_v42 }
  0x23   :  { %5525 = vmatprep.subr.bf16.mxu0 %v25682_v43  ;;  %5730 = vmatprep.subr.bf16.mxu1 %v25685_v44 }
  0x26   :  { %5526 = vmatpush1.bf16.msra.mxu0 %v25680_v45  ;;  %5731 = vmatpush1.bf16.msra.mxu1 %v25683_v46  ;;  %v30050_v45 = vsub.s32 5, %v30022_v27 }
  0x27   :  { %5527 = vmatprep.subr.bf16.mxu0 %v25688_v47  ;;  %5732 = vmatprep.subr.bf16.mxu1 %v25691_v48 }
  0x2a   :  { %5528 = vmatpush1.bf16.msra.mxu0 %v25686_v49  ;;  %5733 = vmatpush1.bf16.msra.mxu1 %v25689_v50 }
  0x2b   :  { %5529 = vmatprep.subr.bf16.mxu0 %v25694_v51  ;;  %5734 = vmatprep.subr.bf16.mxu1 %v25697_v53 }
  0x2e   :  { %5530 = vmatpush1.bf16.msra.mxu0 %v25692_v52  ;;  %5735 = vmatpush1.bf16.msra.mxu1 %v25695_v54  ;;  %v25746_v52 = vld [vmem:[%s38769_s3 + $0x680] ss:$52 sps:$4 sm:$0xff]  }
  0x2f   :  { %5531 = vmatprep.subr.bf16.mxu0 %v25700_v55  ;;  %5736 = vmatprep.subr.bf16.mxu1 %v25703_v56  ;;  %v25749_v55 = vld [vmem:[%s38769_s3 + $0xd08] ss:$52 sps:$4 sm:$0xff]   ;;  %v25754_v56 = vld [vmem:[%s38769_s3 + $0x6ec] ss:$52 sps:$4 sm:$0xff]  }
  0x32   :  { %5532 = vmatpush1.bf16.msra.mxu0 %v25698_v57  ;;  %5737 = vmatpush1.bf16.msra.mxu1 %v25701_v58 }
  0x33   :  { %5533 = vmatprep.subr.bf16.mxu0 %v25706_v59  ;;  %5738 = vmatprep.subr.bf16.mxu1 %v25709_v60  ;;  %v68_v59 = vrot.slane %v30027_v28, %v30050_v45 }
  0x36   :  { %5534 = vmatpush1.bf16.msra.mxu0 %v25704_v61  ;;  %5739 = vmatpush1.bf16.msra.mxu1 %v25707_v62  ;;  %v25757_v62 = vld [vmem:[%s38769_s3 + $0xd74] ss:$52 sps:$4 sm:$0xff]  }
  0x37   :  { %5535 = vmatprep.subr.bf16.mxu0 %v25712_v63  ;;  %5740 = vmatprep.subr.bf16.mxu1 %v25715_v0  ;;  %v25752_v0 = vld [vmem:[%s38769_s3 + $0x6e8] ss:$52 sps:$4 sm:$0xff]  }
  0x3a   :  { %5536 = vmatpush1.bf16.msra.mxu0 %v25710_v1  ;;  %5741 = vmatpush1.bf16.msra.mxu1 %v25713_v2 }
  0x3b   :  { %5537 = vmatprep.subr.bf16.mxu0 %v25718_v4  ;;  %5742 = vmatprep.subr.bf16.mxu1 %v25721_v5 }
  0x3e   :  { %5538 = vmatpush1.bf16.msra.mxu0 %v25716_v6  ;;  %5743 = vmatpush1.bf16.msra.mxu1 %v25719_v7  ;;  %v25755_v7 = vld [vmem:[%s38769_s3 + $0xd70] ss:$52 sps:$4 sm:$0xff]  }
  0x3f   :  { %5539 = vmatprep.subr.bf16.mxu0 %v25724_v8  ;;  %5744 = vmatprep.subr.bf16.mxu1 %v25727_v9  ;;  %v25760_v8 = vld [vmem:[%s38769_s3 + $0x754] ss:$52 sps:$4 sm:$0xff]  }
  0x42   :  { %5540 = vmatpush1.bf16.msra.mxu0 %v25722_v10  ;;  %5745 = vmatpush1.bf16.msra.mxu1 %v25725_v11  ;;  %v25758_v10 = vld [vmem:[%s38769_s3 + $0x750] ss:$52 sps:$4 sm:$0xff]  }
  0x43   :  { %5541 = vmatprep.subr.bf16.mxu0 %v25730_v12  ;;  %5746 = vmatprep.subr.bf16.mxu1 %v25733_v13  ;;  %v25763_v11 = vld [vmem:[%s38769_s3 + $0xddc] ss:$52 sps:$4 sm:$0xff]  }
  0x46   :  { %5542 = vmatpush1.bf16.msra.mxu0 %v25728_v14  ;;  %5747 = vmatpush1.bf16.msra.mxu1 %v25731_v15 }
  0x47   :  { %5543 = vmatprep.subr.bf16.mxu0 %v25736_v16  ;;  %5748 = vmatprep.subr.bf16.mxu1 %v25739_v17  ;;  %v25761_v16 = vld [vmem:[%s38769_s3 + $0xdd8] ss:$52 sps:$4 sm:$0xff]   ;;  %v25766_v17 = vld [vmem:[%s38769_s3 + $0x7bc] ss:$52 sps:$4 sm:$0xff]  }
  0x4a   :  { %5544 = vmatpush1.bf16.msra.mxu0 %v25734_v18  ;;  %5749 = vmatpush1.bf16.msra.mxu1 %v25737_v19  ;;  %v25764_v18 = vld [vmem:[%s38769_s3 + $0x7b8] ss:$52 sps:$4 sm:$0xff]  }
  0x4b   :  { %5545 = vmatprep.subr.bf16.mxu0 %v25742_v20  ;;  %5750 = vmatprep.subr.bf16.mxu1 %v25745_v21  ;;  %v25769_v19 = vld [vmem:[%s38769_s3 + $0xe44] ss:$52 sps:$4 sm:$0xff]   ;;  %v25767_v20 = vld [vmem:[%s38769_s3 + $0xe40] ss:$52 sps:$4 sm:$0xff]  }
  0x4c   :  { %v25772_v21 = vld [vmem:[%s38769_s3 + $0x824] ss:$52 sps:$4 sm:$0xff]  }
  0x4e   :  { %5546 = vmatpush1.bf16.msra.mxu0 %v25740_v22  ;;  %5751 = vmatpush1.bf16.msra.mxu1 %v25743_v23  ;;  %v25770_v22 = vld [vmem:[%s38769_s3 + $0x820] ss:$52 sps:$4 sm:$0xff]  }
  0x4f   :  { %5556 = vmatprep.subr.bf16.mxu0 %v25748_v24  ;;  %5761 = vmatprep.subr.bf16.mxu1 %v25751_v25  ;;  %v25775_v23 = vld [vmem:[%s38769_s3 + $0xeac] ss:$52 sps:$4 sm:$0xff]   ;;  %v25773_v24 = vld [vmem:[%s38769_s3 + $0xea8] ss:$52 sps:$4 sm:$0xff]  }
  0x50   :  { %v25778_v25 = vld [vmem:[%s38769_s3 + $0x88c] ss:$52 sps:$4 sm:$0xff]  }
  0xdc   :  { %v180_v37 = vpop.f32.mrb[0].mxu0  ;;  %v221_v39 = vpop.f32.mrb[0].mxu1 }
  0xdd   :  { %v181_v38 = vadd.f32 %v180_v37, %v48_v33  ;;  %v182_v40 = vpop.f32.mrb[1].mxu0  ;;  %v222_v41 = vadd.f32 %v221_v39, %v56_v34  ;;  %v223_v43 = vpop.f32.mrb[1].mxu1  ;;  %v25781_v33 = vld [vmem:[%s38769_s3 + $0xf14] ss:$52 sps:$4 sm:$0xff]   ;;  %v25779_v34 = vld [vmem:[%s38769_s3 + $0xf10] ss:$52 sps:$4 sm:$0xff]  }
  0xde   :  { %v183_v42 = vadd.f32 %v182_v40, %v52_v35  ;;  %v184_v44 = vpop.f32.mrb[2].mxu0  ;;  %v224_v47 = vadd.f32 %v223_v43, %v60_v36  ;;  %v225_v49 = vpop.f32.mrb[2].mxu1  ;;  %v25784_v35 = vld [vmem:[%s38769_s3 + $0x8f4] ss:$52 sps:$4 sm:$0xff]   ;;  %v25782_v36 = vld [vmem:[%s38769_s3 + $0x8f0] ss:$52 sps:$4 sm:$0xff]  }
  0xdf   :  { %v310_v46 = vmax.f32 %v181_v38, 0.0  ;;  %v185_v48 = vpop.f32.mrb[3].mxu0  ;;  %v312_v50 = vmax.f32 %v222_v41, 0.0  ;;  %v226_v53 = vpop.f32.mrb[3].mxu1  ;;  %v25787_v37 = vld [vmem:[%s38769_s3 + $0xf7c] ss:$52 sps:$4 sm:$0xff]  }
  0xe0   :  { %v311_v51 = vmax.f32 %v183_v42, 0.0  ;;  %v313_v54 = vmax.f32 %v224_v47, 0.0  ;;  %v25785_v38 = vld [vmem:[%s38769_s3 + $0xf78] ss:$52 sps:$4 sm:$0xff]   ;;  %v25790_v39 = vld [vmem:[%s38769_s3 + $0x95c] ss:$52 sps:$4 sm:$0xff]  }
  0xe1   :  { %v30061_v57 = vpack.c.bf16 %v312_v50, %v312_v50  ;;  %v30067_v60 = vpack.c.bf16 %v310_v46, %v310_v46  ;;  %v25788_v40 = vld [vmem:[%s38769_s3 + $0x958] ss:$52 sps:$4 sm:$0xff]   ;;  %v25791_v42 = vld [vmem:[%s38769_s3 + $0xfe0] ss:$52 sps:$4 sm:$0xff]   ;;  %v25797_v47 = vld [vmem:[%s38769_s3 + $0x1048] ss:$52 sps:$4 sm:$0xff]  }
  0xe2   :  { %v30063_v58 = vpack.c.bf16 %v311_v51, %v311_v51  ;;  %v30069_v61 = vpack.c.bf16 %v313_v54, %v313_v54  ;;  %v25793_v41 = vld [vmem:[%s38769_s3 + $0xfe4] ss:$52 sps:$4 sm:$0xff]   ;;  %v25794_v44 = vld [vmem:[%s38769_s3 + $0x9c0] ss:$52 sps:$4 sm:$0xff]   ;;  %v25800_v49 = vld [vmem:[%s38769_s3 + $0xa28] ss:$52 sps:$4 sm:$0xff]  }
  0xe3   :  { %v25796_v43 = vld [vmem:[%s38769_s3 + $0x9c4] ss:$52 sps:$4 sm:$0xff]   ;;  %v25799_v46 = vld [vmem:[%s38769_s3 + $0x104c] ss:$52 sps:$4 sm:$0xff]   ;;  %v25805_v50 = vld [vmem:[%s38769_s3 + $0x10b4] ss:$52 sps:$4 sm:$0xff]  }
  0xe4   :  { %5547 = vmatprep.mubr.bf16.mxu0 %v30063_v58  ;;  %v30075_v63 = vpop.f32.mrb[4].mxu0  ;;  %5752 = vmatprep.mubr.bf16.mxu1 %v30069_v61  ;;  %v30082_v2 = vpop.f32.mrb[4].mxu1  ;;  %v25802_v48 = vld [vmem:[%s38769_s3 + $0xa2c] ss:$52 sps:$4 sm:$0xff]   ;;  %v25803_v51 = vld [vmem:[%s38769_s3 + $0x10b0] ss:$52 sps:$4 sm:$0xff]  }
  0xe5   :  { %5548 = vmatmul.mubr.bf16.vlgmr.msra.gmra.mrb[8].mxu0 %v30067_v60  ;;  %v264_v1 = vpop.f32.mrb[5].mxu0  ;;  %5753 = vmatmul.mubr.bf16.vlgmr.msra.gmra.mrb[8].mxu1 %v30061_v57  ;;  %v30085_v6 = vpop.f32.mrb[5].mxu1  ;;  %v25806_v53 = vld [vmem:[%s38769_s3 + $0xa90] ss:$52 sps:$4 sm:$0xff]  }
  0xe6   :  { %5557 = vmatpush1.bf16.msra.mxu0 %v25746_v52  ;;  %v265_v4 = vadd.f32 %v264_v1, %v68_v59  ;;  %v266_v5 = vpop.f32.mrb[6].mxu0  ;;  %5762 = vmatpush1.bf16.msra.mxu1 %v25749_v55  ;;  %v307_v13 = vpop.f32.mrb[6].mxu1  ;;  %v25808_v52 = vld [vmem:[%s38769_s3 + $0xa94] ss:$52 sps:$4 sm:$0xff]   ;;  %v25811_v54 = vld [vmem:[%s38769_s3 + $0x111c] ss:$52 sps:$4 sm:$0xff]  }
  0xe7   :  { %5558 = vmatprep.subr.bf16.mxu0 %v25754_v56  ;;  %v267_v9 = vpop.f32.mrb[7].mxu0  ;;  %5763 = vmatprep.subr.bf16.mxu1 %v25757_v62  ;;  %v308_v15 = vpop.f32.mrb[7].mxu1  ;;  %v25809_v55 = vld [vmem:[%s38769_s3 + $0x1118] ss:$52 sps:$4 sm:$0xff]   ;;  %v25814_v56 = vld [vmem:[%s38769_s3 + $0xafc] ss:$52 sps:$4 sm:$0xff]  }
  0xe8   :  { %5588 = vmatprep.mubr.bf16.mxu0 %v30069_v61  ;;  %v315_v12 = vmax.f32 %v265_v4, 0.0  ;;  %v25812_v59 = vld [vmem:[%s38769_s3 + $0xaf8] ss:$52 sps:$4 sm:$0xff]   ;;  %v25818_v4 = vld [vmem:[%s38769_s3 + $0xb60] ss:$52 sps:$4 sm:$0xff]  }
  0xe9   :  { %v25817_v62 = vld [vmem:[%s38769_s3 + $0x1184] ss:$52 sps:$4 sm:$0xff]   ;;  %v25823_v5 = vld [vmem:[%s38769_s3 + $0x11ec] ss:$52 sps:$4 sm:$0xff]  }
  0xea   :  { %5559 = vmatpush1.bf16.msra.mxu0 %v25752_v0  ;;  %v30100_v14 = vpack.c.bf16 %v315_v12, %v315_v12  ;;  %5764 = vmatpush1.bf16.msra.mxu1 %v25755_v7  ;;  %v25815_v0 = vld [vmem:[%s38769_s3 + $0x1180] ss:$52 sps:$4 sm:$0xff]   ;;  %v25820_v1 = vld [vmem:[%s38769_s3 + $0xb64] ss:$52 sps:$4 sm:$0xff]   ;;  %v30224_v7 = vsub.s32 4, %v30022_v27  ;;  %v30239_v12 = vsub.s32 7, %v30022_v27 }
  0xeb   :  { %5560 = vmatprep.subr.bf16.mxu0 %v25760_v8  ;;  %5765 = vmatprep.subr.bf16.mxu1 %v25763_v11  ;;  %v25821_v8 = vld [vmem:[%s38769_s3 + $0x11e8] ss:$52 sps:$4 sm:$0xff]   ;;  %v25826_v9 = vld [vmem:[%s38769_s3 + $0xbcc] ss:$52 sps:$4 sm:$0xff]   ;;  %v25827_v15 = vld [vmem:[%s38769_s3 + $0x1250] ss:$52 sps:$4 sm:$0xff]  }
  0xec   :  { %5793 = vmatprep.mubr.bf16.mxu1 %v30100_v14  ;;  %v25829_v11 = vld [vmem:[%s38769_s3 + $0x1254] ss:$52 sps:$4 sm:$0xff]   ;;  %v64_v13 = vrot.slane %v30027_v28, %v30224_v7 }
  0xee   :  { %5561 = vmatpush1.bf16.msra.mxu0 %v25758_v10  ;;  %5766 = vmatpush1.bf16.msra.mxu1 %v25761_v16  ;;  %v25824_v10 = vld [vmem:[%s38769_s3 + $0xbc8] ss:$52 sps:$4 sm:$0xff]  }
  0xef   :  { %5562 = vmatprep.subr.bf16.mxu0 %v25766_v17  ;;  %5767 = vmatprep.subr.bf16.mxu1 %v25769_v19  ;;  %v25832_v16 = vld [vmem:[%s38769_s3 + $0xc34] ss:$52 sps:$4 sm:$0xff]   ;;  %v25830_v17 = vld [vmem:[%s38769_s3 + $0xc30] ss:$52 sps:$4 sm:$0xff]   ;;  %v76_v19 = vrot.slane %v30027_v28, %v30239_v12 }
  0xf0   :  { %v25841_v28 = vld [vmem:[%s38769_s3 + $0x1324] ss:$52 sps:$4 sm:$0xff]  }
  0xf2   :  { %5563 = vmatpush1.bf16.msra.mxu0 %v25764_v18  ;;  %5768 = vmatpush1.bf16.msra.mxu1 %v25767_v20  ;;  %v25835_v18 = vld [vmem:[%s38769_s3 + $0x12bc] ss:$52 sps:$4 sm:$0xff]   ;;  %v263_v20 = vadd.f32 %v30075_v63, %v64_v13  ;;  %v306_v63 = vadd.f32 %v30085_v6, %v76_v19  ;;  %v25842_v6 = vld [vmem:[%s38769_s3 + $0xd00] ss:$52 sps:$4 sm:$0xff]   ;;  %v25892_v13 = vld [vmem:[%s38769_s3 + $0x1044] ss:$52 sps:$4 sm:$0xff]  }
  0xf3   :  { %5564 = vmatprep.subr.bf16.mxu0 %v25772_v21  ;;  %5769 = vmatprep.subr.bf16.mxu1 %v25775_v23  ;;  %v25833_v21 = vld [vmem:[%s38769_s3 + $0x12b8] ss:$52 sps:$4 sm:$0xff]   ;;  %v25896_v19 = vld [vmem:[%s38769_s3 + $0x10a8] ss:$52 sps:$4 sm:$0xff]  }
  0xf4   :  { %v25836_v23 = vld [vmem:[%s38769_s3 + $0xc98] ss:$52 sps:$4 sm:$0xff]  }
  0xf6   :  { %5565 = vmatpush1.bf16.msra.mxu0 %v25770_v22  ;;  %5770 = vmatpush1.bf16.msra.mxu1 %v25773_v24  ;;  %v25838_v22 = vld [vmem:[%s38769_s3 + $0xc9c] ss:$52 sps:$4 sm:$0xff]   ;;  %v314_v24 = vmax.f32 %v263_v20, 0.0  ;;  %v25901_v20 = vld [vmem:[%s38769_s3 + $0x1734] ss:$52 sps:$4 sm:$0xff]  }
  0xf7   :  { %5566 = vmatprep.subr.bf16.mxu0 %v25778_v25  ;;  %5771 = vmatprep.subr.bf16.mxu1 %v25781_v33  ;;  %v25839_v25 = vld [vmem:[%s38769_s3 + $0x1320] ss:$52 sps:$4 sm:$0xff]  }
  0xf8   :  { %v25847_v33 = vld [vmem:[%s38769_s3 + $0x138c] ss:$52 sps:$4 sm:$0xff]  }
  0xfa   :  { %5567 = vmatpush1.bf16.msra.mxu0 %v25776_v26  ;;  %5772 = vmatpush1.bf16.msra.mxu1 %v25779_v34  ;;  %v25844_v26 = vld [vmem:[%s38769_s3 + $0xd04] ss:$52 sps:$4 sm:$0xff]   ;;  %v25845_v34 = vld [vmem:[%s38769_s3 + $0x1388] ss:$52 sps:$4 sm:$0xff]  }
  0xfb   :  { %5568 = vmatprep.subr.bf16.mxu0 %v25784_v35  ;;  %5773 = vmatprep.subr.bf16.mxu1 %v25787_v37  ;;  %v25850_v35 = vld [vmem:[%s38769_s3 + $0xd6c] ss:$52 sps:$4 sm:$0xff]   ;;  %v30289_v37 = vpack.c.bf16 %v314_v24, %v314_v24  ;;  %v25910_v24 = vld [vmem:[%s38769_s3 + $0x117c] ss:$52 sps:$4 sm:$0xff]  }
  0xfe   :  { %5569 = vmatpush1.bf16.msra.mxu0 %v25782_v36  ;;  %5774 = vmatpush1.bf16.msra.mxu1 %v25785_v38  ;;  %v317_v36 = vmax.f32 %v306_v63, 0.0  ;;  %v25848_v38 = vld [vmem:[%s38769_s3 + $0xd68] ss:$52 sps:$4 sm:$0xff]   ;;  %v25905_v63 = vld [vmem:[%s38769_s3 + $0x1798] ss:$52 sps:$4 sm:$0xff]  }
  0xff   :  { %5570 = vmatprep.subr.bf16.mxu0 %v25790_v39  ;;  %5775 = vmatprep.subr.bf16.mxu1 %v25793_v41  ;;  %v25853_v39 = vld [vmem:[%s38769_s3 + $0x13f4] ss:$52 sps:$4 sm:$0xff]  }
 0x100   :  { %v25856_v41 = vld [vmem:[%s38769_s3 + $0xdd4] ss:$52 sps:$4 sm:$0xff]  }
 0x102   :  { %5571 = vmatpush1.bf16.msra.mxu0 %v25788_v40  ;;  %5776 = vmatpush1.bf16.msra.mxu1 %v25791_v42  ;;  %v25851_v40 = vld [vmem:[%s38769_s3 + $0x13f0] ss:$52 sps:$4 sm:$0xff]   ;;  %v30304_v42 = vpack.c.bf16 %v317_v36, %v317_v36  ;;  %v30436_v36 = vsub.s32 6, %v30022_v27  ;;  %v25925_v27 = vld [vmem:[%s38769_s3 + $0x18d4] ss:$52 sps:$4 sm:$0xff]  }
 0x103   :  { %5572 = vmatprep.subr.bf16.mxu0 %v25796_v43  ;;  %5777 = vmatprep.subr.bf16.mxu1 %v25799_v46  ;;  %v25859_v43 = vld [vmem:[%s38769_s3 + $0x145c] ss:$52 sps:$4 sm:$0xff]   ;;  %v25857_v46 = vld [vmem:[%s38769_s3 + $0x1458] ss:$52 sps:$4 sm:$0xff]  }
 0x106   :  { %5573 = vmatpush1.bf16.msra.mxu0 %v25794_v44  ;;  %5778 = vmatpush1.bf16.msra.mxu1 %v25797_v47  ;;  %v25854_v44 = vld [vmem:[%s38769_s3 + $0xdd0] ss:$52 sps:$4 sm:$0xff]  }
 0x107   :  { %5574 = vmatprep.subr.bf16.mxu0 %v25802_v48  ;;  %5779 = vmatprep.subr.bf16.mxu1 %v25805_v50  ;;  %v25862_v47 = vld [vmem:[%s38769_s3 + $0xe3c] ss:$52 sps:$4 sm:$0xff]   ;;  %v25860_v48 = vld [vmem:[%s38769_s3 + $0xe38] ss:$52 sps:$4 sm:$0xff]   ;;  %v25863_v50 = vld [vmem:[%s38769_s3 + $0x14c0] ss:$52 sps:$4 sm:$0xff]  }
 0x10a   :  { %5575 = vmatpush1.bf16.msra.mxu0 %v25800_v49  ;;  %5780 = vmatpush1.bf16.msra.mxu1 %v25803_v51  ;;  %v25865_v49 = vld [vmem:[%s38769_s3 + $0x14c4] ss:$52 sps:$4 sm:$0xff]  }
 0x10b   :  { %5576 = vmatprep.subr.bf16.mxu0 %v25808_v52  ;;  %5781 = vmatprep.subr.bf16.mxu1 %v25811_v54  ;;  %v25868_v51 = vld [vmem:[%s38769_s3 + $0xea4] ss:$52 sps:$4 sm:$0xff]   ;;  %v25866_v52 = vld [vmem:[%s38769_s3 + $0xea0] ss:$52 sps:$4 sm:$0xff]   ;;  %v25869_v54 = vld [vmem:[%s38769_s3 + $0x1528] ss:$52 sps:$4 sm:$0xff]  }
 0x10e   :  { %5577 = vmatpush1.bf16.msra.mxu0 %v25806_v53  ;;  %5782 = vmatpush1.bf16.msra.mxu1 %v25809_v55  ;;  %v25871_v53 = vld [vmem:[%s38769_s3 + $0x152c] ss:$52 sps:$4 sm:$0xff]  }
 0x10f   :  { %5578 = vmatprep.subr.bf16.mxu0 %v25814_v56  ;;  %5783 = vmatprep.subr.bf16.mxu1 %v25817_v62  ;;  %v25874_v55 = vld [vmem:[%s38769_s3 + $0xf0c] ss:$52 sps:$4 sm:$0xff]   ;;  %v25872_v56 = vld [vmem:[%s38769_s3 + $0xf08] ss:$52 sps:$4 sm:$0xff]   ;;  %v25875_v62 = vld [vmem:[%s38769_s3 + $0x1590] ss:$52 sps:$4 sm:$0xff]  }
 0x112   :  { %5579 = vmatpush1.bf16.msra.mxu0 %v25812_v59  ;;  %5784 = vmatpush1.bf16.msra.mxu1 %v25815_v0  ;;  %v25877_v59 = vld [vmem:[%s38769_s3 + $0x1594] ss:$52 sps:$4 sm:$0xff]  }
 0x113   :  { %5580 = vmatprep.subr.bf16.mxu0 %v25820_v1  ;;  %5785 = vmatprep.subr.bf16.mxu1 %v25823_v5  ;;  %v25880_v0 = vld [vmem:[%s38769_s3 + $0xf74] ss:$52 sps:$4 sm:$0xff]   ;;  %v25878_v1 = vld [vmem:[%s38769_s3 + $0xf70] ss:$52 sps:$4 sm:$0xff]   ;;  %v25881_v5 = vld [vmem:[%s38769_s3 + $0x15f8] ss:$52 sps:$4 sm:$0xff]  }
 0x116   :  { %5581 = vmatpush1.bf16.msra.mxu0 %v25818_v4  ;;  %5786 = vmatpush1.bf16.msra.mxu1 %v25821_v8  ;;  %v25883_v4 = vld [vmem:[%s38769_s3 + $0x15fc] ss:$52 sps:$4 sm:$0xff]  }
 0x117   :  { %5582 = vmatprep.subr.bf16.mxu0 %v25826_v9  ;;  %5787 = vmatprep.subr.bf16.mxu1 %v25829_v11  ;;  %v25886_v8 = vld [vmem:[%s38769_s3 + $0xfdc] ss:$52 sps:$4 sm:$0xff]   ;;  %v25884_v9 = vld [vmem:[%s38769_s3 + $0xfd8] ss:$52 sps:$4 sm:$0xff]   ;;  %v25887_v11 = vld [vmem:[%s38769_s3 + $0x1660] ss:$52 sps:$4 sm:$0xff]  }
 0x11a   :  { %5583 = vmatpush1.bf16.msra.mxu0 %v25824_v10  ;;  %5788 = vmatpush1.bf16.msra.mxu1 %v25827_v15  ;;  %v25889_v10 = vld [vmem:[%s38769_s3 + $0x1664] ss:$52 sps:$4 sm:$0xff]   ;;  %v25890_v15 = vld [vmem:[%s38769_s3 + $0x1040] ss:$52 sps:$4 sm:$0xff]  }
 0x11b   :  { %5584 = vmatprep.subr.bf16.mxu0 %v25832_v16  ;;  %5789 = vmatprep.subr.bf16.mxu1 %v25835_v18  ;;  %v25895_v16 = vld [vmem:[%s38769_s3 + $0x16cc] ss:$52 sps:$4 sm:$0xff]  }
 0x11c   :  { %v25898_v18 = vld [vmem:[%s38769_s3 + $0x10ac] ss:$52 sps:$4 sm:$0xff]  }
 0x11e   :  { %5585 = vmatpush1.bf16.msra.mxu0 %v25830_v17  ;;  %5790 = vmatpush1.bf16.msra.mxu1 %v25833_v21  ;;  %v25893_v17 = vld [vmem:[%s38769_s3 + $0x16c8] ss:$52 sps:$4 sm:$0xff]   ;;  %v25899_v21 = vld [vmem:[%s38769_s3 + $0x1730] ss:$52 sps:$4 sm:$0xff]  }
 0x11f   :  { %5586 = vmatprep.subr.bf16.mxu0 %v25838_v22  ;;  %5791 = vmatprep.subr.bf16.mxu1 %v25841_v28  ;;  %v25904_v22 = vld [vmem:[%s38769_s3 + $0x1114] ss:$52 sps:$4 sm:$0xff]   ;;  %v25907_v28 = vld [vmem:[%s38769_s3 + $0x179c] ss:$52 sps:$4 sm:$0xff]  }
 0x122   :  { %5587 = vmatpush1.bf16.msra.mxu0 %v25836_v23  ;;  %5792 = vmatpush1.bf16.msra.mxu1 %v25839_v25  ;;  %v25902_v23 = vld [vmem:[%s38769_s3 + $0x1110] ss:$52 sps:$4 sm:$0xff]   ;;  %v25908_v25 = vld [vmem:[%s38769_s3 + $0x1178] ss:$52 sps:$4 sm:$0xff]  }
 0x123   :  { %5597 = vmatprep.subr.bf16.mxu0 %v25844_v26  ;;  %5802 = vmatprep.subr.bf16.mxu1 %v25847_v33  ;;  %v25913_v26 = vld [vmem:[%s38769_s3 + $0x1804] ss:$52 sps:$4 sm:$0xff]   ;;  %v25911_v33 = vld [vmem:[%s38769_s3 + $0x1800] ss:$52 sps:$4 sm:$0xff]  }
 0x125   :  { %5589 = vmatmul.mubr.bf16.vlgmr.msra.gmra.mrb[8].mxu0 %v30061_v57  ;;  %5794 = vmatmul.mubr.bf16.vlgmr.msra.gmra.mrb[8].mxu1 %v30289_v37 }
 0x126   :  { %5598 = vmatpush1.bf16.msra.mxu0 %v25842_v6  ;;  %5803 = vmatpush1.bf16.msra.mxu1 %v25845_v34  ;;  %v25916_v6 = vld [vmem:[%s38769_s3 + $0x11e4] ss:$52 sps:$4 sm:$0xff]   ;;  %v25914_v34 = vld [vmem:[%s38769_s3 + $0x11e0] ss:$52 sps:$4 sm:$0xff]  }
 0x127   :  { %5599 = vmatprep.subr.bf16.mxu0 %v25850_v35  ;;  %5804 = vmatprep.subr.bf16.mxu1 %v25853_v39  ;;  %v25919_v35 = vld [vmem:[%s38769_s3 + $0x186c] ss:$52 sps:$4 sm:$0xff]  }
 0x128   :  { %5629 = vmatprep.mubr.bf16.mxu0 %v30100_v14  ;;  %5834 = vmatprep.mubr.bf16.mxu1 %v30304_v42  ;;  %v25922_v39 = vld [vmem:[%s38769_s3 + $0x124c] ss:$52 sps:$4 sm:$0xff]  }
 0x12a   :  { %5600 = vmatpush1.bf16.msra.mxu0 %v25848_v38  ;;  %5805 = vmatpush1.bf16.msra.mxu1 %v25851_v40  ;;  %v25917_v38 = vld [vmem:[%s38769_s3 + $0x1868] ss:$52 sps:$4 sm:$0xff]  }
 0x12b   :  { %5601 = vmatprep.subr.bf16.mxu0 %v25856_v41  ;;  %5806 = vmatprep.subr.bf16.mxu1 %v25859_v43  ;;  %v25920_v40 = vld [vmem:[%s38769_s3 + $0x1248] ss:$52 sps:$4 sm:$0xff]   ;;  %v29722_v41 = vld [vmem:[%s38770_s2] sm:$0xff] }
 0x12c   :  { %v72_v43 = vrot.slane %v29722_v41, %v30436_v36  ;;  %v25991_v41 = vld [vmem:[%s38769_s3 + $0x35c] ss:$52 sps:$4 sm:$0xff]  }
 0x12e   :  { %5602 = vmatpush1.bf16.msra.mxu0 %v25854_v44  ;;  %5807 = vmatpush1.bf16.msra.mxu1 %v25857_v46  ;;  %v25923_v44 = vld [vmem:[%s38769_s3 + $0x18d0] ss:$52 sps:$4 sm:$0xff]   ;;  %v25928_v46 = vld [vmem:[%s38769_s3 + $0x12b4] ss:$52 sps:$4 sm:$0xff]  }
 0x12f   :  { %5603 = vmatprep.subr.bf16.mxu0 %v25862_v47  ;;  %5808 = vmatprep.subr.bf16.mxu1 %v25865_v49  ;;  %v25926_v47 = vld [vmem:[%s38769_s3 + $0x12b0] ss:$52 sps:$4 sm:$0xff]   ;;  %v304_v49 = vadd.f32 %v30082_v2, %v72_v43  ;;  %v25989_v43 = vld [vmem:[%s38769_s3 + $0x358] ss:$52 sps:$4 sm:$0xff]  }
 0x131   :  { %v316_v2 = vmax.f32 %v304_v49, 0.0  ;;  %v26000_v49 = vld [vmem:[%s38769_s3 + $0x1794] ss:$52 sps:$4 sm:$0xff]  }
 0x132   :  { %5604 = vmatpush1.bf16.msra.mxu0 %v25860_v48  ;;  %5809 = vmatpush1.bf16.msra.mxu1 %v25863_v50  ;;  %v25931_v48 = vld [vmem:[%s38769_s3 + $0x193c] ss:$52 sps:$4 sm:$0xff]   ;;  %v25929_v50 = vld [vmem:[%s38769_s3 + $0x1938] ss:$52 sps:$4 sm:$0xff]  }
 0x133   :  { %5605 = vmatprep.subr.bf16.mxu0 %v25868_v51  ;;  %5810 = vmatprep.subr.bf16.mxu1 %v25871_v53  ;;  %v25934_v51 = vld [vmem:[%s38769_s3 + $0x131c] ss:$52 sps:$4 sm:$0xff]   ;;  %v25937_v53 = vld [vmem:[%s38769_s3 + $0x19a4] ss:$52 sps:$4 sm:$0xff]  }
 0x136   :  { %5606 = vmatpush1.bf16.msra.mxu0 %v25866_v52  ;;  %5811 = vmatpush1.bf16.msra.mxu1 %v25869_v54  ;;  %v25932_v52 = vld [vmem:[%s38769_s3 + $0x1318] ss:$52 sps:$4 sm:$0xff]   ;;  %v25935_v54 = vld [vmem:[%s38769_s3 + $0x19a0] ss:$52 sps:$4 sm:$0xff]  }
 0x137   :  { %5607 = vmatprep.subr.bf16.mxu0 %v25874_v55  ;;  %5812 = vmatprep.subr.bf16.mxu1 %v25877_v59  ;;  %v25940_v55 = vld [vmem:[%s38769_s3 + $0x1384] ss:$52 sps:$4 sm:$0xff]   ;;  %v25938_v59 = vld [vmem:[%s38769_s3 + $0x1380] ss:$52 sps:$4 sm:$0xff]  }
 0x13a   :  { %5608 = vmatpush1.bf16.msra.mxu0 %v25872_v56  ;;  %5813 = vmatpush1.bf16.msra.mxu1 %v25875_v62  ;;  %v25943_v56 = vld [vmem:[%s38769_s3 + $0x1c] ss:$52 sps:$4 sm:$0xff]   ;;  %v25941_v62 = vld [vmem:[%s38769_s3 + $0x18] ss:$52 sps:$4 sm:$0xff]  }
 0x13b   :  { %5609 = vmatprep.subr.bf16.mxu0 %v25880_v0  ;;  %5814 = vmatprep.subr.bf16.mxu1 %v25883_v4  ;;  %v30494_v0 = vpack.c.bf16 %v316_v2, %v316_v2  ;;  %v25949_v4 = vld [vmem:[%s38769_s3 + $0x84] ss:$52 sps:$4 sm:$0xff]  }
 0x13c   :  { %v26004_v2 = vld [vmem:[%s38769_s3 + $0x17f8] ss:$52 sps:$4 sm:$0xff]  }
 0x13e   :  { %5610 = vmatpush1.bf16.msra.mxu0 %v25878_v1  ;;  %5815 = vmatpush1.bf16.msra.mxu1 %v25881_v5  ;;  %v25946_v1 = vld [vmem:[%s38769_s3 + $0x13ec] ss:$52 sps:$4 sm:$0xff]   ;;  %v25944_v5 = vld [vmem:[%s38769_s3 + $0x13e8] ss:$52 sps:$4 sm:$0xff]  }
 0x13f   :  { %5611 = vmatprep.subr.bf16.mxu0 %v25886_v8  ;;  %5816 = vmatprep.subr.bf16.mxu1 %v25889_v10  ;;  %v25947_v8 = vld [vmem:[%s38769_s3 + $0x80] ss:$52 sps:$4 sm:$0xff]  }
 0x140   :  { %v25955_v10 = vld [vmem:[%s38769_s3 + $0xec] ss:$52 sps:$4 sm:$0xff]  }
 0x142   :  { %5612 = vmatpush1.bf16.msra.mxu0 %v25884_v9  ;;  %5817 = vmatpush1.bf16.msra.mxu1 %v25887_v11  ;;  %v25952_v9 = vld [vmem:[%s38769_s3 + $0x1454] ss:$52 sps:$4 sm:$0xff]   ;;  %v25950_v11 = vld [vmem:[%s38769_s3 + $0x1450] ss:$52 sps:$4 sm:$0xff]  }
 0x143   :  { %5613 = vmatprep.subr.bf16.mxu0 %v25892_v13  ;;  %5818 = vmatprep.subr.bf16.mxu1 %v25895_v16  ;;  %v25953_v13 = vld [vmem:[%s38769_s3 + $0xe8] ss:$52 sps:$4 sm:$0xff]   ;;  %v25956_v16 = vld [vmem:[%s38769_s3 + $0x14b8] ss:$52 sps:$4 sm:$0xff]  }
 0x146   :  { %5614 = vmatpush1.bf16.msra.mxu0 %v25890_v15  ;;  %5819 = vmatpush1.bf16.msra.mxu1 %v25893_v17  ;;  %v25958_v15 = vld [vmem:[%s38769_s3 + $0x14bc] ss:$52 sps:$4 sm:$0xff]   ;;  %v25961_v17 = vld [vmem:[%s38769_s3 + $0x154] ss:$52 sps:$4 sm:$0xff]  }
 0x147   :  { %5615 = vmatprep.subr.bf16.mxu0 %v25898_v18  ;;  %5820 = vmatprep.subr.bf16.mxu1 %v25901_v20  ;;  %v25959_v18 = vld [vmem:[%s38769_s3 + $0x150] ss:$52 sps:$4 sm:$0xff]   ;;  %v25962_v20 = vld [vmem:[%s38769_s3 + $0x1520] ss:$52 sps:$4 sm:$0xff]  }
 0x14a   :  { %5616 = vmatpush1.bf16.msra.mxu0 %v25896_v19  ;;  %5821 = vmatpush1.bf16.msra.mxu1 %v25899_v21  ;;  %v25964_v19 = vld [vmem:[%s38769_s3 + $0x1524] ss:$52 sps:$4 sm:$0xff]   ;;  %v25967_v21 = vld [vmem:[%s38769_s3 + $0x1bc] ss:$52 sps:$4 sm:$0xff]  }
 0x14b   :  { %5617 = vmatprep.subr.bf16.mxu0 %v25904_v22  ;;  %5822 = vmatprep.subr.bf16.mxu1 %v25907_v28  ;;  %v25965_v22 = vld [vmem:[%s38769_s3 + $0x1b8] ss:$52 sps:$4 sm:$0xff]   ;;  %v25968_v28 = vld [vmem:[%s38769_s3 + $0x1588] ss:$52 sps:$4 sm:$0xff]  }
 0x14e   :  { %5618 = vmatpush1.bf16.msra.mxu0 %v25902_v23  ;;  %5823 = vmatpush1.bf16.msra.mxu1 %v25905_v63  ;;  %v25970_v23 = vld [vmem:[%s38769_s3 + $0x158c] ss:$52 sps:$4 sm:$0xff]   ;;  %v25973_v63 = vld [vmem:[%s38769_s3 + $0x224] ss:$52 sps:$4 sm:$0xff]  }
 0x14f   :  { %5619 = vmatprep.subr.bf16.mxu0 %v25910_v24  ;;  %5824 = vmatprep.subr.bf16.mxu1 %v25913_v26  ;;  %v25971_v24 = vld [vmem:[%s38769_s3 + $0x220] ss:$52 sps:$4 sm:$0xff]   ;;  %v25974_v26 = vld [vmem:[%s38769_s3 + $0x15f0] ss:$52 sps:$4 sm:$0xff]  }
 0x152   :  { %5620 = vmatpush1.bf16.msra.mxu0 %v25908_v25  ;;  %5825 = vmatpush1.bf16.msra.mxu1 %v25911_v33  ;;  %v25976_v25 = vld [vmem:[%s38769_s3 + $0x15f4] ss:$52 sps:$4 sm:$0xff]   ;;  %v25979_v33 = vld [vmem:[%s38769_s3 + $0x28c] ss:$52 sps:$4 sm:$0xff]  }
 0x153   :  { %5621 = vmatprep.subr.bf16.mxu0 %v25916_v6  ;;  %5826 = vmatprep.subr.bf16.mxu1 %v25919_v35  ;;  %v25977_v6 = vld [vmem:[%s38769_s3 + $0x288] ss:$52 sps:$4 sm:$0xff]   ;;  %v25980_v35 = vld [vmem:[%s38769_s3 + $0x1658] ss:$52 sps:$4 sm:$0xff]  }
 0x156   :  { %5622 = vmatpush1.bf16.msra.mxu0 %v25914_v34  ;;  %5827 = vmatpush1.bf16.msra.mxu1 %v25917_v38  ;;  %v25982_v34 = vld [vmem:[%s38769_s3 + $0x165c] ss:$52 sps:$4 sm:$0xff]   ;;  %v25985_v38 = vld [vmem:[%s38769_s3 + $0x2f4] ss:$52 sps:$4 sm:$0xff]  }
 0x157   :  { %5623 = vmatprep.subr.bf16.mxu0 %v25922_v39  ;;  %5828 = vmatprep.subr.bf16.mxu1 %v25925_v27  ;;  %v25983_v39 = vld [vmem:[%s38769_s3 + $0x2f0] ss:$52 sps:$4 sm:$0xff]   ;;  %v25986_v27 = vld [vmem:[%s38769_s3 + $0x16c0] ss:$52 sps:$4 sm:$0xff]  }
 0x15a   :  { %5624 = vmatpush1.bf16.msra.mxu0 %v25920_v40  ;;  %5829 = vmatpush1.bf16.msra.mxu1 %v25923_v44  ;;  %v25988_v40 = vld [vmem:[%s38769_s3 + $0x16c4] ss:$52 sps:$4 sm:$0xff]   ;;  %v25994_v44 = vld [vmem:[%s38769_s3 + $0x172c] ss:$52 sps:$4 sm:$0xff]  }
 0x15b   :  { %5625 = vmatprep.subr.bf16.mxu0 %v25928_v46  ;;  %5830 = vmatprep.subr.bf16.mxu1 %v25931_v48  ;;  %v25992_v46 = vld [vmem:[%s38769_s3 + $0x1728] ss:$52 sps:$4 sm:$0xff]   ;;  %v25995_v48 = vld [vmem:[%s38769_s3 + $0x3c0] ss:$52 sps:$4 sm:$0xff]  }
 0x15e   :  { %5626 = vmatpush1.bf16.msra.mxu0 %v25926_v47  ;;  %5831 = vmatpush1.bf16.msra.mxu1 %v25929_v50  ;;  %v25997_v47 = vld [vmem:[%s38769_s3 + $0x3c4] ss:$52 sps:$4 sm:$0xff]  }
 0x15f   :  { %5627 = vmatprep.subr.bf16.mxu0 %v25934_v51  ;;  %5832 = vmatprep.subr.bf16.mxu1 %v25937_v53  ;;  %v25998_v50 = vld [vmem:[%s38769_s3 + $0x1790] ss:$52 sps:$4 sm:$0xff]   ;;  %v26003_v51 = vld [vmem:[%s38769_s3 + $0x42c] ss:$52 sps:$4 sm:$0xff]  }
 0x160   :  { %v26006_v53 = vld [vmem:[%s38769_s3 + $0x17fc] ss:$52 sps:$4 sm:$0xff]  }
 0x162   :  { %5628 = vmatpush1.bf16.msra.mxu0 %v25932_v52  ;;  %5833 = vmatpush1.bf16.msra.mxu1 %v25935_v54  ;;  %v26001_v52 = vld [vmem:[%s38769_s3 + $0x428] ss:$52 sps:$4 sm:$0xff]  }
 0x163   :  { %5638 = vmatprep.subr.bf16.mxu0 %v25940_v55  ;;  %6007 = vmatprep.subr.bf16.mxu1 %v25943_v56  ;;  %v26009_v54 = vld [vmem:[%s38769_s3 + $0x494] ss:$52 sps:$4 sm:$0xff]   ;;  %v26007_v55 = vld [vmem:[%s38769_s3 + $0x490] ss:$52 sps:$4 sm:$0xff]  }
 0x164   :  { %v26012_v56 = vld [vmem:[%s38769_s3 + $0x1864] ss:$52 sps:$4 sm:$0xff]  }
 0x165   :  { %5630 = vmatmul.mubr.bf16.vlgmr.msra.gmra.mrb[8].mxu0 %v30289_v37  ;;  %5835 = vmatmul.mubr.bf16.vlgmr.msra.gmra.mrb[8].mxu1 %v30494_v0 }
 0x166   :  { %5639 = vmatpush1.bf16.msra.mxu0 %v25938_v59  ;;  %6008 = vmatpush1.bf16.msra.mxu1 %v25941_v62  ;;  %v26010_v59 = vld [vmem:[%s38769_s3 + $0x1860] ss:$52 sps:$4 sm:$0xff]   ;;  %v26015_v62 = vld [vmem:[%s38769_s3 + $0x4fc] ss:$52 sps:$4 sm:$0xff]  }
 0x167   :  { %6039 = vmatprep.mubr.bf16.mxu1 %v30063_v58  ;;  %5640 = vmatprep.subr.bf16.mxu0 %v25946_v1  ;;  %v26013_v1 = vld [vmem:[%s38769_s3 + $0x4f8] ss:$52 sps:$4 sm:$0xff]  }
 0x168   :  { %6009 = vmatprep.subr.bf16.mxu1 %v25949_v4  ;;  %5670 = vmatprep.mubr.bf16.mxu0 %v30304_v42  ;;  %v26018_v4 = vld [vmem:[%s38769_s3 + $0x18cc] ss:$52 sps:$4 sm:$0xff]  }
 0x16a   :  { %5641 = vmatpush1.bf16.msra.mxu0 %v25944_v5  ;;  %6010 = vmatpush1.bf16.msra.mxu1 %v25947_v8  ;;  %v26016_v5 = vld [vmem:[%s38769_s3 + $0x18c8] ss:$52 sps:$4 sm:$0xff]   ;;  %v26021_v8 = vld [vmem:[%s38769_s3 + $0x564] ss:$52 sps:$4 sm:$0xff]  }
 0x16b   :  { %5642 = vmatprep.subr.bf16.mxu0 %v25952_v9  ;;  %6011 = vmatprep.subr.bf16.mxu1 %v25955_v10  ;;  %v26019_v9 = vld [vmem:[%s38769_s3 + $0x560] ss:$52 sps:$4 sm:$0xff]  }
 0x16c   :  { %v26024_v10 = vld [vmem:[%s38769_s3 + $0x1934] ss:$52 sps:$4 sm:$0xff]  }
 0x16e   :  { %5643 = vmatpush1.bf16.msra.mxu0 %v25950_v11  ;;  %6012 = vmatpush1.bf16.msra.mxu1 %v25953_v13  ;;  %v26022_v11 = vld [vmem:[%s38769_s3 + $0x1930] ss:$52 sps:$4 sm:$0xff]   ;;  %v26027_v13 = vld [vmem:[%s38769_s3 + $0x5cc] ss:$52 sps:$4 sm:$0xff]  }
 0x16f   :  { %5644 = vmatprep.subr.bf16.mxu0 %v25958_v15  ;;  %6013 = vmatprep.subr.bf16.mxu1 %v25961_v17  ;;  %v26025_v15 = vld [vmem:[%s38769_s3 + $0x5c8] ss:$52 sps:$4 sm:$0xff]   ;;  %v26028_v17 = vld [vmem:[%s38769_s3 + $0x1998] ss:$52 sps:$4 sm:$0xff]  }
 0x172   :  { %5645 = vmatpush1.bf16.msra.mxu0 %v25956_v16  ;;  %6014 = vmatpush1.bf16.msra.mxu1 %v25959_v18  ;;  %v26030_v16 = vld [vmem:[%s38769_s3 + $0x199c] ss:$52 sps:$4 sm:$0xff]   ;;  %v26033_v18 = vld [vmem:[%s38769_s3 + $0x634] ss:$52 sps:$4 sm:$0xff]  }
 0x173   :  { %5646 = vmatprep.subr.bf16.mxu0 %v25964_v19  ;;  %6015 = vmatprep.subr.bf16.mxu1 %v25967_v21  ;;  %v26031_v19 = vld [vmem:[%s38769_s3 + $0x630] ss:$52 sps:$4 sm:$0xff]  }
 0x174   :  { %v26039_v21 = vld [vmem:[%s38769_s3 + $0x69c] ss:$52 sps:$4 sm:$0xff]  }
 0x176   :  { %5647 = vmatpush1.bf16.msra.mxu0 %v25962_v20  ;;  %6016 = vmatpush1.bf16.msra.mxu1 %v25965_v22  ;;  %v26036_v20 = vld [vmem:[%s38769_s3 + $0xc] ss:$52 sps:$4 sm:$0xff]   ;;  %v26034_v22 = vld [vmem:[%s38769_s3 + $0x8] ss:$52 sps:$4 sm:$0xff]  }
 0x177   :  { %5648 = vmatprep.subr.bf16.mxu0 %v25970_v23  ;;  %6017 = vmatprep.subr.bf16.mxu1 %v25973_v63  ;;  %v26037_v23 = vld [vmem:[%s38769_s3 + $0x698] ss:$52 sps:$4 sm:$0xff]   ;;  %v26040_v63 = vld [vmem:[%s38769_s3 + $0x70] ss:$52 sps:$4 sm:$0xff]  }
 0x17a   :  { %5649 = vmatpush1.bf16.msra.mxu0 %v25968_v28  ;;  %6018 = vmatpush1.bf16.msra.mxu1 %v25971_v24  ;;  %v26042_v28 = vld [vmem:[%s38769_s3 + $0x74] ss:$52 sps:$4 sm:$0xff]  }
 0x17b   :  { %5650 = vmatprep.subr.bf16.mxu0 %v25976_v25  ;;  %6019 = vmatprep.subr.bf16.mxu1 %v25979_v33  ;;  %v26043_v24 = vld [vmem:[%s38769_s3 + $0x700] ss:$52 sps:$4 sm:$0xff]   ;;  %v26045_v25 = vld [vmem:[%s38769_s3 + $0x704] ss:$52 sps:$4 sm:$0xff]  }
 0x17c   :  { %v26051_v33 = vld [vmem:[%s38769_s3 + $0x76c] ss:$52 sps:$4 sm:$0xff]  }
 0x17e   :  { %5651 = vmatpush1.bf16.msra.mxu0 %v25974_v26  ;;  %6020 = vmatpush1.bf16.msra.mxu1 %v25977_v6  ;;  %v26048_v26 = vld [vmem:[%s38769_s3 + $0xdc] ss:$52 sps:$4 sm:$0xff]   ;;  %v26046_v6 = vld [vmem:[%s38769_s3 + $0xd8] ss:$52 sps:$4 sm:$0xff]  }
 0x17f   :  { %5652 = vmatprep.subr.bf16.mxu0 %v25982_v34  ;;  %6021 = vmatprep.subr.bf16.mxu1 %v25985_v38  ;;  %v26049_v34 = vld [vmem:[%s38769_s3 + $0x768] ss:$52 sps:$4 sm:$0xff]   ;;  %v26052_v38 = vld [vmem:[%s38769_s3 + $0x140] ss:$52 sps:$4 sm:$0xff]  }
 0x182   :  { %5653 = vmatpush1.bf16.msra.mxu0 %v25980_v35  ;;  %6022 = vmatpush1.bf16.msra.mxu1 %v25983_v39  ;;  %v26054_v35 = vld [vmem:[%s38769_s3 + $0x144] ss:$52 sps:$4 sm:$0xff]   ;;  %v26057_v39 = vld [vmem:[%s38769_s3 + $0x7d4] ss:$52 sps:$4 sm:$0xff]  }
 0x183   :  { %5654 = vmatprep.subr.bf16.mxu0 %v25988_v40  ;;  %6023 = vmatprep.subr.bf16.mxu1 %v25991_v41  ;;  %v26055_v40 = vld [vmem:[%s38769_s3 + $0x7d0] ss:$52 sps:$4 sm:$0xff]   ;;  %v26058_v41 = vld [vmem:[%s38769_s3 + $0x1a8] ss:$52 sps:$4 sm:$0xff]  }
 0x186   :  { %5655 = vmatpush1.bf16.msra.mxu0 %v25986_v27  ;;  %6024 = vmatpush1.bf16.msra.mxu1 %v25989_v43  ;;  %v26060_v27 = vld [vmem:[%s38769_s3 + $0x1ac] ss:$52 sps:$4 sm:$0xff]   ;;  %v26063_v43 = vld [vmem:[%s38769_s3 + $0x83c] ss:$52 sps:$4 sm:$0xff]  }
 0x187   :  { %5656 = vmatprep.subr.bf16.mxu0 %v25994_v44  ;;  %6025 = vmatprep.subr.bf16.mxu1 %v25997_v47  ;;  %v26061_v44 = vld [vmem:[%s38769_s3 + $0x838] ss:$52 sps:$4 sm:$0xff]   ;;  %v26064_v47 = vld [vmem:[%s38769_s3 + $0x210] ss:$52 sps:$4 sm:$0xff]  }
 0x18a   :  { %5657 = vmatpush1.bf16.msra.mxu0 %v25992_v46  ;;  %6026 = vmatpush1.bf16.msra.mxu1 %v25995_v48  ;;  %v26066_v46 = vld [vmem:[%s38769_s3 + $0x214] ss:$52 sps:$4 sm:$0xff]   ;;  %v26069_v48 = vld [vmem:[%s38769_s3 + $0x8a4] ss:$52 sps:$4 sm:$0xff]  }
 0x18b   :  { %5658 = vmatprep.subr.bf16.mxu0 %v26000_v49  ;;  %6027 = vmatprep.subr.bf16.mxu1 %v26003_v51  ;;  %v26067_v49 = vld [vmem:[%s38769_s3 + $0x8a0] ss:$52 sps:$4 sm:$0xff]  }
 0x18c   :  { %v26075_v51 = vld [vmem:[%s38769_s3 + $0x90c] ss:$52 sps:$4 sm:$0xff]  }
 0x18e   :  { %5659 = vmatpush1.bf16.msra.mxu0 %v25998_v50  ;;  %6028 = vmatpush1.bf16.msra.mxu1 %v26001_v52  ;;  %v26072_v50 = vld [vmem:[%s38769_s3 + $0x27c] ss:$52 sps:$4 sm:$0xff]   ;;  %v26070_v52 = vld [vmem:[%s38769_s3 + $0x278] ss:$52 sps:$4 sm:$0xff]  }
 0x18f   :  { %5660 = vmatprep.subr.bf16.mxu0 %v26006_v53  ;;  %6029 = vmatprep.subr.bf16.mxu1 %v26009_v54  ;;  %v26073_v53 = vld [vmem:[%s38769_s3 + $0x908] ss:$52 sps:$4 sm:$0xff]  }
 0x190   :  { %v26081_v54 = vld [vmem:[%s38769_s3 + $0x974] ss:$52 sps:$4 sm:$0xff]  }
 0x192   :  { %5661 = vmatpush1.bf16.msra.mxu0 %v26004_v2  ;;  %6030 = vmatpush1.bf16.msra.mxu1 %v26007_v55  ;;  %v26078_v2 = vld [vmem:[%s38769_s3 + $0x2e4] ss:$52 sps:$4 sm:$0xff]   ;;  %v26076_v55 = vld [vmem:[%s38769_s3 + $0x2e0] ss:$52 sps:$4 sm:$0xff]  }
 0x193   :  { %5662 = vmatprep.subr.bf16.mxu0 %v26012_v56  ;;  %6031 = vmatprep.subr.bf16.mxu1 %v26015_v62  ;;  %v26079_v56 = vld [vmem:[%s38769_s3 + $0x970] ss:$52 sps:$4 sm:$0xff]  }
 0x194   :  { %v26087_v62 = vld [vmem:[%s38769_s3 + $0x9dc] ss:$52 sps:$4 sm:$0xff]  }
 0x196   :  { %5663 = vmatpush1.bf16.msra.mxu0 %v26010_v59  ;;  %6032 = vmatpush1.bf16.msra.mxu1 %v26013_v1  ;;  %v26084_v59 = vld [vmem:[%s38769_s3 + $0x34c] ss:$52 sps:$4 sm:$0xff]   ;;  %v26082_v1 = vld [vmem:[%s38769_s3 + $0x348] ss:$52 sps:$4 sm:$0xff]  }
 0x197   :  { %5664 = vmatprep.subr.bf16.mxu0 %v26018_v4  ;;  %6033 = vmatprep.subr.bf16.mxu1 %v26021_v8  ;;  %v26085_v4 = vld [vmem:[%s38769_s3 + $0x9d8] ss:$52 sps:$4 sm:$0xff]  }
 0x198   :  { %v26093_v8 = vld [vmem:[%s38769_s3 + $0xa44] ss:$52 sps:$4 sm:$0xff]  }
 0x19a   :  { %5665 = vmatpush1.bf16.msra.mxu0 %v26016_v5  ;;  %6034 = vmatpush1.bf16.msra.mxu1 %v26019_v9  ;;  %v26090_v5 = vld [vmem:[%s38769_s3 + $0x3b4] ss:$52 sps:$4 sm:$0xff]   ;;  %v26088_v9 = vld [vmem:[%s38769_s3 + $0x3b0] ss:$52 sps:$4 sm:$0xff]  }
 0x19b   :  { %5666 = vmatprep.subr.bf16.mxu0 %v26024_v10  ;;  %6035 = vmatprep.subr.bf16.mxu1 %v26027_v13  ;;  %v26091_v10 = vld [vmem:[%s38769_s3 + $0xa40] ss:$52 sps:$4 sm:$0xff]  }
 0x19c   :  { %v26099_v13 = vld [vmem:[%s38769_s3 + $0xaac] ss:$52 sps:$4 sm:$0xff]  }
 0x19e   :  { %5667 = vmatpush1.bf16.msra.mxu0 %v26022_v11  ;;  %6036 = vmatpush1.bf16.msra.mxu1 %v26025_v15  ;;  %v26096_v11 = vld [vmem:[%s38769_s3 + $0x41c] ss:$52 sps:$4 sm:$0xff]   ;;  %v26094_v15 = vld [vmem:[%s38769_s3 + $0x418] ss:$52 sps:$4 sm:$0xff]  }
 0x19f   :  { %5668 = vmatprep.subr.bf16.mxu0 %v26030_v16  ;;  %6037 = vmatprep.subr.bf16.mxu1 %v26033_v18  ;;  %v26097_v16 = vld [vmem:[%s38769_s3 + $0xaa8] ss:$52 sps:$4 sm:$0xff]  }
 0x1a0   :  { %v26105_v18 = vld [vmem:[%s38769_s3 + $0xb14] ss:$52 sps:$4 sm:$0xff]  }
 0x1a2   :  { %5669 = vmatpush1.bf16.msra.mxu0 %v26028_v17  ;;  %6038 = vmatpush1.bf16.msra.mxu1 %v26031_v19  ;;  %v26102_v17 = vld [vmem:[%s38769_s3 + $0x484] ss:$52 sps:$4 sm:$0xff]   ;;  %v26100_v19 = vld [vmem:[%s38769_s3 + $0x480] ss:$52 sps:$4 sm:$0xff]  }
 0x1a3   :  { %5679 = vmatprep.subr.bf16.mxu0 %v26036_v20  ;;  %6048 = vmatprep.subr.bf16.mxu1 %v26039_v21  ;;  %v26103_v20 = vld [vmem:[%s38769_s3 + $0xb10] ss:$52 sps:$4 sm:$0xff]   ;;  %v26108_v21 = vld [vmem:[%s38769_s3 + $0x4ec] ss:$52 sps:$4 sm:$0xff]  }
 0x1a5   :  { %5671 = vmatmul.mubr.bf16.vlgmr.msra.gmra.mrb[8].mxu0 %v30494_v0  ;;  %6040 = vmatmul.mubr.bf16.vlgmr.msra.gmra.mrb[12].mxu1 %v30067_v60 }
 0x1a6   :  { %5680 = vmatpush1.bf16.msra.mxu0 %v26034_v22  ;;  %5711 = vmatprep.mubr.bf16.mxu0 %v30063_v58  ;;  %v26111_v22 = vld [vmem:[%s38769_s3 + $0xb7c] ss:$52 sps:$4 sm:$0xff]  }
 0x1a7   :  { %6049 = vmatpush1.bf16.msra.mxu1 %v26037_v23  ;;  %6080 = vmatprep.mubr.bf16.mxu1 %v30069_v61  ;;  %v26106_v23 = vld [vmem:[%s38769_s3 + $0x4e8] ss:$52 sps:$4 sm:$0xff]  }
 0x1a8   :  { %5681 = vmatprep.subr.bf16.mxu0 %v26042_v28  ;;  %6050 = vmatprep.subr.bf16.mxu1 %v26045_v25  ;;  %v26109_v28 = vld [vmem:[%s38769_s3 + $0xb78] ss:$52 sps:$4 sm:$0xff]   ;;  %v26112_v25 = vld [vmem:[%s38769_s3 + $0x550] ss:$52 sps:$4 sm:$0xff]  }
 0x1aa   :  { %5682 = vmatpush1.bf16.msra.mxu0 %v26040_v63  ;;  %v26114_v63 = vld [vmem:[%s38769_s3 + $0x554] ss:$52 sps:$4 sm:$0xff]  }
 0x1ab   :  { %6051 = vmatpush1.bf16.msra.mxu1 %v26043_v24  ;;  %5683 = vmatprep.subr.bf16.mxu0 %v26048_v26  ;;  %v26117_v24 = vld [vmem:[%s38769_s3 + $0xbe4] ss:$52 sps:$4 sm:$0xff]   ;;  %v26115_v26 = vld [vmem:[%s38769_s3 + $0xbe0] ss:$52 sps:$4 sm:$0xff]  }
 0x1ac   :  { %6052 = vmatprep.subr.bf16.mxu1 %v26051_v33  ;;  %v26120_v33 = vld [vmem:[%s38769_s3 + $0x5bc] ss:$52 sps:$4 sm:$0xff]  }
 0x1ae   :  { %5684 = vmatpush1.bf16.msra.mxu0 %v26046_v6  ;;  %v26123_v6 = vld [vmem:[%s38769_s3 + $0xc4c] ss:$52 sps:$4 sm:$0xff]  }
 0x1af   :  { %6053 = vmatpush1.bf16.msra.mxu1 %v26049_v34  ;;  %5685 = vmatprep.subr.bf16.mxu0 %v26054_v35  ;;  %v26118_v34 = vld [vmem:[%s38769_s3 + $0x5b8] ss:$52 sps:$4 sm:$0xff]   ;;  %v26121_v35 = vld [vmem:[%s38769_s3 + $0xc48] ss:$52 sps:$4 sm:$0xff]  }
 0x1b0   :  { %6054 = vmatprep.subr.bf16.mxu1 %v26057_v39  ;;  %v26129_v39 = vld [vmem:[%s38769_s3 + $0xcb4] ss:$52 sps:$4 sm:$0xff]  }
 0x1b2   :  { %5686 = vmatpush1.bf16.msra.mxu0 %v26052_v38  ;;  %v26126_v38 = vld [vmem:[%s38769_s3 + $0x624] ss:$52 sps:$4 sm:$0xff]  }
 0x1b3   :  { %6055 = vmatpush1.bf16.msra.mxu1 %v26055_v40  ;;  %5687 = vmatprep.subr.bf16.mxu0 %v26060_v27  ;;  %v26124_v40 = vld [vmem:[%s38769_s3 + $0x620] ss:$52 sps:$4 sm:$0xff]   ;;  %v26127_v27 = vld [vmem:[%s38769_s3 + $0xcb0] ss:$52 sps:$4 sm:$0xff]  }
 0x1b4   :  { %6056 = vmatprep.subr.bf16.mxu1 %v26063_v43  ;;  %v26135_v43 = vld [vmem:[%s38769_s3 + $0xd1c] ss:$52 sps:$4 sm:$0xff]  }
 0x1b6   :  { %5688 = vmatpush1.bf16.msra.mxu0 %v26058_v41  ;;  %v26132_v41 = vld [vmem:[%s38769_s3 + $0x14] ss:$52 sps:$4 sm:$0xff]  }
 0x1b7   :  { %6057 = vmatpush1.bf16.msra.mxu1 %v26061_v44  ;;  %5689 = vmatprep.subr.bf16.mxu0 %v26066_v46  ;;  %v26130_v44 = vld [vmem:[%s38769_s3 + $0x10] ss:$52 sps:$4 sm:$0xff]   ;;  %v26133_v46 = vld [vmem:[%s38769_s3 + $0xd18] ss:$52 sps:$4 sm:$0xff]  }
 0x1b8   :  { %6058 = vmatprep.subr.bf16.mxu1 %v26069_v48  ;;  %v26141_v48 = vld [vmem:[%s38769_s3 + $0xd84] ss:$52 sps:$4 sm:$0xff]  }
 0x1ba   :  { %5690 = vmatpush1.bf16.msra.mxu0 %v26064_v47  ;;  %v26138_v47 = vld [vmem:[%s38769_s3 + $0x7c] ss:$52 sps:$4 sm:$0xff]  }
 0x1bb   :  { %6059 = vmatpush1.bf16.msra.mxu1 %v26067_v49  ;;  %5691 = vmatprep.subr.bf16.mxu0 %v26072_v50  ;;  %v26136_v49 = vld [vmem:[%s38769_s3 + $0x78] ss:$52 sps:$4 sm:$0xff]   ;;  %v26139_v50 = vld [vmem:[%s38769_s3 + $0xd80] ss:$52 sps:$4 sm:$0xff]  }
 0x1bc   :  { %6060 = vmatprep.subr.bf16.mxu1 %v26075_v51  ;;  %v26144_v51 = vld [vmem:[%s38769_s3 + $0xe4] ss:$52 sps:$4 sm:$0xff]  }
 0x1be   :  { %5692 = vmatpush1.bf16.msra.mxu0 %v26070_v52  ;;  %v26147_v52 = vld [vmem:[%s38769_s3 + $0xdec] ss:$52 sps:$4 sm:$0xff]  }
 0x1bf   :  { %6061 = vmatpush1.bf16.msra.mxu1 %v26073_v53  ;;  %5693 = vmatprep.subr.bf16.mxu0 %v26078_v2  ;;  %v26142_v53 = vld [vmem:[%s38769_s3 + $0xe0] ss:$52 sps:$4 sm:$0xff]   ;;  %v26145_v2 = vld [vmem:[%s38769_s3 + $0xde8] ss:$52 sps:$4 sm:$0xff]  }
 0x1c0   :  { %6062 = vmatprep.subr.bf16.mxu1 %v26081_v54  ;;  %v26150_v54 = vld [vmem:[%s38769_s3 + $0x14c] ss:$52 sps:$4 sm:$0xff]  }
 0x1c2   :  { %5694 = vmatpush1.bf16.msra.mxu0 %v26076_v55  ;;  %v26153_v55 = vld [vmem:[%s38769_s3 + $0xe54] ss:$52 sps:$4 sm:$0xff]  }
 0x1c3   :  { %6063 = vmatpush1.bf16.msra.mxu1 %v26079_v56  ;;  %5695 = vmatprep.subr.bf16.mxu0 %v26084_v59  ;;  %v26148_v56 = vld [vmem:[%s38769_s3 + $0x148] ss:$52 sps:$4 sm:$0xff]   ;;  %v26151_v59 = vld [vmem:[%s38769_s3 + $0xe50] ss:$52 sps:$4 sm:$0xff]  }
 0x1c4   :  { %6064 = vmatprep.subr.bf16.mxu1 %v26087_v62  ;;  %v26156_v62 = vld [vmem:[%s38769_s3 + $0x1b4] ss:$52 sps:$4 sm:$0xff]  }
 0x1c6   :  { %5696 = vmatpush1.bf16.msra.mxu0 %v26082_v1  ;;  %v26159_v1 = vld [vmem:[%s38769_s3 + $0xebc] ss:$52 sps:$4 sm:$0xff]  }
 0x1c7   :  { %6065 = vmatpush1.bf16.msra.mxu1 %v26085_v4  ;;  %5697 = vmatprep.subr.bf16.mxu0 %v26090_v5  ;;  %v26154_v4 = vld [vmem:[%s38769_s3 + $0x1b0] ss:$52 sps:$4 sm:$0xff]   ;;  %v26157_v5 = vld [vmem:[%s38769_s3 + $0xeb8] ss:$52 sps:$4 sm:$0xff]  }
 0x1c8   :  { %6066 = vmatprep.subr.bf16.mxu1 %v26093_v8  ;;  %v26162_v8 = vld [vmem:[%s38769_s3 + $0x21c] ss:$52 sps:$4 sm:$0xff]  }
 0x1ca   :  { %5698 = vmatpush1.bf16.msra.mxu0 %v26088_v9  ;;  %v26165_v9 = vld [vmem:[%s38769_s3 + $0xf24] ss:$52 sps:$4 sm:$0xff]  }
 0x1cb   :  { %6067 = vmatpush1.bf16.msra.mxu1 %v26091_v10  ;;  %5699 = vmatprep.subr.bf16.mxu0 %v26096_v11  ;;  %v26160_v10 = vld [vmem:[%s38769_s3 + $0x218] ss:$52 sps:$4 sm:$0xff]   ;;  %v26163_v11 = vld [vmem:[%s38769_s3 + $0xf20] ss:$52 sps:$4 sm:$0xff]  }
 0x1cc   :  { %6068 = vmatprep.subr.bf16.mxu1 %v26099_v13  ;;  %v26168_v13 = vld [vmem:[%s38769_s3 + $0x284] ss:$52 sps:$4 sm:$0xff]  }
 0x1ce   :  { %5700 = vmatpush1.bf16.msra.mxu0 %v26094_v15  ;;  %v26171_v15 = vld [vmem:[%s38769_s3 + $0xf8c] ss:$52 sps:$4 sm:$0xff]  }
 0x1cf   :  { %6069 = vmatpush1.bf16.msra.mxu1 %v26097_v16  ;;  %5701 = vmatprep.subr.bf16.mxu0 %v26102_v17  ;;  %v26166_v16 = vld [vmem:[%s38769_s3 + $0x280] ss:$52 sps:$4 sm:$0xff]   ;;  %v26169_v17 = vld [vmem:[%s38769_s3 + $0xf88] ss:$52 sps:$4 sm:$0xff]  }
 0x1d0   :  { %6070 = vmatprep.subr.bf16.mxu1 %v26105_v18  ;;  %v26174_v18 = vld [vmem:[%s38769_s3 + $0x2ec] ss:$52 sps:$4 sm:$0xff]  }
 0x1d2   :  { %5702 = vmatpush1.bf16.msra.mxu0 %v26100_v19  ;;  %v26177_v19 = vld [vmem:[%s38769_s3 + $0xff4] ss:$52 sps:$4 sm:$0xff]  }
 0x1d3   :  { %6071 = vmatpush1.bf16.msra.mxu1 %v26103_v20  ;;  %5703 = vmatprep.subr.bf16.mxu0 %v26108_v21  ;;  %v26172_v20 = vld [vmem:[%s38769_s3 + $0x2e8] ss:$52 sps:$4 sm:$0xff]   ;;  %v26175_v21 = vld [vmem:[%s38769_s3 + $0xff0] ss:$52 sps:$4 sm:$0xff]  }
 0x1d4   :  { %6072 = vmatprep.subr.bf16.mxu1 %v26111_v22  ;;  %v26180_v22 = vld [vmem:[%s38769_s3 + $0x354] ss:$52 sps:$4 sm:$0xff]  }
 0x1d6   :  { %5704 = vmatpush1.bf16.msra.mxu0 %v26106_v23  ;;  %v26183_v23 = vld [vmem:[%s38769_s3 + $0x105c] ss:$52 sps:$4 sm:$0xff]  }
 0x1d7   :  { %6073 = vmatpush1.bf16.msra.mxu1 %v26109_v28  ;;  %5705 = vmatprep.subr.bf16.mxu0 %v26114_v63  ;;  %v26178_v28 = vld [vmem:[%s38769_s3 + $0x350] ss:$52 sps:$4 sm:$0xff]   ;;  %v26181_v63 = vld [vmem:[%s38769_s3 + $0x1058] ss:$52 sps:$4 sm:$0xff]  }
 0x1d8   :  { %6074 = vmatprep.subr.bf16.mxu1 %v26117_v24  ;;  %v26186_v24 = vld [vmem:[%s38769_s3 + $0x3bc] ss:$52 sps:$4 sm:$0xff]  }
 0x1da   :  { %5706 = vmatpush1.bf16.msra.mxu0 %v26112_v25  ;;  %v26189_v25 = vld [vmem:[%s38769_s3 + $0x10c4] ss:$52 sps:$4 sm:$0xff]  }
 0x1db   :  { %6075 = vmatpush1.bf16.msra.mxu1 %v26115_v26  ;;  %5707 = vmatprep.subr.bf16.mxu0 %v26120_v33  ;;  %v26184_v26 = vld [vmem:[%s38769_s3 + $0x3b8] ss:$52 sps:$4 sm:$0xff]   ;;  %v26187_v33 = vld [vmem:[%s38769_s3 + $0x10c0] ss:$52 sps:$4 sm:$0xff]  }
 0x1dc   :  { %6076 = vmatprep.subr.bf16.mxu1 %v26123_v6  ;;  %v26192_v6 = vld [vmem:[%s38769_s3 + $0x424] ss:$52 sps:$4 sm:$0xff]  }
 0x1de   :  { %5708 = vmatpush1.bf16.msra.mxu0 %v26118_v34  ;;  %v26195_v34 = vld [vmem:[%s38769_s3 + $0x112c] ss:$52 sps:$4 sm:$0xff]  }
 0x1df   :  { %6077 = vmatpush1.bf16.msra.mxu1 %v26121_v35  ;;  %5709 = vmatprep.subr.bf16.mxu0 %v26126_v38  ;;  %v26190_v35 = vld [vmem:[%s38769_s3 + $0x420] ss:$52 sps:$4 sm:$0xff]   ;;  %v26193_v38 = vld [vmem:[%s38769_s3 + $0x1128] ss:$52 sps:$4 sm:$0xff]  }
 0x1e0   :  { %6078 = vmatprep.subr.bf16.mxu1 %v26129_v39  ;;  %v26198_v39 = vld [vmem:[%s38769_s3 + $0x48c] ss:$52 sps:$4 sm:$0xff]  }
 0x1e2   :  { %5710 = vmatpush1.bf16.msra.mxu0 %v26124_v40  ;;  %v26201_v40 = vld [vmem:[%s38769_s3 + $0x1194] ss:$52 sps:$4 sm:$0xff]  }
 0x1e3   :  { %6079 = vmatpush1.bf16.msra.mxu1 %v26127_v27  ;;  %5843 = vmatprep.subr.bf16.mxu0 %v26132_v41  ;;  %v26196_v27 = vld [vmem:[%s38769_s3 + $0x488] ss:$52 sps:$4 sm:$0xff]   ;;  %v26199_v41 = vld [vmem:[%s38769_s3 + $0x1190] ss:$52 sps:$4 sm:$0xff]  }
 0x1e4   :  { %6089 = vmatprep.subr.bf16.mxu1 %v26135_v43  ;;  %v26204_v43 = vld [vmem:[%s38769_s3 + $0x4f4] ss:$52 sps:$4 sm:$0xff]  }
 0x1e5   :  { %5712 = vmatmul.mubr.bf16.vlgmr.msra.gmra.mrb[12].mxu0 %v30067_v60 }
 0x1e6   :  { %6081 = vmatmul.mubr.bf16.vlgmr.msra.gmra.mrb[12].mxu1 %v30061_v57  ;;  %5844 = vmatpush1.bf16.msra.mxu0 %v26130_v44  ;;  %v26207_v44 = vld [vmem:[%s38769_s3 + $0x11fc] ss:$52 sps:$4 sm:$0xff]  }
 0x1e7   :  { %5875 = vmatprep.mubr.bf16.mxu0 %v30063_v58  ;;  %6090 = vmatpush1.bf16.msra.mxu1 %v26133_v46  ;;  %v26202_v46 = vld [vmem:[%s38769_s3 + $0x4f0] ss:$52 sps:$4 sm:$0xff]  }
 0x1e8   :  { %6121 = vmatprep.mubr.bf16.mxu1 %v30100_v14  ;;  %5845 = vmatprep.subr.bf16.mxu0 %v26138_v47  ;;  %v26205_v47 = vld [vmem:[%s38769_s3 + $0x11f8] ss:$52 sps:$4 sm:$0xff]  }
 0x1e9   :  { %6091 = vmatprep.subr.bf16.mxu1 %v26141_v48  ;;  %v26210_v48 = vld [vmem:[%s38769_s3 + $0x55c] ss:$52 sps:$4 sm:$0xff]  }
 0x1ea   :  { %5846 = vmatpush1.bf16.msra.mxu0 %v26136_v49  ;;  %v26213_v49 = vld [vmem:[%s38769_s3 + $0x1264] ss:$52 sps:$4 sm:$0xff]  }
 0x1eb   :  { %6092 = vmatpush1.bf16.msra.mxu1 %v26139_v50  ;;  %5847 = vmatprep.subr.bf16.mxu0 %v26144_v51  ;;  %v26208_v50 = vld [vmem:[%s38769_s3 + $0x558] ss:$52 sps:$4 sm:$0xff]   ;;  %v26211_v51 = vld [vmem:[%s38769_s3 + $0x1260] ss:$52 sps:$4 sm:$0xff]  }
 0x1ec   :  { %6093 = vmatprep.subr.bf16.mxu1 %v26147_v52  ;;  %v26216_v52 = vld [vmem:[%s38769_s3 + $0x5c4] ss:$52 sps:$4 sm:$0xff]  }
 0x1ee   :  { %5848 = vmatpush1.bf16.msra.mxu0 %v26142_v53  ;;  %v26219_v53 = vld [vmem:[%s38769_s3 + $0x12cc] ss:$52 sps:$4 sm:$0xff]  }
 0x1ef   :  { %6094 = vmatpush1.bf16.msra.mxu1 %v26145_v2  ;;  %5849 = vmatprep.subr.bf16.mxu0 %v26150_v54  ;;  %v26214_v2 = vld [vmem:[%s38769_s3 + $0x5c0] ss:$52 sps:$4 sm:$0xff]   ;;  %v26217_v54 = vld [vmem:[%s38769_s3 + $0x12c8] ss:$52 sps:$4 sm:$0xff]  }
 0x1f0   :  { %6095 = vmatprep.subr.bf16.mxu1 %v26153_v55  ;;  %v26222_v55 = vld [vmem:[%s38769_s3 + $0x62c] ss:$52 sps:$4 sm:$0xff]  }
 0x1f2   :  { %5850 = vmatpush1.bf16.msra.mxu0 %v26148_v56  ;;  %v26225_v56 = vld [vmem:[%s38769_s3 + $0x1334] ss:$52 sps:$4 sm:$0xff]  }
 0x1f3   :  { %6096 = vmatpush1.bf16.msra.mxu1 %v26151_v59  ;;  %5851 = vmatprep.subr.bf16.mxu0 %v26156_v62  ;;  %v26220_v59 = vld [vmem:[%s38769_s3 + $0x628] ss:$52 sps:$4 sm:$0xff]   ;;  %v26223_v62 = vld [vmem:[%s38769_s3 + $0x1330] ss:$52 sps:$4 sm:$0xff]  }
 0x1f4   :  { %6097 = vmatprep.subr.bf16.mxu1 %v26159_v1  ;;  %v26228_v1 = vld [vmem:[%s38769_s3 + $0x694] ss:$52 sps:$4 sm:$0xff]  }
 0x1f6   :  { %5852 = vmatpush1.bf16.msra.mxu0 %v26154_v4  ;;  %v26231_v4 = vld [vmem:[%s38769_s3 + $0x139c] ss:$52 sps:$4 sm:$0xff]  }
 0x1f7   :  { %6098 = vmatpush1.bf16.msra.mxu1 %v26157_v5  ;;  %5853 = vmatprep.subr.bf16.mxu0 %v26162_v8  ;;  %v26226_v5 = vld [vmem:[%s38769_s3 + $0x690] ss:$52 sps:$4 sm:$0xff]   ;;  %v26229_v8 = vld [vmem:[%s38769_s3 + $0x1398] ss:$52 sps:$4 sm:$0xff]  }
 0x1f8   :  { %6099 = vmatprep.subr.bf16.mxu1 %v26165_v9  ;;  %v26234_v9 = vld [vmem:[%s38769_s3 + $0x6fc] ss:$52 sps:$4 sm:$0xff]  }
 0x1fa   :  { %5854 = vmatpush1.bf16.msra.mxu0 %v26160_v10  ;;  %v26237_v10 = vld [vmem:[%s38769_s3 + $0x1404] ss:$52 sps:$4 sm:$0xff]  }
 0x1fb   :  { %6100 = vmatpush1.bf16.msra.mxu1 %v26163_v11  ;;  %5855 = vmatprep.subr.bf16.mxu0 %v26168_v13  ;;  %v26232_v11 = vld [vmem:[%s38769_s3 + $0x6f8] ss:$52 sps:$4 sm:$0xff]   ;;  %v26235_v13 = vld [vmem:[%s38769_s3 + $0x1400] ss:$52 sps:$4 sm:$0xff]  }
 0x1fc   :  { %6101 = vmatprep.subr.bf16.mxu1 %v26171_v15  ;;  %v26240_v15 = vld [vmem:[%s38769_s3 + $0x764] ss:$52 sps:$4 sm:$0xff]  }
 0x1fe   :  { %5856 = vmatpush1.bf16.msra.mxu0 %v26166_v16  ;;  %v26243_v16 = vld [vmem:[%s38769_s3 + $0x146c] ss:$52 sps:$4 sm:$0xff]  }
 0x1ff   :  { %6102 = vmatpush1.bf16.msra.mxu1 %v26169_v17  ;;  %5857 = vmatprep.subr.bf16.mxu0 %v26174_v18  ;;  %v26238_v17 = vld [vmem:[%s38769_s3 + $0x760] ss:$52 sps:$4 sm:$0xff]   ;;  %v26241_v18 = vld [vmem:[%s38769_s3 + $0x1468] ss:$52 sps:$4 sm:$0xff]  }
 0x200   :  { %6103 = vmatprep.subr.bf16.mxu1 %v26177_v19  ;;  %v26246_v19 = vld [vmem:[%s38769_s3 + $0x7cc] ss:$52 sps:$4 sm:$0xff]  }
 0x202   :  { %5858 = vmatpush1.bf16.msra.mxu0 %v26172_v20  ;;  %v26249_v20 = vld [vmem:[%s38769_s3 + $0x14d4] ss:$52 sps:$4 sm:$0xff]  }
 0x203   :  { %6104 = vmatpush1.bf16.msra.mxu1 %v26175_v21  ;;  %5859 = vmatprep.subr.bf16.mxu0 %v26180_v22  ;;  %v26244_v21 = vld [vmem:[%s38769_s3 + $0x7c8] ss:$52 sps:$4 sm:$0xff]   ;;  %v26247_v22 = vld [vmem:[%s38769_s3 + $0x14d0] ss:$52 sps:$4 sm:$0xff]  }
 0x204   :  { %6105 = vmatprep.subr.bf16.mxu1 %v26183_v23  ;;  %v26252_v23 = vld [vmem:[%s38769_s3 + $0x834] ss:$52 sps:$4 sm:$0xff]  }
 0x206   :  { %5860 = vmatpush1.bf16.msra.mxu0 %v26178_v28  ;;  %v26255_v28 = vld [vmem:[%s38769_s3 + $0x153c] ss:$52 sps:$4 sm:$0xff]  }
 0x207   :  { %6106 = vmatpush1.bf16.msra.mxu1 %v26181_v63  ;;  %5861 = vmatprep.subr.bf16.mxu0 %v26186_v24  ;;  %v26250_v63 = vld [vmem:[%s38769_s3 + $0x830] ss:$52 sps:$4 sm:$0xff]   ;;  %v26253_v24 = vld [vmem:[%s38769_s3 + $0x1538] ss:$52 sps:$4 sm:$0xff]  }
 0x208   :  { %6107 = vmatprep.subr.bf16.mxu1 %v26189_v25  ;;  %v26258_v25 = vld [vmem:[%s38769_s3 + $0x89c] ss:$52 sps:$4 sm:$0xff]  }
 0x20a   :  { %5862 = vmatpush1.bf16.msra.mxu0 %v26184_v26  ;;  %v26261_v26 = vld [vmem:[%s38769_s3 + $0x15a4] ss:$52 sps:$4 sm:$0xff]  }
 0x20b   :  { %6108 = vmatpush1.bf16.msra.mxu1 %v26187_v33  ;;  %5863 = vmatprep.subr.bf16.mxu0 %v26192_v6  ;;  %v26256_v33 = vld [vmem:[%s38769_s3 + $0x898] ss:$52 sps:$4 sm:$0xff]   ;;  %v26259_v6 = vld [vmem:[%s38769_s3 + $0x15a0] ss:$52 sps:$4 sm:$0xff]  }
 0x20c   :  { %6109 = vmatprep.subr.bf16.mxu1 %v26195_v34  ;;  %v26264_v34 = vld [vmem:[%s38769_s3 + $0x904] ss:$52 sps:$4 sm:$0xff]  }
 0x20e   :  { %5864 = vmatpush1.bf16.msra.mxu0 %v26190_v35  ;;  %v26267_v35 = vld [vmem:[%s38769_s3 + $0x160c] ss:$52 sps:$4 sm:$0xff]  }
 0x20f   :  { %6110 = vmatpush1.bf16.msra.mxu1 %v26193_v38  ;;  %5865 = vmatprep.subr.bf16.mxu0 %v26198_v39 }
 0x210   :  { %6111 = vmatprep.subr.bf16.mxu1 %v26201_v40  ;;  %v26262_v40 = vld [vmem:[%s38769_s3 + $0x900] ss:$52 sps:$4 sm:$0xff]  }
 0x212   :  { %5866 = vmatpush1.bf16.msra.mxu0 %v26196_v27 }
 0x213   :  { %6112 = vmatpush1.bf16.msra.mxu1 %v26199_v41  ;;  %5867 = vmatprep.subr.bf16.mxu0 %v26204_v43  ;;  %v26265_v41 = vld [vmem:[%s38769_s3 + $0x1608] ss:$52 sps:$4 sm:$0xff]   ;;  %v26270_v43 = vld [vmem:[%s38769_s3 + $0x96c] ss:$52 sps:$4 sm:$0xff]  }
 0x214   :  { %6113 = vmatprep.subr.bf16.mxu1 %v26207_v44 }
 0x216   :  { %5868 = vmatpush1.bf16.msra.mxu0 %v26202_v46  ;;  %v26273_v46 = vld [vmem:[%s38769_s3 + $0x1674] ss:$52 sps:$4 sm:$0xff]  }
 0x217   :  { %6114 = vmatpush1.bf16.msra.mxu1 %v26205_v47  ;;  %5869 = vmatprep.subr.bf16.mxu0 %v26210_v48  ;;  %v26268_v47 = vld [vmem:[%s38769_s3 + $0x968] ss:$52 sps:$4 sm:$0xff]   ;;  %v26271_v48 = vld [vmem:[%s38769_s3 + $0x1670] ss:$52 sps:$4 sm:$0xff]  }
 0x218   :  { %6115 = vmatprep.subr.bf16.mxu1 %v26213_v49  ;;  %v26276_v49 = vld [vmem:[%s38769_s3 + $0x9d4] ss:$52 sps:$4 sm:$0xff]  }
 0x21a   :  { %5870 = vmatpush1.bf16.msra.mxu0 %v26208_v50  ;;  %v26279_v50 = vld [vmem:[%s38769_s3 + $0x16dc] ss:$52 sps:$4 sm:$0xff]  }
 0x21b   :  { %6116 = vmatpush1.bf16.msra.mxu1 %v26211_v51  ;;  %5871 = vmatprep.subr.bf16.mxu0 %v26216_v52  ;;  %v26274_v51 = vld [vmem:[%s38769_s3 + $0x9d0] ss:$52 sps:$4 sm:$0xff]   ;;  %v26277_v52 = vld [vmem:[%s38769_s3 + $0x16d8] ss:$52 sps:$4 sm:$0xff]  }
 0x21c   :  { %6117 = vmatprep.subr.bf16.mxu1 %v26219_v53  ;;  %v26282_v53 = vld [vmem:[%s38769_s3 + $0xa3c] ss:$52 sps:$4 sm:$0xff]  }
 0x21e   :  { %5872 = vmatpush1.bf16.msra.mxu0 %v26214_v2  ;;  %v26285_v2 = vld [vmem:[%s38769_s3 + $0x1744] ss:$52 sps:$4 sm:$0xff]  }
 0x21f   :  { %6118 = vmatpush1.bf16.msra.mxu1 %v26217_v54  ;;  %5873 = vmatprep.subr.bf16.mxu0 %v26222_v55  ;;  %v26280_v54 = vld [vmem:[%s38769_s3 + $0xa38] ss:$52 sps:$4 sm:$0xff]   ;;  %v26283_v55 = vld [vmem:[%s38769_s3 + $0x1740] ss:$52 sps:$4 sm:$0xff]  }
 0x220   :  { %6119 = vmatprep.subr.bf16.mxu1 %v26225_v56  ;;  %v26288_v56 = vld [vmem:[%s38769_s3 + $0xaa4] ss:$52 sps:$4 sm:$0xff]  }
 0x222   :  { %5874 = vmatpush1.bf16.msra.mxu0 %v26220_v59  ;;  %v26291_v59 = vld [vmem:[%s38769_s3 + $0x17ac] ss:$52 sps:$4 sm:$0xff]  }
 0x223   :  { %6120 = vmatpush1.bf16.msra.mxu1 %v26223_v62  ;;  %5884 = vmatprep.subr.bf16.mxu0 %v26228_v1  ;;  %v26286_v62 = vld [vmem:[%s38769_s3 + $0xaa0] ss:$52 sps:$4 sm:$0xff]   ;;  %v26289_v1 = vld [vmem:[%s38769_s3 + $0x17a8] ss:$52 sps:$4 sm:$0xff]  }
 0x224   :  { %6130 = vmatprep.subr.bf16.mxu1 %v26231_v4  ;;  %v26294_v4 = vld [vmem:[%s38769_s3 + $0xb0c] ss:$52 sps:$4 sm:$0xff]  }
 0x225   :  { %5876 = vmatmul.mubr.bf16.vlgmr.msra.gmra.mrb[16].mxu0 %v30067_v60 }
 0x226   :  { %6122 = vmatmul.mubr.bf16.vlgmr.msra.gmra.mrb[12].mxu1 %v30289_v37  ;;  %5885 = vmatpush1.bf16.msra.mxu0 %v26226_v5  ;;  %v26297_v5 = vld [vmem:[%s38769_s3 + $0x1814] ss:$52 sps:$4 sm:$0xff]  }
 0x227   :  { %5916 = vmatprep.mubr.bf16.mxu0 %v30069_v61  ;;  %6131 = vmatpush1.bf16.msra.mxu1 %v26229_v8  ;;  %v26292_v8 = vld [vmem:[%s38769_s3 + $0xb08] ss:$52 sps:$4 sm:$0xff]  }
 0x228   :  { %6162 = vmatprep.mubr.bf16.mxu1 %v30304_v42  ;;  %5886 = vmatprep.subr.bf16.mxu0 %v26234_v9  ;;  %v26295_v9 = vld [vmem:[%s38769_s3 + $0x1810] ss:$52 sps:$4 sm:$0xff]  }
 0x229   :  { %6132 = vmatprep.subr.bf16.mxu1 %v26237_v10  ;;  %v26300_v10 = vld [vmem:[%s38769_s3 + $0xb74] ss:$52 sps:$4 sm:$0xff]  }
 0x22a   :  { %5887 = vmatpush1.bf16.msra.mxu0 %v26232_v11  ;;  %v26303_v11 = vld [vmem:[%s38769_s3 + $0x187c] ss:$52 sps:$4 sm:$0xff]  }
 0x22b   :  { %6133 = vmatpush1.bf16.msra.mxu1 %v26235_v13  ;;  %5888 = vmatprep.subr.bf16.mxu0 %v26240_v15  ;;  %v26298_v13 = vld [vmem:[%s38769_s3 + $0xb70] ss:$52 sps:$4 sm:$0xff]   ;;  %v26301_v15 = vld [vmem:[%s38769_s3 + $0x1878] ss:$52 sps:$4 sm:$0xff]  }
 0x22c   :  { %6134 = vmatprep.subr.bf16.mxu1 %v26243_v16  ;;  %v26306_v16 = vld [vmem:[%s38769_s3 + $0xbdc] ss:$52 sps:$4 sm:$0xff]  }
 0x22e   :  { %5889 = vmatpush1.bf16.msra.mxu0 %v26238_v17  ;;  %v26309_v17 = vld [vmem:[%s38769_s3 + $0x18e4] ss:$52 sps:$4 sm:$0xff]  }
 0x22f   :  { %6135 = vmatpush1.bf16.msra.mxu1 %v26241_v18  ;;  %5890 = vmatprep.subr.bf16.mxu0 %v26246_v19  ;;  %v26304_v18 = vld [vmem:[%s38769_s3 + $0xbd8] ss:$52 sps:$4 sm:$0xff]   ;;  %v26307_v19 = vld [vmem:[%s38769_s3 + $0x18e0] ss:$52 sps:$4 sm:$0xff]  }
 0x230   :  { %6136 = vmatprep.subr.bf16.mxu1 %v26249_v20  ;;  %v26312_v20 = vld [vmem:[%s38769_s3 + $0xc44] ss:$52 sps:$4 sm:$0xff]  }
 0x232   :  { %5891 = vmatpush1.bf16.msra.mxu0 %v26244_v21  ;;  %v26315_v21 = vld [vmem:[%s38769_s3 + $0x194c] ss:$52 sps:$4 sm:$0xff]  }
 0x233   :  { %6137 = vmatpush1.bf16.msra.mxu1 %v26247_v22  ;;  %5892 = vmatprep.subr.bf16.mxu0 %v26252_v23  ;;  %v26310_v22 = vld [vmem:[%s38769_s3 + $0xc40] ss:$52 sps:$4 sm:$0xff]   ;;  %v26313_v23 = vld [vmem:[%s38769_s3 + $0x1948] ss:$52 sps:$4 sm:$0xff]  }
 0x234   :  { %6138 = vmatprep.subr.bf16.mxu1 %v26255_v28  ;;  %v26318_v28 = vld [vmem:[%s38769_s3 + $0xcac] ss:$52 sps:$4 sm:$0xff]  }
 0x236   :  { %5893 = vmatpush1.bf16.msra.mxu0 %v26250_v63  ;;  %v26321_v63 = vld [vmem:[%s38769_s3 + $0x19b4] ss:$52 sps:$4 sm:$0xff]  }
 0x237   :  { %6139 = vmatpush1.bf16.msra.mxu1 %v26253_v24  ;;  %5894 = vmatprep.subr.bf16.mxu0 %v26258_v25  ;;  %v26316_v24 = vld [vmem:[%s38769_s3 + $0xca8] ss:$52 sps:$4 sm:$0xff]   ;;  %v26319_v25 = vld [vmem:[%s38769_s3 + $0x19b0] ss:$52 sps:$4 sm:$0xff]  }
 0x238   :  { %6140 = vmatprep.subr.bf16.mxu1 %v26261_v26  ;;  %v31154_v38 = vpop.f32.mrb[8].mxu1  ;;  %v26324_v26 = vld [vmem:[%s38769_s3 + $0xd14] ss:$52 sps:$4 sm:$0xff]  }
 0x239   :  { %v31156_v39 = vpop.f32.mrb[9].mxu1 }
 0x23a   :  { %5895 = vmatpush1.bf16.msra.mxu0 %v26256_v33  ;;  %v5840_v27 = vpop.f32.mrb[10].mxu1  ;;  %v26327_v33 = vld [vmem:[%s38769_s3 + $0x2c] ss:$52 sps:$4 sm:$0xff]  }
 0x23b   :  { %6141 = vmatpush1.bf16.msra.mxu1 %v26259_v6  ;;  %5896 = vmatprep.subr.bf16.mxu0 %v26264_v34  ;;  %v5841_v44 = vpop.f32.mrb[11].mxu1  ;;  %v26322_v6 = vld [vmem:[%s38769_s3 + $0xd10] ss:$52 sps:$4 sm:$0xff]   ;;  %v26325_v34 = vld [vmem:[%s38769_s3 + $0x28] ss:$52 sps:$4 sm:$0xff]  }
 0x23c   :  { %6142 = vmatprep.subr.bf16.mxu1 %v26267_v35  ;;  %v26330_v35 = vld [vmem:[%s38769_s3 + $0xd7c] ss:$52 sps:$4 sm:$0xff]   ;;  %v26328_v27 = vld [vmem:[%s38769_s3 + $0xd78] ss:$52 sps:$4 sm:$0xff]  }
 0x23d   :  { %v26339_v44 = vld [vmem:[%s38769_s3 + $0xfc] ss:$52 sps:$4 sm:$0xff]  }
 0x23e   :  { %5897 = vmatpush1.bf16.msra.mxu0 %v26262_v40  ;;  %v26333_v40 = vld [vmem:[%s38769_s3 + $0x94] ss:$52 sps:$4 sm:$0xff]  }
 0x23f   :  { %6143 = vmatpush1.bf16.msra.mxu1 %v26265_v41  ;;  %5898 = vmatprep.subr.bf16.mxu0 %v26270_v43  ;;  %v26331_v41 = vld [vmem:[%s38769_s3 + $0x90] ss:$52 sps:$4 sm:$0xff]  }
 0x240   :  { %6144 = vmatprep.subr.bf16.mxu1 %v26273_v46  ;;  %v26336_v43 = vld [vmem:[%s38769_s3 + $0xde4] ss:$52 sps:$4 sm:$0xff]   ;;  %v26334_v46 = vld [vmem:[%s38769_s3 + $0xde0] ss:$52 sps:$4 sm:$0xff]  }
 0x242   :  { %5899 = vmatpush1.bf16.msra.mxu0 %v26268_v47  ;;  %v26337_v47 = vld [vmem:[%s38769_s3 + $0xf8] ss:$52 sps:$4 sm:$0xff]  }
 0x243   :  { %6145 = vmatpush1.bf16.msra.mxu1 %v26271_v48  ;;  %5900 = vmatprep.subr.bf16.mxu0 %v26276_v49  ;;  %v26342_v48 = vld [vmem:[%s38769_s3 + $0xe4c] ss:$52 sps:$4 sm:$0xff]   ;;  %v26345_v49 = vld [vmem:[%s38769_s3 + $0x164] ss:$52 sps:$4 sm:$0xff]  }
 0x244   :  { %6146 = vmatprep.subr.bf16.mxu1 %v26279_v50  ;;  %v26340_v50 = vld [vmem:[%s38769_s3 + $0xe48] ss:$52 sps:$4 sm:$0xff]  }
 0x246   :  { %5901 = vmatpush1.bf16.msra.mxu0 %v26274_v51  ;;  %v26343_v51 = vld [vmem:[%s38769_s3 + $0x160] ss:$52 sps:$4 sm:$0xff]  }
 0x247   :  { %6147 = vmatpush1.bf16.msra.mxu1 %v26277_v52  ;;  %5902 = vmatprep.subr.bf16.mxu0 %v26282_v53  ;;  %v26348_v52 = vld [vmem:[%s38769_s3 + $0xeb4] ss:$52 sps:$4 sm:$0xff]   ;;  %v26351_v53 = vld [vmem:[%s38769_s3 + $0x1cc] ss:$52 sps:$4 sm:$0xff]  }
 0x248   :  { %6148 = vmatprep.subr.bf16.mxu1 %v26285_v2  ;;  %v26346_v2 = vld [vmem:[%s38769_s3 + $0xeb0] ss:$52 sps:$4 sm:$0xff]  }
 0x24a   :  { %5903 = vmatpush1.bf16.msra.mxu0 %v26280_v54  ;;  %v26349_v54 = vld [vmem:[%s38769_s3 + $0x1c8] ss:$52 sps:$4 sm:$0xff]  }
 0x24b   :  { %6149 = vmatpush1.bf16.msra.mxu1 %v26283_v55  ;;  %5904 = vmatprep.subr.bf16.mxu0 %v26288_v56  ;;  %v26354_v55 = vld [vmem:[%s38769_s3 + $0xf1c] ss:$52 sps:$4 sm:$0xff]   ;;  %v26357_v56 = vld [vmem:[%s38769_s3 + $0x234] ss:$52 sps:$4 sm:$0xff]  }
 0x24c   :  { %6150 = vmatprep.subr.bf16.mxu1 %v26291_v59  ;;  %v26352_v59 = vld [vmem:[%s38769_s3 + $0xf18] ss:$52 sps:$4 sm:$0xff]  }
 0x24e   :  { %5905 = vmatpush1.bf16.msra.mxu0 %v26286_v62  ;;  %v26355_v62 = vld [vmem:[%s38769_s3 + $0x230] ss:$52 sps:$4 sm:$0xff]  }
 0x24f   :  { %6151 = vmatpush1.bf16.msra.mxu1 %v26289_v1  ;;  %5906 = vmatprep.subr.bf16.mxu0 %v26294_v4  ;;  %v26360_v1 = vld [vmem:[%s38769_s3 + $0xf84] ss:$52 sps:$4 sm:$0xff]  }
 0x250   :  { %6152 = vmatprep.subr.bf16.mxu1 %v26297_v5  ;;  %v26363_v5 = vld [vmem:[%s38769_s3 + $0x29c] ss:$52 sps:$4 sm:$0xff]  }
 0x252   :  { %5907 = vmatpush1.bf16.msra.mxu0 %v26292_v8 }
 0x253   :  { %6153 = vmatpush1.bf16.msra.mxu1 %v26295_v9  ;;  %5908 = vmatprep.subr.bf16.mxu0 %v26300_v10  ;;  %v26358_v10 = vld [vmem:[%s38769_s3 + $0xf80] ss:$52 sps:$4 sm:$0xff]  }
 0x254   :  { %6154 = vmatprep.subr.bf16.mxu1 %v26303_v11 }
 0x256   :  { %5909 = vmatpush1.bf16.msra.mxu0 %v26298_v13  ;;  %v26361_v13 = vld [vmem:[%s38769_s3 + $0x298] ss:$52 sps:$4 sm:$0xff]  }
 0x257   :  { %6155 = vmatpush1.bf16.msra.mxu1 %v26301_v15  ;;  %5910 = vmatprep.subr.bf16.mxu0 %v26306_v16  ;;  %v26366_v15 = vld [vmem:[%s38769_s3 + $0xfec] ss:$52 sps:$4 sm:$0xff]   ;;  %v26369_v16 = vld [vmem:[%s38769_s3 + $0x304] ss:$52 sps:$4 sm:$0xff]  }
 0x258   :  { %6156 = vmatprep.subr.bf16.mxu1 %v26309_v17  ;;  %v26364_v17 = vld [vmem:[%s38769_s3 + $0xfe8] ss:$52 sps:$4 sm:$0xff]  }
 0x25a   :  { %5911 = vmatpush1.bf16.msra.mxu0 %v26304_v18  ;;  %v26367_v18 = vld [vmem:[%s38769_s3 + $0x300] ss:$52 sps:$4 sm:$0xff]  }
 0x25b   :  { %6157 = vmatpush1.bf16.msra.mxu1 %v26307_v19  ;;  %5912 = vmatprep.subr.bf16.mxu0 %v26312_v20  ;;  %v26372_v19 = vld [vmem:[%s38769_s3 + $0x1054] ss:$52 sps:$4 sm:$0xff]   ;;  %v26375_v20 = vld [vmem:[%s38769_s3 + $0x36c] ss:$52 sps:$4 sm:$0xff]  }
 0x25c   :  { %6158 = vmatprep.subr.bf16.mxu1 %v26315_v21  ;;  %v26370_v21 = vld [vmem:[%s38769_s3 + $0x1050] ss:$52 sps:$4 sm:$0xff]  }
 0x25e   :  { %5913 = vmatpush1.bf16.msra.mxu0 %v26310_v22  ;;  %v26373_v22 = vld [vmem:[%s38769_s3 + $0x368] ss:$52 sps:$4 sm:$0xff]  }
 0x25f   :  { %6159 = vmatpush1.bf16.msra.mxu1 %v26313_v23  ;;  %5914 = vmatprep.subr.bf16.mxu0 %v26318_v28  ;;  %v26378_v23 = vld [vmem:[%s38769_s3 + $0x10bc] ss:$52 sps:$4 sm:$0xff]   ;;  %v26381_v28 = vld [vmem:[%s38769_s3 + $0x3d4] ss:$52 sps:$4 sm:$0xff]  }
 0x260   :  { %6160 = vmatprep.subr.bf16.mxu1 %v26321_v63  ;;  %v26376_v63 = vld [vmem:[%s38769_s3 + $0x10b8] ss:$52 sps:$4 sm:$0xff]  }
 0x262   :  { %5915 = vmatpush1.bf16.msra.mxu0 %v26316_v24  ;;  %v26379_v24 = vld [vmem:[%s38769_s3 + $0x3d0] ss:$52 sps:$4 sm:$0xff]  }
 0x263   :  { %6161 = vmatpush1.bf16.msra.mxu1 %v26319_v25  ;;  %5925 = vmatprep.subr.bf16.mxu0 %v26324_v26  ;;  %v26384_v25 = vld [vmem:[%s38769_s3 + $0x1124] ss:$52 sps:$4 sm:$0xff]   ;;  %v26387_v26 = vld [vmem:[%s38769_s3 + $0x43c] ss:$52 sps:$4 sm:$0xff]  }
 0x264   :  { %6335 = vmatprep.subr.bf16.mxu1 %v26327_v33  ;;  %v26382_v33 = vld [vmem:[%s38769_s3 + $0x1120] ss:$52 sps:$4 sm:$0xff]  }
 0x265   :  { %5917 = vmatmul.mubr.bf16.vlgmr.msra.gmra.mrb[16].mxu0 %v30061_v57 }
 0x266   :  { %6163 = vmatmul.mubr.bf16.vlgmr.msra.gmra.mrb[12].mxu1 %v30494_v0  ;;  %5926 = vmatpush1.bf16.msra.mxu0 %v26322_v6  ;;  %v26385_v6 = vld [vmem:[%s38769_s3 + $0x438] ss:$52 sps:$4 sm:$0xff]  }
 0x267   :  { %5957 = vmatprep.mubr.bf16.mxu0 %v30100_v14  ;;  %6336 = vmatpush1.bf16.msra.mxu1 %v26325_v34  ;;  %v26390_v34 = vld [vmem:[%s38769_s3 + $0x118c] ss:$52 sps:$4 sm:$0xff]  }
 0x268   :  { %6367 = vmatprep.mubr.bf16.mxu1 %v30063_v58  ;;  %5927 = vmatprep.subr.bf16.mxu0 %v26330_v35  ;;  %v26393_v35 = vld [vmem:[%s38769_s3 + $0x4a4] ss:$52 sps:$4 sm:$0xff]  }
 0x269   :  { %6337 = vmatprep.subr.bf16.mxu1 %v26333_v40  ;;  %v26388_v40 = vld [vmem:[%s38769_s3 + $0x1188] ss:$52 sps:$4 sm:$0xff]  }
 0x26a   :  { %5928 = vmatpush1.bf16.msra.mxu0 %v26328_v27  ;;  %v26391_v27 = vld [vmem:[%s38769_s3 + $0x4a0] ss:$52 sps:$4 sm:$0xff]  }
 0x26b   :  { %6338 = vmatpush1.bf16.msra.mxu1 %v26331_v41  ;;  %5929 = vmatprep.subr.bf16.mxu0 %v26336_v43  ;;  %v26396_v41 = vld [vmem:[%s38769_s3 + $0x11f4] ss:$52 sps:$4 sm:$0xff]   ;;  %v26399_v43 = vld [vmem:[%s38769_s3 + $0x50c] ss:$52 sps:$4 sm:$0xff]  }
 0x26c   :  { %6339 = vmatprep.subr.bf16.mxu1 %v26339_v44  ;;  %v26394_v44 = vld [vmem:[%s38769_s3 + $0x11f0] ss:$52 sps:$4 sm:$0xff]  }
 0x26e   :  { %5930 = vmatpush1.bf16.msra.mxu0 %v26334_v46  ;;  %v26397_v46 = vld [vmem:[%s38769_s3 + $0x508] ss:$52 sps:$4 sm:$0xff]  }
 0x26f   :  { %6340 = vmatpush1.bf16.msra.mxu1 %v26337_v47  ;;  %5931 = vmatprep.subr.bf16.mxu0 %v26342_v48  ;;  %v26402_v47 = vld [vmem:[%s38769_s3 + $0x125c] ss:$52 sps:$4 sm:$0xff]   ;;  %v26405_v48 = vld [vmem:[%s38769_s3 + $0x574] ss:$52 sps:$4 sm:$0xff]  }
 0x270   :  { %6341 = vmatprep.subr.bf16.mxu1 %v26345_v49  ;;  %v26400_v49 = vld [vmem:[%s38769_s3 + $0x1258] ss:$52 sps:$4 sm:$0xff]  }
 0x272   :  { %5932 = vmatpush1.bf16.msra.mxu0 %v26340_v50  ;;  %v26403_v50 = vld [vmem:[%s38769_s3 + $0x570] ss:$52 sps:$4 sm:$0xff]  }
 0x273   :  { %6342 = vmatpush1.bf16.msra.mxu1 %v26343_v51  ;;  %5933 = vmatprep.subr.bf16.mxu0 %v26348_v52  ;;  %v26408_v51 = vld [vmem:[%s38769_s3 + $0x12c4] ss:$52 sps:$4 sm:$0xff]   ;;  %v26411_v52 = vld [vmem:[%s38769_s3 + $0x5dc] ss:$52 sps:$4 sm:$0xff]  }
 0x274   :  { %6343 = vmatprep.subr.bf16.mxu1 %v26351_v53  ;;  %v26406_v53 = vld [vmem:[%s38769_s3 + $0x12c0] ss:$52 sps:$4 sm:$0xff]  }
 0x276   :  { %5934 = vmatpush1.bf16.msra.mxu0 %v26346_v2  ;;  %v26409_v2 = vld [vmem:[%s38769_s3 + $0x5d8] ss:$52 sps:$4 sm:$0xff]  }
 0x277   :  { %6344 = vmatpush1.bf16.msra.mxu1 %v26349_v54  ;;  %5935 = vmatprep.subr.bf16.mxu0 %v26354_v55  ;;  %v26414_v54 = vld [vmem:[%s38769_s3 + $0x132c] ss:$52 sps:$4 sm:$0xff]   ;;  %v26417_v55 = vld [vmem:[%s38769_s3 + $0x644] ss:$52 sps:$4 sm:$0xff]  }
 0x278   :  { %v31351_v4 = vpop.f32.mrb[8].mxu0  ;;  %6345 = vmatprep.subr.bf16.mxu1 %v26357_v56  ;;  %v26412_v56 = vld [vmem:[%s38769_s3 + $0x1328] ss:$52 sps:$4 sm:$0xff]  }
 0x279   :  { %v31356_v8 = vpop.f32.mrb[9].mxu0 }
 0x27a   :  { %v5676_v9 = vpop.f32.mrb[10].mxu0  ;;  %5936 = vmatpush1.bf16.msra.mxu0 %v26352_v59  ;;  %v26415_v59 = vld [vmem:[%s38769_s3 + $0x640] ss:$52 sps:$4 sm:$0xff]  }
 0x27b   :  { %6346 = vmatpush1.bf16.msra.mxu1 %v26355_v62  ;;  %v5677_v11 = vpop.f32.mrb[11].mxu0  ;;  %5937 = vmatprep.subr.bf16.mxu0 %v26360_v1  ;;  %v26420_v62 = vld [vmem:[%s38769_s3 + $0x1394] ss:$52 sps:$4 sm:$0xff]   ;;  %v26423_v1 = vld [vmem:[%s38769_s3 + $0x6ac] ss:$52 sps:$4 sm:$0xff]  }
 0x27c   :  { %6347 = vmatprep.subr.bf16.mxu1 %v26363_v5  ;;  %v26418_v5 = vld [vmem:[%s38769_s3 + $0x1390] ss:$52 sps:$4 sm:$0xff]   ;;  %v26421_v9 = vld [vmem:[%s38769_s3 + $0x6a8] ss:$52 sps:$4 sm:$0xff]  }
 0x27d   :  { %v26429_v11 = vld [vmem:[%s38769_s3 + $0x714] ss:$52 sps:$4 sm:$0xff]  }
 0x27e   :  { %5938 = vmatpush1.bf16.msra.mxu0 %v26358_v10  ;;  %v26426_v10 = vld [vmem:[%s38769_s3 + $0x13fc] ss:$52 sps:$4 sm:$0xff]  }
 0x27f   :  { %6348 = vmatpush1.bf16.msra.mxu1 %v26361_v13  ;;  %5939 = vmatprep.subr.bf16.mxu0 %v26366_v15  ;;  %v26424_v13 = vld [vmem:[%s38769_s3 + $0x13f8] ss:$52 sps:$4 sm:$0xff]   ;;  %v26427_v15 = vld [vmem:[%s38769_s3 + $0x710] ss:$52 sps:$4 sm:$0xff]  }
 0x280   :  { %6349 = vmatprep.subr.bf16.mxu1 %v26369_v16  ;;  %v26432_v16 = vld [vmem:[%s38769_s3 + $0x1464] ss:$52 sps:$4 sm:$0xff]  }
 0x282   :  { %5940 = vmatpush1.bf16.msra.mxu0 %v26364_v17  ;;  %v26435_v17 = vld [vmem:[%s38769_s3 + $0x77c] ss:$52 sps:$4 sm:$0xff]  }
 0x283   :  { %6350 = vmatpush1.bf16.msra.mxu1 %v26367_v18  ;;  %5941 = vmatprep.subr.bf16.mxu0 %v26372_v19  ;;  %v26430_v18 = vld [vmem:[%s38769_s3 + $0x1460] ss:$52 sps:$4 sm:$0xff]   ;;  %v26433_v19 = vld [vmem:[%s38769_s3 + $0x778] ss:$52 sps:$4 sm:$0xff]  }
 0x284   :  { %6351 = vmatprep.subr.bf16.mxu1 %v26375_v20  ;;  %v26438_v20 = vld [vmem:[%s38769_s3 + $0x14cc] ss:$52 sps:$4 sm:$0xff]  }
 0x286   :  { %5942 = vmatpush1.bf16.msra.mxu0 %v26370_v21  ;;  %v26441_v21 = vld [vmem:[%s38769_s3 + $0x7e4] ss:$52 sps:$4 sm:$0xff]  }
 0x287   :  { %6352 = vmatpush1.bf16.msra.mxu1 %v26373_v22  ;;  %5943 = vmatprep.subr.bf16.mxu0 %v26378_v23  ;;  %v26436_v22 = vld [vmem:[%s38769_s3 + $0x14c8] ss:$52 sps:$4 sm:$0xff]   ;;  %v26439_v23 = vld [vmem:[%s38769_s3 + $0x7e0] ss:$52 sps:$4 sm:$0xff]  }
 0x288   :  { %6353 = vmatprep.subr.bf16.mxu1 %v26381_v28  ;;  %v26444_v28 = vld [vmem:[%s38769_s3 + $0x1534] ss:$52 sps:$4 sm:$0xff]  }
 0x28a   :  { %5944 = vmatpush1.bf16.msra.mxu0 %v26376_v63  ;;  %v26447_v63 = vld [vmem:[%s38769_s3 + $0x84c] ss:$52 sps:$4 sm:$0xff]  }
 0x28b   :  { %6354 = vmatpush1.bf16.msra.mxu1 %v26379_v24  ;;  %5945 = vmatprep.subr.bf16.mxu0 %v26384_v25  ;;  %v26442_v24 = vld [vmem:[%s38769_s3 + $0x1530] ss:$52 sps:$4 sm:$0xff]   ;;  %v26445_v25 = vld [vmem:[%s38769_s3 + $0x848] ss:$52 sps:$4 sm:$0xff]  }
 0x28c   :  { %6355 = vmatprep.subr.bf16.mxu1 %v26387_v26  ;;  %v26450_v26 = vld [vmem:[%s38769_s3 + $0x159c] ss:$52 sps:$4 sm:$0xff]  }
 0x28e   :  { %5946 = vmatpush1.bf16.msra.mxu0 %v26382_v33  ;;  %v1222_v33 = vld [vmem:[%s38771_s4] sm:$0xff] }
 0x28f   :  { %6356 = vmatpush1.bf16.msra.mxu1 %v26385_v6  ;;  %5947 = vmatprep.subr.bf16.mxu0 %v26390_v34  ;;  %v26453_v6 = vld [vmem:[%s38769_s3 + $0x8b4] ss:$52 sps:$4 sm:$0xff]   ;;  %v1237_v34 = vrot.slane %v1222_v33, %v30033_v30 }
 0x290   :  { %6357 = vmatprep.subr.bf16.mxu1 %v26393_v35  ;;  %v1241_v35 = vrot.slane %v1222_v33, %v30039_v32  ;;  %v26499_v33 = vld [vmem:[%s38769_s3 + $0xbf0] ss:$52 sps:$4 sm:$0xff]  }
 0x292   :  { %5948 = vmatpush1.bf16.msra.mxu0 %v26388_v40  ;;  %v26448_v40 = vld [vmem:[%s38769_s3 + $0x1598] ss:$52 sps:$4 sm:$0xff]  }
 0x293   :  { %6358 = vmatpush1.bf16.msra.mxu1 %v26391_v27  ;;  %5949 = vmatprep.subr.bf16.mxu0 %v26396_v41  ;;  %v26451_v27 = vld [vmem:[%s38769_s3 + $0x8b0] ss:$52 sps:$4 sm:$0xff]  }
 0x294   :  { %6359 = vmatprep.subr.bf16.mxu1 %v26399_v43  ;;  %v26456_v41 = vld [vmem:[%s38769_s3 + $0x1604] ss:$52 sps:$4 sm:$0xff]  }
 0x296   :  { %5950 = vmatpush1.bf16.msra.mxu0 %v26394_v44  ;;  %v26459_v44 = vld [vmem:[%s38769_s3 + $0x91c] ss:$52 sps:$4 sm:$0xff]  }
 0x297   :  { %6360 = vmatpush1.bf16.msra.mxu1 %v26397_v46  ;;  %5951 = vmatprep.subr.bf16.mxu0 %v26402_v47 }
 0x298   :  { %6361 = vmatprep.subr.bf16.mxu1 %v26405_v48 }
 0x29a   :  { %5952 = vmatpush1.bf16.msra.mxu0 %v26400_v49 }
 0x29b   :  { %6362 = vmatpush1.bf16.msra.mxu1 %v26403_v50  ;;  %5953 = vmatprep.subr.bf16.mxu0 %v26408_v51  ;;  %v26454_v50 = vld [vmem:[%s38769_s3 + $0x1600] ss:$52 sps:$4 sm:$0xff]  }
 0x29c   :  { %6363 = vmatprep.subr.bf16.mxu1 %v26411_v52 }
 0x29e   :  { %5954 = vmatpush1.bf16.msra.mxu0 %v26406_v53  ;;  %v26457_v53 = vld [vmem:[%s38769_s3 + $0x918] ss:$52 sps:$4 sm:$0xff]  }
 0x29f   :  { %6364 = vmatpush1.bf16.msra.mxu1 %v26409_v2  ;;  %5955 = vmatprep.subr.bf16.mxu0 %v26414_v54  ;;  %v26462_v2 = vld [vmem:[%s38769_s3 + $0x166c] ss:$52 sps:$4 sm:$0xff]  }
 0x2a0   :  { %6365 = vmatprep.subr.bf16.mxu1 %v26417_v55  ;;  %v26460_v55 = vld [vmem:[%s38769_s3 + $0x1668] ss:$52 sps:$4 sm:$0xff]  }
 0x2a2   :  { %5956 = vmatpush1.bf16.msra.mxu0 %v26412_v56  ;;  %v26463_v56 = vld [vmem:[%s38769_s3 + $0x980] ss:$52 sps:$4 sm:$0xff]  }
 0x2a3   :  { %6366 = vmatpush1.bf16.msra.mxu1 %v26415_v59  ;;  %5966 = vmatprep.subr.bf16.mxu0 %v26420_v62  ;;  %v26471_v59 = vld [vmem:[%s38769_s3 + $0x9ec] ss:$52 sps:$4 sm:$0xff]   ;;  %v26466_v62 = vld [vmem:[%s38769_s3 + $0x16d0] ss:$52 sps:$4 sm:$0xff]  }
 0x2a4   :  { %6376 = vmatprep.subr.bf16.mxu1 %v26423_v1  ;;  %v26469_v1 = vld [vmem:[%s38769_s3 + $0x9e8] ss:$52 sps:$4 sm:$0xff]  }
 0x2a5   :  { %5958 = vmatmul.mubr.bf16.vlgmr.msra.gmra.mrb[16].mxu0 %v30289_v37 }
 0x2a6   :  { %6368 = vmatmul.mubr.bf16.vlgmr.msra.gmra.mrb[16].mxu1 %v30067_v60  ;;  %5967 = vmatpush1.bf16.msra.mxu0 %v26418_v5  ;;  %v26474_v5 = vld [vmem:[%s38769_s3 + $0x173c] ss:$52 sps:$4 sm:$0xff]  }
 0x2a7   :  { %5998 = vmatprep.mubr.bf16.mxu0 %v30304_v42  ;;  %6377 = vmatpush1.bf16.msra.mxu1 %v26421_v9  ;;  %v26477_v9 = vld [vmem:[%s38769_s3 + $0xa54] ss:$52 sps:$4 sm:$0xff]  }
 0x2a8   :  { %6408 = vmatprep.mubr.bf16.mxu1 %v30069_v61  ;;  %5968 = vmatprep.subr.bf16.mxu0 %v26426_v10  ;;  %v26472_v10 = vld [vmem:[%s38769_s3 + $0x1738] ss:$52 sps:$4 sm:$0xff]  }
 0x2a9   :  { %6378 = vmatprep.subr.bf16.mxu1 %v26429_v11  ;;  %v26475_v11 = vld [vmem:[%s38769_s3 + $0xa50] ss:$52 sps:$4 sm:$0xff]  }
 0x2aa   :  { %5969 = vmatpush1.bf16.msra.mxu0 %v26424_v13  ;;  %v26480_v13 = vld [vmem:[%s38769_s3 + $0x17a4] ss:$52 sps:$4 sm:$0xff]  }
 0x2ab   :  { %6379 = vmatpush1.bf16.msra.mxu1 %v26427_v15  ;;  %5970 = vmatprep.subr.bf16.mxu0 %v26432_v16  ;;  %v26483_v15 = vld [vmem:[%s38769_s3 + $0xabc] ss:$52 sps:$4 sm:$0xff]   ;;  %v26478_v16 = vld [vmem:[%s38769_s3 + $0x17a0] ss:$52 sps:$4 sm:$0xff]  }
 0x2ac   :  { %6380 = vmatprep.subr.bf16.mxu1 %v26435_v17  ;;  %v26481_v17 = vld [vmem:[%s38769_s3 + $0xab8] ss:$52 sps:$4 sm:$0xff]  }
 0x2ae   :  { %5971 = vmatpush1.bf16.msra.mxu0 %v26430_v18  ;;  %v26486_v18 = vld [vmem:[%s38769_s3 + $0x180c] ss:$52 sps:$4 sm:$0xff]  }
 0x2af   :  { %6381 = vmatpush1.bf16.msra.mxu1 %v26433_v19  ;;  %5972 = vmatprep.subr.bf16.mxu0 %v26438_v20  ;;  %v26489_v19 = vld [vmem:[%s38769_s3 + $0xb24] ss:$52 sps:$4 sm:$0xff]   ;;  %v26484_v20 = vld [vmem:[%s38769_s3 + $0x1808] ss:$52 sps:$4 sm:$0xff]  }
 0x2b0   :  { %6382 = vmatprep.subr.bf16.mxu1 %v26441_v21  ;;  %v26487_v21 = vld [vmem:[%s38769_s3 + $0xb20] ss:$52 sps:$4 sm:$0xff]  }
 0x2b2   :  { %5973 = vmatpush1.bf16.msra.mxu0 %v26436_v22  ;;  %v26492_v22 = vld [vmem:[%s38769_s3 + $0x1874] ss:$52 sps:$4 sm:$0xff]  }
 0x2b3   :  { %6383 = vmatpush1.bf16.msra.mxu1 %v26439_v23  ;;  %5974 = vmatprep.subr.bf16.mxu0 %v26444_v28  ;;  %v26495_v23 = vld [vmem:[%s38769_s3 + $0xb8c] ss:$52 sps:$4 sm:$0xff]   ;;  %v26490_v28 = vld [vmem:[%s38769_s3 + $0x1870] ss:$52 sps:$4 sm:$0xff]  }
 0x2b4   :  { %6384 = vmatprep.subr.bf16.mxu1 %v26447_v63  ;;  %v26493_v63 = vld [vmem:[%s38769_s3 + $0xb88] ss:$52 sps:$4 sm:$0xff]  }
 0x2b6   :  { %5975 = vmatpush1.bf16.msra.mxu0 %v26442_v24  ;;  %v26498_v24 = vld [vmem:[%s38769_s3 + $0x18dc] ss:$52 sps:$4 sm:$0xff]  }
 0x2b7   :  { %6385 = vmatpush1.bf16.msra.mxu1 %v26445_v25  ;;  %5976 = vmatprep.subr.bf16.mxu0 %v26450_v26  ;;  %v26501_v25 = vld [vmem:[%s38769_s3 + $0xbf4] ss:$52 sps:$4 sm:$0xff]   ;;  %v26496_v26 = vld [vmem:[%s38769_s3 + $0x18d8] ss:$52 sps:$4 sm:$0xff]  }
 0x2b8   :  { %v5713_v43 = vpop.f32.mrb[12].mxu0  ;;  %6386 = vmatprep.subr.bf16.mxu1 %v26453_v6  ;;  %v26504_v6 = vld [vmem:[%s38769_s3 + $0x1944] ss:$52 sps:$4 sm:$0xff]  }
 0x2b9   :  { %v5714_v46 = vadd.f32 %v5713_v43, %v1237_v34  ;;  %v5715_v47 = vpop.f32.mrb[13].mxu0  ;;  %v26507_v34 = vld [vmem:[%s38769_s3 + $0xc5c] ss:$52 sps:$4 sm:$0xff]  }
 0x2ba   :  { %v5716_v48 = vadd.f32 %v5715_v47, %v1241_v35  ;;  %v5717_v49 = vpop.f32.mrb[14].mxu0  ;;  %5977 = vmatpush1.bf16.msra.mxu0 %v26448_v40  ;;  %v26502_v35 = vld [vmem:[%s38769_s3 + $0x1940] ss:$52 sps:$4 sm:$0xff]   ;;  %v26505_v40 = vld [vmem:[%s38769_s3 + $0xc58] ss:$52 sps:$4 sm:$0xff]  }
 0x2bb   :  { %v31563_v51 = vadd.f32 %v31154_v38, %v5714_v46  ;;  %6387 = vmatpush1.bf16.msra.mxu1 %v26451_v27  ;;  %v5718_v52 = vpop.f32.mrb[15].mxu0  ;;  %5978 = vmatprep.subr.bf16.mxu0 %v26456_v41  ;;  %v26465_v38 = vld [vmem:[%s38769_s3 + $0x984] ss:$52 sps:$4 sm:$0xff]   ;;  %v26510_v27 = vld [vmem:[%s38769_s3 + $0x19ac] ss:$52 sps:$4 sm:$0xff]  }
 0x2bc   :  { %v31572_v54 = vadd.f32 %v31156_v39, %v5716_v48  ;;  %6388 = vmatprep.subr.bf16.mxu1 %v26459_v44  ;;  %v26468_v39 = vld [vmem:[%s38769_s3 + $0x16d4] ss:$52 sps:$4 sm:$0xff]   ;;  %v26513_v41 = vld [vmem:[%s38769_s3 + $0xcc4] ss:$52 sps:$4 sm:$0xff]   ;;  %v26519_v47 = vld [vmem:[%s38769_s3 + $0xd2c] ss:$52 sps:$4 sm:$0xff]  }
 0x2bd   :  { %v26508_v43 = vld [vmem:[%s38769_s3 + $0x19a8] ss:$52 sps:$4 sm:$0xff]   ;;  %v26511_v44 = vld [vmem:[%s38769_s3 + $0xcc0] ss:$52 sps:$4 sm:$0xff]   ;;  %v26516_v46 = vld [vmem:[%s38769_s3 + $0x24] ss:$52 sps:$4 sm:$0xff]  }
 0x2be   :  { %5979 = vmatpush1.bf16.msra.mxu0 %v26454_v50  ;;  %v26514_v48 = vld [vmem:[%s38769_s3 + $0x20] ss:$52 sps:$4 sm:$0xff]   ;;  %v26517_v49 = vld [vmem:[%s38769_s3 + $0xd28] ss:$52 sps:$4 sm:$0xff]  }
 0x2bf   :  { %6389 = vmatpush1.bf16.msra.mxu1 %v26457_v53  ;;  %5980 = vmatprep.subr.bf16.mxu0 %v26462_v2  ;;  %v26522_v50 = vld [vmem:[%s38769_s3 + $0x8c] ss:$52 sps:$4 sm:$0xff]   ;;  %v26525_v52 = vld [vmem:[%s38769_s3 + $0xd94] ss:$52 sps:$4 sm:$0xff]   ;;  %v26523_v2 = vld [vmem:[%s38769_s3 + $0xd90] ss:$52 sps:$4 sm:$0xff]  }
 0x2c0   :  { %6390 = vmatprep.subr.bf16.mxu1 %v26465_v38  ;;  %v26520_v53 = vld [vmem:[%s38769_s3 + $0x88] ss:$52 sps:$4 sm:$0xff]  }
 0x2c1   :  { %v26528_v38 = vld [vmem:[%s38769_s3 + $0xf4] ss:$52 sps:$4 sm:$0xff]  }
 0x2c2   :  { %5981 = vmatpush1.bf16.msra.mxu0 %v26460_v55  ;;  %v26531_v55 = vld [vmem:[%s38769_s3 + $0xdfc] ss:$52 sps:$4 sm:$0xff]  }
 0x2c3   :  { %6391 = vmatpush1.bf16.msra.mxu1 %v26463_v56  ;;  %5982 = vmatprep.subr.bf16.mxu0 %v26468_v39  ;;  %v26526_v56 = vld [vmem:[%s38769_s3 + $0xf0] ss:$52 sps:$4 sm:$0xff]   ;;  %v26529_v39 = vld [vmem:[%s38769_s3 + $0xdf8] ss:$52 sps:$4 sm:$0xff]  }
 0x2c4   :  { %6392 = vmatprep.subr.bf16.mxu1 %v26471_v59  ;;  %v26534_v59 = vld [vmem:[%s38769_s3 + $0x15c] ss:$52 sps:$4 sm:$0xff]  }
 0x2c6   :  { %5983 = vmatpush1.bf16.msra.mxu0 %v26466_v62  ;;  %v26537_v62 = vld [vmem:[%s38769_s3 + $0xe64] ss:$52 sps:$4 sm:$0xff]  }
 0x2c7   :  { %6393 = vmatpush1.bf16.msra.mxu1 %v26469_v1  ;;  %5984 = vmatprep.subr.bf16.mxu0 %v26474_v5  ;;  %v26532_v1 = vld [vmem:[%s38769_s3 + $0x158] ss:$52 sps:$4 sm:$0xff]   ;;  %v26535_v5 = vld [vmem:[%s38769_s3 + $0xe60] ss:$52 sps:$4 sm:$0xff]  }
 0x2c8   :  { %6394 = vmatprep.subr.bf16.mxu1 %v26477_v9  ;;  %v26540_v9 = vld [vmem:[%s38769_s3 + $0x1c4] ss:$52 sps:$4 sm:$0xff]  }
 0x2ca   :  { %5985 = vmatpush1.bf16.msra.mxu0 %v26472_v10  ;;  %v26543_v10 = vld [vmem:[%s38769_s3 + $0xecc] ss:$52 sps:$4 sm:$0xff]  }
 0x2cb   :  { %6395 = vmatpush1.bf16.msra.mxu1 %v26475_v11  ;;  %5986 = vmatprep.subr.bf16.mxu0 %v26480_v13  ;;  %v26538_v11 = vld [vmem:[%s38769_s3 + $0x1c0] ss:$52 sps:$4 sm:$0xff]   ;;  %v26541_v13 = vld [vmem:[%s38769_s3 + $0xec8] ss:$52 sps:$4 sm:$0xff]  }
 0x2cc   :  { %6396 = vmatprep.subr.bf16.mxu1 %v26483_v15  ;;  %v26546_v15 = vld [vmem:[%s38769_s3 + $0x22c] ss:$52 sps:$4 sm:$0xff]  }
 0x2ce   :  { %5987 = vmatpush1.bf16.msra.mxu0 %v26478_v16  ;;  %v26549_v16 = vld [vmem:[%s38769_s3 + $0xf34] ss:$52 sps:$4 sm:$0xff]  }
 0x2cf   :  { %6397 = vmatpush1.bf16.msra.mxu1 %v26481_v17  ;;  %5988 = vmatprep.subr.bf16.mxu0 %v26486_v18  ;;  %v26544_v17 = vld [vmem:[%s38769_s3 + $0x228] ss:$52 sps:$4 sm:$0xff]   ;;  %v26547_v18 = vld [vmem:[%s38769_s3 + $0xf30] ss:$52 sps:$4 sm:$0xff]  }
 0x2d0   :  { %6398 = vmatprep.subr.bf16.mxu1 %v26489_v19  ;;  %v26552_v19 = vld [vmem:[%s38769_s3 + $0x294] ss:$52 sps:$4 sm:$0xff]  }
 0x2d2   :  { %5989 = vmatpush1.bf16.msra.mxu0 %v26484_v20  ;;  %v26555_v20 = vld [vmem:[%s38769_s3 + $0xf9c] ss:$52 sps:$4 sm:$0xff]  }
 0x2d3   :  { %6399 = vmatpush1.bf16.msra.mxu1 %v26487_v21  ;;  %5990 = vmatprep.subr.bf16.mxu0 %v26492_v22  ;;  %v26550_v21 = vld [vmem:[%s38769_s3 + $0x290] ss:$52 sps:$4 sm:$0xff]   ;;  %v26553_v22 = vld [vmem:[%s38769_s3 + $0xf98] ss:$52 sps:$4 sm:$0xff]  }
 0x2d4   :  { %6400 = vmatprep.subr.bf16.mxu1 %v26495_v23  ;;  %v26558_v23 = vld [vmem:[%s38769_s3 + $0x2fc] ss:$52 sps:$4 sm:$0xff]  }
 0x2d6   :  { %5991 = vmatpush1.bf16.msra.mxu0 %v26490_v28  ;;  %v26561_v28 = vld [vmem:[%s38769_s3 + $0x1004] ss:$52 sps:$4 sm:$0xff]  }
 0x2d7   :  { %6401 = vmatpush1.bf16.msra.mxu1 %v26493_v63  ;;  %5992 = vmatprep.subr.bf16.mxu0 %v26498_v24  ;;  %v26556_v63 = vld [vmem:[%s38769_s3 + $0x2f8] ss:$52 sps:$4 sm:$0xff]   ;;  %v26559_v24 = vld [vmem:[%s38769_s3 + $0x1000] ss:$52 sps:$4 sm:$0xff]  }
 0x2d8   :  { %6402 = vmatprep.subr.bf16.mxu1 %v26501_v25  ;;  %v26564_v25 = vld [vmem:[%s38769_s3 + $0x364] ss:$52 sps:$4 sm:$0xff]  }
 0x2da   :  { %5993 = vmatpush1.bf16.msra.mxu0 %v26496_v26  ;;  %v26567_v26 = vld [vmem:[%s38769_s3 + $0x106c] ss:$52 sps:$4 sm:$0xff]  }
 0x2db   :  { %6403 = vmatpush1.bf16.msra.mxu1 %v26499_v33  ;;  %5994 = vmatprep.subr.bf16.mxu0 %v26504_v6  ;;  %v26562_v33 = vld [vmem:[%s38769_s3 + $0x360] ss:$52 sps:$4 sm:$0xff]   ;;  %v26565_v6 = vld [vmem:[%s38769_s3 + $0x1068] ss:$52 sps:$4 sm:$0xff]  }
 0x2dc   :  { %6404 = vmatprep.subr.bf16.mxu1 %v26507_v34  ;;  %v26570_v34 = vld [vmem:[%s38769_s3 + $0x3cc] ss:$52 sps:$4 sm:$0xff]  }
 0x2de   :  { %5995 = vmatpush1.bf16.msra.mxu0 %v26502_v35  ;;  %v26573_v35 = vld [vmem:[%s38769_s3 + $0x10d4] ss:$52 sps:$4 sm:$0xff]  }
 0x2df   :  { %6405 = vmatpush1.bf16.msra.mxu1 %v26505_v40  ;;  %5996 = vmatprep.subr.bf16.mxu0 %v26510_v27  ;;  %v26568_v40 = vld [vmem:[%s38769_s3 + $0x3c8] ss:$52 sps:$4 sm:$0xff]   ;;  %v26571_v27 = vld [vmem:[%s38769_s3 + $0x10d0] ss:$52 sps:$4 sm:$0xff]  }
 0x2e0   :  { %6406 = vmatprep.subr.bf16.mxu1 %v26513_v41  ;;  %v26576_v41 = vld [vmem:[%s38769_s3 + $0x434] ss:$52 sps:$4 sm:$0xff]  }
 0x2e2   :  { %5997 = vmatpush1.bf16.msra.mxu0 %v26508_v43  ;;  %v26574_v43 = vld [vmem:[%s38769_s3 + $0x430] ss:$52 sps:$4 sm:$0xff]  }
 0x2e3   :  { %6407 = vmatpush1.bf16.msra.mxu1 %v26511_v44  ;;  %6171 = vmatprep.subr.bf16.mxu0 %v26516_v46  ;;  %v26579_v44 = vld [vmem:[%s38769_s3 + $0x113c] ss:$52 sps:$4 sm:$0xff]   ;;  %v26577_v46 = vld [vmem:[%s38769_s3 + $0x1138] ss:$52 sps:$4 sm:$0xff]  }
 0x2e4   :  { %6417 = vmatprep.subr.bf16.mxu1 %v26519_v47  ;;  %v26582_v47 = vld [vmem:[%s38769_s3 + $0x49c] ss:$52 sps:$4 sm:$0xff]  }
 0x2e5   :  { %5999 = vmatmul.mubr.bf16.vlgmr.msra.gmra.mrb[16].mxu0 %v30494_v0 }
 0x2e6   :  { %6409 = vmatmul.mubr.bf16.vlgmr.msra.gmra.mrb[16].mxu1 %v30061_v57  ;;  %6172 = vmatpush1.bf16.msra.mxu0 %v26514_v48  ;;  %v26580_v48 = vld [vmem:[%s38769_s3 + $0x498] ss:$52 sps:$4 sm:$0xff]  }
 0x2e7   :  { %6203 = vmatprep.mubr.bf16.mxu0 %v30063_v58  ;;  %6418 = vmatpush1.bf16.msra.mxu1 %v26517_v49  ;;  %v26585_v49 = vld [vmem:[%s38769_s3 + $0x11a4] ss:$52 sps:$4 sm:$0xff]  }
 0x2e8   :  { %6449 = vmatprep.mubr.bf16.mxu1 %v30100_v14  ;;  %6173 = vmatprep.subr.bf16.mxu0 %v26522_v50  ;;  %v26583_v50 = vld [vmem:[%s38769_s3 + $0x11a0] ss:$52 sps:$4 sm:$0xff]  }
 0x2e9   :  { %6419 = vmatprep.subr.bf16.mxu1 %v26525_v52  ;;  %v26588_v52 = vld [vmem:[%s38769_s3 + $0x504] ss:$52 sps:$4 sm:$0xff]  }
 0x2ea   :  { %6174 = vmatpush1.bf16.msra.mxu0 %v26520_v53  ;;  %v26586_v53 = vld [vmem:[%s38769_s3 + $0x500] ss:$52 sps:$4 sm:$0xff]  }
 0x2eb   :  { %6420 = vmatpush1.bf16.msra.mxu1 %v26523_v2  ;;  %6175 = vmatprep.subr.bf16.mxu0 %v26528_v38  ;;  %v26591_v2 = vld [vmem:[%s38769_s3 + $0x120c] ss:$52 sps:$4 sm:$0xff]   ;;  %v26589_v38 = vld [vmem:[%s38769_s3 + $0x1208] ss:$52 sps:$4 sm:$0xff]  }
 0x2ec   :  { %6421 = vmatprep.subr.bf16.mxu1 %v26531_v55  ;;  %v26594_v55 = vld [vmem:[%s38769_s3 + $0x56c] ss:$52 sps:$4 sm:$0xff]  }
 0x2ee   :  { %6176 = vmatpush1.bf16.msra.mxu0 %v26526_v56  ;;  %v26592_v56 = vld [vmem:[%s38769_s3 + $0x568] ss:$52 sps:$4 sm:$0xff]  }
 0x2ef   :  { %6422 = vmatpush1.bf16.msra.mxu1 %v26529_v39  ;;  %6177 = vmatprep.subr.bf16.mxu0 %v26534_v59  ;;  %v26597_v39 = vld [vmem:[%s38769_s3 + $0x1274] ss:$52 sps:$4 sm:$0xff]   ;;  %v26595_v59 = vld [vmem:[%s38769_s3 + $0x1270] ss:$52 sps:$4 sm:$0xff]  }
 0x2f0   :  { %6423 = vmatprep.subr.bf16.mxu1 %v26537_v62  ;;  %v26600_v62 = vld [vmem:[%s38769_s3 + $0x5d4] ss:$52 sps:$4 sm:$0xff]  }
 0x2f2   :  { %6178 = vmatpush1.bf16.msra.mxu0 %v26532_v1  ;;  %v26598_v1 = vld [vmem:[%s38769_s3 + $0x5d0] ss:$52 sps:$4 sm:$0xff]  }
 0x2f3   :  { %6424 = vmatpush1.bf16.msra.mxu1 %v26535_v5  ;;  %6179 = vmatprep.subr.bf16.mxu0 %v26540_v9  ;;  %v26603_v5 = vld [vmem:[%s38769_s3 + $0x12dc] ss:$52 sps:$4 sm:$0xff]   ;;  %v26601_v9 = vld [vmem:[%s38769_s3 + $0x12d8] ss:$52 sps:$4 sm:$0xff]  }
 0x2f4   :  { %6425 = vmatprep.subr.bf16.mxu1 %v26543_v10  ;;  %v26606_v10 = vld [vmem:[%s38769_s3 + $0x63c] ss:$52 sps:$4 sm:$0xff]  }
 0x2f6   :  { %6180 = vmatpush1.bf16.msra.mxu0 %v26538_v11  ;;  %v26604_v11 = vld [vmem:[%s38769_s3 + $0x638] ss:$52 sps:$4 sm:$0xff]  }
 0x2f7   :  { %6426 = vmatpush1.bf16.msra.mxu1 %v26541_v13  ;;  %6181 = vmatprep.subr.bf16.mxu0 %v26546_v15  ;;  %v26609_v13 = vld [vmem:[%s38769_s3 + $0x1344] ss:$52 sps:$4 sm:$0xff]   ;;  %v26607_v15 = vld [vmem:[%s38769_s3 + $0x1340] ss:$52 sps:$4 sm:$0xff]  }
 0x2f8   :  { %6427 = vmatprep.subr.bf16.mxu1 %v26549_v16  ;;  %v26612_v16 = vld [vmem:[%s38769_s3 + $0x6a4] ss:$52 sps:$4 sm:$0xff]  }
 0x2fa   :  { %6182 = vmatpush1.bf16.msra.mxu0 %v26544_v17  ;;  %v26610_v17 = vld [vmem:[%s38769_s3 + $0x6a0] ss:$52 sps:$4 sm:$0xff]  }
 0x2fb   :  { %6428 = vmatpush1.bf16.msra.mxu1 %v26547_v18  ;;  %6183 = vmatprep.subr.bf16.mxu0 %v26552_v19  ;;  %v26615_v18 = vld [vmem:[%s38769_s3 + $0x13ac] ss:$52 sps:$4 sm:$0xff]   ;;  %v26613_v19 = vld [vmem:[%s38769_s3 + $0x13a8] ss:$52 sps:$4 sm:$0xff]  }
 0x2fc   :  { %6429 = vmatprep.subr.bf16.mxu1 %v26555_v20  ;;  %v26618_v20 = vld [vmem:[%s38769_s3 + $0x70c] ss:$52 sps:$4 sm:$0xff]  }
 0x2fe   :  { %6184 = vmatpush1.bf16.msra.mxu0 %v26550_v21  ;;  %v26621_v21 = vld [vmem:[%s38769_s3 + $0x1414] ss:$52 sps:$4 sm:$0xff]  }
 0x2ff   :  { %6430 = vmatpush1.bf16.msra.mxu1 %v26553_v22  ;;  %6185 = vmatprep.subr.bf16.mxu0 %v26558_v23  ;;  %v26616_v22 = vld [vmem:[%s38769_s3 + $0x708] ss:$52 sps:$4 sm:$0xff]   ;;  %v26619_v23 = vld [vmem:[%s38769_s3 + $0x1410] ss:$52 sps:$4 sm:$0xff]  }
 0x300   :  { %6431 = vmatprep.subr.bf16.mxu1 %v26561_v28  ;;  %v26624_v28 = vld [vmem:[%s38769_s3 + $0x774] ss:$52 sps:$4 sm:$0xff]  }
 0x302   :  { %6186 = vmatpush1.bf16.msra.mxu0 %v26556_v63  ;;  %v26622_v63 = vld [vmem:[%s38769_s3 + $0x770] ss:$52 sps:$4 sm:$0xff]  }
 0x303   :  { %6432 = vmatpush1.bf16.msra.mxu1 %v26559_v24  ;;  %6187 = vmatprep.subr.bf16.mxu0 %v26564_v25  ;;  %v26627_v24 = vld [vmem:[%s38769_s3 + $0x147c] ss:$52 sps:$4 sm:$0xff]   ;;  %v26625_v25 = vld [vmem:[%s38769_s3 + $0x1478] ss:$52 sps:$4 sm:$0xff]  }
 0x304   :  { %6433 = vmatprep.subr.bf16.mxu1 %v26567_v26  ;;  %v26630_v26 = vld [vmem:[%s38769_s3 + $0x7dc] ss:$52 sps:$4 sm:$0xff]  }
 0x306   :  { %6188 = vmatpush1.bf16.msra.mxu0 %v26562_v33  ;;  %v26628_v33 = vld [vmem:[%s38769_s3 + $0x7d8] ss:$52 sps:$4 sm:$0xff]  }
 0x307   :  { %6434 = vmatpush1.bf16.msra.mxu1 %v26565_v6  ;;  %6189 = vmatprep.subr.bf16.mxu0 %v26570_v34  ;;  %v26633_v6 = vld [vmem:[%s38769_s3 + $0x14e4] ss:$52 sps:$4 sm:$0xff]   ;;  %v26631_v34 = vld [vmem:[%s38769_s3 + $0x14e0] ss:$52 sps:$4 sm:$0xff]  }
 0x308   :  { %6435 = vmatprep.subr.bf16.mxu1 %v26573_v35  ;;  %v26636_v35 = vld [vmem:[%s38769_s3 + $0x844] ss:$52 sps:$4 sm:$0xff]  }
 0x30a   :  { %6190 = vmatpush1.bf16.msra.mxu0 %v26568_v40  ;;  %v26634_v40 = vld [vmem:[%s38769_s3 + $0x840] ss:$52 sps:$4 sm:$0xff]  }
 0x30b   :  { %6436 = vmatpush1.bf16.msra.mxu1 %v26571_v27  ;;  %6191 = vmatprep.subr.bf16.mxu0 %v26576_v41  ;;  %v26639_v27 = vld [vmem:[%s38769_s3 + $0x154c] ss:$52 sps:$4 sm:$0xff]   ;;  %v26637_v41 = vld [vmem:[%s38769_s3 + $0x1548] ss:$52 sps:$4 sm:$0xff]  }
 0x30c   :  { %6437 = vmatprep.subr.bf16.mxu1 %v26579_v44  ;;  %v26645_v44 = vld [vmem:[%s38769_s3 + $0x15b4] ss:$52 sps:$4 sm:$0xff]  }
 0x30e   :  { %6192 = vmatpush1.bf16.msra.mxu0 %v26574_v43  ;;  %v26642_v43 = vld [vmem:[%s38769_s3 + $0x8ac] ss:$52 sps:$4 sm:$0xff]  }
 0x30f   :  { %6438 = vmatpush1.bf16.msra.mxu1 %v26577_v46  ;;  %6193 = vmatprep.subr.bf16.mxu0 %v26582_v47  ;;  %v26640_v46 = vld [vmem:[%s38769_s3 + $0x8a8] ss:$52 sps:$4 sm:$0xff]   ;;  %v26643_v47 = vld [vmem:[%s38769_s3 + $0x15b0] ss:$52 sps:$4 sm:$0xff]  }
 0x310   :  { %6439 = vmatprep.subr.bf16.mxu1 %v26585_v49  ;;  %v26651_v49 = vld [vmem:[%s38769_s3 + $0x161c] ss:$52 sps:$4 sm:$0xff]  }
 0x312   :  { %6194 = vmatpush1.bf16.msra.mxu0 %v26580_v48  ;;  %v26648_v48 = vld [vmem:[%s38769_s3 + $0x914] ss:$52 sps:$4 sm:$0xff]  }
 0x313   :  { %6440 = vmatpush1.bf16.msra.mxu1 %v26583_v50  ;;  %6195 = vmatprep.subr.bf16.mxu0 %v26588_v52  ;;  %v26646_v52 = vld [vmem:[%s38769_s3 + $0x910] ss:$52 sps:$4 sm:$0xff]  }
 0x314   :  { %6441 = vmatprep.subr.bf16.mxu1 %v26591_v2 }
 0x316   :  { %6196 = vmatpush1.bf16.msra.mxu0 %v26586_v53  ;;  %v26649_v53 = vld [vmem:[%s38769_s3 + $0x1618] ss:$52 sps:$4 sm:$0xff]  }
 0x317   :  { %6442 = vmatpush1.bf16.msra.mxu1 %v26589_v38  ;;  %6197 = vmatprep.subr.bf16.mxu0 %v26594_v55  ;;  %v26654_v38 = vld [vmem:[%s38769_s3 + $0x97c] ss:$52 sps:$4 sm:$0xff]   ;;  %v26657_v55 = vld [vmem:[%s38769_s3 + $0x1684] ss:$52 sps:$4 sm:$0xff]  }
 0x318   :  { %6443 = vmatprep.subr.bf16.mxu1 %v26597_v39 }
 0x31a   :  { %6198 = vmatpush1.bf16.msra.mxu0 %v26592_v56 }
 0x31b   :  { %6444 = vmatpush1.bf16.msra.mxu1 %v26595_v59  ;;  %6199 = vmatprep.subr.bf16.mxu0 %v26600_v62  ;;  %v26652_v59 = vld [vmem:[%s38769_s3 + $0x978] ss:$52 sps:$4 sm:$0xff]   ;;  %v26655_v62 = vld [vmem:[%s38769_s3 + $0x1680] ss:$52 sps:$4 sm:$0xff]  }
 0x31c   :  { %6445 = vmatprep.subr.bf16.mxu1 %v26603_v5  ;;  %v26658_v5 = vld [vmem:[%s38769_s3 + $0x9e0] ss:$52 sps:$4 sm:$0xff]  }
 0x31e   :  { %6200 = vmatpush1.bf16.msra.mxu0 %v26598_v1  ;;  %v26660_v1 = vld [vmem:[%s38769_s3 + $0x9e4] ss:$52 sps:$4 sm:$0xff]  }
 0x31f   :  { %6446 = vmatpush1.bf16.msra.mxu1 %v26601_v9  ;;  %6201 = vmatprep.subr.bf16.mxu0 %v26606_v10  ;;  %v26663_v9 = vld [vmem:[%s38769_s3 + $0x16ec] ss:$52 sps:$4 sm:$0xff]   ;;  %v26661_v10 = vld [vmem:[%s38769_s3 + $0x16e8] ss:$52 sps:$4 sm:$0xff]  }
 0x320   :  { %6447 = vmatprep.subr.bf16.mxu1 %v26609_v13  ;;  %v26669_v13 = vld [vmem:[%s38769_s3 + $0x1754] ss:$52 sps:$4 sm:$0xff]  }
 0x322   :  { %6202 = vmatpush1.bf16.msra.mxu0 %v26604_v11  ;;  %v26666_v11 = vld [vmem:[%s38769_s3 + $0xa4c] ss:$52 sps:$4 sm:$0xff]  }
 0x323   :  { %6448 = vmatpush1.bf16.msra.mxu1 %v26607_v15  ;;  %6212 = vmatprep.subr.bf16.mxu0 %v26612_v16  ;;  %v26664_v15 = vld [vmem:[%s38769_s3 + $0xa48] ss:$52 sps:$4 sm:$0xff]   ;;  %v26667_v16 = vld [vmem:[%s38769_s3 + $0x1750] ss:$52 sps:$4 sm:$0xff]  }
 0x324   :  { %6458 = vmatprep.subr.bf16.mxu1 %v26615_v18  ;;  %v26670_v18 = vld [vmem:[%s38769_s3 + $0xab0] ss:$52 sps:$4 sm:$0xff]  }
 0x325   :  { %6204 = vmatmul.mubr.bf16.vlgmr.msra.gmra.mrb[20].mxu0 %v30067_v60 }
 0x326   :  { %6450 = vmatmul.mubr.bf16.vlgmr.msra.gmra.mrb[16].mxu1 %v30289_v37  ;;  %6213 = vmatpush1.bf16.msra.mxu0 %v26610_v17  ;;  %v26672_v17 = vld [vmem:[%s38769_s3 + $0xab4] ss:$52 sps:$4 sm:$0xff]  }
 0x327   :  { %6244 = vmatprep.mubr.bf16.mxu0 %v30069_v61  ;;  %6459 = vmatpush1.bf16.msra.mxu1 %v26613_v19  ;;  %v26675_v19 = vld [vmem:[%s38769_s3 + $0x17bc] ss:$52 sps:$4 sm:$0xff]  }
 0x328   :  { %6490 = vmatprep.mubr.bf16.mxu1 %v30304_v42  ;;  %6214 = vmatprep.subr.bf16.mxu0 %v26618_v20  ;;  %v26673_v20 = vld [vmem:[%s38769_s3 + $0x17b8] ss:$52 sps:$4 sm:$0xff]  }
 0x329   :  { %6460 = vmatprep.subr.bf16.mxu1 %v26621_v21  ;;  %v26678_v21 = vld [vmem:[%s38769_s3 + $0xb1c] ss:$52 sps:$4 sm:$0xff]  }
 0x32a   :  { %6215 = vmatpush1.bf16.msra.mxu0 %v26616_v22  ;;  %v26676_v22 = vld [vmem:[%s38769_s3 + $0xb18] ss:$52 sps:$4 sm:$0xff]  }
 0x32b   :  { %6461 = vmatpush1.bf16.msra.mxu1 %v26619_v23  ;;  %6216 = vmatprep.subr.bf16.mxu0 %v26624_v28  ;;  %v26681_v23 = vld [vmem:[%s38769_s3 + $0x1824] ss:$52 sps:$4 sm:$0xff]   ;;  %v26679_v28 = vld [vmem:[%s38769_s3 + $0x1820] ss:$52 sps:$4 sm:$0xff]  }
 0x32c   :  { %6462 = vmatprep.subr.bf16.mxu1 %v26627_v24  ;;  %v26682_v24 = vld [vmem:[%s38769_s3 + $0xb80] ss:$52 sps:$4 sm:$0xff]  }
 0x32e   :  { %6217 = vmatpush1.bf16.msra.mxu0 %v26622_v63  ;;  %v26684_v63 = vld [vmem:[%s38769_s3 + $0xb84] ss:$52 sps:$4 sm:$0xff]  }
 0x32f   :  { %6463 = vmatpush1.bf16.msra.mxu1 %v26625_v25  ;;  %6218 = vmatprep.subr.bf16.mxu0 %v26630_v26  ;;  %v26687_v25 = vld [vmem:[%s38769_s3 + $0x188c] ss:$52 sps:$4 sm:$0xff]   ;;  %v26685_v26 = vld [vmem:[%s38769_s3 + $0x1888] ss:$52 sps:$4 sm:$0xff]  }
 0x330   :  { %6464 = vmatprep.subr.bf16.mxu1 %v26633_v6  ;;  %v26688_v6 = vld [vmem:[%s38769_s3 + $0xbe8] ss:$52 sps:$4 sm:$0xff]  }
 0x332   :  { %6219 = vmatpush1.bf16.msra.mxu0 %v26628_v33  ;;  %v26690_v33 = vld [vmem:[%s38769_s3 + $0xbec] ss:$52 sps:$4 sm:$0xff]  }
 0x333   :  { %6465 = vmatpush1.bf16.msra.mxu1 %v26631_v34  ;;  %6220 = vmatprep.subr.bf16.mxu0 %v26636_v35  ;;  %v26693_v34 = vld [vmem:[%s38769_s3 + $0x18f4] ss:$52 sps:$4 sm:$0xff]   ;;  %v26691_v35 = vld [vmem:[%s38769_s3 + $0x18f0] ss:$52 sps:$4 sm:$0xff]  }
 0x334   :  { %6466 = vmatprep.subr.bf16.mxu1 %v26639_v27  ;;  %v26694_v27 = vld [vmem:[%s38769_s3 + $0xc50] ss:$52 sps:$4 sm:$0xff]  }
 0x336   :  { %6221 = vmatpush1.bf16.msra.mxu0 %v26634_v40  ;;  %v26696_v40 = vld [vmem:[%s38769_s3 + $0xc54] ss:$52 sps:$4 sm:$0xff]  }
 0x337   :  { %6467 = vmatpush1.bf16.msra.mxu1 %v26637_v41  ;;  %6222 = vmatprep.subr.bf16.mxu0 %v26642_v43  ;;  %v26699_v41 = vld [vmem:[%s38769_s3 + $0x195c] ss:$52 sps:$4 sm:$0xff]   ;;  %v26697_v43 = vld [vmem:[%s38769_s3 + $0x1958] ss:$52 sps:$4 sm:$0xff]  }
 0x338   :  { %6468 = vmatprep.subr.bf16.mxu1 %v26645_v44  ;;  %v26702_v44 = vld [vmem:[%s38769_s3 + $0xcbc] ss:$52 sps:$4 sm:$0xff]  }
 0x339   :  { %v31957_v50 = vpop.f32.mrb[12].mxu1 }
 0x33a   :  { %v31965_v2 = vpop.f32.mrb[13].mxu1  ;;  %6223 = vmatpush1.bf16.msra.mxu0 %v26640_v46  ;;  %v26700_v46 = vld [vmem:[%s38769_s3 + $0xcb8] ss:$52 sps:$4 sm:$0xff]  }
 0x33b   :  { %v6168_v56 = vpop.f32.mrb[14].mxu1  ;;  %6469 = vmatpush1.bf16.msra.mxu1 %v26643_v47  ;;  %6224 = vmatprep.subr.bf16.mxu0 %v26648_v48  ;;  %v26705_v47 = vld [vmem:[%s38769_s3 + $0x19c4] ss:$52 sps:$4 sm:$0xff]   ;;  %v26703_v48 = vld [vmem:[%s38769_s3 + $0x19c0] ss:$52 sps:$4 sm:$0xff]  }
 0x33c   :  { %v6169_v39 = vpop.f32.mrb[15].mxu1  ;;  %6470 = vmatprep.subr.bf16.mxu1 %v26651_v49  ;;  %v26708_v49 = vld [vmem:[%s38769_s3 + $0xd24] ss:$52 sps:$4 sm:$0xff]  }
 0x33d   :  { %v26714_v56 = vld [vmem:[%s38769_s3 + $0x1758] ss:$52 sps:$4 sm:$0xff]   ;;  %v26711_v39 = vld [vmem:[%s38769_s3 + $0xd88] ss:$52 sps:$4 sm:$0xff]  }
 0x33e   :  { %6225 = vmatpush1.bf16.msra.mxu0 %v26646_v52  ;;  %v26706_v52 = vld [vmem:[%s38769_s3 + $0xd20] ss:$52 sps:$4 sm:$0xff]  }
 0x33f   :  { %6471 = vmatpush1.bf16.msra.mxu1 %v26649_v53  ;;  %6226 = vmatprep.subr.bf16.mxu0 %v26654_v38  ;;  %v26709_v53 = vld [vmem:[%s38769_s3 + $0x16f0] ss:$52 sps:$4 sm:$0xff]  }
 0x340   :  { %6472 = vmatprep.subr.bf16.mxu1 %v26657_v55  ;;  %v26710_v38 = vld [vmem:[%s38769_s3 + $0x13b0] ss:$52 sps:$4 sm:$0xff]   ;;  %v26713_v55 = vld [vmem:[%s38769_s3 + $0xd8c] ss:$52 sps:$4 sm:$0xff]  }
 0x342   :  { %6227 = vmatpush1.bf16.msra.mxu0 %v26652_v59  ;;  %v26715_v59 = vld [vmem:[%s38769_s3 + $0x1418] ss:$52 sps:$4 sm:$0xff]  }
 0x343   :  { %6473 = vmatpush1.bf16.msra.mxu1 %v26655_v62  ;;  %6228 = vmatprep.subr.bf16.mxu0 %v26660_v1  ;;  %v26718_v62 = vld [vmem:[%s38769_s3 + $0xdf4] ss:$52 sps:$4 sm:$0xff]   ;;  %v26716_v1 = vld [vmem:[%s38769_s3 + $0xdf0] ss:$52 sps:$4 sm:$0xff]  }
 0x344   :  { %6474 = vmatprep.subr.bf16.mxu1 %v26663_v9  ;;  %v26720_v9 = vld [vmem:[%s38769_s3 + $0x1480] ss:$52 sps:$4 sm:$0xff]  }
 0x346   :  { %6229 = vmatpush1.bf16.msra.mxu0 %v26658_v5  ;;  %v26719_v5 = vld [vmem:[%s38769_s3 + $0x17c0] ss:$52 sps:$4 sm:$0xff]  }
 0x347   :  { %6475 = vmatpush1.bf16.msra.mxu1 %v26661_v10  ;;  %6230 = vmatprep.subr.bf16.mxu0 %v26666_v11  ;;  %v26723_v10 = vld [vmem:[%s38769_s3 + $0xe5c] ss:$52 sps:$4 sm:$0xff]   ;;  %v26721_v11 = vld [vmem:[%s38769_s3 + $0xe58] ss:$52 sps:$4 sm:$0xff]  }
 0x348   :  { %6476 = vmatprep.subr.bf16.mxu1 %v26669_v13  ;;  %v26724_v13 = vld [vmem:[%s38769_s3 + $0x1828] ss:$52 sps:$4 sm:$0xff]  }
 0x34a   :  { %6231 = vmatpush1.bf16.msra.mxu0 %v26664_v15  ;;  %v26725_v15 = vld [vmem:[%s38769_s3 + $0x14e8] ss:$52 sps:$4 sm:$0xff]  }
 0x34b   :  { %6477 = vmatpush1.bf16.msra.mxu1 %v26667_v16  ;;  %6232 = vmatprep.subr.bf16.mxu0 %v26672_v17  ;;  %v26728_v16 = vld [vmem:[%s38769_s3 + $0xec4] ss:$52 sps:$4 sm:$0xff]   ;;  %v26726_v17 = vld [vmem:[%s38769_s3 + $0xec0] ss:$52 sps:$4 sm:$0xff]  }
 0x34c   :  { %6478 = vmatprep.subr.bf16.mxu1 %v26675_v19  ;;  %v26730_v19 = vld [vmem:[%s38769_s3 + $0x1550] ss:$52 sps:$4 sm:$0xff]  }
 0x34e   :  { %6233 = vmatpush1.bf16.msra.mxu0 %v26670_v18  ;;  %v26729_v18 = vld [vmem:[%s38769_s3 + $0x1890] ss:$52 sps:$4 sm:$0xff]  }
 0x34f   :  { %6479 = vmatpush1.bf16.msra.mxu1 %v26673_v20  ;;  %6234 = vmatprep.subr.bf16.mxu0 %v26678_v21  ;;  %v26733_v20 = vld [vmem:[%s38769_s3 + $0xf2c] ss:$52 sps:$4 sm:$0xff]   ;;  %v26731_v21 = vld [vmem:[%s38769_s3 + $0xf28] ss:$52 sps:$4 sm:$0xff]  }
 0x350   :  { %6480 = vmatprep.subr.bf16.mxu1 %v26681_v23  ;;  %v26735_v23 = vld [vmem:[%s38769_s3 + $0x15b8] ss:$52 sps:$4 sm:$0xff]  }
 0x352   :  { %6235 = vmatpush1.bf16.msra.mxu0 %v26676_v22  ;;  %v26734_v22 = vld [vmem:[%s38769_s3 + $0x18f8] ss:$52 sps:$4 sm:$0xff]  }
 0x353   :  { %6481 = vmatpush1.bf16.msra.mxu1 %v26679_v28  ;;  %6236 = vmatprep.subr.bf16.mxu0 %v26684_v63  ;;  %v26738_v28 = vld [vmem:[%s38769_s3 + $0xf94] ss:$52 sps:$4 sm:$0xff]   ;;  %v26736_v63 = vld [vmem:[%s38769_s3 + $0xf90] ss:$52 sps:$4 sm:$0xff]  }
 0x354   :  { %6482 = vmatprep.subr.bf16.mxu1 %v26687_v25  ;;  %v32163_v25 = vld [vmem:[%s38771_s4] sm:$0xff] }
 0x356   :  { %6237 = vmatpush1.bf16.msra.mxu0 %v26682_v24  ;;  %v26739_v24 = vld [vmem:[%s38769_s3 + $0x1960] ss:$52 sps:$4 sm:$0xff]  }
 0x357   :  { %6483 = vmatpush1.bf16.msra.mxu1 %v26685_v26  ;;  %6238 = vmatprep.subr.bf16.mxu0 %v26690_v33  ;;  %v1233_v26 = vrot.slane %v32163_v25, %v30036_v31  ;;  %v26740_v33 = vld [vmem:[%s38769_s3 + $0x1620] ss:$52 sps:$4 sm:$0xff]  }
 0x358   :  { %6484 = vmatprep.subr.bf16.mxu1 %v26693_v34  ;;  %v26741_v34 = vld [vmem:[%s38769_s3 + $0xff8] ss:$52 sps:$4 sm:$0xff]  }
 0x35a   :  { %6239 = vmatpush1.bf16.msra.mxu0 %v26688_v6  ;;  %v26743_v6 = vld [vmem:[%s38769_s3 + $0xffc] ss:$52 sps:$4 sm:$0xff]  }
 0x35b   :  { %6485 = vmatpush1.bf16.msra.mxu1 %v26691_v35  ;;  %6240 = vmatprep.subr.bf16.mxu0 %v26696_v40  ;;  %v26744_v35 = vld [vmem:[%s38769_s3 + $0x19c8] ss:$52 sps:$4 sm:$0xff]   ;;  %v25332_v40 = vadd.f32 %v31356_v8, %v1233_v26  ;;  %v26751_v8 = vld [vmem:[%s38772_s5 + $0xc] ss:$52 sps:$4 sm:$0xff]   ;;  %v26796_v26 = vld [vmem:[%s38769_s3 + $0x13a4] ss:$52 sps:$4 sm:$0xff]  }
 0x35c   :  { %6486 = vmatprep.subr.bf16.mxu1 %v26699_v41  ;;  %v26748_v41 = vld [vmem:[%s38769_s3 + $0x1064] ss:$52 sps:$4 sm:$0xff]  }
 0x35e   :  { %6241 = vmatpush1.bf16.msra.mxu0 %v26694_v27  ;;  %v26745_v27 = vld [vmem:[%s38769_s3 + $0x1688] ss:$52 sps:$4 sm:$0xff]  }
 0x35f   :  { %6487 = vmatpush1.bf16.msra.mxu1 %v26697_v43  ;;  %6242 = vmatprep.subr.bf16.mxu0 %v26702_v44  ;;  %v26746_v43 = vld [vmem:[%s38769_s3 + $0x1060] ss:$52 sps:$4 sm:$0xff]   ;;  %v6660_v44 = vmax.f32 %v25332_v40, 0.0 }
 0x360   :  { %6488 = vmatprep.subr.bf16.mxu1 %v26705_v47  ;;  %v26754_v47 = vld [vmem:[%s38769_s3 + $0x10cc] ss:$52 sps:$4 sm:$0xff]   ;;  %v26805_v40 = vld [vmem:[%s38772_s5 + $0x3b4] ss:$52 sps:$4 sm:$0xff]  }
 0x362   :  { %6243 = vmatpush1.bf16.msra.mxu0 %v26700_v46  ;;  %v26749_v46 = vld [vmem:[%s38772_s5 + $0x8] ss:$52 sps:$4 sm:$0xff]  }
 0x363   :  { %6489 = vmatpush1.bf16.msra.mxu1 %v26703_v48  ;;  %6253 = vmatprep.subr.bf16.mxu0 %v26708_v49  ;;  %v26757_v48 = vld [vmem:[%s38772_s5 + $0x74] ss:$52 sps:$4 sm:$0xff]   ;;  %v32201_v49 = vpack.c.bf16 %v6660_v44, %v6660_v44  ;;  %v26809_v44 = vld [vmem:[%s38772_s5 + $0x418] ss:$52 sps:$4 sm:$0xff]  }
 0x364   :  { %25023 = vmatprep.subr.bf16.mxu1 %v26709_v53  ;;  %v26755_v53 = vld [vmem:[%s38772_s5 + $0x70] ss:$52 sps:$4 sm:$0xff]  }
 0x365   :  { %6245 = vmatmul.mubr.bf16.vlgmr.msra.gmra.mrb[20].mxu0 %v30061_v57 }
 0x366   :  { %6491 = vmatmul.mubr.bf16.vlgmr.msra.gmra.mrb[16].mxu1 %v30494_v0  ;;  %6254 = vmatpush1.bf16.msra.mxu0 %v26706_v52  ;;  %v26752_v52 = vld [vmem:[%s38769_s3 + $0x10c8] ss:$52 sps:$4 sm:$0xff]  }
 0x367   :  { %6285 = vmatprep.mubr.bf16.mxu0 %v30100_v14  ;;  %25024 = vmatpush3.bf16.msra.mxu1 %v26710_v38  ;;  %v26760_v38 = vld [vmem:[%s38769_s3 + $0x1134] ss:$52 sps:$4 sm:$0xff]  }
 0x368   :  { %6651 = vmatprep.mubr.bf16.mxu1 %v30304_v42  ;;  %6255 = vmatprep.subr.bf16.mxu0 %v26713_v55  ;;  %v26763_v55 = vld [vmem:[%s38772_s5 + $0xdc] ss:$52 sps:$4 sm:$0xff]  }
 0x369   :  { %25025 = vmatprep.subr.bf16.mxu1 %v26714_v56  ;;  %v26758_v56 = vld [vmem:[%s38769_s3 + $0x1130] ss:$52 sps:$4 sm:$0xff]  }
 0x36a   :  { %6256 = vmatpush1.bf16.msra.mxu0 %v26711_v39  ;;  %v26761_v39 = vld [vmem:[%s38772_s5 + $0xd8] ss:$52 sps:$4 sm:$0xff]  }
 0x36b   :  { %25026 = vmatpush3.bf16.msra.mxu1 %v26715_v59  ;;  %6257 = vmatprep.subr.bf16.mxu0 %v26718_v62  ;;  %v26766_v59 = vld [vmem:[%s38769_s3 + $0x119c] ss:$52 sps:$4 sm:$0xff]   ;;  %v26764_v62 = vld [vmem:[%s38769_s3 + $0x1198] ss:$52 sps:$4 sm:$0xff]  }
 0x36c   :  { %25027 = vmatprep.subr.bf16.mxu1 %v26719_v5  ;;  %v26767_v5 = vld [vmem:[%s38772_s5 + $0x140] ss:$52 sps:$4 sm:$0xff]  }
 0x36e   :  { %6258 = vmatpush1.bf16.msra.mxu0 %v26716_v1  ;;  %v26769_v1 = vld [vmem:[%s38772_s5 + $0x144] ss:$52 sps:$4 sm:$0xff]  }
 0x36f   :  { %25028 = vmatpush3.bf16.msra.mxu1 %v26720_v9  ;;  %6259 = vmatprep.subr.bf16.mxu0 %v26723_v10  ;;  %v26772_v9 = vld [vmem:[%s38769_s3 + $0x1204] ss:$52 sps:$4 sm:$0xff]   ;;  %v26770_v10 = vld [vmem:[%s38769_s3 + $0x1200] ss:$52 sps:$4 sm:$0xff]  }
 0x370   :  { %25029 = vmatprep.subr.bf16.mxu1 %v26724_v13  ;;  %v26773_v13 = vld [vmem:[%s38772_s5 + $0x1a8] ss:$52 sps:$4 sm:$0xff]  }
 0x372   :  { %6260 = vmatpush1.bf16.msra.mxu0 %v26721_v11  ;;  %v26775_v11 = vld [vmem:[%s38772_s5 + $0x1ac] ss:$52 sps:$4 sm:$0xff]  }
 0x373   :  { %25030 = vmatpush3.bf16.msra.mxu1 %v26725_v15  ;;  %6261 = vmatprep.subr.bf16.mxu0 %v26728_v16  ;;  %v26778_v15 = vld [vmem:[%s38769_s3 + $0x126c] ss:$52 sps:$4 sm:$0xff]   ;;  %v26776_v16 = vld [vmem:[%s38769_s3 + $0x1268] ss:$52 sps:$4 sm:$0xff]  }
 0x374   :  { %25031 = vmatprep.subr.bf16.mxu1 %v26729_v18  ;;  %v26779_v18 = vld [vmem:[%s38772_s5 + $0x210] ss:$52 sps:$4 sm:$0xff]  }
 0x376   :  { %6262 = vmatpush1.bf16.msra.mxu0 %v26726_v17  ;;  %v26781_v17 = vld [vmem:[%s38772_s5 + $0x214] ss:$52 sps:$4 sm:$0xff]  }
 0x377   :  { %25032 = vmatpush3.bf16.msra.mxu1 %v26730_v19  ;;  %6263 = vmatprep.subr.bf16.mxu0 %v26733_v20  ;;  %v26784_v19 = vld [vmem:[%s38769_s3 + $0x12d4] ss:$52 sps:$4 sm:$0xff]   ;;  %v26782_v20 = vld [vmem:[%s38769_s3 + $0x12d0] ss:$52 sps:$4 sm:$0xff]  }
 0x378   :  { %25033 = vmatprep.subr.bf16.mxu1 %v26734_v22  ;;  %v26785_v22 = vld [vmem:[%s38772_s5 + $0x278] ss:$52 sps:$4 sm:$0xff]  }
 0x37a   :  { %6264 = vmatpush1.bf16.msra.mxu0 %v26731_v21  ;;  %v26787_v21 = vld [vmem:[%s38772_s5 + $0x27c] ss:$52 sps:$4 sm:$0xff]  }
 0x37b   :  { %25034 = vmatpush3.bf16.msra.mxu1 %v26735_v23  ;;  %6265 = vmatprep.subr.bf16.mxu0 %v26738_v28  ;;  %v26790_v23 = vld [vmem:[%s38769_s3 + $0x133c] ss:$52 sps:$4 sm:$0xff]   ;;  %v26788_v28 = vld [vmem:[%s38769_s3 + $0x1338] ss:$52 sps:$4 sm:$0xff]  }
 0x37c   :  { %25035 = vmatprep.subr.bf16.mxu1 %v26739_v24  ;;  %v26791_v24 = vld [vmem:[%s38772_s5 + $0x2e0] ss:$52 sps:$4 sm:$0xff]  }
 0x37e   :  { %6266 = vmatpush1.bf16.msra.mxu0 %v26736_v63  ;;  %v26793_v63 = vld [vmem:[%s38772_s5 + $0x2e4] ss:$52 sps:$4 sm:$0xff]  }
 0x37f   :  { %25036 = vmatpush3.bf16.msra.mxu1 %v26740_v33  ;;  %6267 = vmatprep.subr.bf16.mxu0 %v26743_v6  ;;  %v26794_v33 = vld [vmem:[%s38769_s3 + $0x13a0] ss:$52 sps:$4 sm:$0xff]  }
 0x380   :  { %25037 = vmatprep.subr.bf16.mxu1 %v26744_v35  ;;  %v26799_v6 = vld [vmem:[%s38772_s5 + $0x34c] ss:$52 sps:$4 sm:$0xff]  }
 0x381   :  { %v26802_v35 = vld [vmem:[%s38769_s3 + $0x140c] ss:$52 sps:$4 sm:$0xff]  }
 0x382   :  { %6268 = vmatpush1.bf16.msra.mxu0 %v26741_v34  ;;  %v26797_v34 = vld [vmem:[%s38772_s5 + $0x348] ss:$52 sps:$4 sm:$0xff]  }
 0x383   :  { %25038 = vmatpush3.bf16.msra.mxu1 %v26745_v27  ;;  %6269 = vmatprep.subr.bf16.mxu0 %v26748_v41  ;;  %v26800_v27 = vld [vmem:[%s38769_s3 + $0x1408] ss:$52 sps:$4 sm:$0xff]   ;;  %v26803_v41 = vld [vmem:[%s38772_s5 + $0x3b0] ss:$52 sps:$4 sm:$0xff]  }
 0x384   :  { %14885 = vmatprep.subr.bf16.mxu1 %v26751_v8  ;;  %v26806_v8 = vld [vmem:[%s38769_s3 + $0x1470] ss:$52 sps:$4 sm:$0xff]  }
 0x386   :  { %6652 = vmatmul.mubr.bf16.vlgmr.msra.gmra.mrb[20].mxu1 %v30494_v0  ;;  %6270 = vmatpush1.bf16.msra.mxu0 %v26746_v43  ;;  %v26808_v43 = vld [vmem:[%s38769_s3 + $0x1474] ss:$52 sps:$4 sm:$0xff]  }
 0x387   :  { %14886 = vmatpush1.bf16.msra.mxu1 %v26749_v46  ;;  %14917 = vmatprep.mubr.bf16.mxu1 %v32201_v49  ;;  %v26814_v46 = vld [vmem:[%s38769_s3 + $0x14dc] ss:$52 sps:$4 sm:$0xff]  }
 0x388   :  { %6271 = vmatprep.subr.bf16.mxu0 %v26754_v47  ;;  %14887 = vmatprep.subr.bf16.mxu1 %v26757_v48  ;;  %v26812_v47 = vld [vmem:[%s38769_s3 + $0x14d8] ss:$52 sps:$4 sm:$0xff]  }
 0x389   :  { %v26817_v48 = vld [vmem:[%s38772_s5 + $0x484] ss:$52 sps:$4 sm:$0xff]  }
 0x38a   :  { %6272 = vmatpush1.bf16.msra.mxu0 %v26752_v52  ;;  %v26815_v52 = vld [vmem:[%s38772_s5 + $0x480] ss:$52 sps:$4 sm:$0xff]  }
 0x38b   :  { %14888 = vmatpush1.bf16.msra.mxu1 %v26755_v53  ;;  %6273 = vmatprep.subr.bf16.mxu0 %v26760_v38  ;;  %v26820_v53 = vld [vmem:[%s38769_s3 + $0x1544] ss:$52 sps:$4 sm:$0xff]   ;;  %v26818_v38 = vld [vmem:[%s38769_s3 + $0x1540] ss:$52 sps:$4 sm:$0xff]  }
 0x38c   :  { %14889 = vmatprep.subr.bf16.mxu1 %v26763_v55  ;;  %v26823_v55 = vld [vmem:[%s38772_s5 + $0x4ec] ss:$52 sps:$4 sm:$0xff]  }
 0x38e   :  { %6274 = vmatpush1.bf16.msra.mxu0 %v26758_v56  ;;  %v26821_v56 = vld [vmem:[%s38772_s5 + $0x4e8] ss:$52 sps:$4 sm:$0xff]  }
 0x38f   :  { %14890 = vmatpush1.bf16.msra.mxu1 %v26761_v39  ;;  %6275 = vmatprep.subr.bf16.mxu0 %v26766_v59  ;;  %v26826_v39 = vld [vmem:[%s38769_s3 + $0x15ac] ss:$52 sps:$4 sm:$0xff]   ;;  %v26829_v59 = vld [vmem:[%s38772_s5 + $0x554] ss:$52 sps:$4 sm:$0xff]  }
 0x390   :  { %14891 = vmatprep.subr.bf16.mxu1 %v26769_v1  ;;  %v26827_v1 = vld [vmem:[%s38772_s5 + $0x550] ss:$52 sps:$4 sm:$0xff]  }
 0x392   :  { %6276 = vmatpush1.bf16.msra.mxu0 %v26764_v62  ;;  %v26824_v62 = vld [vmem:[%s38769_s3 + $0x15a8] ss:$52 sps:$4 sm:$0xff]  }
 0x393   :  { %14892 = vmatpush1.bf16.msra.mxu1 %v26767_v5  ;;  %6277 = vmatprep.subr.bf16.mxu0 %v26772_v9  ;;  %v26832_v5 = vld [vmem:[%s38769_s3 + $0x1614] ss:$52 sps:$4 sm:$0xff]   ;;  %v26835_v9 = vld [vmem:[%s38772_s5 + $0x5bc] ss:$52 sps:$4 sm:$0xff]  }
 0x394   :  { %14893 = vmatprep.subr.bf16.mxu1 %v26775_v11 }
 0x396   :  { %6278 = vmatpush1.bf16.msra.mxu0 %v26770_v10  ;;  %v1229_v10 = vrot.slane %v32163_v25, %v30030_v29  ;;  %v26841_v25 = vld [vmem:[%s38772_s5 + $0x624] ss:$52 sps:$4 sm:$0xff]  }
 0x397   :  { %14894 = vmatpush1.bf16.msra.mxu1 %v26773_v13  ;;  %6279 = vmatprep.subr.bf16.mxu0 %v26778_v15  ;;  %v26830_v15 = vld [vmem:[%s38769_s3 + $0x1610] ss:$52 sps:$4 sm:$0xff]  }
 0x398   :  { %14895 = vmatprep.subr.bf16.mxu1 %v26781_v17 }
 0x39a   :  { %6280 = vmatpush1.bf16.msra.mxu0 %v26776_v16  ;;  %v26833_v16 = vld [vmem:[%s38772_s5 + $0x5b8] ss:$52 sps:$4 sm:$0xff]  }
 0x39b   :  { %14896 = vmatpush1.bf16.msra.mxu1 %v26779_v18  ;;  %6281 = vmatprep.subr.bf16.mxu0 %v26784_v19  ;;  %v26838_v18 = vld [vmem:[%s38769_s3 + $0x167c] ss:$52 sps:$4 sm:$0xff]  }
 0x39c   :  { %14897 = vmatprep.subr.bf16.mxu1 %v26787_v21  ;;  %v26836_v21 = vld [vmem:[%s38769_s3 + $0x1678] ss:$52 sps:$4 sm:$0xff]  }
 0x39e   :  { %6282 = vmatpush1.bf16.msra.mxu0 %v26782_v20  ;;  %v25331_v20 = vadd.f32 %v31351_v4, %v1229_v10  ;;  %v26842_v4 = vld [vmem:[%s38769_s3 + $0x16e0] ss:$52 sps:$4 sm:$0xff]   ;;  %v26886_v10 = vld [vmem:[%s38769_s3 + $0x19bc] ss:$52 sps:$4 sm:$0xff]  }
 0x39f   :  { %14898 = vmatpush1.bf16.msra.mxu1 %v26785_v22  ;;  %6283 = vmatprep.subr.bf16.mxu0 %v26790_v23  ;;  %v26839_v22 = vld [vmem:[%s38772_s5 + $0x620] ss:$52 sps:$4 sm:$0xff]   ;;  %v26844_v23 = vld [vmem:[%s38769_s3 + $0x16e4] ss:$52 sps:$4 sm:$0xff]  }
 0x3a0   :  { %14899 = vmatprep.subr.bf16.mxu1 %v26793_v63  ;;  %v26847_v63 = vld [vmem:[%s38772_s5 + $0x68c] ss:$52 sps:$4 sm:$0xff]  }
 0x3a2   :  { %6284 = vmatpush1.bf16.msra.mxu0 %v26788_v28  ;;  %v6659_v28 = vmax.f32 %v25331_v20, 0.0  ;;  %v26891_v20 = vld [vmem:[%s38772_s5 + $0x9c8] ss:$52 sps:$4 sm:$0xff]  }
 0x3a3   :  { %14900 = vmatpush1.bf16.msra.mxu1 %v26791_v24  ;;  %6294 = vmatprep.subr.bf16.mxu0 %v26796_v26  ;;  %v6662_v24 = vmax.f32 %v31572_v54, 0.0  ;;  %v26845_v26 = vld [vmem:[%s38772_s5 + $0x688] ss:$52 sps:$4 sm:$0xff]  }
 0x3a4   :  { %14901 = vmatprep.subr.bf16.mxu1 %v26799_v6  ;;  %v26853_v6 = vld [vmem:[%s38772_s5 + $0x6f4] ss:$52 sps:$4 sm:$0xff]  }
 0x3a5   :  { %6286 = vmatmul.mubr.bf16.vlgmr.msra.gmra.mrb[20].mxu0 %v30289_v37  ;;  %v26848_v54 = vld [vmem:[%s38769_s3 + $0x1748] ss:$52 sps:$4 sm:$0xff]  }
 0x3a6   :  { %6295 = vmatpush1.bf16.msra.mxu0 %v26794_v33  ;;  %6326 = vmatprep.mubr.bf16.mxu0 %v30304_v42  ;;  %v26811_v42 = vld [vmem:[%s38772_s5 + $0x41c] ss:$52 sps:$4 sm:$0xff]   ;;  %v26850_v33 = vld [vmem:[%s38769_s3 + $0x174c] ss:$52 sps:$4 sm:$0xff]  }
 0x3a7   :  { %14902 = vmatpush1.bf16.msra.mxu1 %v26797_v34  ;;  %6296 = vmatprep.subr.bf16.mxu0 %v26802_v35  ;;  %v32407_v34 = vpack.c.bf16 %v6659_v28, %v6659_v28  ;;  %v32409_v35 = vpack.c.bf16 %v6662_v24, %v6662_v24  ;;  %v26896_v28 = vld [vmem:[%s38772_s5 + $0xa30] ss:$52 sps:$4 sm:$0xff]   ;;  %v26905_v24 = vld [vmem:[%s38769_s3 + $0x4a8] ss:$52 sps:$4 sm:$0xff]  }
 0x3a8   :  { %14903 = vmatprep.subr.bf16.mxu1 %v26805_v40  ;;  %v26851_v40 = vld [vmem:[%s38772_s5 + $0x6f0] ss:$52 sps:$4 sm:$0xff]  }
 0x3aa   :  { %6297 = vmatpush1.bf16.msra.mxu0 %v26800_v27  ;;  %v26856_v27 = vld [vmem:[%s38769_s3 + $0x17b4] ss:$52 sps:$4 sm:$0xff]  }
 0x3ab   :  { %14904 = vmatpush1.bf16.msra.mxu1 %v26803_v41  ;;  %6298 = vmatprep.subr.bf16.mxu0 %v26808_v43  ;;  %v26859_v41 = vld [vmem:[%s38772_s5 + $0x75c] ss:$52 sps:$4 sm:$0xff]  }
 0x3ac   :  { %14905 = vmatprep.subr.bf16.mxu1 %v26811_v42  ;;  %v26854_v43 = vld [vmem:[%s38769_s3 + $0x17b0] ss:$52 sps:$4 sm:$0xff]  }
 0x3ad   :  { %v26862_v42 = vld [vmem:[%s38769_s3 + $0x181c] ss:$52 sps:$4 sm:$0xff]  }
 0x3ae   :  { %6299 = vmatpush1.bf16.msra.mxu0 %v26806_v8  ;;  %v26857_v8 = vld [vmem:[%s38772_s5 + $0x758] ss:$52 sps:$4 sm:$0xff]  }
 0x3af   :  { %14906 = vmatpush1.bf16.msra.mxu1 %v26809_v44  ;;  %6300 = vmatprep.subr.bf16.mxu0 %v26814_v46  ;;  %v26860_v44 = vld [vmem:[%s38769_s3 + $0x1818] ss:$52 sps:$4 sm:$0xff]  }
 0x3b0   :  { %14907 = vmatprep.subr.bf16.mxu1 %v26817_v48  ;;  %v26865_v46 = vld [vmem:[%s38772_s5 + $0x7c4] ss:$52 sps:$4 sm:$0xff]  }
 0x3b1   :  { %v26868_v48 = vld [vmem:[%s38769_s3 + $0x1884] ss:$52 sps:$4 sm:$0xff]  }
 0x3b2   :  { %6301 = vmatpush1.bf16.msra.mxu0 %v26812_v47  ;;  %v26863_v47 = vld [vmem:[%s38772_s5 + $0x7c0] ss:$52 sps:$4 sm:$0xff]  }
 0x3b3   :  { %14908 = vmatpush1.bf16.msra.mxu1 %v26815_v52  ;;  %6302 = vmatprep.subr.bf16.mxu0 %v26820_v53  ;;  %v26866_v52 = vld [vmem:[%s38769_s3 + $0x1880] ss:$52 sps:$4 sm:$0xff]  }
 0x3b4   :  { %14909 = vmatprep.subr.bf16.mxu1 %v26823_v55  ;;  %v26871_v53 = vld [vmem:[%s38772_s5 + $0x82c] ss:$52 sps:$4 sm:$0xff]  }
 0x3b5   :  { %v26874_v55 = vld [vmem:[%s38769_s3 + $0x18ec] ss:$52 sps:$4 sm:$0xff]  }
 0x3b6   :  { %6303 = vmatpush1.bf16.msra.mxu0 %v26818_v38  ;;  %v26869_v38 = vld [vmem:[%s38772_s5 + $0x828] ss:$52 sps:$4 sm:$0xff]  }
 0x3b7   :  { %14910 = vmatpush1.bf16.msra.mxu1 %v26821_v56  ;;  %6304 = vmatprep.subr.bf16.mxu0 %v26826_v39  ;;  %v26872_v56 = vld [vmem:[%s38769_s3 + $0x18e8] ss:$52 sps:$4 sm:$0xff]  }
 0x3b8   :  { %v32365_v11 = vpop.f32.mrb[16].mxu0  ;;  %14911 = vmatprep.subr.bf16.mxu1 %v26829_v59  ;;  %v26877_v39 = vld [vmem:[%s38772_s5 + $0x894] ss:$52 sps:$4 sm:$0xff]   ;;  %v26875_v59 = vld [vmem:[%s38772_s5 + $0x890] ss:$52 sps:$4 sm:$0xff]  }
 0x3b9   :  { %v32367_v13 = vpop.f32.mrb[17].mxu0 }
 0x3ba   :  { %v6004_v17 = vpop.f32.mrb[18].mxu0  ;;  %6305 = vmatpush1.bf16.msra.mxu0 %v26824_v62  ;;  %v26880_v62 = vld [vmem:[%s38769_s3 + $0x1954] ss:$52 sps:$4 sm:$0xff]  }
 0x3bb   :  { %14912 = vmatpush1.bf16.msra.mxu1 %v26827_v1  ;;  %v6005_v19 = vpop.f32.mrb[19].mxu0  ;;  %6306 = vmatprep.subr.bf16.mxu0 %v26832_v5  ;;  %v26883_v1 = vld [vmem:[%s38772_s5 + $0x8fc] ss:$52 sps:$4 sm:$0xff]   ;;  %v26887_v17 = vld [vmem:[%s38772_s5 + $0x960] ss:$52 sps:$4 sm:$0xff]  }
 0x3bc   :  { %14913 = vmatprep.subr.bf16.mxu1 %v26835_v9  ;;  %v26878_v5 = vld [vmem:[%s38769_s3 + $0x1950] ss:$52 sps:$4 sm:$0xff]   ;;  %v26881_v9 = vld [vmem:[%s38772_s5 + $0x8f8] ss:$52 sps:$4 sm:$0xff]  }
 0x3bd   :  { %v26894_v19 = vld [vmem:[%s38769_s3 + $0x30] ss:$52 sps:$4 sm:$0xff]  }
 0x3be   :  { %6307 = vmatpush1.bf16.msra.mxu0 %v26830_v15  ;;  %v26889_v15 = vld [vmem:[%s38772_s5 + $0x964] ss:$52 sps:$4 sm:$0xff]  }
 0x3bf   :  { %14914 = vmatpush1.bf16.msra.mxu1 %v26833_v16  ;;  %6308 = vmatprep.subr.bf16.mxu0 %v26838_v18  ;;  %v26884_v16 = vld [vmem:[%s38769_s3 + $0x19b8] ss:$52 sps:$4 sm:$0xff]   ;;  %v26890_v18 = vld [vmem:[%s38769_s3 + $0x370] ss:$52 sps:$4 sm:$0xff]  }
 0x3c0   :  { %14915 = vmatprep.subr.bf16.mxu1 %v26841_v25  ;;  %v26893_v25 = vld [vmem:[%s38772_s5 + $0x9cc] ss:$52 sps:$4 sm:$0xff]  }
 0x3c2   :  { %6309 = vmatpush1.bf16.msra.mxu0 %v26836_v21  ;;  %v26895_v21 = vld [vmem:[%s38769_s3 + $0x3d8] ss:$52 sps:$4 sm:$0xff]  }
 0x3c3   :  { %14916 = vmatpush1.bf16.msra.mxu1 %v26839_v22  ;;  %6310 = vmatprep.subr.bf16.mxu0 %v26844_v23  ;;  %v26898_v22 = vld [vmem:[%s38772_s5 + $0xa34] ss:$52 sps:$4 sm:$0xff]   ;;  %v26899_v23 = vld [vmem:[%s38769_s3 + $0x98] ss:$52 sps:$4 sm:$0xff]  }
 0x3c4   :  { %14926 = vmatprep.subr.bf16.mxu1 %v26847_v63  ;;  %v26903_v63 = vld [vmem:[%s38772_s5 + $0xa9c] ss:$52 sps:$4 sm:$0xff]  }
 0x3c6   :  { %14918 = vmatmul.mubr.bf16.vlgmr.msra.gmra.mrb[24].mxu1 %v32407_v34  ;;  %6311 = vmatpush1.bf16.msra.mxu0 %v26842_v4  ;;  %v26900_v4 = vld [vmem:[%s38769_s3 + $0x440] ss:$52 sps:$4 sm:$0xff]  }
 0x3c7   :  { %14927 = vmatpush1.bf16.msra.mxu1 %v26845_v26  ;;  %14958 = vmatprep.mubr.bf16.mxu1 %v32409_v35  ;;  %v26908_v26 = vld [vmem:[%s38772_s5 + $0xb04] ss:$52 sps:$4 sm:$0xff]  }
 0x3c8   :  { %6312 = vmatprep.subr.bf16.mxu0 %v26850_v33  ;;  %14928 = vmatprep.subr.bf16.mxu1 %v26853_v6  ;;  %v26909_v33 = vld [vmem:[%s38769_s3 + $0x168] ss:$52 sps:$4 sm:$0xff]   ;;  %v26906_v6 = vld [vmem:[%s38772_s5 + $0xb00] ss:$52 sps:$4 sm:$0xff]  }
 0x3ca   :  { %6313 = vmatpush1.bf16.msra.mxu0 %v26848_v54  ;;  %v26910_v54 = vld [vmem:[%s38769_s3 + $0x510] ss:$52 sps:$4 sm:$0xff]  }
 0x3cb   :  { %14929 = vmatpush1.bf16.msra.mxu1 %v26851_v40  ;;  %6314 = vmatprep.subr.bf16.mxu0 %v26856_v27  ;;  %v26913_v40 = vld [vmem:[%s38772_s5 + $0xb6c] ss:$52 sps:$4 sm:$0xff]   ;;  %v26914_v27 = vld [vmem:[%s38769_s3 + $0x1d0] ss:$52 sps:$4 sm:$0xff]  }
 0x3cc   :  { %14930 = vmatprep.subr.bf16.mxu1 %v26859_v41  ;;  %v26911_v41 = vld [vmem:[%s38772_s5 + $0xb68] ss:$52 sps:$4 sm:$0xff]  }
 0x3ce   :  { %6315 = vmatpush1.bf16.msra.mxu0 %v26854_v43  ;;  %v26915_v43 = vld [vmem:[%s38769_s3 + $0x578] ss:$52 sps:$4 sm:$0xff]  }
 0x3cf   :  { %14931 = vmatpush1.bf16.msra.mxu1 %v26857_v8  ;;  %6316 = vmatprep.subr.bf16.mxu0 %v26862_v42  ;;  %v26918_v8 = vld [vmem:[%s38772_s5 + $0xbd4] ss:$52 sps:$4 sm:$0xff]   ;;  %v26919_v42 = vld [vmem:[%s38769_s3 + $0x238] ss:$52 sps:$4 sm:$0xff]  }
 0x3d0   :  { %14932 = vmatprep.subr.bf16.mxu1 %v26865_v46  ;;  %v26920_v46 = vld [vmem:[%s38769_s3 + $0x5e0] ss:$52 sps:$4 sm:$0xff]  }
 0x3d2   :  { %6317 = vmatpush1.bf16.msra.mxu0 %v26860_v44  ;;  %v26916_v44 = vld [vmem:[%s38772_s5 + $0xbd0] ss:$52 sps:$4 sm:$0xff]  }
 0x3d3   :  { %14933 = vmatpush1.bf16.msra.mxu1 %v26863_v47  ;;  %6318 = vmatprep.subr.bf16.mxu0 %v26868_v48  ;;  %v26923_v47 = vld [vmem:[%s38772_s5 + $0xc3c] ss:$52 sps:$4 sm:$0xff]   ;;  %v26924_v48 = vld [vmem:[%s38769_s3 + $0x2a0] ss:$52 sps:$4 sm:$0xff]  }
 0x3d4   :  { %14934 = vmatprep.subr.bf16.mxu1 %v26871_v53 }
 0x3d6   :  { %6319 = vmatpush1.bf16.msra.mxu0 %v26866_v52  ;;  %v32577_v52 = vld [vmem:[%s38771_s4] sm:$0xff] }
 0x3d7   :  { %14935 = vmatpush1.bf16.msra.mxu1 %v26869_v38  ;;  %6320 = vmatprep.subr.bf16.mxu0 %v26874_v55  ;;  %v1249_v53 = vrot.slane %v32577_v52, %v30050_v45  ;;  %v26921_v38 = vld [vmem:[%s38772_s5 + $0xc38] ss:$52 sps:$4 sm:$0xff]   ;;  %v26925_v55 = vld [vmem:[%s38769_s3 + $0x648] ss:$52 sps:$4 sm:$0xff]  }
 0x3d8   :  { %14936 = vmatprep.subr.bf16.mxu1 %v26877_v39  ;;  %v26929_v39 = vld [vmem:[%s38769_s3 + $0x308] ss:$52 sps:$4 sm:$0xff]  }
 0x3da   :  { %6321 = vmatpush1.bf16.msra.mxu0 %v26872_v56  ;;  %v26928_v56 = vld [vmem:[%s38772_s5 + $0xca4] ss:$52 sps:$4 sm:$0xff]  }
 0x3db   :  { %14937 = vmatpush1.bf16.msra.mxu1 %v26875_v59  ;;  %6322 = vmatprep.subr.bf16.mxu0 %v26880_v62  ;;  %v25338_v59 = vadd.f32 %v32367_v13, %v1249_v53  ;;  %v26926_v62 = vld [vmem:[%s38772_s5 + $0xca0] ss:$52 sps:$4 sm:$0xff]   ;;  %v26934_v13 = vld [vmem:[%s38769_s3 + $0x6b0] ss:$52 sps:$4 sm:$0xff]  }
 0x3dc   :  { %14938 = vmatprep.subr.bf16.mxu1 %v26883_v1  ;;  %v26930_v1 = vld [vmem:[%s38769_s3 + $0x9f0] ss:$52 sps:$4 sm:$0xff]  }
 0x3dd   :  { %v26974_v53 = vld [vmem:[%s38769_s3 + $0xd30] ss:$52 sps:$4 sm:$0xff]  }
 0x3de   :  { %6323 = vmatpush1.bf16.msra.mxu0 %v26878_v5  ;;  %v26933_v5 = vld [vmem:[%s38772_s5 + $0xd0c] ss:$52 sps:$4 sm:$0xff]  }
 0x3df   :  { %14939 = vmatpush1.bf16.msra.mxu1 %v26881_v9  ;;  %6324 = vmatprep.subr.bf16.mxu0 %v26886_v10  ;;  %v6661_v9 = vmax.f32 %v31563_v51, 0.0  ;;  %v26931_v10 = vld [vmem:[%s38772_s5 + $0xd08] ss:$52 sps:$4 sm:$0xff]  }
 0x3e0   :  { %14940 = vmatprep.subr.bf16.mxu1 %v26889_v15  ;;  %v6664_v15 = vmax.f32 %v25338_v59, 0.0  ;;  %v26938_v51 = vld [vmem:[%s38772_s5 + $0xd74] ss:$52 sps:$4 sm:$0xff]   ;;  %v26976_v59 = vld [vmem:[%s38772_s5 + $0x10b0] ss:$52 sps:$4 sm:$0xff]  }
 0x3e2   :  { %6325 = vmatpush1.bf16.msra.mxu0 %v26884_v16  ;;  %v26935_v16 = vld [vmem:[%s38769_s3 + $0xa58] ss:$52 sps:$4 sm:$0xff]  }
 0x3e3   :  { %14941 = vmatpush1.bf16.msra.mxu1 %v26887_v17  ;;  %24957 = vmatprep.subr.bf16.mxu0 %v26890_v18  ;;  %v32613_v17 = vpack.c.bf16 %v6661_v9, %v6661_v9  ;;  %v32619_v18 = vpack.c.bf16 %v6664_v15, %v6664_v15  ;;  %v26988_v9 = vld [vmem:[%s38772_s5 + $0x1184] ss:$52 sps:$4 sm:$0xff]  }
 0x3e4   :  { %14942 = vmatprep.subr.bf16.mxu1 %v26893_v25  ;;  %v26939_v25 = vld [vmem:[%s38769_s3 + $0x718] ss:$52 sps:$4 sm:$0xff]   ;;  %v26990_v15 = vld [vmem:[%s38769_s3 + $0x1210] ss:$52 sps:$4 sm:$0xff]  }
 0x3e5   :  { %6327 = vmatmul.mubr.bf16.vlgmr.msra.gmra.mrb[20].mxu0 %v30494_v0  ;;  %v26904_v0 = vld [vmem:[%s38769_s3 + $0x100] ss:$52 sps:$4 sm:$0xff]  }
 0x3e6   :  { %24958 = vmatpush3.bf16.msra.mxu0 %v26894_v19  ;;  %6531 = vmatprep.mubr.bf16.mxu0 %v30063_v58  ;;  %v26901_v58 = vld [vmem:[%s38772_s5 + $0xa98] ss:$52 sps:$4 sm:$0xff]   ;;  %v26940_v19 = vld [vmem:[%s38769_s3 + $0xac0] ss:$52 sps:$4 sm:$0xff]  }
 0x3e7   :  { %14943 = vmatpush1.bf16.msra.mxu1 %v26891_v20  ;;  %24959 = vmatprep.subr.bf16.mxu0 %v26895_v21  ;;  %v26943_v20 = vld [vmem:[%s38772_s5 + $0xddc] ss:$52 sps:$4 sm:$0xff]   ;;  %v26941_v21 = vld [vmem:[%s38772_s5 + $0xdd8] ss:$52 sps:$4 sm:$0xff]  }
 0x3e8   :  { %14944 = vmatprep.subr.bf16.mxu1 %v26898_v22  ;;  %v26945_v22 = vld [vmem:[%s38769_s3 + $0xb28] ss:$52 sps:$4 sm:$0xff]  }
 0x3ea   :  { %24960 = vmatpush3.bf16.msra.mxu0 %v26899_v23  ;;  %v26948_v23 = vld [vmem:[%s38772_s5 + $0xe44] ss:$52 sps:$4 sm:$0xff]  }
 0x3eb   :  { %14945 = vmatpush1.bf16.msra.mxu1 %v26896_v28  ;;  %24961 = vmatprep.subr.bf16.mxu0 %v26900_v4  ;;  %v26949_v28 = vld [vmem:[%s38769_s3 + $0x7e8] ss:$52 sps:$4 sm:$0xff]   ;;  %v26946_v4 = vld [vmem:[%s38772_s5 + $0xe40] ss:$52 sps:$4 sm:$0xff]  }
 0x3ec   :  { %14946 = vmatprep.subr.bf16.mxu1 %v26903_v63  ;;  %v26950_v63 = vld [vmem:[%s38769_s3 + $0xb90] ss:$52 sps:$4 sm:$0xff]  }
 0x3ee   :  { %24962 = vmatpush3.bf16.msra.mxu0 %v26904_v0  ;;  %v26953_v0 = vld [vmem:[%s38772_s5 + $0xeac] ss:$52 sps:$4 sm:$0xff]  }
 0x3ef   :  { %14947 = vmatpush1.bf16.msra.mxu1 %v26901_v58  ;;  %24963 = vmatprep.subr.bf16.mxu0 %v26905_v24  ;;  %v26954_v58 = vld [vmem:[%s38769_s3 + $0x850] ss:$52 sps:$4 sm:$0xff]   ;;  %v26951_v24 = vld [vmem:[%s38772_s5 + $0xea8] ss:$52 sps:$4 sm:$0xff]  }
 0x3f0   :  { %14948 = vmatprep.subr.bf16.mxu1 %v26908_v26  ;;  %v26955_v26 = vld [vmem:[%s38769_s3 + $0xbf8] ss:$52 sps:$4 sm:$0xff]  }
 0x3f2   :  { %24964 = vmatpush3.bf16.msra.mxu0 %v26909_v33  ;;  %v26958_v33 = vld [vmem:[%s38772_s5 + $0xf14] ss:$52 sps:$4 sm:$0xff]  }
 0x3f3   :  { %14949 = vmatpush1.bf16.msra.mxu1 %v26906_v6  ;;  %24965 = vmatprep.subr.bf16.mxu0 %v26910_v54  ;;  %v26959_v6 = vld [vmem:[%s38769_s3 + $0x8b8] ss:$52 sps:$4 sm:$0xff]   ;;  %v26956_v54 = vld [vmem:[%s38772_s5 + $0xf10] ss:$52 sps:$4 sm:$0xff]  }
 0x3f4   :  { %14950 = vmatprep.subr.bf16.mxu1 %v26913_v40  ;;  %v26960_v40 = vld [vmem:[%s38769_s3 + $0xc60] ss:$52 sps:$4 sm:$0xff]  }
 0x3f6   :  { %24966 = vmatpush3.bf16.msra.mxu0 %v26914_v27  ;;  %v26963_v27 = vld [vmem:[%s38772_s5 + $0xf7c] ss:$52 sps:$4 sm:$0xff]  }
 0x3f7   :  { %14951 = vmatpush1.bf16.msra.mxu1 %v26911_v41  ;;  %24967 = vmatprep.subr.bf16.mxu0 %v26915_v43  ;;  %v26964_v41 = vld [vmem:[%s38769_s3 + $0x920] ss:$52 sps:$4 sm:$0xff]   ;;  %v26961_v43 = vld [vmem:[%s38772_s5 + $0xf78] ss:$52 sps:$4 sm:$0xff]  }
 0x3f8   :  { %14952 = vmatprep.subr.bf16.mxu1 %v26918_v8  ;;  %v26965_v8 = vld [vmem:[%s38769_s3 + $0xcc8] ss:$52 sps:$4 sm:$0xff]  }
 0x3fa   :  { %24968 = vmatpush3.bf16.msra.mxu0 %v26919_v42  ;;  %v26968_v42 = vld [vmem:[%s38772_s5 + $0xfe4] ss:$52 sps:$4 sm:$0xff]  }
 0x3fb   :  { %14953 = vmatpush1.bf16.msra.mxu1 %v26916_v44  ;;  %24969 = vmatprep.subr.bf16.mxu0 %v26920_v46  ;;  %v26969_v44 = vld [vmem:[%s38769_s3 + $0x988] ss:$52 sps:$4 sm:$0xff]   ;;  %v26966_v46 = vld [vmem:[%s38772_s5 + $0xfe0] ss:$52 sps:$4 sm:$0xff]  }
 0x3fc   :  { %14954 = vmatprep.subr.bf16.mxu1 %v26923_v47  ;;  %v26970_v47 = vld [vmem:[%s38769_s3 + $0x1070] ss:$52 sps:$4 sm:$0xff]  }
 0x3fe   :  { %24970 = vmatpush3.bf16.msra.mxu0 %v26924_v48  ;;  %v26973_v48 = vld [vmem:[%s38772_s5 + $0x104c] ss:$52 sps:$4 sm:$0xff]  }
 0x3ff   :  { %14955 = vmatpush1.bf16.msra.mxu1 %v26921_v38  ;;  %24971 = vmatprep.subr.bf16.mxu0 %v26925_v55  ;;  %v26971_v38 = vld [vmem:[%s38772_s5 + $0x1048] ss:$52 sps:$4 sm:$0xff]   ;;  %v26975_v55 = vld [vmem:[%s38769_s3 + $0x10d8] ss:$52 sps:$4 sm:$0xff]  }
 0x400   :  { %14956 = vmatprep.subr.bf16.mxu1 %v26928_v56  ;;  %v26978_v56 = vld [vmem:[%s38772_s5 + $0x10b4] ss:$52 sps:$4 sm:$0xff]  }
 0x402   :  { %24972 = vmatpush3.bf16.msra.mxu0 %v26929_v39  ;;  %v26979_v39 = vld [vmem:[%s38769_s3 + $0xd98] ss:$52 sps:$4 sm:$0xff]  }
 0x403   :  { %14957 = vmatpush1.bf16.msra.mxu1 %v26926_v62  ;;  %24979 = vmatprep.subr.bf16.mxu0 %v26930_v1  ;;  %v26980_v62 = vld [vmem:[%s38769_s3 + $0x1140] ss:$52 sps:$4 sm:$0xff]   ;;  %v26983_v1 = vld [vmem:[%s38772_s5 + $0x111c] ss:$52 sps:$4 sm:$0xff]  }
 0x404   :  { %14967 = vmatprep.subr.bf16.mxu1 %v26933_v5  ;;  %v26985_v5 = vld [vmem:[%s38769_s3 + $0x11a8] ss:$52 sps:$4 sm:$0xff]  }
 0x405   :  { %6532 = vmatmul.mubr.bf16.vlgmr.msra.gmra.mrb[24].mxu0 %v30067_v60  ;;  %v26936_v60 = vld [vmem:[%s38772_s5 + $0xd70] ss:$52 sps:$4 sm:$0xff]  }
 0x406   :  { %14959 = vmatmul.mubr.bf16.vlgmr.msra.gmra.mrb[24].mxu1 %v32613_v17  ;;  %24980 = vmatpush3.bf16.msra.mxu0 %v26934_v13  ;;  %v26989_v13 = vld [vmem:[%s38769_s3 + $0xe68] ss:$52 sps:$4 sm:$0xff]  }
 0x407   :  { %6571 = vmatprep.mubr.bf16.mxu0 %v30069_v61  ;;  %14968 = vmatpush1.bf16.msra.mxu1 %v26931_v10  ;;  %v26944_v61 = vld [vmem:[%s38769_s3 + $0x780] ss:$52 sps:$4 sm:$0xff]  }
 0x408   :  { %14999 = vmatprep.mubr.bf16.mxu1 %v32619_v18  ;;  %24981 = vmatprep.subr.bf16.mxu0 %v26935_v16  ;;  %v26986_v10 = vld [vmem:[%s38772_s5 + $0x1180] ss:$52 sps:$4 sm:$0xff]  }
 0x409   :  { %14969 = vmatprep.subr.bf16.mxu1 %v26938_v51  ;;  %v26993_v16 = vld [vmem:[%s38772_s5 + $0x11ec] ss:$52 sps:$4 sm:$0xff]   ;;  %v26994_v51 = vld [vmem:[%s38769_s3 + $0xed0] ss:$52 sps:$4 sm:$0xff]  }
 0x40a   :  { %24982 = vmatpush3.bf16.msra.mxu0 %v26939_v25  ;;  %v26991_v25 = vld [vmem:[%s38772_s5 + $0x11e8] ss:$52 sps:$4 sm:$0xff]  }
 0x40b   :  { %14970 = vmatpush1.bf16.msra.mxu1 %v26936_v60  ;;  %24983 = vmatprep.subr.bf16.mxu0 %v26940_v19  ;;  %v26995_v60 = vld [vmem:[%s38769_s3 + $0x1278] ss:$52 sps:$4 sm:$0xff]   ;;  %v26998_v19 = vld [vmem:[%s38772_s5 + $0x1254] ss:$52 sps:$4 sm:$0xff]  }
 0x40c   :  { %14971 = vmatprep.subr.bf16.mxu1 %v26943_v20  ;;  %v26999_v20 = vld [vmem:[%s38769_s3 + $0xf38] ss:$52 sps:$4 sm:$0xff]  }
 0x40e   :  { %24984 = vmatpush3.bf16.msra.mxu0 %v26944_v61  ;;  %v26996_v61 = vld [vmem:[%s38772_s5 + $0x1250] ss:$52 sps:$4 sm:$0xff]  }
 0x40f   :  { %14972 = vmatpush1.bf16.msra.mxu1 %v26941_v21  ;;  %24985 = vmatprep.subr.bf16.mxu0 %v26945_v22  ;;  %v27000_v21 = vld [vmem:[%s38769_s3 + $0x12e0] ss:$52 sps:$4 sm:$0xff]   ;;  %v27003_v22 = vld [vmem:[%s38772_s5 + $0x12bc] ss:$52 sps:$4 sm:$0xff]  }
 0x410   :  { %14973 = vmatprep.subr.bf16.mxu1 %v26948_v23  ;;  %v1245_v23 = vrot.slane %v32577_v52, %v30224_v7 }
 0x412   :  { %24986 = vmatpush3.bf16.msra.mxu0 %v26949_v28 }
 0x413   :  { %14974 = vmatpush1.bf16.msra.mxu1 %v26946_v4  ;;  %24987 = vmatprep.subr.bf16.mxu0 %v26950_v63  ;;  %v27001_v4 = vld [vmem:[%s38772_s5 + $0x12b8] ss:$52 sps:$4 sm:$0xff]   ;;  %v27004_v63 = vld [vmem:[%s38769_s3 + $0xfa0] ss:$52 sps:$4 sm:$0xff]  }
 0x414   :  { %14975 = vmatprep.subr.bf16.mxu1 %v26953_v0  ;;  %v1257_v0 = vrot.slane %v32577_v52, %v30239_v12  ;;  %v27006_v52 = vld [vmem:[%s38772_s5 + $0x1320] ss:$52 sps:$4 sm:$0xff]  }
 0x416   :  { %24988 = vmatpush3.bf16.msra.mxu0 %v26954_v58 }
 0x417   :  { %14976 = vmatpush1.bf16.msra.mxu1 %v26951_v24  ;;  %24989 = vmatprep.subr.bf16.mxu0 %v26955_v26  ;;  %v27005_v24 = vld [vmem:[%s38769_s3 + $0x1348] ss:$52 sps:$4 sm:$0xff]   ;;  %v27008_v26 = vld [vmem:[%s38772_s5 + $0x1324] ss:$52 sps:$4 sm:$0xff]  }
 0x418   :  { %14977 = vmatprep.subr.bf16.mxu1 %v26958_v33 }
 0x41a   :  { %24990 = vmatpush3.bf16.msra.mxu0 %v26959_v6  ;;  %v25337_v6 = vadd.f32 %v32365_v11, %v1245_v23 }
 0x41b   :  { %14978 = vmatpush1.bf16.msra.mxu1 %v26956_v54  ;;  %24991 = vmatprep.subr.bf16.mxu0 %v26960_v40  ;;  %v25340_v40 = vadd.f32 %v31965_v2, %v1257_v0  ;;  %v27015_v2 = vld [vmem:[%s38772_s5 + $0x138c] ss:$52 sps:$4 sm:$0xff]   ;;  %v27057_v0 = vld [vmem:[%s38772_s5 + $0x1664] ss:$52 sps:$4 sm:$0xff]  }
 0x41c   :  { %14979 = vmatprep.subr.bf16.mxu1 %v26963_v27  ;;  %v27009_v27 = vld [vmem:[%s38769_s3 + $0x1008] ss:$52 sps:$4 sm:$0xff]   ;;  %v6663_v11 = vmax.f32 %v25337_v6, 0.0  ;;  %v27058_v6 = vld [vmem:[%s38772_s5 + $0x340] ss:$52 sps:$4 sm:$0xff]  }
 0x41e   :  { %24992 = vmatpush3.bf16.msra.mxu0 %v26964_v41  ;;  %v27012_v41 = vld [vmem:[%s38772_s5 + $0x4] ss:$52 sps:$4 sm:$0xff]  }
 0x41f   :  { %14980 = vmatpush1.bf16.msra.mxu1 %v26961_v43  ;;  %24993 = vmatprep.subr.bf16.mxu0 %v26965_v8  ;;  %v27010_v43 = vld [vmem:[%s38772_s5] ss:$52 sps:$4 sm:$0xff]   ;;  %v27013_v8 = vld [vmem:[%s38772_s5 + $0x1388] ss:$52 sps:$4 sm:$0xff]  }
 0x420   :  { %14981 = vmatprep.subr.bf16.mxu1 %v26968_v42  ;;  %v6666_v42 = vmax.f32 %v25340_v40, 0.0  ;;  %v27066_v40 = vld [vmem:[%s38772_s5 + $0x3ac] ss:$52 sps:$4 sm:$0xff]  }
 0x422   :  { %24994 = vmatpush3.bf16.msra.mxu0 %v26969_v44  ;;  %v27018_v44 = vld [vmem:[%s38772_s5 + $0x6c] ss:$52 sps:$4 sm:$0xff]  }
 0x423   :  { %14982 = vmatpush1.bf16.msra.mxu1 %v26966_v46  ;;  %25001 = vmatprep.subr.bf16.mxu0 %v26970_v47  ;;  %v32825_v46 = vpack.c.bf16 %v6663_v11, %v6663_v11  ;;  %v27016_v47 = vld [vmem:[%s38772_s5 + $0x68] ss:$52 sps:$4 sm:$0xff]   ;;  %v27067_v11 = vld [vmem:[%s38772_s5 + $0x1730] ss:$52 sps:$4 sm:$0xff]  }
 0x424   :  { %14983 = vmatprep.subr.bf16.mxu1 %v26973_v48  ;;  %v27019_v48 = vld [vmem:[%s38772_s5 + $0x13f0] ss:$52 sps:$4 sm:$0xff]  }
 0x425   :  { %6572 = vmatmul.mubr.bf16.vlgmr.msra.gmra.mrb[28].mxu0 %v30061_v57  ;;  %v26984_v57 = vld [vmem:[%s38769_s3 + $0xe00] ss:$52 sps:$4 sm:$0xff]  }
 0x426   :  { %25002 = vmatpush3.bf16.msra.mxu0 %v26974_v53  ;;  %6611 = vmatprep.mubr.bf16.mxu0 %v30100_v14  ;;  %v26981_v14 = vld [vmem:[%s38772_s5 + $0x1118] ss:$52 sps:$4 sm:$0xff]   ;;  %v27021_v53 = vld [vmem:[%s38772_s5 + $0x13f4] ss:$52 sps:$4 sm:$0xff]  }
 0x427   :  { %14984 = vmatpush1.bf16.msra.mxu1 %v26971_v38  ;;  %25003 = vmatprep.subr.bf16.mxu0 %v26975_v55  ;;  %v32837_v38 = vpack.c.bf16 %v6666_v42, %v6666_v42  ;;  %v27027_v55 = vld [vmem:[%s38772_s5 + $0x145c] ss:$52 sps:$4 sm:$0xff]   ;;  %v27073_v42 = vld [vmem:[%s38772_s5 + $0x1798] ss:$52 sps:$4 sm:$0xff]  }
 0x428   :  { %14985 = vmatprep.subr.bf16.mxu1 %v26978_v56  ;;  %v27022_v56 = vld [vmem:[%s38772_s5 + $0xd0] ss:$52 sps:$4 sm:$0xff]  }
 0x42a   :  { %25004 = vmatpush3.bf16.msra.mxu0 %v26979_v39  ;;  %v27025_v39 = vld [vmem:[%s38772_s5 + $0x1458] ss:$52 sps:$4 sm:$0xff]  }
 0x42b   :  { %14986 = vmatpush1.bf16.msra.mxu1 %v26976_v59  ;;  %25005 = vmatprep.subr.bf16.mxu0 %v26980_v62  ;;  %v27030_v59 = vld [vmem:[%s38772_s5 + $0x13c] ss:$52 sps:$4 sm:$0xff]   ;;  %v27028_v62 = vld [vmem:[%s38772_s5 + $0x138] ss:$52 sps:$4 sm:$0xff]  }
 0x42c   :  { %14987 = vmatprep.subr.bf16.mxu1 %v26983_v1  ;;  %v27033_v1 = vld [vmem:[%s38772_s5 + $0x14c4] ss:$52 sps:$4 sm:$0xff]  }
 0x42e   :  { %25006 = vmatpush3.bf16.msra.mxu0 %v26984_v57  ;;  %v27031_v57 = vld [vmem:[%s38772_s5 + $0x14c0] ss:$52 sps:$4 sm:$0xff]  }
 0x42f   :  { %14988 = vmatpush1.bf16.msra.mxu1 %v26981_v14  ;;  %25007 = vmatprep.subr.bf16.mxu0 %v26985_v5  ;;  %v27036_v14 = vld [vmem:[%s38772_s5 + $0x1a4] ss:$52 sps:$4 sm:$0xff]   ;;  %v27034_v5 = vld [vmem:[%s38772_s5 + $0x1a0] ss:$52 sps:$4 sm:$0xff]  }
 0x430   :  { %14989 = vmatprep.subr.bf16.mxu1 %v26988_v9  ;;  %v27039_v9 = vld [vmem:[%s38772_s5 + $0x152c] ss:$52 sps:$4 sm:$0xff]  }
 0x432   :  { %25008 = vmatpush3.bf16.msra.mxu0 %v26989_v13  ;;  %v27037_v13 = vld [vmem:[%s38772_s5 + $0x1528] ss:$52 sps:$4 sm:$0xff]  }
 0x433   :  { %14990 = vmatpush1.bf16.msra.mxu1 %v26986_v10  ;;  %25009 = vmatprep.subr.bf16.mxu0 %v26990_v15  ;;  %v27042_v10 = vld [vmem:[%s38772_s5 + $0x20c] ss:$52 sps:$4 sm:$0xff]   ;;  %v27045_v15 = vld [vmem:[%s38772_s5 + $0x1594] ss:$52 sps:$4 sm:$0xff]  }
 0x434   :  { %14991 = vmatprep.subr.bf16.mxu1 %v26993_v16  ;;  %v27040_v16 = vld [vmem:[%s38772_s5 + $0x208] ss:$52 sps:$4 sm:$0xff]  }
 0x436   :  { %25010 = vmatpush3.bf16.msra.mxu0 %v26994_v51  ;;  %v27043_v51 = vld [vmem:[%s38772_s5 + $0x1590] ss:$52 sps:$4 sm:$0xff]  }
 0x437   :  { %14992 = vmatpush1.bf16.msra.mxu1 %v26991_v25  ;;  %25011 = vmatprep.subr.bf16.mxu0 %v26995_v60  ;;  %v27048_v25 = vld [vmem:[%s38772_s5 + $0x274] ss:$52 sps:$4 sm:$0xff]   ;;  %v27051_v60 = vld [vmem:[%s38772_s5 + $0x15fc] ss:$52 sps:$4 sm:$0xff]  }
 0x438   :  { %14993 = vmatprep.subr.bf16.mxu1 %v26998_v19 }
 0x439   :  { %v32784_v28 = vpop.f32.mrb[16].mxu1 }
 0x43a   :  { %v32794_v58 = vpop.f32.mrb[17].mxu1  ;;  %25012 = vmatpush3.bf16.msra.mxu0 %v26999_v20  ;;  %v27046_v20 = vld [vmem:[%s38772_s5 + $0x270] ss:$52 sps:$4 sm:$0xff]  }
 0x43b   :  { %v6496_v33 = vpop.f32.mrb[18].mxu1  ;;  %14994 = vmatpush1.bf16.msra.mxu1 %v26996_v61  ;;  %25013 = vmatprep.subr.bf16.mxu0 %v27000_v21  ;;  %v27049_v21 = vld [vmem:[%s38772_s5 + $0x15f8] ss:$52 sps:$4 sm:$0xff]  }
 0x43c   :  { %v6497_v54 = vpop.f32.mrb[19].mxu1  ;;  %14995 = vmatprep.subr.bf16.mxu1 %v27003_v22  ;;  %v27054_v22 = vld [vmem:[%s38772_s5 + $0x2dc] ss:$52 sps:$4 sm:$0xff]   ;;  %v27060_v33 = vld [vmem:[%s38772_s5 + $0x344] ss:$52 sps:$4 sm:$0xff]  }
 0x43d   :  { %v27063_v54 = vld [vmem:[%s38772_s5 + $0x16cc] ss:$52 sps:$4 sm:$0xff]  }
 0x43e   :  { %25014 = vmatpush3.bf16.msra.mxu0 %v27004_v63 }
 0x43f   :  { %14996 = vmatpush1.bf16.msra.mxu1 %v27001_v4  ;;  %25015 = vmatprep.subr.bf16.mxu0 %v27005_v24  ;;  %v27052_v24 = vld [vmem:[%s38772_s5 + $0x2d8] ss:$52 sps:$4 sm:$0xff]  }
 0x440   :  { %14997 = vmatprep.subr.bf16.mxu1 %v27008_v26  ;;  %v27055_v26 = vld [vmem:[%s38772_s5 + $0x1660] ss:$52 sps:$4 sm:$0xff]  }
 0x442   :  { %25016 = vmatpush3.bf16.msra.mxu0 %v27009_v27  ;;  %v27064_v27 = vld [vmem:[%s38772_s5 + $0x3a8] ss:$52 sps:$4 sm:$0xff]  }
 0x443   :  { %14998 = vmatpush1.bf16.msra.mxu1 %v27006_v52  ;;  %14598 = vmatprep.subr.bf16.mxu0 %v27012_v41  ;;  %v27061_v52 = vld [vmem:[%s38772_s5 + $0x16c8] ss:$52 sps:$4 sm:$0xff]  }
 0x444   :  { %15008 = vmatprep.subr.bf16.mxu1 %v27015_v2  ;;  %v27069_v41 = vld [vmem:[%s38772_s5 + $0x1734] ss:$52 sps:$4 sm:$0xff]   ;;  %v27070_v2 = vld [vmem:[%s38772_s5 + $0x410] ss:$52 sps:$4 sm:$0xff]  }
 0x445   :  { %6612 = vmatmul.mubr.bf16.vlgmr.msra.gmra.mrb[32].mxu0 %v30289_v37  ;;  %v27024_v37 = vld [vmem:[%s38772_s5 + $0xd4] ss:$52 sps:$4 sm:$0xff]  }
 0x446   :  { %15000 = vmatmul.mubr.bf16.vlgmr.msra.gmra.mrb[24].mxu1 %v32825_v46  ;;  %14599 = vmatpush1.bf16.msra.mxu0 %v27010_v43  ;;  %v27072_v43 = vld [vmem:[%s38772_s5 + $0x414] ss:$52 sps:$4 sm:$0xff]  }
 0x447   :  { %14630 = vmatprep.mubr.bf16.mxu0 %v32201_v49  ;;  %15009 = vmatpush1.bf16.msra.mxu1 %v27013_v8  ;;  %v27075_v8 = vld [vmem:[%s38772_s5 + $0x179c] ss:$52 sps:$4 sm:$0xff]  }
 0x448   :  { %15040 = vmatprep.mubr.bf16.mxu1 %v32837_v38  ;;  %14600 = vmatprep.subr.bf16.mxu0 %v27018_v44  ;;  %v27078_v44 = vld [vmem:[%s38772_s5 + $0x47c] ss:$52 sps:$4 sm:$0xff]  }
 0x449   :  { %15010 = vmatprep.subr.bf16.mxu1 %v27021_v53  ;;  %v27079_v53 = vld [vmem:[%s38772_s5 + $0x1800] ss:$52 sps:$4 sm:$0xff]  }
 0x44a   :  { %14601 = vmatpush1.bf16.msra.mxu0 %v27016_v47  ;;  %v27076_v47 = vld [vmem:[%s38772_s5 + $0x478] ss:$52 sps:$4 sm:$0xff]  }
 0x44b   :  { %15011 = vmatpush1.bf16.msra.mxu1 %v27019_v48  ;;  %14602 = vmatprep.subr.bf16.mxu0 %v27024_v37  ;;  %v27081_v48 = vld [vmem:[%s38772_s5 + $0x1804] ss:$52 sps:$4 sm:$0xff]  }
 0x44c   :  { %15012 = vmatprep.subr.bf16.mxu1 %v27027_v55  ;;  %v27084_v37 = vld [vmem:[%s38772_s5 + $0x4e4] ss:$52 sps:$4 sm:$0xff]   ;;  %v27082_v55 = vld [vmem:[%s38772_s5 + $0x4e0] ss:$52 sps:$4 sm:$0xff]  }
 0x44e   :  { %14603 = vmatpush1.bf16.msra.mxu0 %v27022_v56  ;;  %v27087_v56 = vld [vmem:[%s38772_s5 + $0x186c] ss:$52 sps:$4 sm:$0xff]  }
 0x44f   :  { %15013 = vmatpush1.bf16.msra.mxu1 %v27025_v39  ;;  %14604 = vmatprep.subr.bf16.mxu0 %v27030_v59  ;;  %v27085_v39 = vld [vmem:[%s38772_s5 + $0x1868] ss:$52 sps:$4 sm:$0xff]   ;;  %v27090_v59 = vld [vmem:[%s38772_s5 + $0x54c] ss:$52 sps:$4 sm:$0xff]  }
 0x450   :  { %15014 = vmatprep.subr.bf16.mxu1 %v27033_v1  ;;  %v27093_v1 = vld [vmem:[%s38772_s5 + $0x18d4] ss:$52 sps:$4 sm:$0xff]  }
 0x452   :  { %14605 = vmatpush1.bf16.msra.mxu0 %v27028_v62  ;;  %v27088_v62 = vld [vmem:[%s38772_s5 + $0x548] ss:$52 sps:$4 sm:$0xff]  }
 0x453   :  { %15015 = vmatpush1.bf16.msra.mxu1 %v27031_v57  ;;  %14606 = vmatprep.subr.bf16.mxu0 %v27036_v14  ;;  %v27091_v57 = vld [vmem:[%s38772_s5 + $0x18d0] ss:$52 sps:$4 sm:$0xff]   ;;  %v27096_v14 = vld [vmem:[%s38772_s5 + $0x5b4] ss:$52 sps:$4 sm:$0xff]  }
 0x454   :  { %15016 = vmatprep.subr.bf16.mxu1 %v27039_v9  ;;  %v29725_v9 = vld [vmem:[%s38771_s4] sm:$0xff] }
 0x456   :  { %14607 = vmatpush1.bf16.msra.mxu0 %v27034_v5  ;;  %v27099_v5 = vld [vmem:[%s38772_s5 + $0x193c] ss:$52 sps:$4 sm:$0xff]  }
 0x457   :  { %15017 = vmatpush1.bf16.msra.mxu1 %v27037_v13  ;;  %14608 = vmatprep.subr.bf16.mxu0 %v27042_v10  ;;  %v1253_v13 = vrot.slane %v29725_v9, %v30436_v36  ;;  %v27094_v10 = vld [vmem:[%s38772_s5 + $0x5b0] ss:$52 sps:$4 sm:$0xff]   ;;  %v27154_v9 = vld [vmem:[%s38772_s5 + $0x9c0] ss:$52 sps:$4 sm:$0xff]  }
 0x458   :  { %15018 = vmatprep.subr.bf16.mxu1 %v27045_v15  ;;  %v27097_v15 = vld [vmem:[%s38772_s5 + $0x1938] ss:$52 sps:$4 sm:$0xff]  }
 0x459   :  { %v25039_v19 = vpop.f32.mrb[20].mxu1 }
 0x45a   :  { %v25040_v61 = vpop.f32.mrb[21].mxu1  ;;  %14609 = vmatpush1.bf16.msra.mxu0 %v27040_v16  ;;  %v27102_v16 = vld [vmem:[%s38772_s5 + $0x61c] ss:$52 sps:$4 sm:$0xff]  }
 0x45b   :  { %v32905_v23 = vadd.f32 %v25040_v61, %v25039_v19  ;;  %v25042_v4 = vpop.f32.mrb[22].mxu1  ;;  %15019 = vmatpush1.bf16.msra.mxu1 %v27043_v51  ;;  %14610 = vmatprep.subr.bf16.mxu0 %v27048_v25  ;;  %v25339_v51 = vadd.f32 %v31957_v50, %v1253_v13  ;;  %v27105_v25 = vld [vmem:[%s38772_s5 + $0x19a4] ss:$52 sps:$4 sm:$0xff]   ;;  %v27103_v19 = vld [vmem:[%s38772_s5 + $0x19a0] ss:$52 sps:$4 sm:$0xff]  }
 0x45c   :  { %v25043_v63 = vpop.f32.mrb[23].mxu1  ;;  %15020 = vmatprep.subr.bf16.mxu1 %v27051_v60  ;;  %v27100_v60 = vld [vmem:[%s38772_s5 + $0x618] ss:$52 sps:$4 sm:$0xff]   ;;  %v27106_v61 = vld [vmem:[%s38772_s5 + $0x680] ss:$52 sps:$4 sm:$0xff]  }
 0x45d   :  { %v27108_v50 = vld [vmem:[%s38772_s5 + $0x684] ss:$52 sps:$4 sm:$0xff]   ;;  %v27114_v4 = vld [vmem:[%s38772_s5 + $0x6ec] ss:$52 sps:$4 sm:$0xff]   ;;  %v27117_v63 = vld [vmem:[%s38772_s5 + $0x1a74] ss:$52 sps:$4 sm:$0xff]  }
 0x45e   :  { %14611 = vmatpush1.bf16.msra.mxu0 %v27046_v20  ;;  %v6665_v20 = vmax.f32 %v25339_v51, 0.0  ;;  %v27157_v13 = vld [vmem:[%s38772_s5 + $0x1d48] ss:$52 sps:$4 sm:$0xff]   ;;  %v27163_v51 = vld [vmem:[%s38772_s5 + $0x1db0] ss:$52 sps:$4 sm:$0xff]  }
 0x45f   :  { %15021 = vmatpush1.bf16.msra.mxu1 %v27049_v21  ;;  %14612 = vmatprep.subr.bf16.mxu0 %v27054_v22  ;;  %v27111_v21 = vld [vmem:[%s38772_s5 + $0x1a0c] ss:$52 sps:$4 sm:$0xff]   ;;  %v27109_v22 = vld [vmem:[%s38772_s5 + $0x1a08] ss:$52 sps:$4 sm:$0xff]  }
 0x460   :  { %15022 = vmatprep.subr.bf16.mxu1 %v27057_v0  ;;  %v33035_v0 = vpack.c.bf16 %v6665_v20, %v6665_v20  ;;  %v27174_v20 = vld [vmem:[%s38772_s5 + $0xafc] ss:$52 sps:$4 sm:$0xff]  }
 0x462   :  { %14613 = vmatpush1.bf16.msra.mxu0 %v27052_v24  ;;  %v27112_v24 = vld [vmem:[%s38772_s5 + $0x6e8] ss:$52 sps:$4 sm:$0xff]  }
 0x463   :  { %15023 = vmatpush1.bf16.msra.mxu1 %v27055_v26  ;;  %14614 = vmatprep.subr.bf16.mxu0 %v27060_v33  ;;  %v27115_v26 = vld [vmem:[%s38772_s5 + $0x1a70] ss:$52 sps:$4 sm:$0xff]   ;;  %v27120_v33 = vld [vmem:[%s38772_s5 + $0x754] ss:$52 sps:$4 sm:$0xff]  }
 0x464   :  { %15024 = vmatprep.subr.bf16.mxu1 %v27063_v54  ;;  %v27118_v54 = vld [vmem:[%s38772_s5 + $0x750] ss:$52 sps:$4 sm:$0xff]  }
 0x466   :  { %14615 = vmatpush1.bf16.msra.mxu0 %v27058_v6  ;;  %v27123_v6 = vld [vmem:[%s38772_s5 + $0x1adc] ss:$52 sps:$4 sm:$0xff]  }
 0x467   :  { %15025 = vmatpush1.bf16.msra.mxu1 %v27061_v52  ;;  %14616 = vmatprep.subr.bf16.mxu0 %v27066_v40  ;;  %v27121_v52 = vld [vmem:[%s38772_s5 + $0x1ad8] ss:$52 sps:$4 sm:$0xff]   ;;  %v27126_v40 = vld [vmem:[%s38772_s5 + $0x7bc] ss:$52 sps:$4 sm:$0xff]  }
 0x468   :  { %15026 = vmatprep.subr.bf16.mxu1 %v27069_v41  ;;  %v27124_v41 = vld [vmem:[%s38772_s5 + $0x7b8] ss:$52 sps:$4 sm:$0xff]  }
 0x46a   :  { %14617 = vmatpush1.bf16.msra.mxu0 %v27064_v27  ;;  %v27129_v27 = vld [vmem:[%s38772_s5 + $0x1b44] ss:$52 sps:$4 sm:$0xff]  }
 0x46b   :  { %15027 = vmatpush1.bf16.msra.mxu1 %v27067_v11  ;;  %14618 = vmatprep.subr.bf16.mxu0 %v27072_v43  ;;  %v27127_v11 = vld [vmem:[%s38772_s5 + $0x1b40] ss:$52 sps:$4 sm:$0xff]   ;;  %v27132_v43 = vld [vmem:[%s38772_s5 + $0x824] ss:$52 sps:$4 sm:$0xff]  }
 0x46c   :  { %15028 = vmatprep.subr.bf16.mxu1 %v27075_v8  ;;  %v27130_v8 = vld [vmem:[%s38772_s5 + $0x820] ss:$52 sps:$4 sm:$0xff]  }
 0x46e   :  { %14619 = vmatpush1.bf16.msra.mxu0 %v27070_v2  ;;  %v27135_v2 = vld [vmem:[%s38772_s5 + $0x1bac] ss:$52 sps:$4 sm:$0xff]  }
 0x46f   :  { %15029 = vmatpush1.bf16.msra.mxu1 %v27073_v42  ;;  %14620 = vmatprep.subr.bf16.mxu0 %v27078_v44  ;;  %v27133_v42 = vld [vmem:[%s38772_s5 + $0x1ba8] ss:$52 sps:$4 sm:$0xff]   ;;  %v27138_v44 = vld [vmem:[%s38772_s5 + $0x88c] ss:$52 sps:$4 sm:$0xff]  }
 0x470   :  { %15030 = vmatprep.subr.bf16.mxu1 %v27081_v48  ;;  %v27136_v48 = vld [vmem:[%s38772_s5 + $0x888] ss:$52 sps:$4 sm:$0xff]  }
 0x472   :  { %14621 = vmatpush1.bf16.msra.mxu0 %v27076_v47  ;;  %v27141_v47 = vld [vmem:[%s38772_s5 + $0x1c14] ss:$52 sps:$4 sm:$0xff]  }
 0x473   :  { %15031 = vmatpush1.bf16.msra.mxu1 %v27079_v53  ;;  %14622 = vmatprep.subr.bf16.mxu0 %v27084_v37  ;;  %v27139_v53 = vld [vmem:[%s38772_s5 + $0x1c10] ss:$52 sps:$4 sm:$0xff]   ;;  %v27144_v37 = vld [vmem:[%s38772_s5 + $0x8f4] ss:$52 sps:$4 sm:$0xff]  }
 0x474   :  { %15032 = vmatprep.subr.bf16.mxu1 %v27087_v56  ;;  %v27142_v56 = vld [vmem:[%s38772_s5 + $0x8f0] ss:$52 sps:$4 sm:$0xff]  }
 0x476   :  { %14623 = vmatpush1.bf16.msra.mxu0 %v27082_v55  ;;  %v27147_v55 = vld [vmem:[%s38772_s5 + $0x1c7c] ss:$52 sps:$4 sm:$0xff]  }
 0x477   :  { %15033 = vmatpush1.bf16.msra.mxu1 %v27085_v39  ;;  %14624 = vmatprep.subr.bf16.mxu0 %v27090_v59  ;;  %v27145_v39 = vld [vmem:[%s38772_s5 + $0x1c78] ss:$52 sps:$4 sm:$0xff]   ;;  %v27150_v59 = vld [vmem:[%s38772_s5 + $0x95c] ss:$52 sps:$4 sm:$0xff]  }
 0x478   :  { %15034 = vmatprep.subr.bf16.mxu1 %v27093_v1  ;;  %v27148_v1 = vld [vmem:[%s38772_s5 + $0x958] ss:$52 sps:$4 sm:$0xff]  }
 0x47a   :  { %14625 = vmatpush1.bf16.msra.mxu0 %v27088_v62  ;;  %v27153_v62 = vld [vmem:[%s38772_s5 + $0x1ce4] ss:$52 sps:$4 sm:$0xff]  }
 0x47b   :  { %15035 = vmatpush1.bf16.msra.mxu1 %v27091_v57  ;;  %14626 = vmatprep.subr.bf16.mxu0 %v27096_v14  ;;  %v27151_v57 = vld [vmem:[%s38772_s5 + $0x1ce0] ss:$52 sps:$4 sm:$0xff]   ;;  %v27156_v14 = vld [vmem:[%s38772_s5 + $0x9c4] ss:$52 sps:$4 sm:$0xff]  }
 0x47c   :  { %15036 = vmatprep.subr.bf16.mxu1 %v27099_v5  ;;  %v27159_v5 = vld [vmem:[%s38772_s5 + $0x1d4c] ss:$52 sps:$4 sm:$0xff]  }
 0x47e   :  { %14627 = vmatpush1.bf16.msra.mxu0 %v27094_v10  ;;  %v27162_v10 = vld [vmem:[%s38772_s5 + $0xa2c] ss:$52 sps:$4 sm:$0xff]  }
 0x47f   :  { %15037 = vmatpush1.bf16.msra.mxu1 %v27097_v15  ;;  %14628 = vmatprep.subr.bf16.mxu0 %v27102_v16  ;;  %v27165_v15 = vld [vmem:[%s38772_s5 + $0x1db4] ss:$52 sps:$4 sm:$0xff]  }
 0x480   :  { %15038 = vmatprep.subr.bf16.mxu1 %v27105_v25  ;;  %v27160_v16 = vld [vmem:[%s38772_s5 + $0xa28] ss:$52 sps:$4 sm:$0xff]  }
 0x481   :  { %v27168_v25 = vld [vmem:[%s38772_s5 + $0xa94] ss:$52 sps:$4 sm:$0xff]  }
 0x482   :  { %14629 = vmatpush1.bf16.msra.mxu0 %v27100_v60  ;;  %v27171_v60 = vld [vmem:[%s38772_s5 + $0x1e1c] ss:$52 sps:$4 sm:$0xff]  }
 0x483   :  { %15039 = vmatpush1.bf16.msra.mxu1 %v27103_v19  ;;  %14639 = vmatprep.subr.bf16.mxu0 %v27108_v50  ;;  %v27166_v19 = vld [vmem:[%s38772_s5 + $0xa90] ss:$52 sps:$4 sm:$0xff]   ;;  %v27169_v50 = vld [vmem:[%s38772_s5 + $0x1e18] ss:$52 sps:$4 sm:$0xff]  }
 0x484   :  { %15049 = vmatprep.subr.bf16.mxu1 %v27111_v21  ;;  %v27172_v21 = vld [vmem:[%s38772_s5 + $0xaf8] ss:$52 sps:$4 sm:$0xff]  }
 0x485   :  { %14631 = vmatmul.mubr.bf16.vlgmr.msra.gmra.mrb[36].mxu0 %v32407_v34 }
 0x486   :  { %15041 = vmatmul.mubr.bf16.vlgmr.msra.gmra.mrb[24].mxu1 %v33035_v0  ;;  %14640 = vmatpush1.bf16.msra.mxu0 %v27106_v61  ;;  %v27177_v61 = vld [vmem:[%s38772_s5 + $0x1e84] ss:$52 sps:$4 sm:$0xff]  }
 0x487   :  { %14671 = vmatprep.mubr.bf16.mxu0 %v32409_v35  ;;  %15050 = vmatpush1.bf16.msra.mxu1 %v27109_v22  ;;  %v27175_v22 = vld [vmem:[%s38772_s5 + $0x1e80] ss:$52 sps:$4 sm:$0xff]  }
 0x488   :  { %14641 = vmatprep.subr.bf16.mxu0 %v27114_v4  ;;  %15051 = vmatprep.subr.bf16.mxu1 %v27117_v63  ;;  %v27180_v4 = vld [vmem:[%s38772_s5 + $0xb64] ss:$52 sps:$4 sm:$0xff]   ;;  %v27183_v63 = vld [vmem:[%s38772_s5 + $0x1eec] ss:$52 sps:$4 sm:$0xff]  }
 0x48a   :  { %14642 = vmatpush1.bf16.msra.mxu0 %v27112_v24  ;;  %v27178_v24 = vld [vmem:[%s38772_s5 + $0xb60] ss:$52 sps:$4 sm:$0xff]  }
 0x48b   :  { %15052 = vmatpush1.bf16.msra.mxu1 %v27115_v26  ;;  %14643 = vmatprep.subr.bf16.mxu0 %v27120_v33  ;;  %v27181_v26 = vld [vmem:[%s38772_s5 + $0x1ee8] ss:$52 sps:$4 sm:$0xff]   ;;  %v27186_v33 = vld [vmem:[%s38772_s5 + $0xbcc] ss:$52 sps:$4 sm:$0xff]  }
 0x48c   :  { %15053 = vmatprep.subr.bf16.mxu1 %v27123_v6  ;;  %v27189_v6 = vld [vmem:[%s38772_s5 + $0x1f54] ss:$52 sps:$4 sm:$0xff]  }
 0x48e   :  { %14644 = vmatpush1.bf16.msra.mxu0 %v27118_v54  ;;  %v33187_v54 = vld [vmem:[%s38771_s4 + $0x8] sm:$0x1f] }
 0x48f   :  { %15054 = vmatpush1.bf16.msra.mxu1 %v27121_v52  ;;  %14645 = vmatprep.subr.bf16.mxu0 %v27126_v40  ;;  %v27184_v52 = vld [vmem:[%s38772_s5 + $0xbc8] ss:$52 sps:$4 sm:$0xff]   ;;  %v27187_v40 = vld [vmem:[%s38772_s5 + $0x1f50] ss:$52 sps:$4 sm:$0xff]  }
 0x490   :  { %15055 = vmatprep.subr.bf16.mxu1 %v27129_v27  ;;  %v1265_v27 = vrot.slane %v33187_v54, %v30036_v31 }
 0x492   :  { %14646 = vmatpush1.bf16.msra.mxu0 %v27124_v41  ;;  %v27192_v41 = vld [vmem:[%s38772_s5 + $0xc34] ss:$52 sps:$4 sm:$0xff]  }
 0x493   :  { %15056 = vmatpush1.bf16.msra.mxu1 %v27127_v11  ;;  %14647 = vmatprep.subr.bf16.mxu0 %v27132_v43  ;;  %v27195_v11 = vld [vmem:[%s38772_s5 + $0x1fbc] ss:$52 sps:$4 sm:$0xff]   ;;  %v1261_v43 = vrot.slane %v33187_v54, %v30030_v29 }
 0x494   :  { %15057 = vmatprep.subr.bf16.mxu1 %v27135_v2 }
 0x496   :  { %14648 = vmatpush1.bf16.msra.mxu0 %v27130_v8 }
 0x497   :  { %15058 = vmatpush1.bf16.msra.mxu1 %v27133_v42  ;;  %14649 = vmatprep.subr.bf16.mxu0 %v27138_v44  ;;  %v27190_v42 = vld [vmem:[%s38772_s5 + $0xc30] ss:$52 sps:$4 sm:$0xff]   ;;  %v27193_v44 = vld [vmem:[%s38772_s5 + $0x1fb8] ss:$52 sps:$4 sm:$0xff]  }
 0x498   :  { %15059 = vmatprep.subr.bf16.mxu1 %v27141_v47  ;;  %v1273_v47 = vrot.slane %v33187_v54, %v30039_v32 }
 0x49a   :  { %14650 = vmatpush1.bf16.msra.mxu0 %v27136_v48 }
 0x49b   :  { %15060 = vmatpush1.bf16.msra.mxu1 %v27139_v53  ;;  %14651 = vmatprep.subr.bf16.mxu0 %v27144_v37  ;;  %v27198_v37 = vld [vmem:[%s38772_s5 + $0xc9c] ss:$52 sps:$4 sm:$0xff]  }
 0x49c   :  { %15061 = vmatprep.subr.bf16.mxu1 %v27147_v55  ;;  %v27201_v55 = vld [vmem:[%s38772_s5 + $0x2024] ss:$52 sps:$4 sm:$0xff]  }
 0x49e   :  { %14652 = vmatpush1.bf16.msra.mxu0 %v27142_v56 }
 0x49f   :  { %15062 = vmatpush1.bf16.msra.mxu1 %v27145_v39  ;;  %14653 = vmatprep.subr.bf16.mxu0 %v27150_v59 }
 0x4a0   :  { %15063 = vmatprep.subr.bf16.mxu1 %v27153_v62  ;;  %v27196_v62 = vld [vmem:[%s38772_s5 + $0xc98] ss:$52 sps:$4 sm:$0xff]  }
 0x4a2   :  { %14654 = vmatpush1.bf16.msra.mxu0 %v27148_v1  ;;  %v27199_v1 = vld [vmem:[%s38772_s5 + $0x2020] ss:$52 sps:$4 sm:$0xff]  }
 0x4a3   :  { %15064 = vmatpush1.bf16.msra.mxu1 %v27151_v57  ;;  %14655 = vmatprep.subr.bf16.mxu0 %v27156_v14  ;;  %v25344_v57 = vadd.f32 %v32794_v58, %v1273_v47  ;;  %v27202_v58 = vld [vmem:[%s38772_s5 + $0xd00] ss:$52 sps:$4 sm:$0xff]   ;;  %v27238_v47 = vld [vmem:[%s38772_s5 + $0xf70] ss:$52 sps:$4 sm:$0xff]  }
 0x4a4   :  { %15065 = vmatprep.subr.bf16.mxu1 %v27159_v5  ;;  %v27204_v5 = vld [vmem:[%s38772_s5 + $0xd04] ss:$52 sps:$4 sm:$0xff]  }
 0x4a6   :  { %14656 = vmatpush1.bf16.msra.mxu0 %v27154_v9  ;;  %v27207_v9 = vld [vmem:[%s38772_s5 + $0x208c] ss:$52 sps:$4 sm:$0xff]  }
 0x4a7   :  { %15066 = vmatpush1.bf16.msra.mxu1 %v27157_v13  ;;  %14657 = vmatprep.subr.bf16.mxu0 %v27162_v10  ;;  %v6670_v10 = vmax.f32 %v25344_v57, 0.0  ;;  %v27255_v57 = vld [vmem:[%s38772_s5 + $0x23cc] ss:$52 sps:$4 sm:$0xff]  }
 0x4a8   :  { %15067 = vmatprep.subr.bf16.mxu1 %v27165_v15  ;;  %v27205_v15 = vld [vmem:[%s38772_s5 + $0x2088] ss:$52 sps:$4 sm:$0xff]  }
 0x4aa   :  { %14658 = vmatpush1.bf16.msra.mxu0 %v27160_v16  ;;  %v27210_v16 = vld [vmem:[%s38772_s5 + $0xd6c] ss:$52 sps:$4 sm:$0xff]  }
 0x4ab   :  { %15068 = vmatpush1.bf16.msra.mxu1 %v27163_v51  ;;  %14659 = vmatprep.subr.bf16.mxu0 %v27168_v25  ;;  %v27208_v25 = vld [vmem:[%s38772_s5 + $0xd68] ss:$52 sps:$4 sm:$0xff]  }
 0x4ac   :  { %15069 = vmatprep.subr.bf16.mxu1 %v27171_v60  ;;  %v27211_v60 = vld [vmem:[%s38772_s5 + $0x20f0] ss:$52 sps:$4 sm:$0xff]  }
 0x4ae   :  { %14660 = vmatpush1.bf16.msra.mxu0 %v27166_v19  ;;  %v27213_v19 = vld [vmem:[%s38772_s5 + $0x20f4] ss:$52 sps:$4 sm:$0xff]  }
 0x4af   :  { %15070 = vmatpush1.bf16.msra.mxu1 %v27169_v50  ;;  %14661 = vmatprep.subr.bf16.mxu0 %v27174_v20  ;;  %v33256_v50 = vpack.c.bf16 %v6670_v10, %v6670_v10  ;;  %v27216_v20 = vld [vmem:[%s38772_s5 + $0xdd4] ss:$52 sps:$4 sm:$0xff]  }
 0x4b0   :  { %15071 = vmatprep.subr.bf16.mxu1 %v27177_v61  ;;  %v27219_v61 = vld [vmem:[%s38772_s5 + $0x215c] ss:$52 sps:$4 sm:$0xff]  }
 0x4b1   :  { %v27256_v10 = vld [vmem:[%s38772_s5 + $0x10a8] ss:$52 sps:$4 sm:$0xff]  }
 0x4b2   :  { %14662 = vmatpush1.bf16.msra.mxu0 %v27172_v21  ;;  %v27214_v21 = vld [vmem:[%s38772_s5 + $0xdd0] ss:$52 sps:$4 sm:$0xff]  }
 0x4b3   :  { %15072 = vmatpush1.bf16.msra.mxu1 %v27175_v22  ;;  %14663 = vmatprep.subr.bf16.mxu0 %v27180_v4  ;;  %v27217_v22 = vld [vmem:[%s38772_s5 + $0x2158] ss:$52 sps:$4 sm:$0xff]   ;;  %v27222_v4 = vld [vmem:[%s38772_s5 + $0xe3c] ss:$52 sps:$4 sm:$0xff]  }
 0x4b4   :  { %15073 = vmatprep.subr.bf16.mxu1 %v27183_v63  ;;  %v27225_v63 = vld [vmem:[%s38772_s5 + $0x21c4] ss:$52 sps:$4 sm:$0xff]  }
 0x4b6   :  { %14664 = vmatpush1.bf16.msra.mxu0 %v27178_v24  ;;  %v27220_v24 = vld [vmem:[%s38772_s5 + $0xe38] ss:$52 sps:$4 sm:$0xff]  }
 0x4b7   :  { %15074 = vmatpush1.bf16.msra.mxu1 %v27181_v26  ;;  %14665 = vmatprep.subr.bf16.mxu0 %v27186_v33  ;;  %v27223_v26 = vld [vmem:[%s38772_s5 + $0x21c0] ss:$52 sps:$4 sm:$0xff]   ;;  %v27228_v33 = vld [vmem:[%s38772_s5 + $0xea4] ss:$52 sps:$4 sm:$0xff]  }
 0x4b8   :  { %v6328_v2 = vpop.f32.mrb[20].mxu0  ;;  %15075 = vmatprep.subr.bf16.mxu1 %v27189_v6  ;;  %v27231_v6 = vld [vmem:[%s38772_s5 + $0x222c] ss:$52 sps:$4 sm:$0xff]  }
 0x4b9   :  { %v6330_v8 = vpop.f32.mrb[21].mxu0  ;;  %v25341_v39 = vadd.f32 %v6328_v2, %v1261_v43  ;;  %v27235_v43 = vld [vmem:[%s38772_s5 + $0x2290] ss:$52 sps:$4 sm:$0xff]   ;;  %v27240_v2 = vld [vmem:[%s38772_s5 + $0xf74] ss:$52 sps:$4 sm:$0xff]  }
 0x4ba   :  { %v25342_v48 = vadd.f32 %v6330_v8, %v1265_v27  ;;  %v6332_v53 = vpop.f32.mrb[22].mxu0  ;;  %14666 = vmatpush1.bf16.msra.mxu0 %v27184_v52  ;;  %v27226_v52 = vld [vmem:[%s38772_s5 + $0xea0] ss:$52 sps:$4 sm:$0xff]   ;;  %v27243_v8 = vld [vmem:[%s38772_s5 + $0x22fc] ss:$52 sps:$4 sm:$0xff]  }
 0x4bb   :  { %15076 = vmatpush1.bf16.msra.mxu1 %v27187_v40  ;;  %v6333_v56 = vpop.f32.mrb[23].mxu0  ;;  %14667 = vmatprep.subr.bf16.mxu0 %v27192_v41  ;;  %v6667_v13 = vmax.f32 %v25341_v39, 0.0  ;;  %v27229_v40 = vld [vmem:[%s38772_s5 + $0x2228] ss:$52 sps:$4 sm:$0xff]   ;;  %v27234_v27 = vld [vmem:[%s38772_s5 + $0xf0c] ss:$52 sps:$4 sm:$0xff]  }
 0x4bc   :  { %v6668_v59 = vmax.f32 %v25342_v48, 0.0  ;;  %15077 = vmatprep.subr.bf16.mxu1 %v27195_v11  ;;  %v27237_v41 = vld [vmem:[%s38772_s5 + $0x2294] ss:$52 sps:$4 sm:$0xff]   ;;  %v27241_v48 = vld [vmem:[%s38772_s5 + $0x22f8] ss:$52 sps:$4 sm:$0xff]  }
 0x4bd   :  { %v33244_v51 = vpack.c.bf16 %v6667_v13, %v6667_v13  ;;  %v27232_v11 = vld [vmem:[%s38772_s5 + $0xf08] ss:$52 sps:$4 sm:$0xff]   ;;  %v27249_v56 = vld [vmem:[%s38772_s5 + $0x2364] ss:$52 sps:$4 sm:$0xff]   ;;  %v27258_v13 = vld [vmem:[%s38772_s5 + $0x10ac] ss:$52 sps:$4 sm:$0xff]  }
 0x4be   :  { %v33226_v14 = vpack.c.bf16 %v6668_v59, %v6668_v59  ;;  %14668 = vmatpush1.bf16.msra.mxu0 %v27190_v42  ;;  %v27244_v59 = vld [vmem:[%s38772_s5 + $0xfd8] ss:$52 sps:$4 sm:$0xff]  }
 0x4bf   :  { %15078 = vmatpush1.bf16.msra.mxu1 %v27193_v44  ;;  %14669 = vmatprep.subr.bf16.mxu0 %v27198_v37 }
 0x4c0   :  { %15081 = vmatprep.mubr.bf16.mxu1 %v33226_v14  ;;  %15079 = vmatprep.subr.bf16.mxu1 %v27201_v55  ;;  %v27246_v55 = vld [vmem:[%s38772_s5 + $0xfdc] ss:$52 sps:$4 sm:$0xff]  }
 0x4c2   :  { %14670 = vmatpush1.bf16.msra.mxu0 %v27196_v62  ;;  %v27247_v62 = vld [vmem:[%s38772_s5 + $0x2360] ss:$52 sps:$4 sm:$0xff]  }
 0x4c3   :  { %15080 = vmatpush1.bf16.msra.mxu1 %v27199_v1  ;;  %14680 = vmatprep.subr.bf16.mxu0 %v27204_v5  ;;  %v27252_v1 = vld [vmem:[%s38772_s5 + $0x1044] ss:$52 sps:$4 sm:$0xff]   ;;  %v27250_v5 = vld [vmem:[%s38772_s5 + $0x1040] ss:$52 sps:$4 sm:$0xff]  }
 0x4c4   :  { %15090 = vmatprep.subr.bf16.mxu1 %v27207_v9  ;;  %v27253_v9 = vld [vmem:[%s38772_s5 + $0x23c8] ss:$52 sps:$4 sm:$0xff]  }
 0x4c5   :  { %14672 = vmatmul.mubr.bf16.vlgmr.msra.gmra.mrb[36].mxu0 %v32613_v17 }
 0x4c6   :  { %15082 = vmatmul.mubr.bf16.vlgmr.msra.gmra.mrb[24].mxu1 %v33244_v51  ;;  %14681 = vmatpush1.bf16.msra.mxu0 %v27202_v58  ;;  %v27261_v58 = vld [vmem:[%s38772_s5 + $0x2434] ss:$52 sps:$4 sm:$0xff]  }
 0x4c7   :  { %14712 = vmatprep.mubr.bf16.mxu0 %v32619_v18  ;;  %15091 = vmatpush1.bf16.msra.mxu1 %v27205_v15  ;;  %v27259_v15 = vld [vmem:[%s38772_s5 + $0x2430] ss:$52 sps:$4 sm:$0xff]  }
 0x4c8   :  { %15122 = vmatprep.mubr.bf16.mxu1 %v33256_v50  ;;  %14682 = vmatprep.subr.bf16.mxu0 %v27210_v16  ;;  %v27264_v16 = vld [vmem:[%s38772_s5 + $0x1114] ss:$52 sps:$4 sm:$0xff]  }
 0x4c9   :  { %15092 = vmatprep.subr.bf16.mxu1 %v27213_v19  ;;  %v27265_v19 = vld [vmem:[%s38772_s5 + $0x2498] ss:$52 sps:$4 sm:$0xff]  }
 0x4ca   :  { %14683 = vmatpush1.bf16.msra.mxu0 %v27208_v25  ;;  %v27267_v25 = vld [vmem:[%s38772_s5 + $0x249c] ss:$52 sps:$4 sm:$0xff]  }
 0x4cb   :  { %15093 = vmatpush1.bf16.msra.mxu1 %v27211_v60  ;;  %14684 = vmatprep.subr.bf16.mxu0 %v27216_v20  ;;  %v27262_v60 = vld [vmem:[%s38772_s5 + $0x1110] ss:$52 sps:$4 sm:$0xff]  }
 0x4cc   :  { %15094 = vmatprep.subr.bf16.mxu1 %v27219_v61  ;;  %v27270_v20 = vld [vmem:[%s38772_s5 + $0x117c] ss:$52 sps:$4 sm:$0xff]   ;;  %v27273_v61 = vld [vmem:[%s38772_s5 + $0x2504] ss:$52 sps:$4 sm:$0xff]  }
 0x4ce   :  { %14685 = vmatpush1.bf16.msra.mxu0 %v27214_v21  ;;  %v27268_v21 = vld [vmem:[%s38772_s5 + $0x1178] ss:$52 sps:$4 sm:$0xff]  }
 0x4cf   :  { %15095 = vmatpush1.bf16.msra.mxu1 %v27217_v22  ;;  %14686 = vmatprep.subr.bf16.mxu0 %v27222_v4  ;;  %v27271_v22 = vld [vmem:[%s38772_s5 + $0x2500] ss:$52 sps:$4 sm:$0xff]   ;;  %v27276_v4 = vld [vmem:[%s38772_s5 + $0x11e4] ss:$52 sps:$4 sm:$0xff]  }
 0x4d0   :  { %15096 = vmatprep.subr.bf16.mxu1 %v27225_v63  ;;  %v27279_v63 = vld [vmem:[%s38772_s5 + $0x256c] ss:$52 sps:$4 sm:$0xff]  }
 0x4d2   :  { %14687 = vmatpush1.bf16.msra.mxu0 %v27220_v24  ;;  %v27274_v24 = vld [vmem:[%s38772_s5 + $0x11e0] ss:$52 sps:$4 sm:$0xff]  }
 0x4d3   :  { %15097 = vmatpush1.bf16.msra.mxu1 %v27223_v26  ;;  %14688 = vmatprep.subr.bf16.mxu0 %v27228_v33  ;;  %v27277_v26 = vld [vmem:[%s38772_s5 + $0x2568] ss:$52 sps:$4 sm:$0xff]   ;;  %v27282_v33 = vld [vmem:[%s38772_s5 + $0x124c] ss:$52 sps:$4 sm:$0xff]  }
 0x4d4   :  { %15098 = vmatprep.subr.bf16.mxu1 %v27231_v6  ;;  %v27285_v6 = vld [vmem:[%s38772_s5 + $0x25d4] ss:$52 sps:$4 sm:$0xff]  }
 0x4d6   :  { %14689 = vmatpush1.bf16.msra.mxu0 %v27226_v52  ;;  %v27280_v52 = vld [vmem:[%s38772_s5 + $0x1248] ss:$52 sps:$4 sm:$0xff]  }
 0x4d7   :  { %15099 = vmatpush1.bf16.msra.mxu1 %v27229_v40  ;;  %14690 = vmatprep.subr.bf16.mxu0 %v27234_v27  ;;  %v27283_v40 = vld [vmem:[%s38772_s5 + $0x25d0] ss:$52 sps:$4 sm:$0xff]   ;;  %v1277_v27 = vrot.slane %v33187_v54, %v30224_v7 }
 0x4d8   :  { %v24973_v42 = vpop.f32.mrb[24].mxu0  ;;  %15100 = vmatprep.subr.bf16.mxu1 %v27237_v41  ;;  %v27288_v41 = vld [vmem:[%s38772_s5 + $0x12b4] ss:$52 sps:$4 sm:$0xff]  }
 0x4d9   :  { %v24974_v44 = vpop.f32.mrb[25].mxu0 }
 0x4da   :  { %v33321_v53 = vadd.f32 %v24974_v44, %v24973_v42  ;;  %v24976_v37 = vpop.f32.mrb[26].mxu0  ;;  %14691 = vmatpush1.bf16.msra.mxu0 %v27232_v11  ;;  %v27291_v11 = vld [vmem:[%s38772_s5 + $0x263c] ss:$52 sps:$4 sm:$0xff]   ;;  %v27289_v44 = vld [vmem:[%s38772_s5 + $0x2638] ss:$52 sps:$4 sm:$0xff]  }
 0x4db   :  { %15101 = vmatpush1.bf16.msra.mxu1 %v27235_v43  ;;  %v24977_v39 = vpop.f32.mrb[27].mxu0  ;;  %14692 = vmatprep.subr.bf16.mxu0 %v27240_v2  ;;  %v1269_v43 = vrot.slane %v33187_v54, %v30033_v30  ;;  %v27286_v42 = vld [vmem:[%s38772_s5 + $0x12b0] ss:$52 sps:$4 sm:$0xff]  }
 0x4dc   :  { %15102 = vmatprep.subr.bf16.mxu1 %v27243_v8  ;;  %v27294_v54 = vld [vmem:[%s38772_s5 + $0x131c] ss:$52 sps:$4 sm:$0xff]  }
 0x4dd   :  { %v25343_v39 = vadd.f32 %v32784_v28, %v1269_v43 }
 0x4de   :  { %14693 = vmatpush1.bf16.msra.mxu0 %v27238_v47  ;;  %v6534_v47 = vadd.f32 %v33321_v53, %v1277_v27  ;;  %v27292_v53 = vld [vmem:[%s38772_s5 + $0x1318] ss:$52 sps:$4 sm:$0xff]   ;;  %v27327_v27 = vld [vmem:[%s38772_s5 + $0x165c] ss:$52 sps:$4 sm:$0xff]  }
 0x4df   :  { %15103 = vmatpush1.bf16.msra.mxu1 %v27241_v48  ;;  %14694 = vmatprep.subr.bf16.mxu0 %v27246_v55  ;;  %v27297_v55 = vld [vmem:[%s38772_s5 + $0x26a4] ss:$52 sps:$4 sm:$0xff]   ;;  %v6669_v28 = vmax.f32 %v25343_v39, 0.0  ;;  %v27345_v39 = vld [vmem:[%s38772_s5 + $0x1794] ss:$52 sps:$4 sm:$0xff]  }
 0x4e0   :  { %15104 = vmatprep.subr.bf16.mxu1 %v27249_v56 }
 0x4e2   :  { %14695 = vmatpush1.bf16.msra.mxu0 %v27244_v59 }
 0x4e3   :  { %15105 = vmatpush1.bf16.msra.mxu1 %v27247_v62  ;;  %14696 = vmatprep.subr.bf16.mxu0 %v27252_v1  ;;  %v27295_v62 = vld [vmem:[%s38772_s5 + $0x26a0] ss:$52 sps:$4 sm:$0xff]   ;;  %v27300_v1 = vld [vmem:[%s38772_s5 + $0x1384] ss:$52 sps:$4 sm:$0xff]  }
 0x4e4   :  { %15106 = vmatprep.subr.bf16.mxu1 %v27255_v57  ;;  %v27318_v57 = vld [vmem:[%s38772_s5 + $0x270c] ss:$52 sps:$4 sm:$0xff]  }
 0x4e6   :  { %14697 = vmatpush1.bf16.msra.mxu0 %v27250_v5  ;;  %v27298_v5 = vld [vmem:[%s38772_s5 + $0x1380] ss:$52 sps:$4 sm:$0xff]  }
 0x4e7   :  { %15107 = vmatpush1.bf16.msra.mxu1 %v27253_v9  ;;  %14698 = vmatprep.subr.bf16.mxu0 %v27258_v13  ;;  %v27303_v9 = vld [vmem:[%s38772_s5 + $0x13ec] ss:$52 sps:$4 sm:$0xff]   ;;  %v27316_v13 = vld [vmem:[%s38772_s5 + $0x2708] ss:$52 sps:$4 sm:$0xff]  }
 0x4e8   :  { %15108 = vmatprep.subr.bf16.mxu1 %v27261_v58  ;;  %v33452_v58 = vpack.c.bf16 %v6669_v28, %v6669_v28  ;;  %v27349_v28 = vld [vmem:[%s38772_s5 + $0x17f8] ss:$52 sps:$4 sm:$0xff]  }
 0x4ea   :  { %14699 = vmatpush1.bf16.msra.mxu0 %v27256_v10  ;;  %v27301_v10 = vld [vmem:[%s38772_s5 + $0x13e8] ss:$52 sps:$4 sm:$0xff]  }
 0x4eb   :  { %15109 = vmatpush1.bf16.msra.mxu1 %v27259_v15  ;;  %14700 = vmatprep.subr.bf16.mxu0 %v27264_v16  ;;  %v27324_v15 = vld [vmem:[%s38772_s5 + $0x2774] ss:$52 sps:$4 sm:$0xff]  }
 0x4ec   :  { %15110 = vmatprep.subr.bf16.mxu1 %v27267_v25  ;;  %v27306_v16 = vld [vmem:[%s38772_s5 + $0x1454] ss:$52 sps:$4 sm:$0xff]   ;;  %v27322_v25 = vld [vmem:[%s38772_s5 + $0x2770] ss:$52 sps:$4 sm:$0xff]  }
 0x4ee   :  { %14701 = vmatpush1.bf16.msra.mxu0 %v27262_v60  ;;  %v27330_v60 = vld [vmem:[%s38772_s5 + $0x1c] ss:$52 sps:$4 sm:$0xff]  }
 0x4ef   :  { %15111 = vmatpush1.bf16.msra.mxu1 %v27265_v19  ;;  %14702 = vmatprep.subr.bf16.mxu0 %v27270_v20  ;;  %v27304_v19 = vld [vmem:[%s38772_s5 + $0x1450] ss:$52 sps:$4 sm:$0xff]  }
 0x4f0   :  { %15112 = vmatprep.subr.bf16.mxu1 %v27273_v61  ;;  %v27309_v20 = vld [vmem:[%s38772_s5 + $0x14bc] ss:$52 sps:$4 sm:$0xff]   ;;  %v27307_v61 = vld [vmem:[%s38772_s5 + $0x14b8] ss:$52 sps:$4 sm:$0xff]  }
 0x4f2   :  { %14703 = vmatpush1.bf16.msra.mxu0 %v27268_v21  ;;  %v27312_v21 = vld [vmem:[%s38772_s5 + $0x1524] ss:$52 sps:$4 sm:$0xff]  }
 0x4f3   :  { %15113 = vmatpush1.bf16.msra.mxu1 %v27271_v22  ;;  %14704 = vmatprep.subr.bf16.mxu0 %v27276_v4  ;;  %v27310_v22 = vld [vmem:[%s38772_s5 + $0x1520] ss:$52 sps:$4 sm:$0xff]  }
 0x4f4   :  { %15114 = vmatprep.subr.bf16.mxu1 %v27279_v63  ;;  %v27315_v4 = vld [vmem:[%s38772_s5 + $0x158c] ss:$52 sps:$4 sm:$0xff]   ;;  %v27313_v63 = vld [vmem:[%s38772_s5 + $0x1588] ss:$52 sps:$4 sm:$0xff]  }
 0x4f6   :  { %14705 = vmatpush1.bf16.msra.mxu0 %v27274_v24  ;;  %v27321_v24 = vld [vmem:[%s38772_s5 + $0x15f4] ss:$52 sps:$4 sm:$0xff]  }
 0x4f7   :  { %15115 = vmatpush1.bf16.msra.mxu1 %v27277_v26  ;;  %14706 = vmatprep.subr.bf16.mxu0 %v27282_v33 }
 0x4f8   :  { %v24995_v2 = vpop.f32.mrb[28].mxu0  ;;  %15116 = vmatprep.subr.bf16.mxu1 %v27285_v6 }
 0x4f9   :  { %v24996_v8 = vpop.f32.mrb[29].mxu0 }
 0x4fa   :  { %v24997_v48 = vadd.f32 %v24996_v8, %v24995_v2  ;;  %v24998_v37 = vpop.f32.mrb[30].mxu0  ;;  %14707 = vmatpush1.bf16.msra.mxu0 %v27280_v52  ;;  %v27325_v2 = vld [vmem:[%s38772_s5 + $0x1658] ss:$52 sps:$4 sm:$0xff]  }
 0x4fb   :  { %15117 = vmatpush1.bf16.msra.mxu1 %v27283_v40  ;;  %v24999_v56 = vpop.f32.mrb[31].mxu0  ;;  %14708 = vmatprep.subr.bf16.mxu0 %v27288_v41  ;;  %v27319_v40 = vld [vmem:[%s38772_s5 + $0x15f0] ss:$52 sps:$4 sm:$0xff]   ;;  %v27339_v37 = vld [vmem:[%s38772_s5 + $0x172c] ss:$52 sps:$4 sm:$0xff]  }
 0x4fc   :  { %v6574_v59 = vadd.f32 %v24997_v48, %v6534_v47  ;;  %15118 = vmatprep.subr.bf16.mxu1 %v27291_v11  ;;  %v27333_v8 = vld [vmem:[%s38772_s5 + $0x16c4] ss:$52 sps:$4 sm:$0xff]   ;;  %v27342_v56 = vld [vmem:[%s38772_s5 + $0xec] ss:$52 sps:$4 sm:$0xff]  }
 0x4fd   :  { %v27336_v47 = vld [vmem:[%s38772_s5 + $0x84] ss:$52 sps:$4 sm:$0xff]  }
 0x4fe   :  { %14709 = vmatpush1.bf16.msra.mxu0 %v27286_v42  ;;  %v27328_v42 = vld [vmem:[%s38772_s5 + $0x18] ss:$52 sps:$4 sm:$0xff]  }
 0x4ff   :  { %15119 = vmatpush1.bf16.msra.mxu1 %v27289_v44  ;;  %14710 = vmatprep.subr.bf16.mxu0 %v27294_v54  ;;  %v27334_v54 = vld [vmem:[%s38772_s5 + $0x80] ss:$52 sps:$4 sm:$0xff]  }
 0x500   :  { %15120 = vmatprep.subr.bf16.mxu1 %v27297_v55  ;;  %v27337_v55 = vld [vmem:[%s38772_s5 + $0x1728] ss:$52 sps:$4 sm:$0xff]  }
 0x502   :  { %14711 = vmatpush1.bf16.msra.mxu0 %v27292_v53  ;;  %v27343_v53 = vld [vmem:[%s38772_s5 + $0x1790] ss:$52 sps:$4 sm:$0xff]  }
 0x503   :  { %15121 = vmatpush1.bf16.msra.mxu1 %v27295_v62  ;;  %14721 = vmatprep.subr.bf16.mxu0 %v27300_v1  ;;  %v27348_v62 = vld [vmem:[%s38772_s5 + $0x154] ss:$52 sps:$4 sm:$0xff]   ;;  %v27351_v1 = vld [vmem:[%s38772_s5 + $0x17fc] ss:$52 sps:$4 sm:$0xff]  }
 0x504   :  { %15131 = vmatprep.subr.bf16.mxu1 %v27318_v57  ;;  %v27346_v57 = vld [vmem:[%s38772_s5 + $0x150] ss:$52 sps:$4 sm:$0xff]  }
 0x505   :  { %14713 = vmatmul.mubr.bf16.vlgmr.msra.gmra.mrb[36].mxu0 %v32825_v46 }
 0x506   :  { %15123 = vmatmul.mubr.bf16.vlgmr.msra.gmra.mrb[24].mxu1 %v33452_v58  ;;  %14722 = vmatpush1.bf16.msra.mxu0 %v27298_v5  ;;  %v27354_v5 = vld [vmem:[%s38772_s5 + $0x1bc] ss:$52 sps:$4 sm:$0xff]  }
 0x507   :  { %14753 = vmatprep.mubr.bf16.mxu0 %v32837_v38  ;;  %14723 = vmatprep.subr.bf16.mxu0 %v27303_v9  ;;  %v27357_v9 = vld [vmem:[%s38772_s5 + $0x1864] ss:$52 sps:$4 sm:$0xff]  }
 0x508   :  { %15132 = vmatpush1.bf16.msra.mxu1 %v27316_v13  ;;  %15163 = vmatprep.mubr.bf16.mxu1 %v29728_v3  ;;  %v27352_v13 = vld [vmem:[%s38772_s5 + $0x1b8] ss:$52 sps:$4 sm:$0xff]  }
 0x509   :  { %15133 = vmatprep.subr.bf16.mxu1 %v27324_v15  ;;  %v27360_v15 = vld [vmem:[%s38772_s5 + $0x224] ss:$52 sps:$4 sm:$0xff]  }
 0x50a   :  { %14724 = vmatpush1.bf16.msra.mxu0 %v27301_v10  ;;  %v27355_v10 = vld [vmem:[%s38772_s5 + $0x1860] ss:$52 sps:$4 sm:$0xff]  }
 0x50b   :  { %14725 = vmatprep.subr.bf16.mxu0 %v27306_v16  ;;  %v27363_v16 = vld [vmem:[%s38772_s5 + $0x18cc] ss:$52 sps:$4 sm:$0xff]  }
 0x50c   :  { %15134 = vmatpush1.bf16.msra.mxu1 %v27322_v25  ;;  %v27358_v25 = vld [vmem:[%s38772_s5 + $0x220] ss:$52 sps:$4 sm:$0xff]  }
 0x50d   :  { %15459 = vmatprep.subr.bf16.mxu1 %v27330_v60  ;;  %v27361_v60 = vld [vmem:[%s38772_s5 + $0x18c8] ss:$52 sps:$4 sm:$0xff]  }
 0x50e   :  { %14726 = vmatpush1.bf16.msra.mxu0 %v27304_v19  ;;  %v27366_v19 = vld [vmem:[%s38772_s5 + $0x28c] ss:$52 sps:$4 sm:$0xff]  }
 0x50f   :  { %14727 = vmatprep.subr.bf16.mxu0 %v27309_v20  ;;  %v27369_v20 = vld [vmem:[%s38772_s5 + $0x1934] ss:$52 sps:$4 sm:$0xff]  }
 0x512   :  { %14728 = vmatpush1.bf16.msra.mxu0 %v27307_v61  ;;  %v27364_v61 = vld [vmem:[%s38772_s5 + $0x288] ss:$52 sps:$4 sm:$0xff]  }
 0x513   :  { %14729 = vmatprep.subr.bf16.mxu0 %v27312_v21  ;;  %v27367_v21 = vld [vmem:[%s38772_s5 + $0x1930] ss:$52 sps:$4 sm:$0xff]  }
 0x516   :  { %14730 = vmatpush1.bf16.msra.mxu0 %v27310_v22  ;;  %v27372_v22 = vld [vmem:[%s38772_s5 + $0x2f4] ss:$52 sps:$4 sm:$0xff]  }
 0x517   :  { %14731 = vmatprep.subr.bf16.mxu0 %v27315_v4  ;;  %v27375_v4 = vld [vmem:[%s38772_s5 + $0x199c] ss:$52 sps:$4 sm:$0xff]  }
 0x518   :  { %v25017_v26 = vpop.f32.mrb[32].mxu0 }
 0x519   :  { %v25018_v33 = vpop.f32.mrb[33].mxu0 }
 0x51a   :  { %v25019_v6 = vadd.f32 %v25018_v33, %v25017_v26  ;;  %v25020_v52 = vpop.f32.mrb[34].mxu0  ;;  %14732 = vmatpush1.bf16.msra.mxu0 %v27313_v63  ;;  %v27370_v63 = vld [vmem:[%s38772_s5 + $0x2f0] ss:$52 sps:$4 sm:$0xff]  }
 0x51b   :  { %v25021_v41 = vpop.f32.mrb[35].mxu0  ;;  %14733 = vmatprep.subr.bf16.mxu0 %v27321_v24  ;;  %v27373_v24 = vld [vmem:[%s38772_s5 + $0x1998] ss:$52 sps:$4 sm:$0xff]   ;;  %v27378_v26 = vld [vmem:[%s38772_s5 + $0x35c] ss:$52 sps:$4 sm:$0xff]  }
 0x51c   :  { %v6614_v11 = vadd.f32 %v25019_v6, %v6574_v59  ;;  %v27340_v59 = vld [vmem:[%s38772_s5 + $0xe8] ss:$52 sps:$4 sm:$0xff]   ;;  %v27381_v33 = vld [vmem:[%s38772_s5 + $0x1a04] ss:$52 sps:$4 sm:$0xff]   ;;  %v27379_v52 = vld [vmem:[%s38772_s5 + $0x1a00] ss:$52 sps:$4 sm:$0xff]  }
 0x51d   :  { %v27376_v6 = vld [vmem:[%s38772_s5 + $0x358] ss:$52 sps:$4 sm:$0xff]   ;;  %v27382_v41 = vld [vmem:[%s38772_s5 + $0x3c0] ss:$52 sps:$4 sm:$0xff]  }
 0x51e   :  { %v6654_v43 = vadd.f32 %v32905_v23, %v6614_v11  ;;  %14734 = vmatpush1.bf16.msra.mxu0 %v27319_v40  ;;  %v27331_v23 = vld [vmem:[%s38772_s5 + $0x16c0] ss:$52 sps:$4 sm:$0xff]   ;;  %v27384_v40 = vld [vmem:[%s38772_s5 + $0x3c4] ss:$52 sps:$4 sm:$0xff]   ;;  %v27385_v11 = vld [vmem:[%s38772_s5 + $0x1a68] ss:$52 sps:$4 sm:$0xff]  }
 0x51f   :  { %14735 = vmatprep.subr.bf16.mxu0 %v27327_v27  ;;  %v27387_v27 = vld [vmem:[%s38772_s5 + $0x1a6c] ss:$52 sps:$4 sm:$0xff]  }
 0x520   :  { %v6671_v44 = vmax.f32 %v6654_v43, 0.0  ;;  %v27390_v43 = vld [vmem:[%s38772_s5 + $0x42c] ss:$52 sps:$4 sm:$0xff]  }
 0x522   :  { %v33519_v48 = vpack.c.bf16 %v6671_v44, %v6671_v44  ;;  %14736 = vmatpush1.bf16.msra.mxu0 %v27325_v2  ;;  %v27393_v2 = vld [vmem:[%s38772_s5 + $0x1ad4] ss:$52 sps:$4 sm:$0xff]  }
 0x523   :  { %14737 = vmatprep.subr.bf16.mxu0 %v27333_v8  ;;  %v27388_v8 = vld [vmem:[%s38772_s5 + $0x428] ss:$52 sps:$4 sm:$0xff]  }
 0x524   :  { %24261 = vmatmul.mubr.msk.bf16.vlgmr.msra.gmra.mrb[24].mxu1 %vm14594_vm2, %v33519_v48  ;;  %v27396_v44 = vld [vmem:[%s38772_s5 + $0x494] ss:$52 sps:$4 sm:$0xff]  }
 0x525   :  { %15460 = vmatpush1.bf16.msra.mxu1 %v27328_v42  ;;  %15491 = vmatprep.mubr.bf16.mxu1 %v32201_v49  ;;  %v27391_v42 = vld [vmem:[%s38772_s5 + $0x1ad0] ss:$52 sps:$4 sm:$0xff]  }
 0x526   :  { %14738 = vmatpush1.bf16.msra.mxu0 %v27331_v23  ;;  %15461 = vmatprep.subr.bf16.mxu1 %v27336_v47  ;;  %v27399_v23 = vld [vmem:[%s38772_s5 + $0x1b3c] ss:$52 sps:$4 sm:$0xff]  }
 0x527   :  { %14739 = vmatprep.subr.bf16.mxu0 %v27339_v37  ;;  %v27394_v47 = vld [vmem:[%s38772_s5 + $0x490] ss:$52 sps:$4 sm:$0xff]   ;;  %v27397_v37 = vld [vmem:[%s38772_s5 + $0x1b38] ss:$52 sps:$4 sm:$0xff]  }
 0x529   :  { %15462 = vmatpush1.bf16.msra.mxu1 %v27334_v54  ;;  %v27402_v54 = vld [vmem:[%s38772_s5 + $0x4fc] ss:$52 sps:$4 sm:$0xff]  }
 0x52a   :  { %14740 = vmatpush1.bf16.msra.mxu0 %v27337_v55  ;;  %15463 = vmatprep.subr.bf16.mxu1 %v27342_v56  ;;  %v27405_v55 = vld [vmem:[%s38772_s5 + $0x1ba4] ss:$52 sps:$4 sm:$0xff]  }
 0x52b   :  { %14741 = vmatprep.subr.bf16.mxu0 %v27345_v39  ;;  %v27400_v56 = vld [vmem:[%s38772_s5 + $0x4f8] ss:$52 sps:$4 sm:$0xff]   ;;  %v27403_v39 = vld [vmem:[%s38772_s5 + $0x1ba0] ss:$52 sps:$4 sm:$0xff]  }
 0x52d   :  { %15464 = vmatpush1.bf16.msra.mxu1 %v27340_v59  ;;  %v27408_v59 = vld [vmem:[%s38772_s5 + $0x564] ss:$52 sps:$4 sm:$0xff]  }
 0x52e   :  { %14742 = vmatpush1.bf16.msra.mxu0 %v27343_v53  ;;  %15465 = vmatprep.subr.bf16.mxu1 %v27348_v62  ;;  %v27406_v53 = vld [vmem:[%s38772_s5 + $0x560] ss:$52 sps:$4 sm:$0xff]  }
 0x52f   :  { %14743 = vmatprep.subr.bf16.mxu0 %v27351_v1  ;;  %v27411_v62 = vld [vmem:[%s38772_s5 + $0x1c0c] ss:$52 sps:$4 sm:$0xff]   ;;  %v27409_v1 = vld [vmem:[%s38772_s5 + $0x1c08] ss:$52 sps:$4 sm:$0xff]  }
 0x531   :  { %15466 = vmatpush1.bf16.msra.mxu1 %v27346_v57  ;;  %v27414_v57 = vld [vmem:[%s38772_s5 + $0x5cc] ss:$52 sps:$4 sm:$0xff]  }
 0x532   :  { %14744 = vmatpush1.bf16.msra.mxu0 %v27349_v28  ;;  %15467 = vmatprep.subr.bf16.mxu1 %v27354_v5  ;;  %v27412_v28 = vld [vmem:[%s38772_s5 + $0x5c8] ss:$52 sps:$4 sm:$0xff]  }
 0x533   :  { %14745 = vmatprep.subr.bf16.mxu0 %v27357_v9  ;;  %v27417_v5 = vld [vmem:[%s38772_s5 + $0x1c74] ss:$52 sps:$4 sm:$0xff]   ;;  %v27415_v9 = vld [vmem:[%s38772_s5 + $0x1c70] ss:$52 sps:$4 sm:$0xff]  }
 0x535   :  { %15468 = vmatpush1.bf16.msra.mxu1 %v27352_v13  ;;  %v27420_v13 = vld [vmem:[%s38772_s5 + $0x634] ss:$52 sps:$4 sm:$0xff]  }
 0x536   :  { %14746 = vmatpush1.bf16.msra.mxu0 %v27355_v10  ;;  %15469 = vmatprep.subr.bf16.mxu1 %v27360_v15  ;;  %v27418_v10 = vld [vmem:[%s38772_s5 + $0x630] ss:$52 sps:$4 sm:$0xff]  }
 0x537   :  { %14747 = vmatprep.subr.bf16.mxu0 %v27363_v16  ;;  %v27423_v15 = vld [vmem:[%s38772_s5 + $0x1cdc] ss:$52 sps:$4 sm:$0xff]   ;;  %v27421_v16 = vld [vmem:[%s38772_s5 + $0x1cd8] ss:$52 sps:$4 sm:$0xff]  }
 0x539   :  { %15470 = vmatpush1.bf16.msra.mxu1 %v27358_v25  ;;  %v27426_v25 = vld [vmem:[%s38772_s5 + $0x69c] ss:$52 sps:$4 sm:$0xff]  }
 0x53a   :  { %14748 = vmatpush1.bf16.msra.mxu0 %v27361_v60  ;;  %15471 = vmatprep.subr.bf16.mxu1 %v27366_v19  ;;  %v27424_v60 = vld [vmem:[%s38772_s5 + $0x698] ss:$52 sps:$4 sm:$0xff]  }
 0x53b   :  { %14749 = vmatprep.subr.bf16.mxu0 %v27369_v20  ;;  %v27429_v19 = vld [vmem:[%s38772_s5 + $0x1d44] ss:$52 sps:$4 sm:$0xff]   ;;  %v27427_v20 = vld [vmem:[%s38772_s5 + $0x1d40] ss:$52 sps:$4 sm:$0xff]  }
 0x53d   :  { %15472 = vmatpush1.bf16.msra.mxu1 %v27364_v61  ;;  %v27432_v61 = vld [vmem:[%s38772_s5 + $0x704] ss:$52 sps:$4 sm:$0xff]  }
 0x53e   :  { %14750 = vmatpush1.bf16.msra.mxu0 %v27367_v21  ;;  %15473 = vmatprep.subr.bf16.mxu1 %v27372_v22  ;;  %v27435_v21 = vld [vmem:[%s38772_s5 + $0x1dac] ss:$52 sps:$4 sm:$0xff]  }
 0x53f   :  { %14751 = vmatprep.subr.bf16.mxu0 %v27375_v4  ;;  %v27430_v22 = vld [vmem:[%s38772_s5 + $0x700] ss:$52 sps:$4 sm:$0xff]   ;;  %v27433_v4 = vld [vmem:[%s38772_s5 + $0x1da8] ss:$52 sps:$4 sm:$0xff]  }
 0x541   :  { %15474 = vmatpush1.bf16.msra.mxu1 %v27370_v63  ;;  %v27438_v63 = vld [vmem:[%s38772_s5 + $0x76c] ss:$52 sps:$4 sm:$0xff]  }
 0x542   :  { %14752 = vmatpush1.bf16.msra.mxu0 %v27373_v24  ;;  %15475 = vmatprep.subr.bf16.mxu1 %v27378_v26  ;;  %v27436_v24 = vld [vmem:[%s38772_s5 + $0x768] ss:$52 sps:$4 sm:$0xff]  }
 0x543   :  { %14762 = vmatprep.subr.bf16.mxu0 %v27381_v33  ;;  %v27441_v26 = vld [vmem:[%s38772_s5 + $0x1e14] ss:$52 sps:$4 sm:$0xff]   ;;  %v27439_v33 = vld [vmem:[%s38772_s5 + $0x1e10] ss:$52 sps:$4 sm:$0xff]  }
 0x545   :  { %15476 = vmatpush1.bf16.msra.mxu1 %v27376_v6  ;;  %14754 = vmatmul.mubr.bf16.vlgmr.msra.gmra.mrb[36].mxu0 %v33035_v0  ;;  %v27444_v6 = vld [vmem:[%s38772_s5 + $0x7d4] ss:$52 sps:$4 sm:$0xff]  }
 0x546   :  { %14763 = vmatpush1.bf16.msra.mxu0 %v27379_v52  ;;  %14794 = vmatprep.mubr.bf16.mxu0 %v33226_v14  ;;  %v27442_v52 = vld [vmem:[%s38772_s5 + $0x7d0] ss:$52 sps:$4 sm:$0xff]  }
 0x547   :  { %15477 = vmatprep.subr.bf16.mxu1 %v27384_v40  ;;  %14764 = vmatprep.subr.bf16.mxu0 %v27387_v27  ;;  %v27447_v40 = vld [vmem:[%s38772_s5 + $0x1e7c] ss:$52 sps:$4 sm:$0xff]   ;;  %v27445_v27 = vld [vmem:[%s38772_s5 + $0x1e78] ss:$52 sps:$4 sm:$0xff]  }
 0x549   :  { %15478 = vmatpush1.bf16.msra.mxu1 %v27382_v41  ;;  %v27450_v41 = vld [vmem:[%s38772_s5 + $0x83c] ss:$52 sps:$4 sm:$0xff]  }
 0x54a   :  { %14765 = vmatpush1.bf16.msra.mxu0 %v27385_v11  ;;  %15479 = vmatprep.subr.bf16.mxu1 %v27390_v43  ;;  %v27448_v11 = vld [vmem:[%s38772_s5 + $0x838] ss:$52 sps:$4 sm:$0xff]  }
 0x54b   :  { %14766 = vmatprep.subr.bf16.mxu0 %v27393_v2  ;;  %v27453_v43 = vld [vmem:[%s38772_s5 + $0x1ee4] ss:$52 sps:$4 sm:$0xff]   ;;  %v27451_v2 = vld [vmem:[%s38772_s5 + $0x1ee0] ss:$52 sps:$4 sm:$0xff]  }
 0x54d   :  { %15480 = vmatpush1.bf16.msra.mxu1 %v27388_v8  ;;  %v27456_v8 = vld [vmem:[%s38772_s5 + $0x8a4] ss:$52 sps:$4 sm:$0xff]  }
 0x54e   :  { %14767 = vmatpush1.bf16.msra.mxu0 %v27391_v42  ;;  %15481 = vmatprep.subr.bf16.mxu1 %v27396_v44  ;;  %v27454_v42 = vld [vmem:[%s38772_s5 + $0x8a0] ss:$52 sps:$4 sm:$0xff]  }
 0x54f   :  { %14768 = vmatprep.subr.bf16.mxu0 %v27399_v23  ;;  %v27459_v44 = vld [vmem:[%s38772_s5 + $0x1f4c] ss:$52 sps:$4 sm:$0xff]   ;;  %v27457_v23 = vld [vmem:[%s38772_s5 + $0x1f48] ss:$52 sps:$4 sm:$0xff]  }
 0x551   :  { %15482 = vmatpush1.bf16.msra.mxu1 %v27394_v47  ;;  %v27462_v47 = vld [vmem:[%s38772_s5 + $0x90c] ss:$52 sps:$4 sm:$0xff]  }
 0x552   :  { %14769 = vmatpush1.bf16.msra.mxu0 %v27397_v37  ;;  %15483 = vmatprep.subr.bf16.mxu1 %v27402_v54  ;;  %v27465_v37 = vld [vmem:[%s38772_s5 + $0x1fb4] ss:$52 sps:$4 sm:$0xff]  }
 0x553   :  { %14770 = vmatprep.subr.bf16.mxu0 %v27405_v55  ;;  %v27460_v54 = vld [vmem:[%s38772_s5 + $0x908] ss:$52 sps:$4 sm:$0xff]   ;;  %v27463_v55 = vld [vmem:[%s38772_s5 + $0x1fb0] ss:$52 sps:$4 sm:$0xff]  }
 0x555   :  { %15484 = vmatpush1.bf16.msra.mxu1 %v27400_v56  ;;  %v27468_v56 = vld [vmem:[%s38772_s5 + $0x974] ss:$52 sps:$4 sm:$0xff]  }
 0x556   :  { %14771 = vmatpush1.bf16.msra.mxu0 %v27403_v39  ;;  %15485 = vmatprep.subr.bf16.mxu1 %v27408_v59  ;;  %v27471_v39 = vld [vmem:[%s38772_s5 + $0x201c] ss:$52 sps:$4 sm:$0xff]  }
 0x557   :  { %14772 = vmatprep.subr.bf16.mxu0 %v27411_v62  ;;  %v27466_v59 = vld [vmem:[%s38772_s5 + $0x970] ss:$52 sps:$4 sm:$0xff]  }
 0x558   :  { %v27474_v62 = vld [vmem:[%s38772_s5 + $0x9dc] ss:$52 sps:$4 sm:$0xff]  }
 0x559   :  { %15486 = vmatpush1.bf16.msra.mxu1 %v27406_v53  ;;  %v27469_v53 = vld [vmem:[%s38772_s5 + $0x2018] ss:$52 sps:$4 sm:$0xff]  }
 0x55a   :  { %14773 = vmatpush1.bf16.msra.mxu0 %v27409_v1  ;;  %15487 = vmatprep.subr.bf16.mxu1 %v27414_v57  ;;  %v27472_v1 = vld [vmem:[%s38772_s5 + $0x9d8] ss:$52 sps:$4 sm:$0xff]  }
 0x55b   :  { %14774 = vmatprep.subr.bf16.mxu0 %v27417_v5  ;;  %v27477_v57 = vld [vmem:[%s38772_s5 + $0x2084] ss:$52 sps:$4 sm:$0xff]  }
 0x55c   :  { %v27480_v5 = vld [vmem:[%s38772_s5 + $0xa44] ss:$52 sps:$4 sm:$0xff]  }
 0x55d   :  { %15488 = vmatpush1.bf16.msra.mxu1 %v27412_v28  ;;  %v27475_v28 = vld [vmem:[%s38772_s5 + $0x2080] ss:$52 sps:$4 sm:$0xff]  }
 0x55e   :  { %14775 = vmatpush1.bf16.msra.mxu0 %v27415_v9  ;;  %15489 = vmatprep.subr.bf16.mxu1 %v27420_v13  ;;  %v27478_v9 = vld [vmem:[%s38772_s5 + $0xa40] ss:$52 sps:$4 sm:$0xff]  }
 0x55f   :  { %14776 = vmatprep.subr.bf16.mxu0 %v27423_v15  ;;  %v27483_v13 = vld [vmem:[%s38772_s5 + $0x20ec] ss:$52 sps:$4 sm:$0xff]  }
 0x560   :  { %v27486_v15 = vld [vmem:[%s38772_s5 + $0xaac] ss:$52 sps:$4 sm:$0xff]  }
 0x561   :  { %15490 = vmatpush1.bf16.msra.mxu1 %v27418_v10  ;;  %v27481_v10 = vld [vmem:[%s38772_s5 + $0x20e8] ss:$52 sps:$4 sm:$0xff]  }
 0x562   :  { %14777 = vmatpush1.bf16.msra.mxu0 %v27421_v16  ;;  %15500 = vmatprep.subr.bf16.mxu1 %v27426_v25  ;;  %v27484_v16 = vld [vmem:[%s38772_s5 + $0xaa8] ss:$52 sps:$4 sm:$0xff]  }
 0x563   :  { %14778 = vmatprep.subr.bf16.mxu0 %v27429_v19  ;;  %v27489_v25 = vld [vmem:[%s38772_s5 + $0x2154] ss:$52 sps:$4 sm:$0xff]  }
 0x564   :  { %15492 = vmatmul.mubr.bf16.vlgmr.msra.gmra.mrb[28].mxu1 %v32407_v34  ;;  %v27492_v19 = vld [vmem:[%s38772_s5 + $0xb14] ss:$52 sps:$4 sm:$0xff]  }
 0x565   :  { %15501 = vmatpush1.bf16.msra.mxu1 %v27424_v60  ;;  %15532 = vmatprep.mubr.bf16.mxu1 %v32409_v35  ;;  %v27487_v60 = vld [vmem:[%s38772_s5 + $0x2150] ss:$52 sps:$4 sm:$0xff]  }
 0x566   :  { %14779 = vmatpush1.bf16.msra.mxu0 %v27427_v20  ;;  %15502 = vmatprep.subr.bf16.mxu1 %v27432_v61  ;;  %v27490_v20 = vld [vmem:[%s38772_s5 + $0xb10] ss:$52 sps:$4 sm:$0xff]  }
 0x567   :  { %14780 = vmatprep.subr.bf16.mxu0 %v27435_v21  ;;  %v27495_v61 = vld [vmem:[%s38772_s5 + $0x21bc] ss:$52 sps:$4 sm:$0xff]   ;;  %v27493_v21 = vld [vmem:[%s38772_s5 + $0x21b8] ss:$52 sps:$4 sm:$0xff]  }
 0x569   :  { %15503 = vmatpush1.bf16.msra.mxu1 %v27430_v22  ;;  %v27498_v22 = vld [vmem:[%s38772_s5 + $0xb7c] ss:$52 sps:$4 sm:$0xff]  }
 0x56a   :  { %14781 = vmatpush1.bf16.msra.mxu0 %v27433_v4  ;;  %15504 = vmatprep.subr.bf16.mxu1 %v27438_v63  ;;  %v27501_v4 = vld [vmem:[%s38772_s5 + $0x2224] ss:$52 sps:$4 sm:$0xff]  }
 0x56b   :  { %14782 = vmatprep.subr.bf16.mxu0 %v27441_v26  ;;  %v27496_v63 = vld [vmem:[%s38772_s5 + $0xb78] ss:$52 sps:$4 sm:$0xff]  }
 0x56c   :  { %v27504_v26 = vld [vmem:[%s38772_s5 + $0xbe4] ss:$52 sps:$4 sm:$0xff]  }
 0x56d   :  { %15505 = vmatpush1.bf16.msra.mxu1 %v27436_v24  ;;  %v27499_v24 = vld [vmem:[%s38772_s5 + $0x2220] ss:$52 sps:$4 sm:$0xff]  }
 0x56e   :  { %14783 = vmatpush1.bf16.msra.mxu0 %v27439_v33  ;;  %15506 = vmatprep.subr.bf16.mxu1 %v27444_v6  ;;  %v27502_v33 = vld [vmem:[%s38772_s5 + $0xbe0] ss:$52 sps:$4 sm:$0xff]  }
 0x56f   :  { %14784 = vmatprep.subr.bf16.mxu0 %v27447_v40  ;;  %v27507_v6 = vld [vmem:[%s38772_s5 + $0x228c] ss:$52 sps:$4 sm:$0xff]  }
 0x570   :  { %v27510_v40 = vld [vmem:[%s38772_s5 + $0xc4c] ss:$52 sps:$4 sm:$0xff]  }
 0x571   :  { %15507 = vmatpush1.bf16.msra.mxu1 %v27442_v52  ;;  %v27505_v52 = vld [vmem:[%s38772_s5 + $0x2288] ss:$52 sps:$4 sm:$0xff]  }
 0x572   :  { %14785 = vmatpush1.bf16.msra.mxu0 %v27445_v27  ;;  %15508 = vmatprep.subr.bf16.mxu1 %v27450_v41  ;;  %v27508_v27 = vld [vmem:[%s38772_s5 + $0xc48] ss:$52 sps:$4 sm:$0xff]  }
 0x573   :  { %14786 = vmatprep.subr.bf16.mxu0 %v27453_v43  ;;  %v27513_v41 = vld [vmem:[%s38772_s5 + $0x22f4] ss:$52 sps:$4 sm:$0xff]  }
 0x574   :  { %v27516_v43 = vld [vmem:[%s38772_s5 + $0xcb4] ss:$52 sps:$4 sm:$0xff]  }
 0x575   :  { %15509 = vmatpush1.bf16.msra.mxu1 %v27448_v11  ;;  %v27511_v11 = vld [vmem:[%s38772_s5 + $0x22f0] ss:$52 sps:$4 sm:$0xff]  }
 0x576   :  { %14787 = vmatpush1.bf16.msra.mxu0 %v27451_v2  ;;  %15510 = vmatprep.subr.bf16.mxu1 %v27456_v8  ;;  %v27514_v2 = vld [vmem:[%s38772_s5 + $0xcb0] ss:$52 sps:$4 sm:$0xff]  }
 0x577   :  { %14788 = vmatprep.subr.bf16.mxu0 %v27459_v44  ;;  %v27519_v8 = vld [vmem:[%s38772_s5 + $0x235c] ss:$52 sps:$4 sm:$0xff]  }
 0x578   :  { %v27522_v44 = vld [vmem:[%s38772_s5 + $0xd1c] ss:$52 sps:$4 sm:$0xff]  }
 0x579   :  { %15511 = vmatpush1.bf16.msra.mxu1 %v27454_v42  ;;  %v27517_v42 = vld [vmem:[%s38772_s5 + $0x2358] ss:$52 sps:$4 sm:$0xff]  }
 0x57a   :  { %14789 = vmatpush1.bf16.msra.mxu0 %v27457_v23  ;;  %15512 = vmatprep.subr.bf16.mxu1 %v27462_v47  ;;  %v27520_v23 = vld [vmem:[%s38772_s5 + $0xd18] ss:$52 sps:$4 sm:$0xff]  }
 0x57b   :  { %14790 = vmatprep.subr.bf16.mxu0 %v27465_v37  ;;  %v27525_v47 = vld [vmem:[%s38772_s5 + $0x23c4] ss:$52 sps:$4 sm:$0xff]   ;;  %v27523_v37 = vld [vmem:[%s38772_s5 + $0x23c0] ss:$52 sps:$4 sm:$0xff]  }
 0x57d   :  { %15513 = vmatpush1.bf16.msra.mxu1 %v27460_v54  ;;  %v27528_v54 = vld [vmem:[%s38772_s5 + $0xd84] ss:$52 sps:$4 sm:$0xff]  }
 0x57e   :  { %14791 = vmatpush1.bf16.msra.mxu0 %v27463_v55  ;;  %15514 = vmatprep.subr.bf16.mxu1 %v27468_v56  ;;  %v27531_v55 = vld [vmem:[%s38772_s5 + $0x242c] ss:$52 sps:$4 sm:$0xff]  }
 0x57f   :  { %14792 = vmatprep.subr.bf16.mxu0 %v27471_v39  ;;  %v27526_v56 = vld [vmem:[%s38772_s5 + $0xd80] ss:$52 sps:$4 sm:$0xff]   ;;  %v27529_v39 = vld [vmem:[%s38772_s5 + $0x2428] ss:$52 sps:$4 sm:$0xff]  }
 0x581   :  { %15515 = vmatpush1.bf16.msra.mxu1 %v27466_v59  ;;  %v27534_v59 = vld [vmem:[%s38772_s5 + $0xdec] ss:$52 sps:$4 sm:$0xff]  }
 0x582   :  { %14793 = vmatpush1.bf16.msra.mxu0 %v27469_v53  ;;  %15516 = vmatprep.subr.bf16.mxu1 %v27474_v62  ;;  %v27532_v53 = vld [vmem:[%s38772_s5 + $0xde8] ss:$52 sps:$4 sm:$0xff]  }
 0x583   :  { %14803 = vmatprep.subr.bf16.mxu0 %v27477_v57  ;;  %v27537_v62 = vld [vmem:[%s38772_s5 + $0x2494] ss:$52 sps:$4 sm:$0xff]  }
 0x584   :  { %v27540_v57 = vld [vmem:[%s38772_s5 + $0xe54] ss:$52 sps:$4 sm:$0xff]  }
 0x585   :  { %15517 = vmatpush1.bf16.msra.mxu1 %v27472_v1  ;;  %14795 = vmatmul.mubr.bf16.vlgmr.msra.gmra.mrb[36].mxu0 %v33244_v51  ;;  %v27535_v1 = vld [vmem:[%s38772_s5 + $0x2490] ss:$52 sps:$4 sm:$0xff]  }
 0x586   :  { %14804 = vmatpush1.bf16.msra.mxu0 %v27475_v28  ;;  %14835 = vmatprep.mubr.bf16.mxu0 %v33256_v50  ;;  %v27543_v28 = vld [vmem:[%s38772_s5 + $0x24fc] ss:$52 sps:$4 sm:$0xff]  }
 0x587   :  { %15518 = vmatprep.subr.bf16.mxu1 %v27480_v5  ;;  %14805 = vmatprep.subr.bf16.mxu0 %v27483_v13  ;;  %v27538_v5 = vld [vmem:[%s38772_s5 + $0xe50] ss:$52 sps:$4 sm:$0xff]  }
 0x588   :  { %v27546_v13 = vld [vmem:[%s38772_s5 + $0xebc] ss:$52 sps:$4 sm:$0xff]  }
 0x589   :  { %15519 = vmatpush1.bf16.msra.mxu1 %v27478_v9  ;;  %v27541_v9 = vld [vmem:[%s38772_s5 + $0x24f8] ss:$52 sps:$4 sm:$0xff]  }
 0x58a   :  { %14806 = vmatpush1.bf16.msra.mxu0 %v27481_v10  ;;  %15520 = vmatprep.subr.bf16.mxu1 %v27486_v15  ;;  %v27549_v10 = vld [vmem:[%s38772_s5 + $0x2564] ss:$52 sps:$4 sm:$0xff]  }
 0x58b   :  { %14807 = vmatprep.subr.bf16.mxu0 %v27489_v25  ;;  %v27544_v15 = vld [vmem:[%s38772_s5 + $0xeb8] ss:$52 sps:$4 sm:$0xff]  }
 0x58c   :  { %v27552_v25 = vld [vmem:[%s38772_s5 + $0xf24] ss:$52 sps:$4 sm:$0xff]  }
 0x58d   :  { %15521 = vmatpush1.bf16.msra.mxu1 %v27484_v16  ;;  %v27547_v16 = vld [vmem:[%s38772_s5 + $0x2560] ss:$52 sps:$4 sm:$0xff]  }
 0x58e   :  { %14808 = vmatpush1.bf16.msra.mxu0 %v27487_v60  ;;  %15522 = vmatprep.subr.bf16.mxu1 %v27492_v19  ;;  %v27555_v60 = vld [vmem:[%s38772_s5 + $0x25cc] ss:$52 sps:$4 sm:$0xff]  }
 0x58f   :  { %14809 = vmatprep.subr.bf16.mxu0 %v27495_v61  ;;  %v27550_v19 = vld [vmem:[%s38772_s5 + $0xf20] ss:$52 sps:$4 sm:$0xff]  }
 0x590   :  { %v27558_v61 = vld [vmem:[%s38772_s5 + $0xf8c] ss:$52 sps:$4 sm:$0xff]  }
 0x591   :  { %15523 = vmatpush1.bf16.msra.mxu1 %v27490_v20  ;;  %v27553_v20 = vld [vmem:[%s38772_s5 + $0x25c8] ss:$52 sps:$4 sm:$0xff]  }
 0x592   :  { %14810 = vmatpush1.bf16.msra.mxu0 %v27493_v21  ;;  %15524 = vmatprep.subr.bf16.mxu1 %v27498_v22  ;;  %v27561_v21 = vld [vmem:[%s38772_s5 + $0x2634] ss:$52 sps:$4 sm:$0xff]  }
 0x593   :  { %14811 = vmatprep.subr.bf16.mxu0 %v27501_v4  ;;  %v27556_v22 = vld [vmem:[%s38772_s5 + $0xf88] ss:$52 sps:$4 sm:$0xff]   ;;  %v27559_v4 = vld [vmem:[%s38772_s5 + $0x2630] ss:$52 sps:$4 sm:$0xff]  }
 0x595   :  { %15525 = vmatpush1.bf16.msra.mxu1 %v27496_v63  ;;  %v27564_v63 = vld [vmem:[%s38772_s5 + $0xff4] ss:$52 sps:$4 sm:$0xff]  }
 0x596   :  { %14812 = vmatpush1.bf16.msra.mxu0 %v27499_v24  ;;  %15526 = vmatprep.subr.bf16.mxu1 %v27504_v26  ;;  %v27567_v24 = vld [vmem:[%s38772_s5 + $0x269c] ss:$52 sps:$4 sm:$0xff]  }
 0x597   :  { %14813 = vmatprep.subr.bf16.mxu0 %v27507_v6  ;;  %v27562_v26 = vld [vmem:[%s38772_s5 + $0xff0] ss:$52 sps:$4 sm:$0xff]  }
 0x598   :  { %v27570_v6 = vld [vmem:[%s38772_s5 + $0x105c] ss:$52 sps:$4 sm:$0xff]  }
 0x599   :  { %15527 = vmatpush1.bf16.msra.mxu1 %v27502_v33  ;;  %v27565_v33 = vld [vmem:[%s38772_s5 + $0x2698] ss:$52 sps:$4 sm:$0xff]  }
 0x59a   :  { %14814 = vmatpush1.bf16.msra.mxu0 %v27505_v52  ;;  %15528 = vmatprep.subr.bf16.mxu1 %v27510_v40  ;;  %v27573_v52 = vld [vmem:[%s38772_s5 + $0x2704] ss:$52 sps:$4 sm:$0xff]  }
 0x59b   :  { %14815 = vmatprep.subr.bf16.mxu0 %v27513_v41  ;;  %v27568_v40 = vld [vmem:[%s38772_s5 + $0x1058] ss:$52 sps:$4 sm:$0xff]  }
 0x59c   :  { %v27576_v41 = vld [vmem:[%s38772_s5 + $0x10c4] ss:$52 sps:$4 sm:$0xff]  }
 0x59d   :  { %15529 = vmatpush1.bf16.msra.mxu1 %v27508_v27  ;;  %v27571_v27 = vld [vmem:[%s38772_s5 + $0x2700] ss:$52 sps:$4 sm:$0xff]  }
 0x59e   :  { %14816 = vmatpush1.bf16.msra.mxu0 %v27511_v11  ;;  %15530 = vmatprep.subr.bf16.mxu1 %v27516_v43  ;;  %v27579_v11 = vld [vmem:[%s38772_s5 + $0x276c] ss:$52 sps:$4 sm:$0xff]  }
 0x59f   :  { %14817 = vmatprep.subr.bf16.mxu0 %v27519_v8  ;;  %v27574_v43 = vld [vmem:[%s38772_s5 + $0x10c0] ss:$52 sps:$4 sm:$0xff]  }
 0x5a0   :  { %v27582_v8 = vld [vmem:[%s38772_s5 + $0x112c] ss:$52 sps:$4 sm:$0xff]  }
 0x5a1   :  { %15531 = vmatpush1.bf16.msra.mxu1 %v27514_v2  ;;  %v27577_v2 = vld [vmem:[%s38772_s5 + $0x2768] ss:$52 sps:$4 sm:$0xff]  }
 0x5a2   :  { %14818 = vmatpush1.bf16.msra.mxu0 %v27517_v42  ;;  %15541 = vmatprep.subr.bf16.mxu1 %v27522_v44  ;;  %v27588_v42 = vld [vmem:[%s38772_s5 + $0x14] ss:$52 sps:$4 sm:$0xff]  }
 0x5a3   :  { %14819 = vmatprep.subr.bf16.mxu0 %v27525_v47  ;;  %v27580_v44 = vld [vmem:[%s38772_s5 + $0x1128] ss:$52 sps:$4 sm:$0xff]   ;;  %v27583_v47 = vld [vmem:[%s38772_s5 + $0x1190] ss:$52 sps:$4 sm:$0xff]  }
 0x5a4   :  { %15533 = vmatmul.mubr.bf16.vlgmr.msra.gmra.mrb[28].mxu1 %v32613_v17 }
 0x5a5   :  { %15542 = vmatpush1.bf16.msra.mxu1 %v27520_v23  ;;  %15573 = vmatprep.mubr.bf16.mxu1 %v32619_v18  ;;  %v27585_v23 = vld [vmem:[%s38772_s5 + $0x1194] ss:$52 sps:$4 sm:$0xff]  }
 0x5a6   :  { %14820 = vmatpush1.bf16.msra.mxu0 %v27523_v37  ;;  %15543 = vmatprep.subr.bf16.mxu1 %v27528_v54  ;;  %v27586_v37 = vld [vmem:[%s38772_s5 + $0x10] ss:$52 sps:$4 sm:$0xff]  }
 0x5a7   :  { %14821 = vmatprep.subr.bf16.mxu0 %v27531_v55  ;;  %v27591_v54 = vld [vmem:[%s38772_s5 + $0x11fc] ss:$52 sps:$4 sm:$0xff]  }
 0x5a8   :  { %v27594_v55 = vld [vmem:[%s38772_s5 + $0x7c] ss:$52 sps:$4 sm:$0xff]  }
 0x5a9   :  { %15544 = vmatpush1.bf16.msra.mxu1 %v27526_v56  ;;  %v27589_v56 = vld [vmem:[%s38772_s5 + $0x11f8] ss:$52 sps:$4 sm:$0xff]  }
 0x5aa   :  { %14822 = vmatpush1.bf16.msra.mxu0 %v27529_v39  ;;  %15545 = vmatprep.subr.bf16.mxu1 %v27534_v59  ;;  %v27592_v39 = vld [vmem:[%s38772_s5 + $0x78] ss:$52 sps:$4 sm:$0xff]  }
 0x5ab   :  { %14823 = vmatprep.subr.bf16.mxu0 %v27537_v62  ;;  %v27597_v59 = vld [vmem:[%s38772_s5 + $0x1264] ss:$52 sps:$4 sm:$0xff]   ;;  %v27595_v62 = vld [vmem:[%s38772_s5 + $0x1260] ss:$52 sps:$4 sm:$0xff]  }
 0x5ad   :  { %15546 = vmatpush1.bf16.msra.mxu1 %v27532_v53  ;;  %v27600_v53 = vld [vmem:[%s38772_s5 + $0xe4] ss:$52 sps:$4 sm:$0xff]  }
 0x5ae   :  { %14824 = vmatpush1.bf16.msra.mxu0 %v27535_v1  ;;  %15547 = vmatprep.subr.bf16.mxu1 %v27540_v57  ;;  %v27598_v1 = vld [vmem:[%s38772_s5 + $0xe0] ss:$52 sps:$4 sm:$0xff]  }
 0x5af   :  { %14825 = vmatprep.subr.bf16.mxu0 %v27543_v28  ;;  %v27603_v57 = vld [vmem:[%s38772_s5 + $0x12cc] ss:$52 sps:$4 sm:$0xff]  }
 0x5b0   :  { %v27606_v28 = vld [vmem:[%s38772_s5 + $0x14c] ss:$52 sps:$4 sm:$0xff]  }
 0x5b1   :  { %15548 = vmatpush1.bf16.msra.mxu1 %v27538_v5  ;;  %v27601_v5 = vld [vmem:[%s38772_s5 + $0x12c8] ss:$52 sps:$4 sm:$0xff]  }
 0x5b2   :  { %14826 = vmatpush1.bf16.msra.mxu0 %v27541_v9  ;;  %15549 = vmatprep.subr.bf16.mxu1 %v27546_v13  ;;  %v27604_v9 = vld [vmem:[%s38772_s5 + $0x148] ss:$52 sps:$4 sm:$0xff]  }
 0x5b3   :  { %14827 = vmatprep.subr.bf16.mxu0 %v27549_v10  ;;  %v27609_v13 = vld [vmem:[%s38772_s5 + $0x1334] ss:$52 sps:$4 sm:$0xff]  }
 0x5b4   :  { %v27612_v10 = vld [vmem:[%s38772_s5 + $0x1b4] ss:$52 sps:$4 sm:$0xff]  }
 0x5b5   :  { %15550 = vmatpush1.bf16.msra.mxu1 %v27544_v15  ;;  %v27607_v15 = vld [vmem:[%s38772_s5 + $0x1330] ss:$52 sps:$4 sm:$0xff]  }
 0x5b6   :  { %14828 = vmatpush1.bf16.msra.mxu0 %v27547_v16  ;;  %15551 = vmatprep.subr.bf16.mxu1 %v27552_v25  ;;  %v27610_v16 = vld [vmem:[%s38772_s5 + $0x1b0] ss:$52 sps:$4 sm:$0xff]  }
 0x5b7   :  { %14829 = vmatprep.subr.bf16.mxu0 %v27555_v60  ;;  %v27615_v25 = vld [vmem:[%s38772_s5 + $0x139c] ss:$52 sps:$4 sm:$0xff]  }
 0x5b8   :  { %v27618_v60 = vld [vmem:[%s38772_s5 + $0x21c] ss:$52 sps:$4 sm:$0xff]  }
 0x5b9   :  { %15552 = vmatpush1.bf16.msra.mxu1 %v27550_v19  ;;  %v27613_v19 = vld [vmem:[%s38772_s5 + $0x1398] ss:$52 sps:$4 sm:$0xff]  }
 0x5ba   :  { %14830 = vmatpush1.bf16.msra.mxu0 %v27553_v20  ;;  %15553 = vmatprep.subr.bf16.mxu1 %v27558_v61  ;;  %v27616_v20 = vld [vmem:[%s38772_s5 + $0x218] ss:$52 sps:$4 sm:$0xff]  }
 0x5bb   :  { %14831 = vmatprep.subr.bf16.mxu0 %v27561_v21  ;;  %v27621_v61 = vld [vmem:[%s38772_s5 + $0x1404] ss:$52 sps:$4 sm:$0xff]  }
 0x5bc   :  { %v27624_v21 = vld [vmem:[%s38772_s5 + $0x284] ss:$52 sps:$4 sm:$0xff]  }
 0x5bd   :  { %15554 = vmatpush1.bf16.msra.mxu1 %v27556_v22  ;;  %v27619_v22 = vld [vmem:[%s38772_s5 + $0x1400] ss:$52 sps:$4 sm:$0xff]  }
 0x5be   :  { %14832 = vmatpush1.bf16.msra.mxu0 %v27559_v4  ;;  %15555 = vmatprep.subr.bf16.mxu1 %v27564_v63  ;;  %v27622_v4 = vld [vmem:[%s38772_s5 + $0x280] ss:$52 sps:$4 sm:$0xff]  }
 0x5bf   :  { %14833 = vmatprep.subr.bf16.mxu0 %v27567_v24  ;;  %v27627_v63 = vld [vmem:[%s38772_s5 + $0x146c] ss:$52 sps:$4 sm:$0xff]  }
 0x5c0   :  { %v27630_v24 = vld [vmem:[%s38772_s5 + $0x2ec] ss:$52 sps:$4 sm:$0xff]  }
 0x5c1   :  { %15556 = vmatpush1.bf16.msra.mxu1 %v27562_v26  ;;  %v27625_v26 = vld [vmem:[%s38772_s5 + $0x1468] ss:$52 sps:$4 sm:$0xff]  }
 0x5c2   :  { %14834 = vmatpush1.bf16.msra.mxu0 %v27565_v33  ;;  %15557 = vmatprep.subr.bf16.mxu1 %v27570_v6  ;;  %v27628_v33 = vld [vmem:[%s38772_s5 + $0x2e8] ss:$52 sps:$4 sm:$0xff]  }
 0x5c3   :  { %14844 = vmatprep.subr.bf16.mxu0 %v27573_v52  ;;  %v27633_v6 = vld [vmem:[%s38772_s5 + $0x14d4] ss:$52 sps:$4 sm:$0xff]  }
 0x5c4   :  { %v27636_v52 = vld [vmem:[%s38772_s5 + $0x354] ss:$52 sps:$4 sm:$0xff]  }
 0x5c5   :  { %15558 = vmatpush1.bf16.msra.mxu1 %v27568_v40  ;;  %14836 = vmatmul.mubr.bf16.vlgmr.msra.gmra.mrb[36].mxu0 %v33452_v58  ;;  %v27631_v40 = vld [vmem:[%s38772_s5 + $0x14d0] ss:$52 sps:$4 sm:$0xff]  }
 0x5c6   :  { %14845 = vmatpush1.bf16.msra.mxu0 %v27571_v27  ;;  %15559 = vmatprep.subr.bf16.mxu1 %v27576_v41  ;;  %v27634_v27 = vld [vmem:[%s38772_s5 + $0x350] ss:$52 sps:$4 sm:$0xff]  }
 0x5c7   :  { %14846 = vmatprep.subr.bf16.mxu0 %v27579_v11  ;;  %14876 = vmatprep.mubr.bf16.mxu0 %v29728_v3  ;;  %v27639_v41 = vld [vmem:[%s38772_s5 + $0x153c] ss:$52 sps:$4 sm:$0xff]  }
 0x5c8   :  { %v27642_v11 = vld [vmem:[%s38772_s5 + $0x3bc] ss:$52 sps:$4 sm:$0xff]  }
 0x5c9   :  { %15560 = vmatpush1.bf16.msra.mxu1 %v27574_v43  ;;  %v27637_v43 = vld [vmem:[%s38772_s5 + $0x1538] ss:$52 sps:$4 sm:$0xff]  }
 0x5ca   :  { %15561 = vmatprep.subr.bf16.mxu1 %v27582_v8  ;;  %14847 = vmatpush1.bf16.msra.mxu0 %v27577_v2  ;;  %v27640_v2 = vld [vmem:[%s38772_s5 + $0x3b8] ss:$52 sps:$4 sm:$0xff]  }
 0x5cb   :  { %15172 = vmatprep.subr.bf16.mxu0 %v27588_v42  ;;  %v27645_v8 = vld [vmem:[%s38772_s5 + $0x15a4] ss:$52 sps:$4 sm:$0xff]  }
 0x5cc   :  { %v27648_v42 = vld [vmem:[%s38772_s5 + $0x424] ss:$52 sps:$4 sm:$0xff]  }
 0x5cd   :  { %15562 = vmatpush1.bf16.msra.mxu1 %v27580_v44  ;;  %v27643_v44 = vld [vmem:[%s38772_s5 + $0x15a0] ss:$52 sps:$4 sm:$0xff]  }
 0x5ce   :  { %15563 = vmatprep.subr.bf16.mxu1 %v27585_v23  ;;  %v27646_v23 = vld [vmem:[%s38772_s5 + $0x420] ss:$52 sps:$4 sm:$0xff]  }
 0x5d1   :  { %15564 = vmatpush1.bf16.msra.mxu1 %v27583_v47  ;;  %24260 = vmatmul.mubr.msk.bf16.vlgmr.msra.gmra.mrb[36].mxu0 %vm14594_vm2, %v33519_v48  ;;  %v27651_v47 = vld [vmem:[%s38772_s5 + $0x160c] ss:$52 sps:$4 sm:$0xff]  }
 0x5d2   :  { %15173 = vmatpush1.bf16.msra.mxu0 %v27586_v37  ;;  %15204 = vmatprep.mubr.bf16.mxu0 %v32201_v49 }
 0x5d3   :  { %15565 = vmatprep.subr.bf16.mxu1 %v27591_v54  ;;  %15174 = vmatprep.subr.bf16.mxu0 %v27594_v55  ;;  %v27654_v54 = vld [vmem:[%s38772_s5 + $0x48c] ss:$52 sps:$4 sm:$0xff]  }
 0x5d5   :  { %15566 = vmatpush1.bf16.msra.mxu1 %v27589_v56 }
 0x5d6   :  { %15175 = vmatpush1.bf16.msra.mxu0 %v27592_v39  ;;  %15567 = vmatprep.subr.bf16.mxu1 %v27597_v59  ;;  %v27649_v39 = vld [vmem:[%s38772_s5 + $0x1608] ss:$52 sps:$4 sm:$0xff]  }
 0x5d7   :  { %15176 = vmatprep.subr.bf16.mxu0 %v27600_v53  ;;  %v27652_v53 = vld [vmem:[%s38772_s5 + $0x488] ss:$52 sps:$4 sm:$0xff]  }
 0x5d9   :  { %15568 = vmatpush1.bf16.msra.mxu1 %v27595_v62  ;;  %v27657_v62 = vld [vmem:[%s38772_s5 + $0x1674] ss:$52 sps:$4 sm:$0xff]  }
 0x5da   :  { %15177 = vmatpush1.bf16.msra.mxu0 %v27598_v1  ;;  %15569 = vmatprep.subr.bf16.mxu1 %v27603_v57  ;;  %v27660_v1 = vld [vmem:[%s38772_s5 + $0x4f4] ss:$52 sps:$4 sm:$0xff]   ;;  %v27655_v57 = vld [vmem:[%s38772_s5 + $0x1670] ss:$52 sps:$4 sm:$0xff]  }
 0x5db   :  { %15178 = vmatprep.subr.bf16.mxu0 %v27606_v28  ;;  %v27658_v28 = vld [vmem:[%s38772_s5 + $0x4f0] ss:$52 sps:$4 sm:$0xff]  }
 0x5dd   :  { %15570 = vmatpush1.bf16.msra.mxu1 %v27601_v5  ;;  %v27663_v5 = vld [vmem:[%s38772_s5 + $0x16dc] ss:$52 sps:$4 sm:$0xff]  }
 0x5de   :  { %15179 = vmatpush1.bf16.msra.mxu0 %v27604_v9  ;;  %15571 = vmatprep.subr.bf16.mxu1 %v27609_v13  ;;  %v27666_v9 = vld [vmem:[%s38772_s5 + $0x55c] ss:$52 sps:$4 sm:$0xff]   ;;  %v27661_v13 = vld [vmem:[%s38772_s5 + $0x16d8] ss:$52 sps:$4 sm:$0xff]  }
 0x5df   :  { %15180 = vmatprep.subr.bf16.mxu0 %v27612_v10  ;;  %v27664_v10 = vld [vmem:[%s38772_s5 + $0x558] ss:$52 sps:$4 sm:$0xff]  }
 0x5e1   :  { %15572 = vmatpush1.bf16.msra.mxu1 %v27607_v15  ;;  %v27669_v15 = vld [vmem:[%s38772_s5 + $0x1744] ss:$52 sps:$4 sm:$0xff]  }
 0x5e2   :  { %15181 = vmatpush1.bf16.msra.mxu0 %v27610_v16  ;;  %15582 = vmatprep.subr.bf16.mxu1 %v27615_v25  ;;  %v27672_v16 = vld [vmem:[%s38772_s5 + $0x5c4] ss:$52 sps:$4 sm:$0xff]   ;;  %v27667_v25 = vld [vmem:[%s38772_s5 + $0x1740] ss:$52 sps:$4 sm:$0xff]  }
 0x5e3   :  { %15182 = vmatprep.subr.bf16.mxu0 %v27618_v60  ;;  %v27670_v60 = vld [vmem:[%s38772_s5 + $0x5c0] ss:$52 sps:$4 sm:$0xff]  }
 0x5e4   :  { %15574 = vmatmul.mubr.bf16.vlgmr.msra.gmra.mrb[28].mxu1 %v32825_v46 }
 0x5e5   :  { %15583 = vmatpush1.bf16.msra.mxu1 %v27613_v19  ;;  %15614 = vmatprep.mubr.bf16.mxu1 %v32837_v38  ;;  %v27675_v19 = vld [vmem:[%s38772_s5 + $0x17ac] ss:$52 sps:$4 sm:$0xff]  }
 0x5e6   :  { %15183 = vmatpush1.bf16.msra.mxu0 %v27616_v20  ;;  %15584 = vmatprep.subr.bf16.mxu1 %v27621_v61  ;;  %v27678_v20 = vld [vmem:[%s38772_s5 + $0x62c] ss:$52 sps:$4 sm:$0xff]   ;;  %v27673_v61 = vld [vmem:[%s38772_s5 + $0x17a8] ss:$52 sps:$4 sm:$0xff]  }
 0x5e7   :  { %15184 = vmatprep.subr.bf16.mxu0 %v27624_v21  ;;  %v27676_v21 = vld [vmem:[%s38772_s5 + $0x628] ss:$52 sps:$4 sm:$0xff]  }
 0x5e9   :  { %15585 = vmatpush1.bf16.msra.mxu1 %v27619_v22  ;;  %v27681_v22 = vld [vmem:[%s38772_s5 + $0x1814] ss:$52 sps:$4 sm:$0xff]  }
 0x5ea   :  { %15185 = vmatpush1.bf16.msra.mxu0 %v27622_v4  ;;  %15586 = vmatprep.subr.bf16.mxu1 %v27627_v63  ;;  %v27684_v4 = vld [vmem:[%s38772_s5 + $0x694] ss:$52 sps:$4 sm:$0xff]   ;;  %v27679_v63 = vld [vmem:[%s38772_s5 + $0x1810] ss:$52 sps:$4 sm:$0xff]  }
 0x5eb   :  { %15186 = vmatprep.subr.bf16.mxu0 %v27630_v24  ;;  %v27682_v24 = vld [vmem:[%s38772_s5 + $0x690] ss:$52 sps:$4 sm:$0xff]  }
 0x5ed   :  { %15587 = vmatpush1.bf16.msra.mxu1 %v27625_v26  ;;  %v27687_v26 = vld [vmem:[%s38772_s5 + $0x187c] ss:$52 sps:$4 sm:$0xff]  }
 0x5ee   :  { %15187 = vmatpush1.bf16.msra.mxu0 %v27628_v33  ;;  %15588 = vmatprep.subr.bf16.mxu1 %v27633_v6  ;;  %v27690_v33 = vld [vmem:[%s38772_s5 + $0x6fc] ss:$52 sps:$4 sm:$0xff]   ;;  %v27685_v6 = vld [vmem:[%s38772_s5 + $0x1878] ss:$52 sps:$4 sm:$0xff]  }
 0x5ef   :  { %15188 = vmatprep.subr.bf16.mxu0 %v27636_v52  ;;  %v27688_v52 = vld [vmem:[%s38772_s5 + $0x6f8] ss:$52 sps:$4 sm:$0xff]  }
 0x5f1   :  { %15589 = vmatpush1.bf16.msra.mxu1 %v27631_v40  ;;  %v27693_v40 = vld [vmem:[%s38772_s5 + $0x18e4] ss:$52 sps:$4 sm:$0xff]  }
 0x5f2   :  { %15189 = vmatpush1.bf16.msra.mxu0 %v27634_v27  ;;  %15590 = vmatprep.subr.bf16.mxu1 %v27639_v41  ;;  %v27696_v27 = vld [vmem:[%s38772_s5 + $0x764] ss:$52 sps:$4 sm:$0xff]   ;;  %v27691_v41 = vld [vmem:[%s38772_s5 + $0x18e0] ss:$52 sps:$4 sm:$0xff]  }
 0x5f3   :  { %15190 = vmatprep.subr.bf16.mxu0 %v27642_v11  ;;  %v27694_v11 = vld [vmem:[%s38772_s5 + $0x760] ss:$52 sps:$4 sm:$0xff]  }
 0x5f5   :  { %15591 = vmatpush1.bf16.msra.mxu1 %v27637_v43  ;;  %v27699_v43 = vld [vmem:[%s38772_s5 + $0x194c] ss:$52 sps:$4 sm:$0xff]  }
 0x5f6   :  { %15191 = vmatpush1.bf16.msra.mxu0 %v27640_v2  ;;  %15592 = vmatprep.subr.bf16.mxu1 %v27645_v8  ;;  %v27702_v2 = vld [vmem:[%s38772_s5 + $0x7cc] ss:$52 sps:$4 sm:$0xff]   ;;  %v27697_v8 = vld [vmem:[%s38772_s5 + $0x1948] ss:$52 sps:$4 sm:$0xff]  }
 0x5f7   :  { %v34169_v37 = vpop.f32.mrb[24].mxu1  ;;  %15192 = vmatprep.subr.bf16.mxu0 %v27648_v42  ;;  %v27700_v42 = vld [vmem:[%s38772_s5 + $0x7c8] ss:$52 sps:$4 sm:$0xff]  }
 0x5f8   :  { %v34174_v55 = vpop.f32.mrb[25].mxu1 }
 0x5f9   :  { %15593 = vmatpush1.bf16.msra.mxu1 %v27643_v44  ;;  %v15169_v56 = vpop.f32.mrb[26].mxu1  ;;  %v27705_v44 = vld [vmem:[%s38772_s5 + $0x19b4] ss:$52 sps:$4 sm:$0xff]  }
 0x5fa   :  { %15193 = vmatpush1.bf16.msra.mxu0 %v27646_v23  ;;  %v15170_v59 = vpop.f32.mrb[27].mxu1  ;;  %15594 = vmatprep.subr.bf16.mxu1 %v27651_v47  ;;  %v27708_v23 = vld [vmem:[%s38772_s5 + $0x834] ss:$52 sps:$4 sm:$0xff]   ;;  %v27703_v47 = vld [vmem:[%s38772_s5 + $0x19b0] ss:$52 sps:$4 sm:$0xff]  }
 0x5fb   :  { %15194 = vmatprep.subr.bf16.mxu0 %v27654_v54  ;;  %v27706_v54 = vld [vmem:[%s38772_s5 + $0x830] ss:$52 sps:$4 sm:$0xff]   ;;  %v27709_v59 = vld [vmem:[%s38772_s5 + $0x1a18] ss:$52 sps:$4 sm:$0xff]  }
 0x5fc   :  { %v27711_v56 = vld [vmem:[%s38772_s5 + $0x1a1c] ss:$52 sps:$4 sm:$0xff]  }
 0x5fd   :  { %15595 = vmatpush1.bf16.msra.mxu1 %v27649_v39  ;;  %v27714_v39 = vld [vmem:[%s38772_s5 + $0x89c] ss:$52 sps:$4 sm:$0xff]  }
 0x5fe   :  { %15195 = vmatpush1.bf16.msra.mxu0 %v27652_v53  ;;  %15596 = vmatprep.subr.bf16.mxu1 %v27657_v62  ;;  %v27712_v53 = vld [vmem:[%s38772_s5 + $0x898] ss:$52 sps:$4 sm:$0xff]  }
 0x5ff   :  { %15196 = vmatprep.subr.bf16.mxu0 %v27660_v1  ;;  %v27717_v62 = vld [vmem:[%s38772_s5 + $0x1a84] ss:$52 sps:$4 sm:$0xff]  }
 0x600   :  { %v27720_v1 = vld [vmem:[%s38772_s5 + $0x904] ss:$52 sps:$4 sm:$0xff]  }
 0x601   :  { %15597 = vmatpush1.bf16.msra.mxu1 %v27655_v57  ;;  %v27715_v57 = vld [vmem:[%s38772_s5 + $0x1a80] ss:$52 sps:$4 sm:$0xff]  }
 0x602   :  { %15197 = vmatpush1.bf16.msra.mxu0 %v27658_v28  ;;  %15598 = vmatprep.subr.bf16.mxu1 %v27663_v5  ;;  %v27718_v28 = vld [vmem:[%s38772_s5 + $0x900] ss:$52 sps:$4 sm:$0xff]  }
 0x603   :  { %15198 = vmatprep.subr.bf16.mxu0 %v27666_v9  ;;  %v27723_v5 = vld [vmem:[%s38772_s5 + $0x1aec] ss:$52 sps:$4 sm:$0xff]  }
 0x604   :  { %v27726_v9 = vld [vmem:[%s38772_s5 + $0x96c] ss:$52 sps:$4 sm:$0xff]  }
 0x605   :  { %15599 = vmatpush1.bf16.msra.mxu1 %v27661_v13  ;;  %v27721_v13 = vld [vmem:[%s38772_s5 + $0x1ae8] ss:$52 sps:$4 sm:$0xff]  }
 0x606   :  { %15199 = vmatpush1.bf16.msra.mxu0 %v27664_v10  ;;  %15600 = vmatprep.subr.bf16.mxu1 %v27669_v15  ;;  %v27724_v10 = vld [vmem:[%s38772_s5 + $0x968] ss:$52 sps:$4 sm:$0xff]  }
 0x607   :  { %15200 = vmatprep.subr.bf16.mxu0 %v27672_v16  ;;  %v27729_v15 = vld [vmem:[%s38772_s5 + $0x1b54] ss:$52 sps:$4 sm:$0xff]  }
 0x608   :  { %v27732_v16 = vld [vmem:[%s38772_s5 + $0x9d4] ss:$52 sps:$4 sm:$0xff]  }
 0x609   :  { %15601 = vmatpush1.bf16.msra.mxu1 %v27667_v25  ;;  %v27727_v25 = vld [vmem:[%s38772_s5 + $0x1b50] ss:$52 sps:$4 sm:$0xff]  }
 0x60a   :  { %15201 = vmatpush1.bf16.msra.mxu0 %v27670_v60  ;;  %15602 = vmatprep.subr.bf16.mxu1 %v27675_v19  ;;  %v27730_v60 = vld [vmem:[%s38772_s5 + $0x9d0] ss:$52 sps:$4 sm:$0xff]  }
 0x60b   :  { %15202 = vmatprep.subr.bf16.mxu0 %v27678_v20  ;;  %v27735_v19 = vld [vmem:[%s38772_s5 + $0x1bbc] ss:$52 sps:$4 sm:$0xff]  }
 0x60c   :  { %v27738_v20 = vld [vmem:[%s38772_s5 + $0xa3c] ss:$52 sps:$4 sm:$0xff]  }
 0x60d   :  { %15603 = vmatpush1.bf16.msra.mxu1 %v27673_v61  ;;  %v27733_v61 = vld [vmem:[%s38772_s5 + $0x1bb8] ss:$52 sps:$4 sm:$0xff]  }
 0x60e   :  { %15203 = vmatpush1.bf16.msra.mxu0 %v27676_v21  ;;  %15604 = vmatprep.subr.bf16.mxu1 %v27681_v22  ;;  %v27736_v21 = vld [vmem:[%s38772_s5 + $0xa38] ss:$52 sps:$4 sm:$0xff]  }
 0x60f   :  { %15213 = vmatprep.subr.bf16.mxu0 %v27684_v4  ;;  %v27741_v22 = vld [vmem:[%s38772_s5 + $0x1c24] ss:$52 sps:$4 sm:$0xff]  }
 0x610   :  { %v27744_v4 = vld [vmem:[%s38772_s5 + $0xaa4] ss:$52 sps:$4 sm:$0xff]  }
 0x611   :  { %15205 = vmatmul.mubr.bf16.vlgmr.msra.gmra.mrb[40].mxu0 %v32407_v34  ;;  %15605 = vmatpush1.bf16.msra.mxu1 %v27679_v63  ;;  %v27739_v63 = vld [vmem:[%s38772_s5 + $0x1c20] ss:$52 sps:$4 sm:$0xff]  }
 0x612   :  { %15214 = vmatpush1.bf16.msra.mxu0 %v27682_v24  ;;  %15245 = vmatprep.mubr.bf16.mxu0 %v32409_v35  ;;  %v27742_v24 = vld [vmem:[%s38772_s5 + $0xaa0] ss:$52 sps:$4 sm:$0xff]  }
 0x613   :  { %15606 = vmatprep.subr.bf16.mxu1 %v27687_v26  ;;  %15215 = vmatprep.subr.bf16.mxu0 %v27690_v33  ;;  %v27747_v26 = vld [vmem:[%s38772_s5 + $0x1c8c] ss:$52 sps:$4 sm:$0xff]  }
 0x614   :  { %v27750_v33 = vld [vmem:[%s38772_s5 + $0xb0c] ss:$52 sps:$4 sm:$0xff]  }
 0x615   :  { %15607 = vmatpush1.bf16.msra.mxu1 %v27685_v6  ;;  %v27745_v6 = vld [vmem:[%s38772_s5 + $0x1c88] ss:$52 sps:$4 sm:$0xff]  }
 0x616   :  { %15216 = vmatpush1.bf16.msra.mxu0 %v27688_v52  ;;  %15608 = vmatprep.subr.bf16.mxu1 %v27693_v40  ;;  %v27748_v52 = vld [vmem:[%s38772_s5 + $0xb08] ss:$52 sps:$4 sm:$0xff]  }
 0x617   :  { %15217 = vmatprep.subr.bf16.mxu0 %v27696_v27  ;;  %v27753_v40 = vld [vmem:[%s38772_s5 + $0x1cf4] ss:$52 sps:$4 sm:$0xff]  }
 0x618   :  { %v27756_v27 = vld [vmem:[%s38772_s5 + $0xb74] ss:$52 sps:$4 sm:$0xff]  }
 0x619   :  { %15609 = vmatpush1.bf16.msra.mxu1 %v27691_v41  ;;  %v27751_v41 = vld [vmem:[%s38772_s5 + $0x1cf0] ss:$52 sps:$4 sm:$0xff]  }
 0x61a   :  { %15218 = vmatpush1.bf16.msra.mxu0 %v27694_v11  ;;  %15610 = vmatprep.subr.bf16.mxu1 %v27699_v43  ;;  %v27754_v11 = vld [vmem:[%s38772_s5 + $0xb70] ss:$52 sps:$4 sm:$0xff]  }
 0x61b   :  { %15219 = vmatprep.subr.bf16.mxu0 %v27702_v2  ;;  %v27759_v43 = vld [vmem:[%s38772_s5 + $0x1d5c] ss:$52 sps:$4 sm:$0xff]  }
 0x61c   :  { %v27762_v2 = vld [vmem:[%s38772_s5 + $0xbdc] ss:$52 sps:$4 sm:$0xff]  }
 0x61d   :  { %15611 = vmatpush1.bf16.msra.mxu1 %v27697_v8  ;;  %v27757_v8 = vld [vmem:[%s38772_s5 + $0x1d58] ss:$52 sps:$4 sm:$0xff]  }
 0x61e   :  { %15220 = vmatpush1.bf16.msra.mxu0 %v27700_v42  ;;  %15612 = vmatprep.subr.bf16.mxu1 %v27705_v44  ;;  %v27760_v42 = vld [vmem:[%s38772_s5 + $0xbd8] ss:$52 sps:$4 sm:$0xff]  }
 0x61f   :  { %15221 = vmatprep.subr.bf16.mxu0 %v27708_v23  ;;  %v27765_v44 = vld [vmem:[%s38772_s5 + $0x1dc4] ss:$52 sps:$4 sm:$0xff]  }
 0x620   :  { %v27768_v23 = vld [vmem:[%s38772_s5 + $0xc44] ss:$52 sps:$4 sm:$0xff]  }
 0x621   :  { %15613 = vmatpush1.bf16.msra.mxu1 %v27703_v47  ;;  %v27763_v47 = vld [vmem:[%s38772_s5 + $0x1dc0] ss:$52 sps:$4 sm:$0xff]  }
 0x622   :  { %15222 = vmatpush1.bf16.msra.mxu0 %v27706_v54  ;;  %15623 = vmatprep.subr.bf16.mxu1 %v27711_v56  ;;  %v27766_v54 = vld [vmem:[%s38772_s5 + $0xc40] ss:$52 sps:$4 sm:$0xff]  }
 0x623   :  { %15223 = vmatprep.subr.bf16.mxu0 %v27714_v39  ;;  %v27771_v56 = vld [vmem:[%s38772_s5 + $0x1e2c] ss:$52 sps:$4 sm:$0xff]  }
 0x624   :  { %15615 = vmatmul.mubr.bf16.vlgmr.msra.gmra.mrb[28].mxu1 %v33035_v0  ;;  %v27774_v39 = vld [vmem:[%s38772_s5 + $0xcac] ss:$52 sps:$4 sm:$0xff]  }
 0x625   :  { %15624 = vmatpush1.bf16.msra.mxu1 %v27709_v59  ;;  %15655 = vmatprep.mubr.bf16.mxu1 %v33226_v14  ;;  %v27769_v59 = vld [vmem:[%s38772_s5 + $0x1e28] ss:$52 sps:$4 sm:$0xff]  }
 0x626   :  { %15224 = vmatpush1.bf16.msra.mxu0 %v27712_v53  ;;  %15625 = vmatprep.subr.bf16.mxu1 %v27717_v62  ;;  %v27772_v53 = vld [vmem:[%s38772_s5 + $0xca8] ss:$52 sps:$4 sm:$0xff]  }
 0x627   :  { %15225 = vmatprep.subr.bf16.mxu0 %v27720_v1  ;;  %v27777_v62 = vld [vmem:[%s38772_s5 + $0x1e94] ss:$52 sps:$4 sm:$0xff]  }
 0x628   :  { %v27780_v1 = vld [vmem:[%s38772_s5 + $0xd14] ss:$52 sps:$4 sm:$0xff]  }
 0x629   :  { %15626 = vmatpush1.bf16.msra.mxu1 %v27715_v57  ;;  %v27775_v57 = vld [vmem:[%s38772_s5 + $0x1e90] ss:$52 sps:$4 sm:$0xff]  }
 0x62a   :  { %15226 = vmatpush1.bf16.msra.mxu0 %v27718_v28  ;;  %15627 = vmatprep.subr.bf16.mxu1 %v27723_v5  ;;  %v27778_v28 = vld [vmem:[%s38772_s5 + $0xd10] ss:$52 sps:$4 sm:$0xff]  }
 0x62b   :  { %15227 = vmatprep.subr.bf16.mxu0 %v27726_v9  ;;  %v27783_v5 = vld [vmem:[%s38772_s5 + $0x1efc] ss:$52 sps:$4 sm:$0xff]  }
 0x62c   :  { %v27786_v9 = vld [vmem:[%s38772_s5 + $0xd7c] ss:$52 sps:$4 sm:$0xff]  }
 0x62d   :  { %15628 = vmatpush1.bf16.msra.mxu1 %v27721_v13  ;;  %v27781_v13 = vld [vmem:[%s38772_s5 + $0x1ef8] ss:$52 sps:$4 sm:$0xff]  }
 0x62e   :  { %15228 = vmatpush1.bf16.msra.mxu0 %v27724_v10  ;;  %15629 = vmatprep.subr.bf16.mxu1 %v27729_v15  ;;  %v27784_v10 = vld [vmem:[%s38772_s5 + $0xd78] ss:$52 sps:$4 sm:$0xff]  }
 0x62f   :  { %15229 = vmatprep.subr.bf16.mxu0 %v27732_v16  ;;  %v27789_v15 = vld [vmem:[%s38772_s5 + $0x1f64] ss:$52 sps:$4 sm:$0xff]  }
 0x630   :  { %v27792_v16 = vld [vmem:[%s38772_s5 + $0xde4] ss:$52 sps:$4 sm:$0xff]  }
 0x631   :  { %15630 = vmatpush1.bf16.msra.mxu1 %v27727_v25  ;;  %v27787_v25 = vld [vmem:[%s38772_s5 + $0x1f60] ss:$52 sps:$4 sm:$0xff]  }
 0x632   :  { %15230 = vmatpush1.bf16.msra.mxu0 %v27730_v60  ;;  %15631 = vmatprep.subr.bf16.mxu1 %v27735_v19  ;;  %v27790_v60 = vld [vmem:[%s38772_s5 + $0xde0] ss:$52 sps:$4 sm:$0xff]  }
 0x633   :  { %15231 = vmatprep.subr.bf16.mxu0 %v27738_v20  ;;  %v27795_v19 = vld [vmem:[%s38772_s5 + $0x1fcc] ss:$52 sps:$4 sm:$0xff]  }
 0x634   :  { %v27798_v20 = vld [vmem:[%s38772_s5 + $0xe4c] ss:$52 sps:$4 sm:$0xff]  }
 0x635   :  { %15632 = vmatpush1.bf16.msra.mxu1 %v27733_v61  ;;  %v27793_v61 = vld [vmem:[%s38772_s5 + $0x1fc8] ss:$52 sps:$4 sm:$0xff]  }
 0x636   :  { %15232 = vmatpush1.bf16.msra.mxu0 %v27736_v21  ;;  %15633 = vmatprep.subr.bf16.mxu1 %v27741_v22  ;;  %v27796_v21 = vld [vmem:[%s38772_s5 + $0xe48] ss:$52 sps:$4 sm:$0xff]  }
 0x637   :  { %15233 = vmatprep.subr.bf16.mxu0 %v27744_v4  ;;  %v27801_v22 = vld [vmem:[%s38772_s5 + $0x2034] ss:$52 sps:$4 sm:$0xff]  }
 0x638   :  { %v27804_v4 = vld [vmem:[%s38772_s5 + $0xeb4] ss:$52 sps:$4 sm:$0xff]  }
 0x639   :  { %15634 = vmatpush1.bf16.msra.mxu1 %v27739_v63  ;;  %v27799_v63 = vld [vmem:[%s38772_s5 + $0x2030] ss:$52 sps:$4 sm:$0xff]  }
 0x63a   :  { %15234 = vmatpush1.bf16.msra.mxu0 %v27742_v24  ;;  %15635 = vmatprep.subr.bf16.mxu1 %v27747_v26  ;;  %v27802_v24 = vld [vmem:[%s38772_s5 + $0xeb0] ss:$52 sps:$4 sm:$0xff]  }
 0x63b   :  { %15235 = vmatprep.subr.bf16.mxu0 %v27750_v33  ;;  %v27807_v26 = vld [vmem:[%s38772_s5 + $0x209c] ss:$52 sps:$4 sm:$0xff]  }
 0x63c   :  { %v27810_v33 = vld [vmem:[%s38772_s5 + $0xf1c] ss:$52 sps:$4 sm:$0xff]  }
 0x63d   :  { %15636 = vmatpush1.bf16.msra.mxu1 %v27745_v6  ;;  %v27805_v6 = vld [vmem:[%s38772_s5 + $0x2098] ss:$52 sps:$4 sm:$0xff]  }
 0x63e   :  { %15236 = vmatpush1.bf16.msra.mxu0 %v27748_v52  ;;  %15637 = vmatprep.subr.bf16.mxu1 %v27753_v40  ;;  %v27808_v52 = vld [vmem:[%s38772_s5 + $0xf18] ss:$52 sps:$4 sm:$0xff]  }
 0x63f   :  { %15237 = vmatprep.subr.bf16.mxu0 %v27756_v27  ;;  %v27813_v40 = vld [vmem:[%s38772_s5 + $0x2104] ss:$52 sps:$4 sm:$0xff]  }
 0x640   :  { %v27816_v27 = vld [vmem:[%s38772_s5 + $0xf84] ss:$52 sps:$4 sm:$0xff]  }
 0x641   :  { %15638 = vmatpush1.bf16.msra.mxu1 %v27751_v41  ;;  %v27811_v41 = vld [vmem:[%s38772_s5 + $0x2100] ss:$52 sps:$4 sm:$0xff]  }
 0x642   :  { %15238 = vmatpush1.bf16.msra.mxu0 %v27754_v11  ;;  %15639 = vmatprep.subr.bf16.mxu1 %v27759_v43  ;;  %v27814_v11 = vld [vmem:[%s38772_s5 + $0xf80] ss:$52 sps:$4 sm:$0xff]  }
 0x643   :  { %15239 = vmatprep.subr.bf16.mxu0 %v27762_v2  ;;  %v27819_v43 = vld [vmem:[%s38772_s5 + $0x216c] ss:$52 sps:$4 sm:$0xff]  }
 0x644   :  { %v27822_v2 = vld [vmem:[%s38772_s5 + $0xfec] ss:$52 sps:$4 sm:$0xff]  }
 0x645   :  { %15640 = vmatpush1.bf16.msra.mxu1 %v27757_v8  ;;  %v27817_v8 = vld [vmem:[%s38772_s5 + $0x2168] ss:$52 sps:$4 sm:$0xff]  }
 0x646   :  { %15240 = vmatpush1.bf16.msra.mxu0 %v27760_v42  ;;  %15641 = vmatprep.subr.bf16.mxu1 %v27765_v44  ;;  %v27820_v42 = vld [vmem:[%s38772_s5 + $0xfe8] ss:$52 sps:$4 sm:$0xff]  }
 0x647   :  { %15241 = vmatprep.subr.bf16.mxu0 %v27768_v23  ;;  %v27825_v44 = vld [vmem:[%s38772_s5 + $0x21d4] ss:$52 sps:$4 sm:$0xff]  }
 0x648   :  { %v27828_v23 = vld [vmem:[%s38772_s5 + $0x1054] ss:$52 sps:$4 sm:$0xff]  }
 0x649   :  { %15642 = vmatpush1.bf16.msra.mxu1 %v27763_v47  ;;  %v27823_v47 = vld [vmem:[%s38772_s5 + $0x21d0] ss:$52 sps:$4 sm:$0xff]  }
 0x64a   :  { %15242 = vmatpush1.bf16.msra.mxu0 %v27766_v54  ;;  %15643 = vmatprep.subr.bf16.mxu1 %v27771_v56  ;;  %v27826_v54 = vld [vmem:[%s38772_s5 + $0x1050] ss:$52 sps:$4 sm:$0xff]  }
 0x64b   :  { %15243 = vmatprep.subr.bf16.mxu0 %v27774_v39  ;;  %v27831_v56 = vld [vmem:[%s38772_s5 + $0x223c] ss:$52 sps:$4 sm:$0xff]  }
 0x64c   :  { %v27834_v39 = vld [vmem:[%s38772_s5 + $0x10bc] ss:$52 sps:$4 sm:$0xff]  }
 0x64d   :  { %15644 = vmatpush1.bf16.msra.mxu1 %v27769_v59  ;;  %v27829_v59 = vld [vmem:[%s38772_s5 + $0x2238] ss:$52 sps:$4 sm:$0xff]  }
 0x64e   :  { %15244 = vmatpush1.bf16.msra.mxu0 %v27772_v53  ;;  %15645 = vmatprep.subr.bf16.mxu1 %v27777_v62  ;;  %v27832_v53 = vld [vmem:[%s38772_s5 + $0x10b8] ss:$52 sps:$4 sm:$0xff]  }
 0x64f   :  { %15254 = vmatprep.subr.bf16.mxu0 %v27780_v1  ;;  %v27837_v62 = vld [vmem:[%s38772_s5 + $0x22a4] ss:$52 sps:$4 sm:$0xff]  }
 0x650   :  { %v27840_v1 = vld [vmem:[%s38772_s5 + $0x1124] ss:$52 sps:$4 sm:$0xff]  }
 0x651   :  { %15246 = vmatmul.mubr.bf16.vlgmr.msra.gmra.mrb[40].mxu0 %v32613_v17  ;;  %15646 = vmatpush1.bf16.msra.mxu1 %v27775_v57  ;;  %v27835_v57 = vld [vmem:[%s38772_s5 + $0x22a0] ss:$52 sps:$4 sm:$0xff]  }
 0x652   :  { %15255 = vmatpush1.bf16.msra.mxu0 %v27778_v28  ;;  %15286 = vmatprep.mubr.bf16.mxu0 %v32619_v18  ;;  %v27838_v28 = vld [vmem:[%s38772_s5 + $0x1120] ss:$52 sps:$4 sm:$0xff]  }
 0x653   :  { %15647 = vmatprep.subr.bf16.mxu1 %v27783_v5  ;;  %15256 = vmatprep.subr.bf16.mxu0 %v27786_v9  ;;  %v27843_v5 = vld [vmem:[%s38772_s5 + $0x230c] ss:$52 sps:$4 sm:$0xff]  }
 0x654   :  { %v27846_v9 = vld [vmem:[%s38772_s5 + $0x118c] ss:$52 sps:$4 sm:$0xff]  }
 0x655   :  { %15648 = vmatpush1.bf16.msra.mxu1 %v27781_v13  ;;  %v27841_v13 = vld [vmem:[%s38772_s5 + $0x2308] ss:$52 sps:$4 sm:$0xff]  }
 0x656   :  { %15257 = vmatpush1.bf16.msra.mxu0 %v27784_v10  ;;  %15649 = vmatprep.subr.bf16.mxu1 %v27789_v15  ;;  %v27844_v10 = vld [vmem:[%s38772_s5 + $0x1188] ss:$52 sps:$4 sm:$0xff]  }
 0x657   :  { %15258 = vmatprep.subr.bf16.mxu0 %v27792_v16  ;;  %v27849_v15 = vld [vmem:[%s38772_s5 + $0x2374] ss:$52 sps:$4 sm:$0xff]  }
 0x658   :  { %v27852_v16 = vld [vmem:[%s38772_s5 + $0x11f4] ss:$52 sps:$4 sm:$0xff]  }
 0x659   :  { %15650 = vmatpush1.bf16.msra.mxu1 %v27787_v25  ;;  %v27847_v25 = vld [vmem:[%s38772_s5 + $0x2370] ss:$52 sps:$4 sm:$0xff]  }
 0x65a   :  { %15259 = vmatpush1.bf16.msra.mxu0 %v27790_v60  ;;  %15651 = vmatprep.subr.bf16.mxu1 %v27795_v19  ;;  %v27850_v60 = vld [vmem:[%s38772_s5 + $0x11f0] ss:$52 sps:$4 sm:$0xff]  }
 0x65b   :  { %15260 = vmatprep.subr.bf16.mxu0 %v27798_v20  ;;  %v27855_v19 = vld [vmem:[%s38772_s5 + $0x23dc] ss:$52 sps:$4 sm:$0xff]  }
 0x65c   :  { %v27858_v20 = vld [vmem:[%s38772_s5 + $0x125c] ss:$52 sps:$4 sm:$0xff]  }
 0x65d   :  { %15652 = vmatpush1.bf16.msra.mxu1 %v27793_v61  ;;  %v27853_v61 = vld [vmem:[%s38772_s5 + $0x23d8] ss:$52 sps:$4 sm:$0xff]  }
 0x65e   :  { %15261 = vmatpush1.bf16.msra.mxu0 %v27796_v21  ;;  %15653 = vmatprep.subr.bf16.mxu1 %v27801_v22  ;;  %v27856_v21 = vld [vmem:[%s38772_s5 + $0x1258] ss:$52 sps:$4 sm:$0xff]  }
 0x65f   :  { %15262 = vmatprep.subr.bf16.mxu0 %v27804_v4  ;;  %v27861_v22 = vld [vmem:[%s38772_s5 + $0x2444] ss:$52 sps:$4 sm:$0xff]  }
 0x660   :  { %v27864_v4 = vld [vmem:[%s38772_s5 + $0x12c4] ss:$52 sps:$4 sm:$0xff]  }
 0x661   :  { %15654 = vmatpush1.bf16.msra.mxu1 %v27799_v63  ;;  %v27859_v63 = vld [vmem:[%s38772_s5 + $0x2440] ss:$52 sps:$4 sm:$0xff]  }
 0x662   :  { %15263 = vmatpush1.bf16.msra.mxu0 %v27802_v24  ;;  %15664 = vmatprep.subr.bf16.mxu1 %v27807_v26  ;;  %v27862_v24 = vld [vmem:[%s38772_s5 + $0x12c0] ss:$52 sps:$4 sm:$0xff]  }
 0x663   :  { %15264 = vmatprep.subr.bf16.mxu0 %v27810_v33  ;;  %v27867_v26 = vld [vmem:[%s38772_s5 + $0x24ac] ss:$52 sps:$4 sm:$0xff]  }
 0x664   :  { %15656 = vmatmul.mubr.bf16.vlgmr.msra.gmra.mrb[28].mxu1 %v33244_v51  ;;  %v27870_v33 = vld [vmem:[%s38772_s5 + $0x132c] ss:$52 sps:$4 sm:$0xff]  }
 0x665   :  { %15665 = vmatpush1.bf16.msra.mxu1 %v27805_v6  ;;  %15696 = vmatprep.mubr.bf16.mxu1 %v33256_v50  ;;  %v27865_v6 = vld [vmem:[%s38772_s5 + $0x24a8] ss:$52 sps:$4 sm:$0xff]  }
 0x666   :  { %15265 = vmatpush1.bf16.msra.mxu0 %v27808_v52  ;;  %15666 = vmatprep.subr.bf16.mxu1 %v27813_v40  ;;  %v27868_v52 = vld [vmem:[%s38772_s5 + $0x1328] ss:$52 sps:$4 sm:$0xff]  }
 0x667   :  { %15266 = vmatprep.subr.bf16.mxu0 %v27816_v27  ;;  %v27873_v40 = vld [vmem:[%s38772_s5 + $0x2514] ss:$52 sps:$4 sm:$0xff]  }
 0x668   :  { %v27876_v27 = vld [vmem:[%s38772_s5 + $0x1394] ss:$52 sps:$4 sm:$0xff]  }
 0x669   :  { %15667 = vmatpush1.bf16.msra.mxu1 %v27811_v41  ;;  %v27871_v41 = vld [vmem:[%s38772_s5 + $0x2510] ss:$52 sps:$4 sm:$0xff]  }
 0x66a   :  { %15267 = vmatpush1.bf16.msra.mxu0 %v27814_v11  ;;  %15668 = vmatprep.subr.bf16.mxu1 %v27819_v43  ;;  %v27874_v11 = vld [vmem:[%s38772_s5 + $0x1390] ss:$52 sps:$4 sm:$0xff]  }
 0x66b   :  { %15268 = vmatprep.subr.bf16.mxu0 %v27822_v2  ;;  %v27879_v43 = vld [vmem:[%s38772_s5 + $0x257c] ss:$52 sps:$4 sm:$0xff]  }
 0x66c   :  { %v27882_v2 = vld [vmem:[%s38772_s5 + $0x13fc] ss:$52 sps:$4 sm:$0xff]  }
 0x66d   :  { %15669 = vmatpush1.bf16.msra.mxu1 %v27817_v8  ;;  %v27877_v8 = vld [vmem:[%s38772_s5 + $0x2578] ss:$52 sps:$4 sm:$0xff]  }
 0x66e   :  { %15269 = vmatpush1.bf16.msra.mxu0 %v27820_v42  ;;  %15670 = vmatprep.subr.bf16.mxu1 %v27825_v44  ;;  %v27880_v42 = vld [vmem:[%s38772_s5 + $0x13f8] ss:$52 sps:$4 sm:$0xff]  }
 0x66f   :  { %15270 = vmatprep.subr.bf16.mxu0 %v27828_v23  ;;  %v27885_v44 = vld [vmem:[%s38772_s5 + $0x25e4] ss:$52 sps:$4 sm:$0xff]  }
 0x670   :  { %v27888_v23 = vld [vmem:[%s38772_s5 + $0x1464] ss:$52 sps:$4 sm:$0xff]  }
 0x671   :  { %15671 = vmatpush1.bf16.msra.mxu1 %v27823_v47  ;;  %v27883_v47 = vld [vmem:[%s38772_s5 + $0x25e0] ss:$52 sps:$4 sm:$0xff]  }
 0x672   :  { %15271 = vmatpush1.bf16.msra.mxu0 %v27826_v54  ;;  %15672 = vmatprep.subr.bf16.mxu1 %v27831_v56  ;;  %v27886_v54 = vld [vmem:[%s38772_s5 + $0x1460] ss:$52 sps:$4 sm:$0xff]  }
 0x673   :  { %15272 = vmatprep.subr.bf16.mxu0 %v27834_v39  ;;  %v27891_v56 = vld [vmem:[%s38772_s5 + $0x264c] ss:$52 sps:$4 sm:$0xff]  }
 0x674   :  { %v27894_v39 = vld [vmem:[%s38772_s5 + $0x14cc] ss:$52 sps:$4 sm:$0xff]  }
 0x675   :  { %15673 = vmatpush1.bf16.msra.mxu1 %v27829_v59  ;;  %v27889_v59 = vld [vmem:[%s38772_s5 + $0x2648] ss:$52 sps:$4 sm:$0xff]  }
 0x676   :  { %15273 = vmatpush1.bf16.msra.mxu0 %v27832_v53  ;;  %15674 = vmatprep.subr.bf16.mxu1 %v27837_v62  ;;  %v27892_v53 = vld [vmem:[%s38772_s5 + $0x14c8] ss:$52 sps:$4 sm:$0xff]  }
 0x677   :  { %15274 = vmatprep.subr.bf16.mxu0 %v27840_v1  ;;  %v27897_v62 = vld [vmem:[%s38772_s5 + $0x26b4] ss:$52 sps:$4 sm:$0xff]  }
 0x678   :  { %v27900_v1 = vld [vmem:[%s38772_s5 + $0x1534] ss:$52 sps:$4 sm:$0xff]  }
 0x679   :  { %15675 = vmatpush1.bf16.msra.mxu1 %v27835_v57  ;;  %v27895_v57 = vld [vmem:[%s38772_s5 + $0x26b0] ss:$52 sps:$4 sm:$0xff]  }
 0x67a   :  { %15275 = vmatpush1.bf16.msra.mxu0 %v27838_v28  ;;  %15676 = vmatprep.subr.bf16.mxu1 %v27843_v5  ;;  %v27898_v28 = vld [vmem:[%s38772_s5 + $0x1530] ss:$52 sps:$4 sm:$0xff]  }
 0x67b   :  { %15276 = vmatprep.subr.bf16.mxu0 %v27846_v9  ;;  %v27906_v5 = vld [vmem:[%s38772_s5 + $0x271c] ss:$52 sps:$4 sm:$0xff]  }
 0x67c   :  { %v27903_v9 = vld [vmem:[%s38772_s5 + $0x159c] ss:$52 sps:$4 sm:$0xff]  }
 0x67d   :  { %15677 = vmatpush1.bf16.msra.mxu1 %v27841_v13  ;;  %v27904_v13 = vld [vmem:[%s38772_s5 + $0x2718] ss:$52 sps:$4 sm:$0xff]  }
 0x67e   :  { %15277 = vmatpush1.bf16.msra.mxu0 %v27844_v10  ;;  %15678 = vmatprep.subr.bf16.mxu1 %v27849_v15  ;;  %v27901_v10 = vld [vmem:[%s38772_s5 + $0x1598] ss:$52 sps:$4 sm:$0xff]  }
 0x67f   :  { %15278 = vmatprep.subr.bf16.mxu0 %v27852_v16  ;;  %v27912_v15 = vld [vmem:[%s38772_s5 + $0x2784] ss:$52 sps:$4 sm:$0xff]  }
 0x680   :  { %v27909_v16 = vld [vmem:[%s38772_s5 + $0x1604] ss:$52 sps:$4 sm:$0xff]  }
 0x681   :  { %15679 = vmatpush1.bf16.msra.mxu1 %v27847_v25 }
 0x682   :  { %15279 = vmatpush1.bf16.msra.mxu0 %v27850_v60  ;;  %15680 = vmatprep.subr.bf16.mxu1 %v27855_v19  ;;  %v27910_v19 = vld [vmem:[%s38772_s5 + $0x2780] ss:$52 sps:$4 sm:$0xff]  }
 0x683   :  { %15280 = vmatprep.subr.bf16.mxu0 %v27858_v20 }
 0x685   :  { %15681 = vmatpush1.bf16.msra.mxu1 %v27853_v61  ;;  %v27907_v61 = vld [vmem:[%s38772_s5 + $0x1600] ss:$52 sps:$4 sm:$0xff]  }
 0x686   :  { %15281 = vmatpush1.bf16.msra.mxu0 %v27856_v21  ;;  %15682 = vmatprep.subr.bf16.mxu1 %v27861_v22  ;;  %v27918_v21 = vld [vmem:[%s38772_s5 + $0x2c] ss:$52 sps:$4 sm:$0xff]  }
 0x687   :  { %15282 = vmatprep.subr.bf16.mxu0 %v27864_v4  ;;  %v27915_v4 = vld [vmem:[%s38772_s5 + $0x166c] ss:$52 sps:$4 sm:$0xff]  }
 0x689   :  { %15683 = vmatpush1.bf16.msra.mxu1 %v27859_v63  ;;  %v27913_v63 = vld [vmem:[%s38772_s5 + $0x1668] ss:$52 sps:$4 sm:$0xff]  }
 0x68a   :  { %15283 = vmatpush1.bf16.msra.mxu0 %v27862_v24  ;;  %15684 = vmatprep.subr.bf16.mxu1 %v27867_v26  ;;  %v27921_v24 = vld [vmem:[%s38772_s5 + $0x16d4] ss:$52 sps:$4 sm:$0xff]  }
 0x68b   :  { %15284 = vmatprep.subr.bf16.mxu0 %v27870_v33  ;;  %v27916_v26 = vld [vmem:[%s38772_s5 + $0x28] ss:$52 sps:$4 sm:$0xff]   ;;  %v27919_v33 = vld [vmem:[%s38772_s5 + $0x16d0] ss:$52 sps:$4 sm:$0xff]  }
 0x68d   :  { %15685 = vmatpush1.bf16.msra.mxu1 %v27865_v6  ;;  %v27924_v6 = vld [vmem:[%s38772_s5 + $0x94] ss:$52 sps:$4 sm:$0xff]  }
 0x68e   :  { %15285 = vmatpush1.bf16.msra.mxu0 %v27868_v52  ;;  %15686 = vmatprep.subr.bf16.mxu1 %v27873_v40  ;;  %v27927_v52 = vld [vmem:[%s38772_s5 + $0x173c] ss:$52 sps:$4 sm:$0xff]  }
 0x68f   :  { %15295 = vmatprep.subr.bf16.mxu0 %v27876_v27  ;;  %v27922_v40 = vld [vmem:[%s38772_s5 + $0x90] ss:$52 sps:$4 sm:$0xff]   ;;  %v27925_v27 = vld [vmem:[%s38772_s5 + $0x1738] ss:$52 sps:$4 sm:$0xff]  }
 0x691   :  { %15287 = vmatmul.mubr.bf16.vlgmr.msra.gmra.mrb[40].mxu0 %v32825_v46  ;;  %15687 = vmatpush1.bf16.msra.mxu1 %v27871_v41  ;;  %v27930_v41 = vld [vmem:[%s38772_s5 + $0xfc] ss:$52 sps:$4 sm:$0xff]  }
 0x692   :  { %15296 = vmatpush1.bf16.msra.mxu0 %v27874_v11  ;;  %15327 = vmatprep.mubr.bf16.mxu0 %v32837_v38  ;;  %v27933_v11 = vld [vmem:[%s38772_s5 + $0x17a4] ss:$52 sps:$4 sm:$0xff]  }
 0x693   :  { %15688 = vmatprep.subr.bf16.mxu1 %v27879_v43  ;;  %15297 = vmatprep.subr.bf16.mxu0 %v27882_v2  ;;  %v27928_v43 = vld [vmem:[%s38772_s5 + $0xf8] ss:$52 sps:$4 sm:$0xff]   ;;  %v27931_v2 = vld [vmem:[%s38772_s5 + $0x17a0] ss:$52 sps:$4 sm:$0xff]  }
 0x695   :  { %15689 = vmatpush1.bf16.msra.mxu1 %v27877_v8  ;;  %v27936_v8 = vld [vmem:[%s38772_s5 + $0x164] ss:$52 sps:$4 sm:$0xff]  }
 0x696   :  { %15298 = vmatpush1.bf16.msra.mxu0 %v27880_v42  ;;  %15690 = vmatprep.subr.bf16.mxu1 %v27885_v44  ;;  %v27939_v42 = vld [vmem:[%s38772_s5 + $0x180c] ss:$52 sps:$4 sm:$0xff]  }
 0x697   :  { %15299 = vmatprep.subr.bf16.mxu0 %v27888_v23  ;;  %v27934_v44 = vld [vmem:[%s38772_s5 + $0x160] ss:$52 sps:$4 sm:$0xff]   ;;  %v27937_v23 = vld [vmem:[%s38772_s5 + $0x1808] ss:$52 sps:$4 sm:$0xff]  }
 0x699   :  { %15691 = vmatpush1.bf16.msra.mxu1 %v27883_v47  ;;  %v27942_v47 = vld [vmem:[%s38772_s5 + $0x1cc] ss:$52 sps:$4 sm:$0xff]  }
 0x69a   :  { %15300 = vmatpush1.bf16.msra.mxu0 %v27886_v54  ;;  %15692 = vmatprep.subr.bf16.mxu1 %v27891_v56  ;;  %v27945_v54 = vld [vmem:[%s38772_s5 + $0x1874] ss:$52 sps:$4 sm:$0xff]  }
 0x69b   :  { %15301 = vmatprep.subr.bf16.mxu0 %v27894_v39  ;;  %v27940_v56 = vld [vmem:[%s38772_s5 + $0x1c8] ss:$52 sps:$4 sm:$0xff]   ;;  %v27943_v39 = vld [vmem:[%s38772_s5 + $0x1870] ss:$52 sps:$4 sm:$0xff]  }
 0x69d   :  { %15693 = vmatpush1.bf16.msra.mxu1 %v27889_v59  ;;  %v27948_v59 = vld [vmem:[%s38772_s5 + $0x234] ss:$52 sps:$4 sm:$0xff]  }
 0x69e   :  { %15302 = vmatpush1.bf16.msra.mxu0 %v27892_v53  ;;  %15694 = vmatprep.subr.bf16.mxu1 %v27897_v62  ;;  %v27951_v53 = vld [vmem:[%s38772_s5 + $0x18dc] ss:$52 sps:$4 sm:$0xff]  }
 0x69f   :  { %15303 = vmatprep.subr.bf16.mxu0 %v27900_v1  ;;  %v27946_v62 = vld [vmem:[%s38772_s5 + $0x230] ss:$52 sps:$4 sm:$0xff]   ;;  %v27949_v1 = vld [vmem:[%s38772_s5 + $0x18d8] ss:$52 sps:$4 sm:$0xff]  }
 0x6a1   :  { %15695 = vmatpush1.bf16.msra.mxu1 %v27895_v57  ;;  %v27954_v57 = vld [vmem:[%s38772_s5 + $0x29c] ss:$52 sps:$4 sm:$0xff]  }
 0x6a2   :  { %15304 = vmatpush1.bf16.msra.mxu0 %v27898_v28  ;;  %15705 = vmatprep.subr.bf16.mxu1 %v27906_v5  ;;  %v27957_v28 = vld [vmem:[%s38772_s5 + $0x1944] ss:$52 sps:$4 sm:$0xff]  }
 0x6a3   :  { %15305 = vmatprep.subr.bf16.mxu0 %v27903_v9  ;;  %v27952_v5 = vld [vmem:[%s38772_s5 + $0x298] ss:$52 sps:$4 sm:$0xff]   ;;  %v27955_v9 = vld [vmem:[%s38772_s5 + $0x1940] ss:$52 sps:$4 sm:$0xff]  }
 0x6a4   :  { %15697 = vmatmul.mubr.bf16.vlgmr.msra.gmra.mrb[28].mxu1 %v33452_v58  ;;  %v34703_v25 = vpop.f32.mrb[36].mxu0 }
 0x6a5   :  { %v34705_v60 = vpop.f32.mrb[37].mxu0  ;;  %15706 = vmatpush1.bf16.msra.mxu1 %v27904_v13  ;;  %15737 = vmatprep.mubr.bf16.mxu1 %v29728_v3  ;;  %v27960_v13 = vld [vmem:[%s38772_s5 + $0x304] ss:$52 sps:$4 sm:$0xff]  }
 0x6a6   :  { %15306 = vmatpush1.bf16.msra.mxu0 %v27901_v10  ;;  %v14882_v20 = vpop.f32.mrb[38].mxu0  ;;  %15707 = vmatprep.subr.bf16.mxu1 %v27912_v15  ;;  %v27963_v10 = vld [vmem:[%s38772_s5 + $0x19ac] ss:$52 sps:$4 sm:$0xff]  }
 0x6a7   :  { %v14883_v22 = vpop.f32.mrb[39].mxu0  ;;  %15307 = vmatprep.subr.bf16.mxu0 %v27909_v16  ;;  %v27958_v15 = vld [vmem:[%s38772_s5 + $0x300] ss:$52 sps:$4 sm:$0xff]   ;;  %v27961_v16 = vld [vmem:[%s38772_s5 + $0x19a8] ss:$52 sps:$4 sm:$0xff]  }
 0x6a8   :  { %v27969_v20 = vld [vmem:[%s38772_s5 + $0x1a14] ss:$52 sps:$4 sm:$0xff]  }
 0x6a9   :  { %15708 = vmatpush1.bf16.msra.mxu1 %v27910_v19  ;;  %v27966_v19 = vld [vmem:[%s38772_s5 + $0x36c] ss:$52 sps:$4 sm:$0xff]   ;;  %v27972_v22 = vld [vmem:[%s38772_s5 + $0x3d4] ss:$52 sps:$4 sm:$0xff]  }
 0x6aa   :  { %15308 = vmatpush1.bf16.msra.mxu0 %v27907_v61  ;;  %16033 = vmatprep.subr.bf16.mxu1 %v27918_v21  ;;  %v27964_v61 = vld [vmem:[%s38772_s5 + $0x368] ss:$52 sps:$4 sm:$0xff]   ;;  %v27967_v21 = vld [vmem:[%s38772_s5 + $0x1a10] ss:$52 sps:$4 sm:$0xff]  }
 0x6ab   :  { %15309 = vmatprep.subr.bf16.mxu0 %v27915_v4  ;;  %v27975_v4 = vld [vmem:[%s38772_s5 + $0x1a7c] ss:$52 sps:$4 sm:$0xff]  }
 0x6ae   :  { %15310 = vmatpush1.bf16.msra.mxu0 %v27913_v63  ;;  %v27970_v63 = vld [vmem:[%s38772_s5 + $0x3d0] ss:$52 sps:$4 sm:$0xff]  }
 0x6af   :  { %15311 = vmatprep.subr.bf16.mxu0 %v27921_v24  ;;  %v27973_v24 = vld [vmem:[%s38772_s5 + $0x1a78] ss:$52 sps:$4 sm:$0xff]  }
 0x6b0   :  { %24263 = vmatmul.mubr.msk.bf16.vlgmr.msra.gmra.mrb[28].mxu1 %vm14594_vm2, %v33519_v48 }
 0x6b1   :  { %16034 = vmatpush1.bf16.msra.mxu1 %v27916_v26  ;;  %16065 = vmatprep.mubr.bf16.mxu1 %v32201_v49  ;;  %v27978_v26 = vld [vmem:[%s38772_s5 + $0x43c] ss:$52 sps:$4 sm:$0xff]  }
 0x6b2   :  { %15312 = vmatpush1.bf16.msra.mxu0 %v27919_v33  ;;  %16035 = vmatprep.subr.bf16.mxu1 %v27924_v6  ;;  %v27981_v33 = vld [vmem:[%s38772_s5 + $0x1ae4] ss:$52 sps:$4 sm:$0xff]  }
 0x6b3   :  { %15313 = vmatprep.subr.bf16.mxu0 %v27927_v52  ;;  %v27976_v6 = vld [vmem:[%s38772_s5 + $0x438] ss:$52 sps:$4 sm:$0xff]   ;;  %v27979_v52 = vld [vmem:[%s38772_s5 + $0x1ae0] ss:$52 sps:$4 sm:$0xff]  }
 0x6b5   :  { %16036 = vmatpush1.bf16.msra.mxu1 %v27922_v40  ;;  %v27984_v40 = vld [vmem:[%s38772_s5 + $0x4a4] ss:$52 sps:$4 sm:$0xff]  }
 0x6b6   :  { %15314 = vmatpush1.bf16.msra.mxu0 %v27925_v27  ;;  %16037 = vmatprep.subr.bf16.mxu1 %v27930_v41  ;;  %v27987_v27 = vld [vmem:[%s38772_s5 + $0x1b4c] ss:$52 sps:$4 sm:$0xff]  }
 0x6b7   :  { %15315 = vmatprep.subr.bf16.mxu0 %v27933_v11  ;;  %v27982_v41 = vld [vmem:[%s38772_s5 + $0x4a0] ss:$52 sps:$4 sm:$0xff]   ;;  %v27985_v11 = vld [vmem:[%s38772_s5 + $0x1b48] ss:$52 sps:$4 sm:$0xff]  }
 0x6b9   :  { %16038 = vmatpush1.bf16.msra.mxu1 %v27928_v43  ;;  %v27990_v43 = vld [vmem:[%s38772_s5 + $0x50c] ss:$52 sps:$4 sm:$0xff]  }
 0x6ba   :  { %15316 = vmatpush1.bf16.msra.mxu0 %v27931_v2  ;;  %16039 = vmatprep.subr.bf16.mxu1 %v27936_v8  ;;  %v27993_v2 = vld [vmem:[%s38772_s5 + $0x1bb4] ss:$52 sps:$4 sm:$0xff]  }
 0x6bb   :  { %15317 = vmatprep.subr.bf16.mxu0 %v27939_v42  ;;  %v27988_v8 = vld [vmem:[%s38772_s5 + $0x508] ss:$52 sps:$4 sm:$0xff]   ;;  %v27991_v42 = vld [vmem:[%s38772_s5 + $0x1bb0] ss:$52 sps:$4 sm:$0xff]  }
 0x6bd   :  { %16040 = vmatpush1.bf16.msra.mxu1 %v27934_v44  ;;  %v27996_v44 = vld [vmem:[%s38772_s5 + $0x574] ss:$52 sps:$4 sm:$0xff]  }
 0x6be   :  { %15318 = vmatpush1.bf16.msra.mxu0 %v27937_v23  ;;  %16041 = vmatprep.subr.bf16.mxu1 %v27942_v47  ;;  %v27999_v23 = vld [vmem:[%s38772_s5 + $0x1c1c] ss:$52 sps:$4 sm:$0xff]  }
 0x6bf   :  { %15319 = vmatprep.subr.bf16.mxu0 %v27945_v54  ;;  %v27994_v47 = vld [vmem:[%s38772_s5 + $0x570] ss:$52 sps:$4 sm:$0xff]   ;;  %v27997_v54 = vld [vmem:[%s38772_s5 + $0x1c18] ss:$52 sps:$4 sm:$0xff]  }
 0x6c1   :  { %16042 = vmatpush1.bf16.msra.mxu1 %v27940_v56  ;;  %v28002_v56 = vld [vmem:[%s38772_s5 + $0x5dc] ss:$52 sps:$4 sm:$0xff]  }
 0x6c2   :  { %15320 = vmatpush1.bf16.msra.mxu0 %v27943_v39  ;;  %16043 = vmatprep.subr.bf16.mxu1 %v27948_v59  ;;  %v28005_v39 = vld [vmem:[%s38772_s5 + $0x1c84] ss:$52 sps:$4 sm:$0xff]  }
 0x6c3   :  { %15321 = vmatprep.subr.bf16.mxu0 %v27951_v53  ;;  %v28000_v59 = vld [vmem:[%s38772_s5 + $0x5d8] ss:$52 sps:$4 sm:$0xff]   ;;  %v28003_v53 = vld [vmem:[%s38772_s5 + $0x1c80] ss:$52 sps:$4 sm:$0xff]  }
 0x6c5   :  { %16044 = vmatpush1.bf16.msra.mxu1 %v27946_v62  ;;  %v28008_v62 = vld [vmem:[%s38772_s5 + $0x644] ss:$52 sps:$4 sm:$0xff]  }
 0x6c6   :  { %15322 = vmatpush1.bf16.msra.mxu0 %v27949_v1  ;;  %16045 = vmatprep.subr.bf16.mxu1 %v27954_v57  ;;  %v28011_v1 = vld [vmem:[%s38772_s5 + $0x1cec] ss:$52 sps:$4 sm:$0xff]  }
 0x6c7   :  { %15323 = vmatprep.subr.bf16.mxu0 %v27957_v28  ;;  %v28006_v57 = vld [vmem:[%s38772_s5 + $0x640] ss:$52 sps:$4 sm:$0xff]   ;;  %v28009_v28 = vld [vmem:[%s38772_s5 + $0x1ce8] ss:$52 sps:$4 sm:$0xff]  }
 0x6c9   :  { %16046 = vmatpush1.bf16.msra.mxu1 %v27952_v5  ;;  %v28014_v5 = vld [vmem:[%s38772_s5 + $0x6ac] ss:$52 sps:$4 sm:$0xff]  }
 0x6ca   :  { %15324 = vmatpush1.bf16.msra.mxu0 %v27955_v9  ;;  %16047 = vmatprep.subr.bf16.mxu1 %v27960_v13  ;;  %v28017_v9 = vld [vmem:[%s38772_s5 + $0x1d54] ss:$52 sps:$4 sm:$0xff]  }
 0x6cb   :  { %15325 = vmatprep.subr.bf16.mxu0 %v27963_v10  ;;  %v28012_v13 = vld [vmem:[%s38772_s5 + $0x6a8] ss:$52 sps:$4 sm:$0xff]   ;;  %v28015_v10 = vld [vmem:[%s38772_s5 + $0x1d50] ss:$52 sps:$4 sm:$0xff]  }
 0x6cd   :  { %16048 = vmatpush1.bf16.msra.mxu1 %v27958_v15  ;;  %v28020_v15 = vld [vmem:[%s38772_s5 + $0x714] ss:$52 sps:$4 sm:$0xff]  }
 0x6ce   :  { %15326 = vmatpush1.bf16.msra.mxu0 %v27961_v16  ;;  %16049 = vmatprep.subr.bf16.mxu1 %v27966_v19  ;;  %v28023_v16 = vld [vmem:[%s38772_s5 + $0x1dbc] ss:$52 sps:$4 sm:$0xff]  }
 0x6cf   :  { %15336 = vmatprep.subr.bf16.mxu0 %v27969_v20  ;;  %v28018_v19 = vld [vmem:[%s38772_s5 + $0x710] ss:$52 sps:$4 sm:$0xff]   ;;  %v28021_v20 = vld [vmem:[%s38772_s5 + $0x1db8] ss:$52 sps:$4 sm:$0xff]  }
 0x6d1   :  { %16050 = vmatpush1.bf16.msra.mxu1 %v27964_v61  ;;  %15328 = vmatmul.mubr.bf16.vlgmr.msra.gmra.mrb[40].mxu0 %v33035_v0  ;;  %v28026_v61 = vld [vmem:[%s38772_s5 + $0x77c] ss:$52 sps:$4 sm:$0xff]  }
 0x6d2   :  { %15337 = vmatpush1.bf16.msra.mxu0 %v27967_v21  ;;  %15368 = vmatprep.mubr.bf16.mxu0 %v33226_v14  ;;  %v28029_v21 = vld [vmem:[%s38772_s5 + $0x1e24] ss:$52 sps:$4 sm:$0xff]  }
 0x6d3   :  { %16051 = vmatprep.subr.bf16.mxu1 %v27972_v22  ;;  %15338 = vmatprep.subr.bf16.mxu0 %v27975_v4  ;;  %v28024_v22 = vld [vmem:[%s38772_s5 + $0x778] ss:$52 sps:$4 sm:$0xff]   ;;  %v28027_v4 = vld [vmem:[%s38772_s5 + $0x1e20] ss:$52 sps:$4 sm:$0xff]  }
 0x6d5   :  { %16052 = vmatpush1.bf16.msra.mxu1 %v27970_v63  ;;  %v28032_v63 = vld [vmem:[%s38772_s5 + $0x7e4] ss:$52 sps:$4 sm:$0xff]  }
 0x6d6   :  { %15339 = vmatpush1.bf16.msra.mxu0 %v27973_v24  ;;  %16053 = vmatprep.subr.bf16.mxu1 %v27978_v26  ;;  %v28035_v24 = vld [vmem:[%s38772_s5 + $0x1e8c] ss:$52 sps:$4 sm:$0xff]  }
 0x6d7   :  { %15340 = vmatprep.subr.bf16.mxu0 %v27981_v33  ;;  %v28030_v26 = vld [vmem:[%s38772_s5 + $0x7e0] ss:$52 sps:$4 sm:$0xff]   ;;  %v28033_v33 = vld [vmem:[%s38772_s5 + $0x1e88] ss:$52 sps:$4 sm:$0xff]  }
 0x6d9   :  { %16054 = vmatpush1.bf16.msra.mxu1 %v27976_v6  ;;  %v28038_v6 = vld [vmem:[%s38772_s5 + $0x84c] ss:$52 sps:$4 sm:$0xff]  }
 0x6da   :  { %15341 = vmatpush1.bf16.msra.mxu0 %v27979_v52  ;;  %16055 = vmatprep.subr.bf16.mxu1 %v27984_v40  ;;  %v28041_v52 = vld [vmem:[%s38772_s5 + $0x1ef4] ss:$52 sps:$4 sm:$0xff]  }
 0x6db   :  { %15342 = vmatprep.subr.bf16.mxu0 %v27987_v27  ;;  %v28036_v40 = vld [vmem:[%s38772_s5 + $0x848] ss:$52 sps:$4 sm:$0xff]   ;;  %v28039_v27 = vld [vmem:[%s38772_s5 + $0x1ef0] ss:$52 sps:$4 sm:$0xff]  }
 0x6dd   :  { %16056 = vmatpush1.bf16.msra.mxu1 %v27982_v41  ;;  %v28044_v41 = vld [vmem:[%s38772_s5 + $0x8b4] ss:$52 sps:$4 sm:$0xff]  }
 0x6de   :  { %15343 = vmatpush1.bf16.msra.mxu0 %v27985_v11  ;;  %16057 = vmatprep.subr.bf16.mxu1 %v27990_v43  ;;  %v28047_v11 = vld [vmem:[%s38772_s5 + $0x1f5c] ss:$52 sps:$4 sm:$0xff]  }
 0x6df   :  { %15344 = vmatprep.subr.bf16.mxu0 %v27993_v2  ;;  %v28042_v43 = vld [vmem:[%s38772_s5 + $0x8b0] ss:$52 sps:$4 sm:$0xff]   ;;  %v28045_v2 = vld [vmem:[%s38772_s5 + $0x1f58] ss:$52 sps:$4 sm:$0xff]  }
 0x6e1   :  { %16058 = vmatpush1.bf16.msra.mxu1 %v27988_v8  ;;  %v28050_v8 = vld [vmem:[%s38772_s5 + $0x91c] ss:$52 sps:$4 sm:$0xff]  }
 0x6e2   :  { %15345 = vmatpush1.bf16.msra.mxu0 %v27991_v42  ;;  %16059 = vmatprep.subr.bf16.mxu1 %v27996_v44  ;;  %v28053_v42 = vld [vmem:[%s38772_s5 + $0x1fc4] ss:$52 sps:$4 sm:$0xff]  }
 0x6e3   :  { %15346 = vmatprep.subr.bf16.mxu0 %v27999_v23  ;;  %v28048_v44 = vld [vmem:[%s38772_s5 + $0x918] ss:$52 sps:$4 sm:$0xff]   ;;  %v28051_v23 = vld [vmem:[%s38772_s5 + $0x1fc0] ss:$52 sps:$4 sm:$0xff]  }
 0x6e5   :  { %16060 = vmatpush1.bf16.msra.mxu1 %v27994_v47  ;;  %v28056_v47 = vld [vmem:[%s38772_s5 + $0x984] ss:$52 sps:$4 sm:$0xff]  }
 0x6e6   :  { %15347 = vmatpush1.bf16.msra.mxu0 %v27997_v54  ;;  %16061 = vmatprep.subr.bf16.mxu1 %v28002_v56  ;;  %v28059_v54 = vld [vmem:[%s38772_s5 + $0x202c] ss:$52 sps:$4 sm:$0xff]  }
 0x6e7   :  { %15348 = vmatprep.subr.bf16.mxu0 %v28005_v39  ;;  %v28054_v56 = vld [vmem:[%s38772_s5 + $0x980] ss:$52 sps:$4 sm:$0xff]   ;;  %v28057_v39 = vld [vmem:[%s38772_s5 + $0x2028] ss:$52 sps:$4 sm:$0xff]  }
 0x6e9   :  { %16062 = vmatpush1.bf16.msra.mxu1 %v28000_v59  ;;  %v28062_v59 = vld [vmem:[%s38772_s5 + $0x9ec] ss:$52 sps:$4 sm:$0xff]  }
 0x6ea   :  { %15349 = vmatpush1.bf16.msra.mxu0 %v28003_v53  ;;  %16063 = vmatprep.subr.bf16.mxu1 %v28008_v62  ;;  %v28065_v53 = vld [vmem:[%s38772_s5 + $0x2094] ss:$52 sps:$4 sm:$0xff]  }
 0x6eb   :  { %15350 = vmatprep.subr.bf16.mxu0 %v28011_v1  ;;  %v28060_v62 = vld [vmem:[%s38772_s5 + $0x9e8] ss:$52 sps:$4 sm:$0xff]   ;;  %v28063_v1 = vld [vmem:[%s38772_s5 + $0x2090] ss:$52 sps:$4 sm:$0xff]  }
 0x6ed   :  { %16064 = vmatpush1.bf16.msra.mxu1 %v28006_v57  ;;  %v28068_v57 = vld [vmem:[%s38772_s5 + $0xa54] ss:$52 sps:$4 sm:$0xff]  }
 0x6ee   :  { %15351 = vmatpush1.bf16.msra.mxu0 %v28009_v28  ;;  %16074 = vmatprep.subr.bf16.mxu1 %v28014_v5  ;;  %v28071_v28 = vld [vmem:[%s38772_s5 + $0x20fc] ss:$52 sps:$4 sm:$0xff]  }
 0x6ef   :  { %15352 = vmatprep.subr.bf16.mxu0 %v28017_v9  ;;  %v28066_v5 = vld [vmem:[%s38772_s5 + $0xa50] ss:$52 sps:$4 sm:$0xff]   ;;  %v28069_v9 = vld [vmem:[%s38772_s5 + $0x20f8] ss:$52 sps:$4 sm:$0xff]  }
 0x6f0   :  { %16066 = vmatmul.mubr.bf16.vlgmr.msra.gmra.mrb[32].mxu1 %v32407_v34 }
 0x6f1   :  { %16075 = vmatpush1.bf16.msra.mxu1 %v28012_v13  ;;  %16106 = vmatprep.mubr.bf16.mxu1 %v32409_v35  ;;  %v28074_v13 = vld [vmem:[%s38772_s5 + $0xabc] ss:$52 sps:$4 sm:$0xff]  }
 0x6f2   :  { %15353 = vmatpush1.bf16.msra.mxu0 %v28015_v10  ;;  %16076 = vmatprep.subr.bf16.mxu1 %v28020_v15  ;;  %v28077_v10 = vld [vmem:[%s38772_s5 + $0x2164] ss:$52 sps:$4 sm:$0xff]  }
 0x6f3   :  { %15354 = vmatprep.subr.bf16.mxu0 %v28023_v16  ;;  %v28072_v15 = vld [vmem:[%s38772_s5 + $0xab8] ss:$52 sps:$4 sm:$0xff]   ;;  %v28075_v16 = vld [vmem:[%s38772_s5 + $0x2160] ss:$52 sps:$4 sm:$0xff]  }
 0x6f5   :  { %16077 = vmatpush1.bf16.msra.mxu1 %v28018_v19  ;;  %v28080_v19 = vld [vmem:[%s38772_s5 + $0xb24] ss:$52 sps:$4 sm:$0xff]  }
 0x6f6   :  { %15355 = vmatpush1.bf16.msra.mxu0 %v28021_v20  ;;  %16078 = vmatprep.subr.bf16.mxu1 %v28026_v61  ;;  %v28083_v20 = vld [vmem:[%s38772_s5 + $0x21cc] ss:$52 sps:$4 sm:$0xff]  }
 0x6f7   :  { %15356 = vmatprep.subr.bf16.mxu0 %v28029_v21  ;;  %v28078_v61 = vld [vmem:[%s38772_s5 + $0xb20] ss:$52 sps:$4 sm:$0xff]   ;;  %v28081_v21 = vld [vmem:[%s38772_s5 + $0x21c8] ss:$52 sps:$4 sm:$0xff]  }
 0x6f9   :  { %16079 = vmatpush1.bf16.msra.mxu1 %v28024_v22  ;;  %v28086_v22 = vld [vmem:[%s38772_s5 + $0xb8c] ss:$52 sps:$4 sm:$0xff]  }
 0x6fa   :  { %15357 = vmatpush1.bf16.msra.mxu0 %v28027_v4  ;;  %16080 = vmatprep.subr.bf16.mxu1 %v28032_v63  ;;  %v28089_v4 = vld [vmem:[%s38772_s5 + $0x2234] ss:$52 sps:$4 sm:$0xff]  }
 0x6fb   :  { %15358 = vmatprep.subr.bf16.mxu0 %v28035_v24  ;;  %v28084_v63 = vld [vmem:[%s38772_s5 + $0xb88] ss:$52 sps:$4 sm:$0xff]   ;;  %v28087_v24 = vld [vmem:[%s38772_s5 + $0x2230] ss:$52 sps:$4 sm:$0xff]  }
 0x6fd   :  { %16081 = vmatpush1.bf16.msra.mxu1 %v28030_v26  ;;  %v28092_v26 = vld [vmem:[%s38772_s5 + $0xbf4] ss:$52 sps:$4 sm:$0xff]  }
 0x6fe   :  { %15359 = vmatpush1.bf16.msra.mxu0 %v28033_v33  ;;  %16082 = vmatprep.subr.bf16.mxu1 %v28038_v6  ;;  %v28095_v33 = vld [vmem:[%s38772_s5 + $0x229c] ss:$52 sps:$4 sm:$0xff]  }
 0x6ff   :  { %15360 = vmatprep.subr.bf16.mxu0 %v28041_v52  ;;  %v28090_v6 = vld [vmem:[%s38772_s5 + $0xbf0] ss:$52 sps:$4 sm:$0xff]   ;;  %v28093_v52 = vld [vmem:[%s38772_s5 + $0x2298] ss:$52 sps:$4 sm:$0xff]  }
 0x701   :  { %16083 = vmatpush1.bf16.msra.mxu1 %v28036_v40  ;;  %v28098_v40 = vld [vmem:[%s38772_s5 + $0xc5c] ss:$52 sps:$4 sm:$0xff]  }
 0x702   :  { %15361 = vmatpush1.bf16.msra.mxu0 %v28039_v27  ;;  %16084 = vmatprep.subr.bf16.mxu1 %v28044_v41  ;;  %v28101_v27 = vld [vmem:[%s38772_s5 + $0x2304] ss:$52 sps:$4 sm:$0xff]  }
 0x703   :  { %15362 = vmatprep.subr.bf16.mxu0 %v28047_v11  ;;  %v28096_v41 = vld [vmem:[%s38772_s5 + $0xc58] ss:$52 sps:$4 sm:$0xff]   ;;  %v28099_v11 = vld [vmem:[%s38772_s5 + $0x2300] ss:$52 sps:$4 sm:$0xff]  }
 0x705   :  { %16085 = vmatpush1.bf16.msra.mxu1 %v28042_v43  ;;  %v28104_v43 = vld [vmem:[%s38772_s5 + $0xcc4] ss:$52 sps:$4 sm:$0xff]  }
 0x706   :  { %15363 = vmatpush1.bf16.msra.mxu0 %v28045_v2  ;;  %16086 = vmatprep.subr.bf16.mxu1 %v28050_v8  ;;  %v28107_v2 = vld [vmem:[%s38772_s5 + $0x236c] ss:$52 sps:$4 sm:$0xff]  }
 0x707   :  { %15364 = vmatprep.subr.bf16.mxu0 %v28053_v42  ;;  %v28102_v8 = vld [vmem:[%s38772_s5 + $0xcc0] ss:$52 sps:$4 sm:$0xff]   ;;  %v28105_v42 = vld [vmem:[%s38772_s5 + $0x2368] ss:$52 sps:$4 sm:$0xff]  }
 0x709   :  { %16087 = vmatpush1.bf16.msra.mxu1 %v28048_v44  ;;  %v28110_v44 = vld [vmem:[%s38772_s5 + $0xd2c] ss:$52 sps:$4 sm:$0xff]  }
 0x70a   :  { %15365 = vmatpush1.bf16.msra.mxu0 %v28051_v23  ;;  %16088 = vmatprep.subr.bf16.mxu1 %v28056_v47  ;;  %v28113_v23 = vld [vmem:[%s38772_s5 + $0x23d4] ss:$52 sps:$4 sm:$0xff]  }
 0x70b   :  { %15366 = vmatprep.subr.bf16.mxu0 %v28059_v54  ;;  %v28108_v47 = vld [vmem:[%s38772_s5 + $0xd28] ss:$52 sps:$4 sm:$0xff]   ;;  %v28111_v54 = vld [vmem:[%s38772_s5 + $0x23d0] ss:$52 sps:$4 sm:$0xff]  }
 0x70d   :  { %16089 = vmatpush1.bf16.msra.mxu1 %v28054_v56  ;;  %v28116_v56 = vld [vmem:[%s38772_s5 + $0xd94] ss:$52 sps:$4 sm:$0xff]  }
 0x70e   :  { %15367 = vmatpush1.bf16.msra.mxu0 %v28057_v39  ;;  %16090 = vmatprep.subr.bf16.mxu1 %v28062_v59  ;;  %v28119_v39 = vld [vmem:[%s38772_s5 + $0x243c] ss:$52 sps:$4 sm:$0xff]  }
 0x70f   :  { %15377 = vmatprep.subr.bf16.mxu0 %v28065_v53  ;;  %v28114_v59 = vld [vmem:[%s38772_s5 + $0xd90] ss:$52 sps:$4 sm:$0xff]   ;;  %v28117_v53 = vld [vmem:[%s38772_s5 + $0x2438] ss:$52 sps:$4 sm:$0xff]  }
 0x711   :  { %16091 = vmatpush1.bf16.msra.mxu1 %v28060_v62  ;;  %15369 = vmatmul.mubr.bf16.vlgmr.msra.gmra.mrb[40].mxu0 %v33244_v51  ;;  %v28122_v62 = vld [vmem:[%s38772_s5 + $0xdfc] ss:$52 sps:$4 sm:$0xff]  }
 0x712   :  { %15378 = vmatpush1.bf16.msra.mxu0 %v28063_v1  ;;  %15409 = vmatprep.mubr.bf16.mxu0 %v33256_v50  ;;  %v28125_v1 = vld [vmem:[%s38772_s5 + $0x24a4] ss:$52 sps:$4 sm:$0xff]  }
 0x713   :  { %16092 = vmatprep.subr.bf16.mxu1 %v28068_v57  ;;  %15379 = vmatprep.subr.bf16.mxu0 %v28071_v28  ;;  %v28120_v57 = vld [vmem:[%s38772_s5 + $0xdf8] ss:$52 sps:$4 sm:$0xff]   ;;  %v28123_v28 = vld [vmem:[%s38772_s5 + $0x24a0] ss:$52 sps:$4 sm:$0xff]  }
 0x715   :  { %16093 = vmatpush1.bf16.msra.mxu1 %v28066_v5  ;;  %v28128_v5 = vld [vmem:[%s38772_s5 + $0xe64] ss:$52 sps:$4 sm:$0xff]  }
 0x716   :  { %15380 = vmatpush1.bf16.msra.mxu0 %v28069_v9  ;;  %16094 = vmatprep.subr.bf16.mxu1 %v28074_v13  ;;  %v28131_v9 = vld [vmem:[%s38772_s5 + $0x250c] ss:$52 sps:$4 sm:$0xff]  }
 0x717   :  { %15381 = vmatprep.subr.bf16.mxu0 %v28077_v10  ;;  %v28126_v13 = vld [vmem:[%s38772_s5 + $0xe60] ss:$52 sps:$4 sm:$0xff]   ;;  %v28129_v10 = vld [vmem:[%s38772_s5 + $0x2508] ss:$52 sps:$4 sm:$0xff]  }
 0x719   :  { %16095 = vmatpush1.bf16.msra.mxu1 %v28072_v15  ;;  %v28134_v15 = vld [vmem:[%s38772_s5 + $0xecc] ss:$52 sps:$4 sm:$0xff]  }
 0x71a   :  { %15382 = vmatpush1.bf16.msra.mxu0 %v28075_v16  ;;  %16096 = vmatprep.subr.bf16.mxu1 %v28080_v19  ;;  %v28137_v16 = vld [vmem:[%s38772_s5 + $0x2574] ss:$52 sps:$4 sm:$0xff]  }
 0x71b   :  { %15383 = vmatprep.subr.bf16.mxu0 %v28083_v20  ;;  %v28132_v19 = vld [vmem:[%s38772_s5 + $0xec8] ss:$52 sps:$4 sm:$0xff]   ;;  %v28135_v20 = vld [vmem:[%s38772_s5 + $0x2570] ss:$52 sps:$4 sm:$0xff]  }
 0x71d   :  { %16097 = vmatpush1.bf16.msra.mxu1 %v28078_v61  ;;  %v28140_v61 = vld [vmem:[%s38772_s5 + $0xf34] ss:$52 sps:$4 sm:$0xff]  }
 0x71e   :  { %15384 = vmatpush1.bf16.msra.mxu0 %v28081_v21  ;;  %16098 = vmatprep.subr.bf16.mxu1 %v28086_v22  ;;  %v28143_v21 = vld [vmem:[%s38772_s5 + $0x25dc] ss:$52 sps:$4 sm:$0xff]  }
 0x71f   :  { %15385 = vmatprep.subr.bf16.mxu0 %v28089_v4  ;;  %v28138_v22 = vld [vmem:[%s38772_s5 + $0xf30] ss:$52 sps:$4 sm:$0xff]   ;;  %v28141_v4 = vld [vmem:[%s38772_s5 + $0x25d8] ss:$52 sps:$4 sm:$0xff]  }
 0x721   :  { %16099 = vmatpush1.bf16.msra.mxu1 %v28084_v63  ;;  %v28146_v63 = vld [vmem:[%s38772_s5 + $0xf9c] ss:$52 sps:$4 sm:$0xff]  }
 0x722   :  { %15386 = vmatpush1.bf16.msra.mxu0 %v28087_v24  ;;  %16100 = vmatprep.subr.bf16.mxu1 %v28092_v26  ;;  %v28149_v24 = vld [vmem:[%s38772_s5 + $0x2644] ss:$52 sps:$4 sm:$0xff]  }
 0x723   :  { %15387 = vmatprep.subr.bf16.mxu0 %v28095_v33  ;;  %v28144_v26 = vld [vmem:[%s38772_s5 + $0xf98] ss:$52 sps:$4 sm:$0xff]   ;;  %v28147_v33 = vld [vmem:[%s38772_s5 + $0x2640] ss:$52 sps:$4 sm:$0xff]  }
 0x725   :  { %16101 = vmatpush1.bf16.msra.mxu1 %v28090_v6  ;;  %v28152_v6 = vld [vmem:[%s38772_s5 + $0x1004] ss:$52 sps:$4 sm:$0xff]  }
 0x726   :  { %15388 = vmatpush1.bf16.msra.mxu0 %v28093_v52  ;;  %16102 = vmatprep.subr.bf16.mxu1 %v28098_v40  ;;  %v28155_v52 = vld [vmem:[%s38772_s5 + $0x26ac] ss:$52 sps:$4 sm:$0xff]  }
 0x727   :  { %15389 = vmatprep.subr.bf16.mxu0 %v28101_v27  ;;  %v28150_v40 = vld [vmem:[%s38772_s5 + $0x1000] ss:$52 sps:$4 sm:$0xff]   ;;  %v28153_v27 = vld [vmem:[%s38772_s5 + $0x26a8] ss:$52 sps:$4 sm:$0xff]  }
 0x729   :  { %16103 = vmatpush1.bf16.msra.mxu1 %v28096_v41  ;;  %v28158_v41 = vld [vmem:[%s38772_s5 + $0x106c] ss:$52 sps:$4 sm:$0xff]  }
 0x72a   :  { %15390 = vmatpush1.bf16.msra.mxu0 %v28099_v11  ;;  %16104 = vmatprep.subr.bf16.mxu1 %v28104_v43  ;;  %v28161_v11 = vld [vmem:[%s38772_s5 + $0x2714] ss:$52 sps:$4 sm:$0xff]  }
 0x72b   :  { %15391 = vmatprep.subr.bf16.mxu0 %v28107_v2  ;;  %v28156_v43 = vld [vmem:[%s38772_s5 + $0x1068] ss:$52 sps:$4 sm:$0xff]   ;;  %v28159_v2 = vld [vmem:[%s38772_s5 + $0x2710] ss:$52 sps:$4 sm:$0xff]  }
 0x72d   :  { %16105 = vmatpush1.bf16.msra.mxu1 %v28102_v8  ;;  %v28164_v8 = vld [vmem:[%s38772_s5 + $0x10d4] ss:$52 sps:$4 sm:$0xff]  }
 0x72e   :  { %15392 = vmatpush1.bf16.msra.mxu0 %v28105_v42  ;;  %16115 = vmatprep.subr.bf16.mxu1 %v28110_v44  ;;  %v28167_v42 = vld [vmem:[%s38772_s5 + $0x277c] ss:$52 sps:$4 sm:$0xff]  }
 0x72f   :  { %15393 = vmatprep.subr.bf16.mxu0 %v28113_v23  ;;  %v28162_v44 = vld [vmem:[%s38772_s5 + $0x10d0] ss:$52 sps:$4 sm:$0xff]   ;;  %v28165_v23 = vld [vmem:[%s38772_s5 + $0x2778] ss:$52 sps:$4 sm:$0xff]  }
 0x730   :  { %16107 = vmatmul.mubr.bf16.vlgmr.msra.gmra.mrb[32].mxu1 %v32613_v17 }
 0x731   :  { %16116 = vmatpush1.bf16.msra.mxu1 %v28108_v47  ;;  %16147 = vmatprep.mubr.bf16.mxu1 %v32619_v18  ;;  %v28170_v47 = vld [vmem:[%s38772_s5 + $0x113c] ss:$52 sps:$4 sm:$0xff]  }
 0x732   :  { %15394 = vmatpush1.bf16.msra.mxu0 %v28111_v54  ;;  %16117 = vmatprep.subr.bf16.mxu1 %v28116_v56  ;;  %v28176_v54 = vld [vmem:[%s38772_s5 + $0x24] ss:$52 sps:$4 sm:$0xff]  }
 0x733   :  { %15395 = vmatprep.subr.bf16.mxu0 %v28119_v39  ;;  %v28168_v56 = vld [vmem:[%s38772_s5 + $0x1138] ss:$52 sps:$4 sm:$0xff]  }
 0x734   :  { %v28173_v39 = vld [vmem:[%s38772_s5 + $0x11a4] ss:$52 sps:$4 sm:$0xff]  }
 0x735   :  { %16118 = vmatpush1.bf16.msra.mxu1 %v28114_v59  ;;  %v28171_v59 = vld [vmem:[%s38772_s5 + $0x11a0] ss:$52 sps:$4 sm:$0xff]  }
 0x736   :  { %15396 = vmatpush1.bf16.msra.mxu0 %v28117_v53  ;;  %16119 = vmatprep.subr.bf16.mxu1 %v28122_v62  ;;  %v28174_v53 = vld [vmem:[%s38772_s5 + $0x20] ss:$52 sps:$4 sm:$0xff]  }
 0x737   :  { %15397 = vmatprep.subr.bf16.mxu0 %v28125_v1  ;;  %v28179_v62 = vld [vmem:[%s38772_s5 + $0x120c] ss:$52 sps:$4 sm:$0xff]  }
 0x738   :  { %v28182_v1 = vld [vmem:[%s38772_s5 + $0x8c] ss:$52 sps:$4 sm:$0xff]  }
 0x739   :  { %16120 = vmatpush1.bf16.msra.mxu1 %v28120_v57  ;;  %v28177_v57 = vld [vmem:[%s38772_s5 + $0x1208] ss:$52 sps:$4 sm:$0xff]  }
 0x73a   :  { %15398 = vmatpush1.bf16.msra.mxu0 %v28123_v28  ;;  %16121 = vmatprep.subr.bf16.mxu1 %v28128_v5  ;;  %v28180_v28 = vld [vmem:[%s38772_s5 + $0x88] ss:$52 sps:$4 sm:$0xff]  }
 0x73b   :  { %15399 = vmatprep.subr.bf16.mxu0 %v28131_v9  ;;  %v28185_v5 = vld [vmem:[%s38772_s5 + $0x1274] ss:$52 sps:$4 sm:$0xff]  }
 0x73c   :  { %v28188_v9 = vld [vmem:[%s38772_s5 + $0xf4] ss:$52 sps:$4 sm:$0xff]  }
 0x73d   :  { %16122 = vmatpush1.bf16.msra.mxu1 %v28126_v13  ;;  %v28183_v13 = vld [vmem:[%s38772_s5 + $0x1270] ss:$52 sps:$4 sm:$0xff]  }
 0x73e   :  { %15400 = vmatpush1.bf16.msra.mxu0 %v28129_v10  ;;  %16123 = vmatprep.subr.bf16.mxu1 %v28134_v15  ;;  %v28186_v10 = vld [vmem:[%s38772_s5 + $0xf0] ss:$52 sps:$4 sm:$0xff]  }
 0x73f   :  { %15401 = vmatprep.subr.bf16.mxu0 %v28137_v16  ;;  %v28191_v15 = vld [vmem:[%s38772_s5 + $0x12dc] ss:$52 sps:$4 sm:$0xff]  }
 0x740   :  { %v28194_v16 = vld [vmem:[%s38772_s5 + $0x15c] ss:$52 sps:$4 sm:$0xff]  }
 0x741   :  { %16124 = vmatpush1.bf16.msra.mxu1 %v28132_v19  ;;  %v28189_v19 = vld [vmem:[%s38772_s5 + $0x12d8] ss:$52 sps:$4 sm:$0xff]  }
 0x742   :  { %15402 = vmatpush1.bf16.msra.mxu0 %v28135_v20  ;;  %16125 = vmatprep.subr.bf16.mxu1 %v28140_v61  ;;  %v28192_v20 = vld [vmem:[%s38772_s5 + $0x158] ss:$52 sps:$4 sm:$0xff]  }
 0x743   :  { %15403 = vmatprep.subr.bf16.mxu0 %v28143_v21  ;;  %v28197_v61 = vld [vmem:[%s38772_s5 + $0x1344] ss:$52 sps:$4 sm:$0xff]  }
 0x744   :  { %v28200_v21 = vld [vmem:[%s38772_s5 + $0x1c4] ss:$52 sps:$4 sm:$0xff]  }
 0x745   :  { %16126 = vmatpush1.bf16.msra.mxu1 %v28138_v22  ;;  %v28195_v22 = vld [vmem:[%s38772_s5 + $0x1340] ss:$52 sps:$4 sm:$0xff]  }
 0x746   :  { %15404 = vmatpush1.bf16.msra.mxu0 %v28141_v4  ;;  %16127 = vmatprep.subr.bf16.mxu1 %v28146_v63  ;;  %v28198_v4 = vld [vmem:[%s38772_s5 + $0x1c0] ss:$52 sps:$4 sm:$0xff]  }
 0x747   :  { %15405 = vmatprep.subr.bf16.mxu0 %v28149_v24  ;;  %v28203_v63 = vld [vmem:[%s38772_s5 + $0x13ac] ss:$52 sps:$4 sm:$0xff]  }
 0x748   :  { %v28206_v24 = vld [vmem:[%s38772_s5 + $0x22c] ss:$52 sps:$4 sm:$0xff]  }
 0x749   :  { %16128 = vmatpush1.bf16.msra.mxu1 %v28144_v26  ;;  %v28201_v26 = vld [vmem:[%s38772_s5 + $0x13a8] ss:$52 sps:$4 sm:$0xff]  }
 0x74a   :  { %15406 = vmatpush1.bf16.msra.mxu0 %v28147_v33  ;;  %16129 = vmatprep.subr.bf16.mxu1 %v28152_v6  ;;  %v28204_v33 = vld [vmem:[%s38772_s5 + $0x228] ss:$52 sps:$4 sm:$0xff]  }
 0x74b   :  { %15407 = vmatprep.subr.bf16.mxu0 %v28155_v52  ;;  %v28209_v6 = vld [vmem:[%s38772_s5 + $0x1414] ss:$52 sps:$4 sm:$0xff]  }
 0x74c   :  { %v28212_v52 = vld [vmem:[%s38772_s5 + $0x294] ss:$52 sps:$4 sm:$0xff]  }
 0x74d   :  { %16130 = vmatpush1.bf16.msra.mxu1 %v28150_v40  ;;  %v28207_v40 = vld [vmem:[%s38772_s5 + $0x1410] ss:$52 sps:$4 sm:$0xff]  }
 0x74e   :  { %15408 = vmatpush1.bf16.msra.mxu0 %v28153_v27  ;;  %16131 = vmatprep.subr.bf16.mxu1 %v28158_v41  ;;  %v28210_v27 = vld [vmem:[%s38772_s5 + $0x290] ss:$52 sps:$4 sm:$0xff]  }
 0x74f   :  { %15418 = vmatprep.subr.bf16.mxu0 %v28161_v11  ;;  %v28215_v41 = vld [vmem:[%s38772_s5 + $0x147c] ss:$52 sps:$4 sm:$0xff]  }
 0x750   :  { %v28218_v11 = vld [vmem:[%s38772_s5 + $0x2fc] ss:$52 sps:$4 sm:$0xff]  }
 0x751   :  { %16132 = vmatpush1.bf16.msra.mxu1 %v28156_v43  ;;  %15410 = vmatmul.mubr.bf16.vlgmr.msra.gmra.mrb[40].mxu0 %v33452_v58  ;;  %v28213_v43 = vld [vmem:[%s38772_s5 + $0x1478] ss:$52 sps:$4 sm:$0xff]  }
 0x752   :  { %15419 = vmatpush1.bf16.msra.mxu0 %v28159_v2  ;;  %16133 = vmatprep.subr.bf16.mxu1 %v28164_v8  ;;  %v28216_v2 = vld [vmem:[%s38772_s5 + $0x2f8] ss:$52 sps:$4 sm:$0xff]  }
 0x753   :  { %15420 = vmatprep.subr.bf16.mxu0 %v28167_v42  ;;  %15450 = vmatprep.mubr.bf16.mxu0 %v29728_v3  ;;  %v28221_v8 = vld [vmem:[%s38772_s5 + $0x14e4] ss:$52 sps:$4 sm:$0xff]  }
 0x754   :  { %v28224_v42 = vld [vmem:[%s38772_s5 + $0x364] ss:$52 sps:$4 sm:$0xff]  }
 0x755   :  { %16134 = vmatpush1.bf16.msra.mxu1 %v28162_v44  ;;  %v28219_v44 = vld [vmem:[%s38772_s5 + $0x14e0] ss:$52 sps:$4 sm:$0xff]  }
 0x756   :  { %16135 = vmatprep.subr.bf16.mxu1 %v28170_v47  ;;  %15421 = vmatpush1.bf16.msra.mxu0 %v28165_v23  ;;  %v28222_v23 = vld [vmem:[%s38772_s5 + $0x360] ss:$52 sps:$4 sm:$0xff]  }
 0x757   :  { %15746 = vmatprep.subr.bf16.mxu0 %v28176_v54  ;;  %v28227_v47 = vld [vmem:[%s38772_s5 + $0x154c] ss:$52 sps:$4 sm:$0xff]  }
 0x758   :  { %v28230_v54 = vld [vmem:[%s38772_s5 + $0x3cc] ss:$52 sps:$4 sm:$0xff]  }
 0x759   :  { %16136 = vmatpush1.bf16.msra.mxu1 %v28168_v56  ;;  %v28225_v56 = vld [vmem:[%s38772_s5 + $0x1548] ss:$52 sps:$4 sm:$0xff]  }
 0x75a   :  { %16137 = vmatprep.subr.bf16.mxu1 %v28173_v39  ;;  %v28228_v39 = vld [vmem:[%s38772_s5 + $0x3c8] ss:$52 sps:$4 sm:$0xff]  }
 0x75d   :  { %16138 = vmatpush1.bf16.msra.mxu1 %v28171_v59  ;;  %24262 = vmatmul.mubr.msk.bf16.vlgmr.msra.gmra.mrb[40].mxu0 %vm14594_vm2, %v33519_v48  ;;  %v28233_v59 = vld [vmem:[%s38772_s5 + $0x15b4] ss:$52 sps:$4 sm:$0xff]  }
 0x75e   :  { %15747 = vmatpush1.bf16.msra.mxu0 %v28174_v53  ;;  %15778 = vmatprep.mubr.bf16.mxu0 %v32201_v49  ;;  %v28236_v53 = vld [vmem:[%s38772_s5 + $0x434] ss:$52 sps:$4 sm:$0xff]  }
 0x75f   :  { %16139 = vmatprep.subr.bf16.mxu1 %v28179_v62  ;;  %15748 = vmatprep.subr.bf16.mxu0 %v28182_v1  ;;  %v28231_v62 = vld [vmem:[%s38772_s5 + $0x15b0] ss:$52 sps:$4 sm:$0xff]  }
 0x760   :  { %v28234_v1 = vld [vmem:[%s38772_s5 + $0x430] ss:$52 sps:$4 sm:$0xff]  }
 0x761   :  { %16140 = vmatpush1.bf16.msra.mxu1 %v28177_v57  ;;  %v28239_v57 = vld [vmem:[%s38772_s5 + $0x161c] ss:$52 sps:$4 sm:$0xff]  }
 0x762   :  { %15749 = vmatpush1.bf16.msra.mxu0 %v28180_v28  ;;  %16141 = vmatprep.subr.bf16.mxu1 %v28185_v5  ;;  %v28242_v5 = vld [vmem:[%s38772_s5 + $0x49c] ss:$52 sps:$4 sm:$0xff]  }
 0x763   :  { %15750 = vmatprep.subr.bf16.mxu0 %v28188_v9 }
 0x765   :  { %16142 = vmatpush1.bf16.msra.mxu1 %v28183_v13 }
 0x766   :  { %15751 = vmatpush1.bf16.msra.mxu0 %v28186_v10  ;;  %16143 = vmatprep.subr.bf16.mxu1 %v28191_v15  ;;  %v28237_v10 = vld [vmem:[%s38772_s5 + $0x1618] ss:$52 sps:$4 sm:$0xff]  }
 0x767   :  { %15752 = vmatprep.subr.bf16.mxu0 %v28194_v16  ;;  %v28240_v16 = vld [vmem:[%s38772_s5 + $0x498] ss:$52 sps:$4 sm:$0xff]  }
 0x769   :  { %16144 = vmatpush1.bf16.msra.mxu1 %v28189_v19  ;;  %v28245_v19 = vld [vmem:[%s38772_s5 + $0x1684] ss:$52 sps:$4 sm:$0xff]  }
 0x76a   :  { %15753 = vmatpush1.bf16.msra.mxu0 %v28192_v20  ;;  %16145 = vmatprep.subr.bf16.mxu1 %v28197_v61  ;;  %v28248_v20 = vld [vmem:[%s38772_s5 + $0x504] ss:$52 sps:$4 sm:$0xff]   ;;  %v28243_v61 = vld [vmem:[%s38772_s5 + $0x1680] ss:$52 sps:$4 sm:$0xff]  }
 0x76b   :  { %15754 = vmatprep.subr.bf16.mxu0 %v28200_v21  ;;  %v28246_v21 = vld [vmem:[%s38772_s5 + $0x500] ss:$52 sps:$4 sm:$0xff]  }
 0x76d   :  { %16146 = vmatpush1.bf16.msra.mxu1 %v28195_v22  ;;  %v28251_v22 = vld [vmem:[%s38772_s5 + $0x16ec] ss:$52 sps:$4 sm:$0xff]  }
 0x76e   :  { %15755 = vmatpush1.bf16.msra.mxu0 %v28198_v4  ;;  %16156 = vmatprep.subr.bf16.mxu1 %v28203_v63  ;;  %v28254_v4 = vld [vmem:[%s38772_s5 + $0x56c] ss:$52 sps:$4 sm:$0xff]   ;;  %v28249_v63 = vld [vmem:[%s38772_s5 + $0x16e8] ss:$52 sps:$4 sm:$0xff]  }
 0x76f   :  { %15756 = vmatprep.subr.bf16.mxu0 %v28206_v24  ;;  %v28252_v24 = vld [vmem:[%s38772_s5 + $0x568] ss:$52 sps:$4 sm:$0xff]  }
 0x770   :  { %16148 = vmatmul.mubr.bf16.vlgmr.msra.gmra.mrb[32].mxu1 %v32825_v46 }
 0x771   :  { %16157 = vmatpush1.bf16.msra.mxu1 %v28201_v26  ;;  %16188 = vmatprep.mubr.bf16.mxu1 %v32837_v38  ;;  %v28257_v26 = vld [vmem:[%s38772_s5 + $0x1754] ss:$52 sps:$4 sm:$0xff]  }
 0x772   :  { %15757 = vmatpush1.bf16.msra.mxu0 %v28204_v33  ;;  %16158 = vmatprep.subr.bf16.mxu1 %v28209_v6  ;;  %v28260_v33 = vld [vmem:[%s38772_s5 + $0x5d4] ss:$52 sps:$4 sm:$0xff]   ;;  %v28255_v6 = vld [vmem:[%s38772_s5 + $0x1750] ss:$52 sps:$4 sm:$0xff]  }
 0x773   :  { %15758 = vmatprep.subr.bf16.mxu0 %v28212_v52  ;;  %v28258_v52 = vld [vmem:[%s38772_s5 + $0x5d0] ss:$52 sps:$4 sm:$0xff]  }
 0x775   :  { %16159 = vmatpush1.bf16.msra.mxu1 %v28207_v40  ;;  %v28263_v40 = vld [vmem:[%s38772_s5 + $0x17bc] ss:$52 sps:$4 sm:$0xff]  }
 0x776   :  { %15759 = vmatpush1.bf16.msra.mxu0 %v28210_v27  ;;  %16160 = vmatprep.subr.bf16.mxu1 %v28215_v41  ;;  %v28266_v27 = vld [vmem:[%s38772_s5 + $0x63c] ss:$52 sps:$4 sm:$0xff]   ;;  %v28261_v41 = vld [vmem:[%s38772_s5 + $0x17b8] ss:$52 sps:$4 sm:$0xff]  }
 0x777   :  { %15760 = vmatprep.subr.bf16.mxu0 %v28218_v11  ;;  %v28264_v11 = vld [vmem:[%s38772_s5 + $0x638] ss:$52 sps:$4 sm:$0xff]  }
 0x779   :  { %16161 = vmatpush1.bf16.msra.mxu1 %v28213_v43  ;;  %v28269_v43 = vld [vmem:[%s38772_s5 + $0x1824] ss:$52 sps:$4 sm:$0xff]  }
 0x77a   :  { %15761 = vmatpush1.bf16.msra.mxu0 %v28216_v2  ;;  %16162 = vmatprep.subr.bf16.mxu1 %v28221_v8  ;;  %v28272_v2 = vld [vmem:[%s38772_s5 + $0x6a4] ss:$52 sps:$4 sm:$0xff]   ;;  %v28267_v8 = vld [vmem:[%s38772_s5 + $0x1820] ss:$52 sps:$4 sm:$0xff]  }
 0x77b   :  { %15762 = vmatprep.subr.bf16.mxu0 %v28224_v42  ;;  %v28270_v42 = vld [vmem:[%s38772_s5 + $0x6a0] ss:$52 sps:$4 sm:$0xff]  }
 0x77d   :  { %16163 = vmatpush1.bf16.msra.mxu1 %v28219_v44  ;;  %v28275_v44 = vld [vmem:[%s38772_s5 + $0x188c] ss:$52 sps:$4 sm:$0xff]  }
 0x77e   :  { %15763 = vmatpush1.bf16.msra.mxu0 %v28222_v23  ;;  %16164 = vmatprep.subr.bf16.mxu1 %v28227_v47  ;;  %v28278_v23 = vld [vmem:[%s38772_s5 + $0x70c] ss:$52 sps:$4 sm:$0xff]   ;;  %v28273_v47 = vld [vmem:[%s38772_s5 + $0x1888] ss:$52 sps:$4 sm:$0xff]  }
 0x77f   :  { %15764 = vmatprep.subr.bf16.mxu0 %v28230_v54  ;;  %v28276_v54 = vld [vmem:[%s38772_s5 + $0x708] ss:$52 sps:$4 sm:$0xff]  }
 0x781   :  { %16165 = vmatpush1.bf16.msra.mxu1 %v28225_v56  ;;  %v28281_v56 = vld [vmem:[%s38772_s5 + $0x18f4] ss:$52 sps:$4 sm:$0xff]  }
 0x782   :  { %15765 = vmatpush1.bf16.msra.mxu0 %v28228_v39  ;;  %16166 = vmatprep.subr.bf16.mxu1 %v28233_v59  ;;  %v28284_v39 = vld [vmem:[%s38772_s5 + $0x774] ss:$52 sps:$4 sm:$0xff]   ;;  %v28279_v59 = vld [vmem:[%s38772_s5 + $0x18f0] ss:$52 sps:$4 sm:$0xff]  }
 0x783   :  { %v35383_v28 = vpop.f32.mrb[28].mxu1  ;;  %15766 = vmatprep.subr.bf16.mxu0 %v28236_v53  ;;  %v28282_v53 = vld [vmem:[%s38772_s5 + $0x770] ss:$52 sps:$4 sm:$0xff]  }
 0x784   :  { %v35388_v9 = vpop.f32.mrb[29].mxu1 }
 0x785   :  { %16167 = vmatpush1.bf16.msra.mxu1 %v28231_v62  ;;  %v15743_v13 = vpop.f32.mrb[30].mxu1  ;;  %v28287_v62 = vld [vmem:[%s38772_s5 + $0x195c] ss:$52 sps:$4 sm:$0xff]  }
 0x786   :  { %15767 = vmatpush1.bf16.msra.mxu0 %v28234_v1  ;;  %v15744_v15 = vpop.f32.mrb[31].mxu1  ;;  %16168 = vmatprep.subr.bf16.mxu1 %v28239_v57  ;;  %v28290_v1 = vld [vmem:[%s38772_s5 + $0x7dc] ss:$52 sps:$4 sm:$0xff]   ;;  %v28285_v57 = vld [vmem:[%s38772_s5 + $0x1958] ss:$52 sps:$4 sm:$0xff]  }
 0x787   :  { %15768 = vmatprep.subr.bf16.mxu0 %v28242_v5  ;;  %v28288_v5 = vld [vmem:[%s38772_s5 + $0x7d8] ss:$52 sps:$4 sm:$0xff]   ;;  %v28291_v15 = vld [vmem:[%s38772_s5 + $0x19c0] ss:$52 sps:$4 sm:$0xff]  }
 0x788   :  { %v28293_v13 = vld [vmem:[%s38772_s5 + $0x19c4] ss:$52 sps:$4 sm:$0xff]  }
 0x789   :  { %16169 = vmatpush1.bf16.msra.mxu1 %v28237_v10  ;;  %v28296_v10 = vld [vmem:[%s38772_s5 + $0x844] ss:$52 sps:$4 sm:$0xff]  }
 0x78a   :  { %15769 = vmatpush1.bf16.msra.mxu0 %v28240_v16  ;;  %16170 = vmatprep.subr.bf16.mxu1 %v28245_v19  ;;  %v28294_v16 = vld [vmem:[%s38772_s5 + $0x840] ss:$52 sps:$4 sm:$0xff]  }
 0x78b   :  { %15770 = vmatprep.subr.bf16.mxu0 %v28248_v20  ;;  %v28299_v19 = vld [vmem:[%s38772_s5 + $0x1a2c] ss:$52 sps:$4 sm:$0xff]  }
 0x78c   :  { %v28302_v20 = vld [vmem:[%s38772_s5 + $0x8ac] ss:$52 sps:$4 sm:$0xff]  }
 0x78d   :  { %16171 = vmatpush1.bf16.msra.mxu1 %v28243_v61  ;;  %v28297_v61 = vld [vmem:[%s38772_s5 + $0x1a28] ss:$52 sps:$4 sm:$0xff]  }
 0x78e   :  { %15771 = vmatpush1.bf16.msra.mxu0 %v28246_v21  ;;  %16172 = vmatprep.subr.bf16.mxu1 %v28251_v22  ;;  %v28300_v21 = vld [vmem:[%s38772_s5 + $0x8a8] ss:$52 sps:$4 sm:$0xff]  }
 0x78f   :  { %15772 = vmatprep.subr.bf16.mxu0 %v28254_v4  ;;  %v28305_v22 = vld [vmem:[%s38772_s5 + $0x1a94] ss:$52 sps:$4 sm:$0xff]  }
 0x790   :  { %v28308_v4 = vld [vmem:[%s38772_s5 + $0x914] ss:$52 sps:$4 sm:$0xff]  }
 0x791   :  { %16173 = vmatpush1.bf16.msra.mxu1 %v28249_v63  ;;  %v28303_v63 = vld [vmem:[%s38772_s5 + $0x1a90] ss:$52 sps:$4 sm:$0xff]  }
 0x792   :  { %15773 = vmatpush1.bf16.msra.mxu0 %v28252_v24  ;;  %16174 = vmatprep.subr.bf16.mxu1 %v28257_v26  ;;  %v28306_v24 = vld [vmem:[%s38772_s5 + $0x910] ss:$52 sps:$4 sm:$0xff]  }
 0x793   :  { %15774 = vmatprep.subr.bf16.mxu0 %v28260_v33  ;;  %v28311_v26 = vld [vmem:[%s38772_s5 + $0x1afc] ss:$52 sps:$4 sm:$0xff]  }
 0x794   :  { %v28314_v33 = vld [vmem:[%s38772_s5 + $0x97c] ss:$52 sps:$4 sm:$0xff]  }
 0x795   :  { %16175 = vmatpush1.bf16.msra.mxu1 %v28255_v6  ;;  %v28309_v6 = vld [vmem:[%s38772_s5 + $0x1af8] ss:$52 sps:$4 sm:$0xff]  }
 0x796   :  { %15775 = vmatpush1.bf16.msra.mxu0 %v28258_v52  ;;  %16176 = vmatprep.subr.bf16.mxu1 %v28263_v40  ;;  %v28312_v52 = vld [vmem:[%s38772_s5 + $0x978] ss:$52 sps:$4 sm:$0xff]  }
 0x797   :  { %15776 = vmatprep.subr.bf16.mxu0 %v28266_v27  ;;  %v28317_v40 = vld [vmem:[%s38772_s5 + $0x1b64] ss:$52 sps:$4 sm:$0xff]  }
 0x798   :  { %v28320_v27 = vld [vmem:[%s38772_s5 + $0x9e4] ss:$52 sps:$4 sm:$0xff]  }
 0x799   :  { %16177 = vmatpush1.bf16.msra.mxu1 %v28261_v41  ;;  %v28315_v41 = vld [vmem:[%s38772_s5 + $0x1b60] ss:$52 sps:$4 sm:$0xff]  }
 0x79a   :  { %15777 = vmatpush1.bf16.msra.mxu0 %v28264_v11  ;;  %16178 = vmatprep.subr.bf16.mxu1 %v28269_v43  ;;  %v28318_v11 = vld [vmem:[%s38772_s5 + $0x9e0] ss:$52 sps:$4 sm:$0xff]  }
 0x79b   :  { %15787 = vmatprep.subr.bf16.mxu0 %v28272_v2  ;;  %v28323_v43 = vld [vmem:[%s38772_s5 + $0x1bcc] ss:$52 sps:$4 sm:$0xff]  }
 0x79c   :  { %v28326_v2 = vld [vmem:[%s38772_s5 + $0xa4c] ss:$52 sps:$4 sm:$0xff]  }
 0x79d   :  { %15779 = vmatmul.mubr.bf16.vlgmr.msra.gmra.mrb[44].mxu0 %v32407_v34  ;;  %16179 = vmatpush1.bf16.msra.mxu1 %v28267_v8  ;;  %v28321_v8 = vld [vmem:[%s38772_s5 + $0x1bc8] ss:$52 sps:$4 sm:$0xff]  }
 0x79e   :  { %15788 = vmatpush1.bf16.msra.mxu0 %v28270_v42  ;;  %15819 = vmatprep.mubr.bf16.mxu0 %v32409_v35  ;;  %v28324_v42 = vld [vmem:[%s38772_s5 + $0xa48] ss:$52 sps:$4 sm:$0xff]  }
 0x79f   :  { %16180 = vmatprep.subr.bf16.mxu1 %v28275_v44  ;;  %15789 = vmatprep.subr.bf16.mxu0 %v28278_v23  ;;  %v28329_v44 = vld [vmem:[%s38772_s5 + $0x1c34] ss:$52 sps:$4 sm:$0xff]  }
 0x7a0   :  { %v28332_v23 = vld [vmem:[%s38772_s5 + $0xab4] ss:$52 sps:$4 sm:$0xff]  }
 0x7a1   :  { %16181 = vmatpush1.bf16.msra.mxu1 %v28273_v47  ;;  %v28327_v47 = vld [vmem:[%s38772_s5 + $0x1c30] ss:$52 sps:$4 sm:$0xff]  }
 0x7a2   :  { %15790 = vmatpush1.bf16.msra.mxu0 %v28276_v54  ;;  %16182 = vmatprep.subr.bf16.mxu1 %v28281_v56  ;;  %v28330_v54 = vld [vmem:[%s38772_s5 + $0xab0] ss:$52 sps:$4 sm:$0xff]  }
 0x7a3   :  { %15791 = vmatprep.subr.bf16.mxu0 %v28284_v39  ;;  %v28335_v56 = vld [vmem:[%s38772_s5 + $0x1c9c] ss:$52 sps:$4 sm:$0xff]  }
 0x7a4   :  { %v28338_v39 = vld [vmem:[%s38772_s5 + $0xb1c] ss:$52 sps:$4 sm:$0xff]  }
 0x7a5   :  { %16183 = vmatpush1.bf16.msra.mxu1 %v28279_v59  ;;  %v28333_v59 = vld [vmem:[%s38772_s5 + $0x1c98] ss:$52 sps:$4 sm:$0xff]  }
 0x7a6   :  { %15792 = vmatpush1.bf16.msra.mxu0 %v28282_v53  ;;  %16184 = vmatprep.subr.bf16.mxu1 %v28287_v62  ;;  %v28336_v53 = vld [vmem:[%s38772_s5 + $0xb18] ss:$52 sps:$4 sm:$0xff]  }
 0x7a7   :  { %15793 = vmatprep.subr.bf16.mxu0 %v28290_v1  ;;  %v28341_v62 = vld [vmem:[%s38772_s5 + $0x1d04] ss:$52 sps:$4 sm:$0xff]  }
 0x7a8   :  { %v28344_v1 = vld [vmem:[%s38772_s5 + $0xb84] ss:$52 sps:$4 sm:$0xff]  }
 0x7a9   :  { %16185 = vmatpush1.bf16.msra.mxu1 %v28285_v57  ;;  %v28339_v57 = vld [vmem:[%s38772_s5 + $0x1d00] ss:$52 sps:$4 sm:$0xff]  }
 0x7aa   :  { %15794 = vmatpush1.bf16.msra.mxu0 %v28288_v5  ;;  %16186 = vmatprep.subr.bf16.mxu1 %v28293_v13  ;;  %v28342_v5 = vld [vmem:[%s38772_s5 + $0xb80] ss:$52 sps:$4 sm:$0xff]  }
 0x7ab   :  { %15795 = vmatprep.subr.bf16.mxu0 %v28296_v10  ;;  %v28347_v13 = vld [vmem:[%s38772_s5 + $0x1d6c] ss:$52 sps:$4 sm:$0xff]  }
 0x7ac   :  { %v28350_v10 = vld [vmem:[%s38772_s5 + $0xbec] ss:$52 sps:$4 sm:$0xff]  }
 0x7ad   :  { %16187 = vmatpush1.bf16.msra.mxu1 %v28291_v15  ;;  %v28345_v15 = vld [vmem:[%s38772_s5 + $0x1d68] ss:$52 sps:$4 sm:$0xff]  }
 0x7ae   :  { %15796 = vmatpush1.bf16.msra.mxu0 %v28294_v16  ;;  %16197 = vmatprep.subr.bf16.mxu1 %v28299_v19  ;;  %v28348_v16 = vld [vmem:[%s38772_s5 + $0xbe8] ss:$52 sps:$4 sm:$0xff]  }
 0x7af   :  { %15797 = vmatprep.subr.bf16.mxu0 %v28302_v20  ;;  %v28353_v19 = vld [vmem:[%s38772_s5 + $0x1dd4] ss:$52 sps:$4 sm:$0xff]  }
 0x7b0   :  { %16189 = vmatmul.mubr.bf16.vlgmr.msra.gmra.mrb[32].mxu1 %v33035_v0  ;;  %v28356_v20 = vld [vmem:[%s38772_s5 + $0xc54] ss:$52 sps:$4 sm:$0xff]  }
 0x7b1   :  { %16198 = vmatpush1.bf16.msra.mxu1 %v28297_v61  ;;  %16229 = vmatprep.mubr.bf16.mxu1 %v33226_v14  ;;  %v28351_v61 = vld [vmem:[%s38772_s5 + $0x1dd0] ss:$52 sps:$4 sm:$0xff]  }
 0x7b2   :  { %15798 = vmatpush1.bf16.msra.mxu0 %v28300_v21  ;;  %16199 = vmatprep.subr.bf16.mxu1 %v28305_v22  ;;  %v28354_v21 = vld [vmem:[%s38772_s5 + $0xc50] ss:$52 sps:$4 sm:$0xff]  }
 0x7b3   :  { %15799 = vmatprep.subr.bf16.mxu0 %v28308_v4  ;;  %v28359_v22 = vld [vmem:[%s38772_s5 + $0x1e3c] ss:$52 sps:$4 sm:$0xff]  }
 0x7b4   :  { %v28362_v4 = vld [vmem:[%s38772_s5 + $0xcbc] ss:$52 sps:$4 sm:$0xff]  }
 0x7b5   :  { %16200 = vmatpush1.bf16.msra.mxu1 %v28303_v63  ;;  %v28357_v63 = vld [vmem:[%s38772_s5 + $0x1e38] ss:$52 sps:$4 sm:$0xff]  }
 0x7b6   :  { %15800 = vmatpush1.bf16.msra.mxu0 %v28306_v24  ;;  %16201 = vmatprep.subr.bf16.mxu1 %v28311_v26  ;;  %v28360_v24 = vld [vmem:[%s38772_s5 + $0xcb8] ss:$52 sps:$4 sm:$0xff]  }
 0x7b7   :  { %15801 = vmatprep.subr.bf16.mxu0 %v28314_v33  ;;  %v28365_v26 = vld [vmem:[%s38772_s5 + $0x1ea4] ss:$52 sps:$4 sm:$0xff]  }
 0x7b8   :  { %v28368_v33 = vld [vmem:[%s38772_s5 + $0xd24] ss:$52 sps:$4 sm:$0xff]  }
 0x7b9   :  { %16202 = vmatpush1.bf16.msra.mxu1 %v28309_v6  ;;  %v28363_v6 = vld [vmem:[%s38772_s5 + $0x1ea0] ss:$52 sps:$4 sm:$0xff]  }
 0x7ba   :  { %15802 = vmatpush1.bf16.msra.mxu0 %v28312_v52  ;;  %16203 = vmatprep.subr.bf16.mxu1 %v28317_v40  ;;  %v28366_v52 = vld [vmem:[%s38772_s5 + $0xd20] ss:$52 sps:$4 sm:$0xff]  }
 0x7bb   :  { %15803 = vmatprep.subr.bf16.mxu0 %v28320_v27  ;;  %v28371_v40 = vld [vmem:[%s38772_s5 + $0x1f0c] ss:$52 sps:$4 sm:$0xff]  }
 0x7bc   :  { %v28374_v27 = vld [vmem:[%s38772_s5 + $0xd8c] ss:$52 sps:$4 sm:$0xff]  }
 0x7bd   :  { %16204 = vmatpush1.bf16.msra.mxu1 %v28315_v41  ;;  %v28369_v41 = vld [vmem:[%s38772_s5 + $0x1f08] ss:$52 sps:$4 sm:$0xff]  }
 0x7be   :  { %15804 = vmatpush1.bf16.msra.mxu0 %v28318_v11  ;;  %16205 = vmatprep.subr.bf16.mxu1 %v28323_v43  ;;  %v28372_v11 = vld [vmem:[%s38772_s5 + $0xd88] ss:$52 sps:$4 sm:$0xff]  }
 0x7bf   :  { %15805 = vmatprep.subr.bf16.mxu0 %v28326_v2  ;;  %v28377_v43 = vld [vmem:[%s38772_s5 + $0x1f74] ss:$52 sps:$4 sm:$0xff]  }
 0x7c0   :  { %v28380_v2 = vld [vmem:[%s38772_s5 + $0xdf4] ss:$52 sps:$4 sm:$0xff]  }
 0x7c1   :  { %16206 = vmatpush1.bf16.msra.mxu1 %v28321_v8  ;;  %v28375_v8 = vld [vmem:[%s38772_s5 + $0x1f70] ss:$52 sps:$4 sm:$0xff]  }
 0x7c2   :  { %15806 = vmatpush1.bf16.msra.mxu0 %v28324_v42  ;;  %16207 = vmatprep.subr.bf16.mxu1 %v28329_v44  ;;  %v28378_v42 = vld [vmem:[%s38772_s5 + $0xdf0] ss:$52 sps:$4 sm:$0xff]  }
 0x7c3   :  { %15807 = vmatprep.subr.bf16.mxu0 %v28332_v23  ;;  %v28383_v44 = vld [vmem:[%s38772_s5 + $0x1fdc] ss:$52 sps:$4 sm:$0xff]  }
 0x7c4   :  { %v28386_v23 = vld [vmem:[%s38772_s5 + $0xe5c] ss:$52 sps:$4 sm:$0xff]  }
 0x7c5   :  { %16208 = vmatpush1.bf16.msra.mxu1 %v28327_v47  ;;  %v28381_v47 = vld [vmem:[%s38772_s5 + $0x1fd8] ss:$52 sps:$4 sm:$0xff]  }
 0x7c6   :  { %15808 = vmatpush1.bf16.msra.mxu0 %v28330_v54  ;;  %16209 = vmatprep.subr.bf16.mxu1 %v28335_v56  ;;  %v28384_v54 = vld [vmem:[%s38772_s5 + $0xe58] ss:$52 sps:$4 sm:$0xff]  }
 0x7c7   :  { %15809 = vmatprep.subr.bf16.mxu0 %v28338_v39  ;;  %v28389_v56 = vld [vmem:[%s38772_s5 + $0x2044] ss:$52 sps:$4 sm:$0xff]  }
 0x7c8   :  { %v28392_v39 = vld [vmem:[%s38772_s5 + $0xec4] ss:$52 sps:$4 sm:$0xff]  }
 0x7c9   :  { %16210 = vmatpush1.bf16.msra.mxu1 %v28333_v59  ;;  %v28387_v59 = vld [vmem:[%s38772_s5 + $0x2040] ss:$52 sps:$4 sm:$0xff]  }
 0x7ca   :  { %15810 = vmatpush1.bf16.msra.mxu0 %v28336_v53  ;;  %16211 = vmatprep.subr.bf16.mxu1 %v28341_v62  ;;  %v28390_v53 = vld [vmem:[%s38772_s5 + $0xec0] ss:$52 sps:$4 sm:$0xff]  }
 0x7cb   :  { %15811 = vmatprep.subr.bf16.mxu0 %v28344_v1  ;;  %v28395_v62 = vld [vmem:[%s38772_s5 + $0x20ac] ss:$52 sps:$4 sm:$0xff]  }
 0x7cc   :  { %v28398_v1 = vld [vmem:[%s38772_s5 + $0xf2c] ss:$52 sps:$4 sm:$0xff]  }
 0x7cd   :  { %16212 = vmatpush1.bf16.msra.mxu1 %v28339_v57  ;;  %v28393_v57 = vld [vmem:[%s38772_s5 + $0x20a8] ss:$52 sps:$4 sm:$0xff]  }
 0x7ce   :  { %15812 = vmatpush1.bf16.msra.mxu0 %v28342_v5  ;;  %16213 = vmatprep.subr.bf16.mxu1 %v28347_v13  ;;  %v28396_v5 = vld [vmem:[%s38772_s5 + $0xf28] ss:$52 sps:$4 sm:$0xff]  }
 0x7cf   :  { %15813 = vmatprep.subr.bf16.mxu0 %v28350_v10  ;;  %v28401_v13 = vld [vmem:[%s38772_s5 + $0x2114] ss:$52 sps:$4 sm:$0xff]  }
 0x7d0   :  { %v28404_v10 = vld [vmem:[%s38772_s5 + $0xf94] ss:$52 sps:$4 sm:$0xff]  }
 0x7d1   :  { %16214 = vmatpush1.bf16.msra.mxu1 %v28345_v15  ;;  %v28399_v15 = vld [vmem:[%s38772_s5 + $0x2110] ss:$52 sps:$4 sm:$0xff]  }
 0x7d2   :  { %15814 = vmatpush1.bf16.msra.mxu0 %v28348_v16  ;;  %16215 = vmatprep.subr.bf16.mxu1 %v28353_v19  ;;  %v28402_v16 = vld [vmem:[%s38772_s5 + $0xf90] ss:$52 sps:$4 sm:$0xff]  }
 0x7d3   :  { %15815 = vmatprep.subr.bf16.mxu0 %v28356_v20  ;;  %v28407_v19 = vld [vmem:[%s38772_s5 + $0x217c] ss:$52 sps:$4 sm:$0xff]  }
 0x7d4   :  { %v28410_v20 = vld [vmem:[%s38772_s5 + $0xffc] ss:$52 sps:$4 sm:$0xff]  }
 0x7d5   :  { %16216 = vmatpush1.bf16.msra.mxu1 %v28351_v61  ;;  %v28405_v61 = vld [vmem:[%s38772_s5 + $0x2178] ss:$52 sps:$4 sm:$0xff]  }
 0x7d6   :  { %15816 = vmatpush1.bf16.msra.mxu0 %v28354_v21  ;;  %16217 = vmatprep.subr.bf16.mxu1 %v28359_v22  ;;  %v28408_v21 = vld [vmem:[%s38772_s5 + $0xff8] ss:$52 sps:$4 sm:$0xff]  }
 0x7d7   :  { %15817 = vmatprep.subr.bf16.mxu0 %v28362_v4  ;;  %v28413_v22 = vld [vmem:[%s38772_s5 + $0x21e4] ss:$52 sps:$4 sm:$0xff]  }
 0x7d8   :  { %v28416_v4 = vld [vmem:[%s38772_s5 + $0x1064] ss:$52 sps:$4 sm:$0xff]  }
 0x7d9   :  { %16218 = vmatpush1.bf16.msra.mxu1 %v28357_v63  ;;  %v28411_v63 = vld [vmem:[%s38772_s5 + $0x21e0] ss:$52 sps:$4 sm:$0xff]  }
 0x7da   :  { %15818 = vmatpush1.bf16.msra.mxu0 %v28360_v24  ;;  %16219 = vmatprep.subr.bf16.mxu1 %v28365_v26  ;;  %v28414_v24 = vld [vmem:[%s38772_s5 + $0x1060] ss:$52 sps:$4 sm:$0xff]  }
 0x7db   :  { %15828 = vmatprep.subr.bf16.mxu0 %v28368_v33  ;;  %v28419_v26 = vld [vmem:[%s38772_s5 + $0x224c] ss:$52 sps:$4 sm:$0xff]  }
 0x7dc   :  { %v28422_v33 = vld [vmem:[%s38772_s5 + $0x10cc] ss:$52 sps:$4 sm:$0xff]  }
 0x7dd   :  { %15820 = vmatmul.mubr.bf16.vlgmr.msra.gmra.mrb[44].mxu0 %v32613_v17  ;;  %16220 = vmatpush1.bf16.msra.mxu1 %v28363_v6  ;;  %v28417_v6 = vld [vmem:[%s38772_s5 + $0x2248] ss:$52 sps:$4 sm:$0xff]  }
 0x7de   :  { %15829 = vmatpush1.bf16.msra.mxu0 %v28366_v52  ;;  %15860 = vmatprep.mubr.bf16.mxu0 %v32619_v18  ;;  %v28420_v52 = vld [vmem:[%s38772_s5 + $0x10c8] ss:$52 sps:$4 sm:$0xff]  }
 0x7df   :  { %16221 = vmatprep.subr.bf16.mxu1 %v28371_v40  ;;  %15830 = vmatprep.subr.bf16.mxu0 %v28374_v27  ;;  %v28425_v40 = vld [vmem:[%s38772_s5 + $0x22b4] ss:$52 sps:$4 sm:$0xff]  }
 0x7e0   :  { %v28428_v27 = vld [vmem:[%s38772_s5 + $0x1134] ss:$52 sps:$4 sm:$0xff]  }
 0x7e1   :  { %16222 = vmatpush1.bf16.msra.mxu1 %v28369_v41  ;;  %v28423_v41 = vld [vmem:[%s38772_s5 + $0x22b0] ss:$52 sps:$4 sm:$0xff]  }
 0x7e2   :  { %15831 = vmatpush1.bf16.msra.mxu0 %v28372_v11  ;;  %16223 = vmatprep.subr.bf16.mxu1 %v28377_v43  ;;  %v28426_v11 = vld [vmem:[%s38772_s5 + $0x1130] ss:$52 sps:$4 sm:$0xff]  }
 0x7e3   :  { %15832 = vmatprep.subr.bf16.mxu0 %v28380_v2  ;;  %v28431_v43 = vld [vmem:[%s38772_s5 + $0x231c] ss:$52 sps:$4 sm:$0xff]  }
 0x7e4   :  { %v28434_v2 = vld [vmem:[%s38772_s5 + $0x119c] ss:$52 sps:$4 sm:$0xff]  }
 0x7e5   :  { %16224 = vmatpush1.bf16.msra.mxu1 %v28375_v8  ;;  %v28429_v8 = vld [vmem:[%s38772_s5 + $0x2318] ss:$52 sps:$4 sm:$0xff]  }
 0x7e6   :  { %15833 = vmatpush1.bf16.msra.mxu0 %v28378_v42  ;;  %16225 = vmatprep.subr.bf16.mxu1 %v28383_v44  ;;  %v28432_v42 = vld [vmem:[%s38772_s5 + $0x1198] ss:$52 sps:$4 sm:$0xff]  }
 0x7e7   :  { %15834 = vmatprep.subr.bf16.mxu0 %v28386_v23  ;;  %v28437_v44 = vld [vmem:[%s38772_s5 + $0x2384] ss:$52 sps:$4 sm:$0xff]  }
 0x7e8   :  { %v28440_v23 = vld [vmem:[%s38772_s5 + $0x1204] ss:$52 sps:$4 sm:$0xff]  }
 0x7e9   :  { %16226 = vmatpush1.bf16.msra.mxu1 %v28381_v47  ;;  %v28435_v47 = vld [vmem:[%s38772_s5 + $0x2380] ss:$52 sps:$4 sm:$0xff]  }
 0x7ea   :  { %15835 = vmatpush1.bf16.msra.mxu0 %v28384_v54  ;;  %16227 = vmatprep.subr.bf16.mxu1 %v28389_v56  ;;  %v28438_v54 = vld [vmem:[%s38772_s5 + $0x1200] ss:$52 sps:$4 sm:$0xff]  }
 0x7eb   :  { %15836 = vmatprep.subr.bf16.mxu0 %v28392_v39  ;;  %v28443_v56 = vld [vmem:[%s38772_s5 + $0x23ec] ss:$52 sps:$4 sm:$0xff]  }
 0x7ec   :  { %v28446_v39 = vld [vmem:[%s38772_s5 + $0x126c] ss:$52 sps:$4 sm:$0xff]  }
 0x7ed   :  { %16228 = vmatpush1.bf16.msra.mxu1 %v28387_v59  ;;  %v28441_v59 = vld [vmem:[%s38772_s5 + $0x23e8] ss:$52 sps:$4 sm:$0xff]  }
 0x7ee   :  { %15837 = vmatpush1.bf16.msra.mxu0 %v28390_v53  ;;  %16238 = vmatprep.subr.bf16.mxu1 %v28395_v62  ;;  %v28444_v53 = vld [vmem:[%s38772_s5 + $0x1268] ss:$52 sps:$4 sm:$0xff]  }
 0x7ef   :  { %15838 = vmatprep.subr.bf16.mxu0 %v28398_v1  ;;  %v28449_v62 = vld [vmem:[%s38772_s5 + $0x2454] ss:$52 sps:$4 sm:$0xff]  }
 0x7f0   :  { %16230 = vmatmul.mubr.bf16.vlgmr.msra.gmra.mrb[32].mxu1 %v33244_v51  ;;  %v28452_v1 = vld [vmem:[%s38772_s5 + $0x12d4] ss:$52 sps:$4 sm:$0xff]  }
 0x7f1   :  { %16239 = vmatpush1.bf16.msra.mxu1 %v28393_v57  ;;  %16270 = vmatprep.mubr.bf16.mxu1 %v33256_v50  ;;  %v28447_v57 = vld [vmem:[%s38772_s5 + $0x2450] ss:$52 sps:$4 sm:$0xff]  }
 0x7f2   :  { %15839 = vmatpush1.bf16.msra.mxu0 %v28396_v5  ;;  %16240 = vmatprep.subr.bf16.mxu1 %v28401_v13  ;;  %v28450_v5 = vld [vmem:[%s38772_s5 + $0x12d0] ss:$52 sps:$4 sm:$0xff]  }
 0x7f3   :  { %15840 = vmatprep.subr.bf16.mxu0 %v28404_v10  ;;  %v28455_v13 = vld [vmem:[%s38772_s5 + $0x24bc] ss:$52 sps:$4 sm:$0xff]  }
 0x7f4   :  { %v28458_v10 = vld [vmem:[%s38772_s5 + $0x133c] ss:$52 sps:$4 sm:$0xff]  }
 0x7f5   :  { %16241 = vmatpush1.bf16.msra.mxu1 %v28399_v15  ;;  %v28453_v15 = vld [vmem:[%s38772_s5 + $0x24b8] ss:$52 sps:$4 sm:$0xff]  }
 0x7f6   :  { %15841 = vmatpush1.bf16.msra.mxu0 %v28402_v16  ;;  %16242 = vmatprep.subr.bf16.mxu1 %v28407_v19  ;;  %v28456_v16 = vld [vmem:[%s38772_s5 + $0x1338] ss:$52 sps:$4 sm:$0xff]  }
 0x7f7   :  { %15842 = vmatprep.subr.bf16.mxu0 %v28410_v20  ;;  %v28461_v19 = vld [vmem:[%s38772_s5 + $0x2524] ss:$52 sps:$4 sm:$0xff]  }
 0x7f8   :  { %v28464_v20 = vld [vmem:[%s38772_s5 + $0x13a4] ss:$52 sps:$4 sm:$0xff]  }
 0x7f9   :  { %16243 = vmatpush1.bf16.msra.mxu1 %v28405_v61  ;;  %v28459_v61 = vld [vmem:[%s38772_s5 + $0x2520] ss:$52 sps:$4 sm:$0xff]  }
 0x7fa   :  { %15843 = vmatpush1.bf16.msra.mxu0 %v28408_v21  ;;  %16244 = vmatprep.subr.bf16.mxu1 %v28413_v22  ;;  %v28462_v21 = vld [vmem:[%s38772_s5 + $0x13a0] ss:$52 sps:$4 sm:$0xff]  }
 0x7fb   :  { %15844 = vmatprep.subr.bf16.mxu0 %v28416_v4  ;;  %v28467_v22 = vld [vmem:[%s38772_s5 + $0x258c] ss:$52 sps:$4 sm:$0xff]  }
 0x7fc   :  { %v28470_v4 = vld [vmem:[%s38772_s5 + $0x140c] ss:$52 sps:$4 sm:$0xff]  }
 0x7fd   :  { %16245 = vmatpush1.bf16.msra.mxu1 %v28411_v63  ;;  %v28465_v63 = vld [vmem:[%s38772_s5 + $0x2588] ss:$52 sps:$4 sm:$0xff]  }
 0x7fe   :  { %15845 = vmatpush1.bf16.msra.mxu0 %v28414_v24  ;;  %16246 = vmatprep.subr.bf16.mxu1 %v28419_v26  ;;  %v28468_v24 = vld [vmem:[%s38772_s5 + $0x1408] ss:$52 sps:$4 sm:$0xff]  }
 0x7ff   :  { %15846 = vmatprep.subr.bf16.mxu0 %v28422_v33  ;;  %v28473_v26 = vld [vmem:[%s38772_s5 + $0x25f4] ss:$52 sps:$4 sm:$0xff]  }
 0x800   :  { %v28476_v33 = vld [vmem:[%s38772_s5 + $0x1474] ss:$52 sps:$4 sm:$0xff]  }
 0x801   :  { %16247 = vmatpush1.bf16.msra.mxu1 %v28417_v6  ;;  %v28471_v6 = vld [vmem:[%s38772_s5 + $0x25f0] ss:$52 sps:$4 sm:$0xff]  }
 0x802   :  { %15847 = vmatpush1.bf16.msra.mxu0 %v28420_v52  ;;  %16248 = vmatprep.subr.bf16.mxu1 %v28425_v40  ;;  %v28474_v52 = vld [vmem:[%s38772_s5 + $0x1470] ss:$52 sps:$4 sm:$0xff]  }
 0x803   :  { %15848 = vmatprep.subr.bf16.mxu0 %v28428_v27  ;;  %v28479_v40 = vld [vmem:[%s38772_s5 + $0x265c] ss:$52 sps:$4 sm:$0xff]  }
 0x804   :  { %v28482_v27 = vld [vmem:[%s38772_s5 + $0x14dc] ss:$52 sps:$4 sm:$0xff]  }
 0x805   :  { %16249 = vmatpush1.bf16.msra.mxu1 %v28423_v41  ;;  %v28477_v41 = vld [vmem:[%s38772_s5 + $0x2658] ss:$52 sps:$4 sm:$0xff]  }
 0x806   :  { %15849 = vmatpush1.bf16.msra.mxu0 %v28426_v11  ;;  %16250 = vmatprep.subr.bf16.mxu1 %v28431_v43  ;;  %v28480_v11 = vld [vmem:[%s38772_s5 + $0x14d8] ss:$52 sps:$4 sm:$0xff]  }
 0x807   :  { %15850 = vmatprep.subr.bf16.mxu0 %v28434_v2  ;;  %v28485_v43 = vld [vmem:[%s38772_s5 + $0x26c4] ss:$52 sps:$4 sm:$0xff]  }
 0x808   :  { %v28488_v2 = vld [vmem:[%s38772_s5 + $0x1544] ss:$52 sps:$4 sm:$0xff]  }
 0x809   :  { %16251 = vmatpush1.bf16.msra.mxu1 %v28429_v8  ;;  %v28483_v8 = vld [vmem:[%s38772_s5 + $0x26c0] ss:$52 sps:$4 sm:$0xff]  }
 0x80a   :  { %15851 = vmatpush1.bf16.msra.mxu0 %v28432_v42  ;;  %16252 = vmatprep.subr.bf16.mxu1 %v28437_v44  ;;  %v28486_v42 = vld [vmem:[%s38772_s5 + $0x1540] ss:$52 sps:$4 sm:$0xff]  }
 0x80b   :  { %15852 = vmatprep.subr.bf16.mxu0 %v28440_v23  ;;  %v28494_v44 = vld [vmem:[%s38772_s5 + $0x272c] ss:$52 sps:$4 sm:$0xff]  }
 0x80c   :  { %v28491_v23 = vld [vmem:[%s38772_s5 + $0x15ac] ss:$52 sps:$4 sm:$0xff]  }
 0x80d   :  { %16253 = vmatpush1.bf16.msra.mxu1 %v28435_v47  ;;  %v28489_v47 = vld [vmem:[%s38772_s5 + $0x15a8] ss:$52 sps:$4 sm:$0xff]  }
 0x80e   :  { %15853 = vmatpush1.bf16.msra.mxu0 %v28438_v54  ;;  %16254 = vmatprep.subr.bf16.mxu1 %v28443_v56  ;;  %v28492_v54 = vld [vmem:[%s38772_s5 + $0x2728] ss:$52 sps:$4 sm:$0xff]  }
 0x80f   :  { %15854 = vmatprep.subr.bf16.mxu0 %v28446_v39  ;;  %v28500_v56 = vld [vmem:[%s38772_s5 + $0x2794] ss:$52 sps:$4 sm:$0xff]  }
 0x810   :  { %v28497_v39 = vld [vmem:[%s38772_s5 + $0x1614] ss:$52 sps:$4 sm:$0xff]  }
 0x811   :  { %16255 = vmatpush1.bf16.msra.mxu1 %v28441_v59 }
 0x812   :  { %15855 = vmatpush1.bf16.msra.mxu0 %v28444_v53  ;;  %16256 = vmatprep.subr.bf16.mxu1 %v28449_v62  ;;  %v28495_v53 = vld [vmem:[%s38772_s5 + $0x1610] ss:$52 sps:$4 sm:$0xff]  }
 0x813   :  { %15856 = vmatprep.subr.bf16.mxu0 %v28452_v1  ;;  %v28498_v1 = vld [vmem:[%s38772_s5 + $0x2790] ss:$52 sps:$4 sm:$0xff]  }
 0x815   :  { %16257 = vmatpush1.bf16.msra.mxu1 %v28447_v57 }
 0x816   :  { %15857 = vmatpush1.bf16.msra.mxu0 %v28450_v5  ;;  %16258 = vmatprep.subr.bf16.mxu1 %v28455_v13  ;;  %v28504_v5 = vld [vmem:[%s38772_s5 + $0x9f0] ss:$52 sps:$4 sm:$0xff]  }
 0x817   :  { %15858 = vmatprep.subr.bf16.mxu0 %v28458_v10  ;;  %v28503_v10 = vld [vmem:[%s38772_s5 + $0x167c] ss:$52 sps:$4 sm:$0xff]  }
 0x819   :  { %16259 = vmatpush1.bf16.msra.mxu1 %v28453_v15  ;;  %v28501_v15 = vld [vmem:[%s38772_s5 + $0x1678] ss:$52 sps:$4 sm:$0xff]  }
 0x81a   :  { %15859 = vmatpush1.bf16.msra.mxu0 %v28456_v16  ;;  %16260 = vmatprep.subr.bf16.mxu1 %v28461_v19  ;;  %v28508_v16 = vld [vmem:[%s38772_s5 + $0x16e4] ss:$52 sps:$4 sm:$0xff]  }
 0x81b   :  { %15869 = vmatprep.subr.bf16.mxu0 %v28464_v20  ;;  %v28505_v19 = vld [vmem:[%s38772_s5 + $0x6b0] ss:$52 sps:$4 sm:$0xff]   ;;  %v28506_v20 = vld [vmem:[%s38772_s5 + $0x16e0] ss:$52 sps:$4 sm:$0xff]  }
 0x81d   :  { %15861 = vmatmul.mubr.bf16.vlgmr.msra.gmra.mrb[44].mxu0 %v32825_v46  ;;  %16261 = vmatpush1.bf16.msra.mxu1 %v28459_v61  ;;  %v28509_v61 = vld [vmem:[%s38772_s5 + $0xa58] ss:$52 sps:$4 sm:$0xff]  }
 0x81e   :  { %15870 = vmatpush1.bf16.msra.mxu0 %v28462_v21  ;;  %15901 = vmatprep.mubr.bf16.mxu0 %v32837_v38  ;;  %v28513_v21 = vld [vmem:[%s38772_s5 + $0x174c] ss:$52 sps:$4 sm:$0xff]  }
 0x81f   :  { %16262 = vmatprep.subr.bf16.mxu1 %v28467_v22  ;;  %15871 = vmatprep.subr.bf16.mxu0 %v28470_v4  ;;  %v28510_v22 = vld [vmem:[%s38772_s5 + $0x718] ss:$52 sps:$4 sm:$0xff]   ;;  %v28511_v4 = vld [vmem:[%s38772_s5 + $0x1748] ss:$52 sps:$4 sm:$0xff]  }
 0x821   :  { %16263 = vmatpush1.bf16.msra.mxu1 %v28465_v63  ;;  %v28514_v63 = vld [vmem:[%s38772_s5 + $0xac0] ss:$52 sps:$4 sm:$0xff]  }
 0x822   :  { %15872 = vmatpush1.bf16.msra.mxu0 %v28468_v24  ;;  %16264 = vmatprep.subr.bf16.mxu1 %v28473_v26  ;;  %v28518_v24 = vld [vmem:[%s38772_s5 + $0x17b4] ss:$52 sps:$4 sm:$0xff]  }
 0x823   :  { %15873 = vmatprep.subr.bf16.mxu0 %v28476_v33  ;;  %v28515_v26 = vld [vmem:[%s38772_s5 + $0x780] ss:$52 sps:$4 sm:$0xff]   ;;  %v28519_v33 = vld [vmem:[%s38772_s5 + $0xb28] ss:$52 sps:$4 sm:$0xff]  }
 0x825   :  { %16265 = vmatpush1.bf16.msra.mxu1 %v28471_v6  ;;  %v28523_v6 = vld [vmem:[%s38772_s5 + $0x181c] ss:$52 sps:$4 sm:$0xff]  }
 0x826   :  { %15874 = vmatpush1.bf16.msra.mxu0 %v28474_v52  ;;  %16266 = vmatprep.subr.bf16.mxu1 %v28479_v40  ;;  %v28520_v52 = vld [vmem:[%s38772_s5 + $0x7e8] ss:$52 sps:$4 sm:$0xff]   ;;  %v28521_v40 = vld [vmem:[%s38772_s5 + $0x1818] ss:$52 sps:$4 sm:$0xff]  }
 0x827   :  { %15875 = vmatprep.subr.bf16.mxu0 %v28482_v27  ;;  %v28524_v27 = vld [vmem:[%s38772_s5 + $0xb90] ss:$52 sps:$4 sm:$0xff]  }
 0x829   :  { %16267 = vmatpush1.bf16.msra.mxu1 %v28477_v41  ;;  %v28528_v41 = vld [vmem:[%s38772_s5 + $0x1884] ss:$52 sps:$4 sm:$0xff]  }
 0x82a   :  { %15876 = vmatpush1.bf16.msra.mxu0 %v28480_v11  ;;  %16268 = vmatprep.subr.bf16.mxu1 %v28485_v43  ;;  %v28525_v11 = vld [vmem:[%s38772_s5 + $0x850] ss:$52 sps:$4 sm:$0xff]   ;;  %v28526_v43 = vld [vmem:[%s38772_s5 + $0x1880] ss:$52 sps:$4 sm:$0xff]  }
 0x82b   :  { %15877 = vmatprep.subr.bf16.mxu0 %v28488_v2  ;;  %v28529_v2 = vld [vmem:[%s38772_s5 + $0xbf8] ss:$52 sps:$4 sm:$0xff]  }
 0x82d   :  { %16269 = vmatpush1.bf16.msra.mxu1 %v28483_v8  ;;  %v28533_v8 = vld [vmem:[%s38772_s5 + $0x18ec] ss:$52 sps:$4 sm:$0xff]  }
 0x82e   :  { %15878 = vmatpush1.bf16.msra.mxu0 %v28486_v42  ;;  %16279 = vmatprep.subr.bf16.mxu1 %v28494_v44  ;;  %v28530_v42 = vld [vmem:[%s38772_s5 + $0x8b8] ss:$52 sps:$4 sm:$0xff]   ;;  %v28531_v44 = vld [vmem:[%s38772_s5 + $0x18e8] ss:$52 sps:$4 sm:$0xff]  }
 0x82f   :  { %15879 = vmatprep.subr.bf16.mxu0 %v28491_v23  ;;  %v28534_v23 = vld [vmem:[%s38772_s5 + $0xc60] ss:$52 sps:$4 sm:$0xff]  }
 0x830   :  { %16271 = vmatmul.mubr.bf16.vlgmr.msra.gmra.mrb[32].mxu1 %v33452_v58  ;;  %v35917_v59 = vpop.f32.mrb[40].mxu0 }
 0x831   :  { %v35922_v62 = vpop.f32.mrb[41].mxu0  ;;  %16280 = vmatpush1.bf16.msra.mxu1 %v28492_v54  ;;  %16311 = vmatprep.mubr.bf16.mxu1 %v29728_v3  ;;  %v28535_v54 = vld [vmem:[%s38772_s5 + $0x920] ss:$52 sps:$4 sm:$0xff]  }
 0x832   :  { %15880 = vmatpush1.bf16.msra.mxu0 %v28489_v47  ;;  %v15456_v57 = vpop.f32.mrb[42].mxu0  ;;  %16281 = vmatprep.subr.bf16.mxu1 %v28500_v56  ;;  %v28538_v47 = vld [vmem:[%s38772_s5 + $0x1954] ss:$52 sps:$4 sm:$0xff]   ;;  %v28536_v56 = vld [vmem:[%s38772_s5 + $0x1950] ss:$52 sps:$4 sm:$0xff]  }
 0x833   :  { %v15457_v13 = vpop.f32.mrb[43].mxu0  ;;  %15881 = vmatprep.subr.bf16.mxu0 %v28497_v39  ;;  %v28539_v39 = vld [vmem:[%s38772_s5 + $0xcc8] ss:$52 sps:$4 sm:$0xff]   ;;  %v28541_v57 = vld [vmem:[%s38772_s5 + $0x19b8] ss:$52 sps:$4 sm:$0xff]  }
 0x834   :  { %v28548_v13 = vld [vmem:[%s38772_s5 + $0x1a24] ss:$52 sps:$4 sm:$0xff]  }
 0x835   :  { %16282 = vmatpush1.bf16.msra.mxu1 %v28498_v1  ;;  %v28540_v1 = vld [vmem:[%s38772_s5 + $0x988] ss:$52 sps:$4 sm:$0xff]  }
 0x836   :  { %15882 = vmatpush1.bf16.msra.mxu0 %v28495_v53  ;;  %25067 = vmatprep.subr.bf16.mxu1 %v28504_v5  ;;  %v28543_v53 = vld [vmem:[%s38772_s5 + $0x19bc] ss:$52 sps:$4 sm:$0xff]  }
 0x837   :  { %15883 = vmatprep.subr.bf16.mxu0 %v28503_v10  ;;  %v28544_v5 = vld [vmem:[%s38772_s5 + $0x16f0] ss:$52 sps:$4 sm:$0xff]  }
 0x838   :  { %v28545_v10 = vld [vmem:[%s38772_s5 + $0x13b0] ss:$52 sps:$4 sm:$0xff]  }
 0x83a   :  { %15884 = vmatpush1.bf16.msra.mxu0 %v28501_v15  ;;  %v28546_v15 = vld [vmem:[%s38772_s5 + $0x1a20] ss:$52 sps:$4 sm:$0xff]  }
 0x83b   :  { %15885 = vmatprep.subr.bf16.mxu0 %v28508_v16  ;;  %v28549_v16 = vld [vmem:[%s38772_s5 + $0x1758] ss:$52 sps:$4 sm:$0xff]  }
 0x83c   :  { %24265 = vmatmul.mubr.msk.bf16.vlgmr.msra.gmra.mrb[32].mxu1 %vm14594_vm2, %v33519_v48 }
 0x83d   :  { %25068 = vmatpush3.bf16.msra.mxu1 %v28505_v19  ;;  %16392 = vmatprep.mubr.bf16.mxu1 %v32409_v35  ;;  %v28516_v35 = vld [vmem:[%s38772_s5 + $0x17b0] ss:$52 sps:$4 sm:$0xff]   ;;  %v28550_v19 = vld [vmem:[%s38772_s5 + $0x1418] ss:$52 sps:$4 sm:$0xff]  }
 0x83e   :  { %15886 = vmatpush1.bf16.msra.mxu0 %v28506_v20  ;;  %25069 = vmatprep.subr.bf16.mxu1 %v28509_v61  ;;  %v28553_v20 = vld [vmem:[%s38772_s5 + $0x1a8c] ss:$52 sps:$4 sm:$0xff]   ;;  %v28551_v61 = vld [vmem:[%s38772_s5 + $0x1a88] ss:$52 sps:$4 sm:$0xff]  }
 0x83f   :  { %15887 = vmatprep.subr.bf16.mxu0 %v28513_v21  ;;  %v28554_v21 = vld [vmem:[%s38772_s5 + $0x17c0] ss:$52 sps:$4 sm:$0xff]  }
 0x841   :  { %25070 = vmatpush3.bf16.msra.mxu1 %v28510_v22  ;;  %v28556_v22 = vld [vmem:[%s38772_s5 + $0x1af0] ss:$52 sps:$4 sm:$0xff]  }
 0x842   :  { %15888 = vmatpush1.bf16.msra.mxu0 %v28511_v4  ;;  %25071 = vmatprep.subr.bf16.mxu1 %v28514_v63  ;;  %v28559_v4 = vld [vmem:[%s38772_s5 + $0x1828] ss:$52 sps:$4 sm:$0xff]  }
 0x843   :  { %15889 = vmatprep.subr.bf16.mxu0 %v28518_v24  ;;  %v28563_v63 = vld [vmem:[%s38772_s5 + $0x1b5c] ss:$52 sps:$4 sm:$0xff]  }
 0x844   :  { %v28560_v24 = vld [vmem:[%s38772_s5 + $0x14e8] ss:$52 sps:$4 sm:$0xff]  }
 0x845   :  { %25072 = vmatpush3.bf16.msra.mxu1 %v28515_v26  ;;  %v28561_v26 = vld [vmem:[%s38772_s5 + $0x1b58] ss:$52 sps:$4 sm:$0xff]  }
 0x846   :  { %15890 = vmatpush1.bf16.msra.mxu0 %v28516_v35  ;;  %25073 = vmatprep.subr.bf16.mxu1 %v28519_v33  ;;  %v28564_v35 = vld [vmem:[%s38772_s5 + $0x1890] ss:$52 sps:$4 sm:$0xff]  }
 0x847   :  { %15891 = vmatprep.subr.bf16.mxu0 %v28523_v6  ;;  %v28568_v33 = vld [vmem:[%s38772_s5 + $0x1bc4] ss:$52 sps:$4 sm:$0xff]  }
 0x848   :  { %v28565_v6 = vld [vmem:[%s38772_s5 + $0x1550] ss:$52 sps:$4 sm:$0xff]  }
 0x849   :  { %25074 = vmatpush3.bf16.msra.mxu1 %v28520_v52  ;;  %v28569_v52 = vld [vmem:[%s38772_s5 + $0x18f8] ss:$52 sps:$4 sm:$0xff]  }
 0x84a   :  { %15892 = vmatpush1.bf16.msra.mxu0 %v28521_v40  ;;  %25075 = vmatprep.subr.bf16.mxu1 %v28524_v27  ;;  %v28566_v40 = vld [vmem:[%s38772_s5 + $0x1bc0] ss:$52 sps:$4 sm:$0xff]   ;;  %v28570_v27 = vld [vmem:[%s38772_s5 + $0x15b8] ss:$52 sps:$4 sm:$0xff]  }
 0x84b   :  { %15893 = vmatprep.subr.bf16.mxu0 %v28528_v41  ;;  %v28573_v41 = vld [vmem:[%s38772_s5 + $0x1c2c] ss:$52 sps:$4 sm:$0xff]  }
 0x84d   :  { %25076 = vmatpush3.bf16.msra.mxu1 %v28525_v11  ;;  %v28574_v11 = vld [vmem:[%s38772_s5 + $0x1960] ss:$52 sps:$4 sm:$0xff]  }
 0x84e   :  { %15894 = vmatpush1.bf16.msra.mxu0 %v28526_v43  ;;  %25077 = vmatprep.subr.bf16.mxu1 %v28529_v2  ;;  %v28571_v43 = vld [vmem:[%s38772_s5 + $0x1c28] ss:$52 sps:$4 sm:$0xff]   ;;  %v28575_v2 = vld [vmem:[%s38772_s5 + $0x1620] ss:$52 sps:$4 sm:$0xff]  }
 0x84f   :  { %15895 = vmatprep.subr.bf16.mxu0 %v28533_v8  ;;  %v28578_v8 = vld [vmem:[%s38772_s5 + $0x1c94] ss:$52 sps:$4 sm:$0xff]  }
 0x851   :  { %25078 = vmatpush3.bf16.msra.mxu1 %v28530_v42  ;;  %v28579_v42 = vld [vmem:[%s38772_s5 + $0x19c8] ss:$52 sps:$4 sm:$0xff]  }
 0x852   :  { %15896 = vmatpush1.bf16.msra.mxu0 %v28531_v44  ;;  %25079 = vmatprep.subr.bf16.mxu1 %v28534_v23  ;;  %v28576_v44 = vld [vmem:[%s38772_s5 + $0x1c90] ss:$52 sps:$4 sm:$0xff]   ;;  %v28580_v23 = vld [vmem:[%s38772_s5 + $0x1688] ss:$52 sps:$4 sm:$0xff]  }
 0x853   :  { %15897 = vmatprep.subr.bf16.mxu0 %v28538_v47  ;;  %v28583_v47 = vld [vmem:[%s38772_s5 + $0x1cfc] ss:$52 sps:$4 sm:$0xff]  }
 0x855   :  { %25080 = vmatpush3.bf16.msra.mxu1 %v28535_v54  ;;  %v28584_v54 = vld [vmem:[%s38772_s5 + $0x23f0] ss:$52 sps:$4 sm:$0xff]  }
 0x856   :  { %15898 = vmatpush1.bf16.msra.mxu0 %v28536_v56  ;;  %25081 = vmatprep.subr.bf16.mxu1 %v28539_v39  ;;  %v28581_v56 = vld [vmem:[%s38772_s5 + $0x1cf8] ss:$52 sps:$4 sm:$0xff]   ;;  %v28585_v39 = vld [vmem:[%s38772_s5 + $0x20b0] ss:$52 sps:$4 sm:$0xff]  }
 0x857   :  { %15899 = vmatprep.subr.bf16.mxu0 %v28543_v53  ;;  %v28588_v53 = vld [vmem:[%s38772_s5 + $0x1d64] ss:$52 sps:$4 sm:$0xff]  }
 0x859   :  { %25082 = vmatpush3.bf16.msra.mxu1 %v28540_v1  ;;  %v28589_v1 = vld [vmem:[%s38772_s5 + $0x2458] ss:$52 sps:$4 sm:$0xff]  }
 0x85a   :  { %15900 = vmatpush1.bf16.msra.mxu0 %v28541_v57  ;;  %25111 = vmatprep.subr.bf16.mxu1 %v28544_v5  ;;  %v28586_v57 = vld [vmem:[%s38772_s5 + $0x1d60] ss:$52 sps:$4 sm:$0xff]   ;;  %v28590_v5 = vld [vmem:[%s38772_s5 + $0x2118] ss:$52 sps:$4 sm:$0xff]  }
 0x85b   :  { %15910 = vmatprep.subr.bf16.mxu0 %v28548_v13  ;;  %v28593_v13 = vld [vmem:[%s38772_s5 + $0x1dcc] ss:$52 sps:$4 sm:$0xff]  }
 0x85c   :  { %16393 = vmatmul.mubr.bf16.vlgmr.msra.gmra.mrb[36].mxu1 %v32613_v17  ;;  %v28558_v17 = vld [vmem:[%s38772_s5 + $0x1af4] ss:$52 sps:$4 sm:$0xff]  }
 0x85d   :  { %25112 = vmatpush3.bf16.msra.mxu1 %v28545_v10  ;;  %16472 = vmatprep.mubr.bf16.mxu1 %v32837_v38  ;;  %v28555_v38 = vld [vmem:[%s38772_s5 + $0x1480] ss:$52 sps:$4 sm:$0xff]  }
 0x85e   :  { %15902 = vmatmul.mubr.bf16.vlgmr.msra.gmra.mrb[44].mxu0 %v33035_v0  ;;  %25113 = vmatprep.subr.bf16.mxu1 %v28549_v16  ;;  %v28594_v10 = vld [vmem:[%s38772_s5 + $0x24c0] ss:$52 sps:$4 sm:$0xff]  }
 0x85f   :  { %15911 = vmatpush1.bf16.msra.mxu0 %v28546_v15  ;;  %15942 = vmatprep.mubr.bf16.mxu0 %v33226_v14  ;;  %v28591_v15 = vld [vmem:[%s38772_s5 + $0x1dc8] ss:$52 sps:$4 sm:$0xff]   ;;  %v28595_v16 = vld [vmem:[%s38772_s5 + $0x2180] ss:$52 sps:$4 sm:$0xff]  }
 0x860   :  { %15912 = vmatprep.subr.bf16.mxu0 %v28553_v20  ;;  %v28596_v20 = vld [vmem:[%s38772_s5 + $0x1e30] ss:$52 sps:$4 sm:$0xff]  }
 0x861   :  { %25114 = vmatpush3.bf16.msra.mxu1 %v28550_v19  ;;  %v28599_v19 = vld [vmem:[%s38772_s5 + $0x2528] ss:$52 sps:$4 sm:$0xff]  }
 0x862   :  { %25115 = vmatprep.subr.bf16.mxu1 %v28554_v21  ;;  %v28603_v21 = vld [vmem:[%s38772_s5 + $0x1e9c] ss:$52 sps:$4 sm:$0xff]  }
 0x863   :  { %15913 = vmatpush1.bf16.msra.mxu0 %v28551_v61  ;;  %v28600_v61 = vld [vmem:[%s38772_s5 + $0x21e8] ss:$52 sps:$4 sm:$0xff]  }
 0x864   :  { %15914 = vmatprep.subr.bf16.mxu0 %v28558_v17  ;;  %v28604_v17 = vld [vmem:[%s38772_s5 + $0x2590] ss:$52 sps:$4 sm:$0xff]  }
 0x865   :  { %25116 = vmatpush3.bf16.msra.mxu1 %v28555_v38  ;;  %v28601_v38 = vld [vmem:[%s38772_s5 + $0x1e98] ss:$52 sps:$4 sm:$0xff]  }
 0x866   :  { %25117 = vmatprep.subr.bf16.mxu1 %v28559_v4  ;;  %v28608_v4 = vld [vmem:[%s38772_s5 + $0x1f04] ss:$52 sps:$4 sm:$0xff]  }
 0x867   :  { %15915 = vmatpush1.bf16.msra.mxu0 %v28556_v22  ;;  %v28605_v22 = vld [vmem:[%s38772_s5 + $0x2250] ss:$52 sps:$4 sm:$0xff]  }
 0x868   :  { %15916 = vmatprep.subr.bf16.mxu0 %v28563_v63  ;;  %v28609_v63 = vld [vmem:[%s38772_s5 + $0x25f8] ss:$52 sps:$4 sm:$0xff]  }
 0x869   :  { %25118 = vmatpush3.bf16.msra.mxu1 %v28560_v24  ;;  %v36198_v24 = vld [vmem:[%s38774_s6] sm:$0xff] }
 0x86a   :  { %25119 = vmatprep.subr.bf16.mxu1 %v28564_v35  ;;  %v28610_v35 = vld [vmem:[%s38772_s5 + $0x22b8] ss:$52 sps:$4 sm:$0xff]  }
 0x86b   :  { %15917 = vmatpush1.bf16.msra.mxu0 %v28561_v26  ;;  %v28606_v26 = vld [vmem:[%s38772_s5 + $0x1f00] ss:$52 sps:$4 sm:$0xff]  }
 0x86c   :  { %15918 = vmatprep.subr.bf16.mxu0 %v28568_v33  ;;  %v28613_v33 = vld [vmem:[%s38772_s5 + $0x1f6c] ss:$52 sps:$4 sm:$0xff]  }
 0x86d   :  { %25120 = vmatpush3.bf16.msra.mxu1 %v28565_v6  ;;  %v28614_v6 = vld [vmem:[%s38772_s5 + $0x2660] ss:$52 sps:$4 sm:$0xff]  }
 0x86e   :  { %25121 = vmatprep.subr.bf16.mxu1 %v28569_v52  ;;  %v8068_v52 = vrot.slane %v36198_v24, %v30036_v31 }
 0x86f   :  { %15919 = vmatpush1.bf16.msra.mxu0 %v28566_v40  ;;  %v28611_v40 = vld [vmem:[%s38772_s5 + $0x1f68] ss:$52 sps:$4 sm:$0xff]  }
 0x870   :  { %15920 = vmatprep.subr.bf16.mxu0 %v28573_v41  ;;  %v28618_v41 = vld [vmem:[%s38772_s5 + $0x1fd4] ss:$52 sps:$4 sm:$0xff]  }
 0x871   :  { %25122 = vmatpush3.bf16.msra.mxu1 %v28570_v27  ;;  %v28615_v27 = vld [vmem:[%s38772_s5 + $0x2320] ss:$52 sps:$4 sm:$0xff]  }
 0x872   :  { %25123 = vmatprep.subr.bf16.mxu1 %v28574_v11  ;;  %v28619_v11 = vld [vmem:[%s38772_s5 + $0x26c8] ss:$52 sps:$4 sm:$0xff]  }
 0x873   :  { %15921 = vmatpush1.bf16.msra.mxu0 %v28571_v43  ;;  %v25346_v43 = vadd.f32 %v34705_v60, %v8068_v52  ;;  %v28626_v60 = vld [vmem:[%s38773_s7 + $0x4] ss:$28 sps:$4 sm:$0xff]   ;;  %v28668_v52 = vld [vmem:[%s38773_s7 + $0x18c] ss:$28 sps:$4 sm:$0xff]  }
 0x874   :  { %15922 = vmatprep.subr.bf16.mxu0 %v28578_v8  ;;  %v28620_v8 = vld [vmem:[%s38772_s5 + $0x2388] ss:$52 sps:$4 sm:$0xff]  }
 0x875   :  { %25124 = vmatpush3.bf16.msra.mxu1 %v28575_v2  ;;  %v28616_v2 = vld [vmem:[%s38772_s5 + $0x1fd0] ss:$52 sps:$4 sm:$0xff]  }
 0x876   :  { %25125 = vmatprep.subr.bf16.mxu1 %v28579_v42  ;;  %v28623_v42 = vld [vmem:[%s38772_s5 + $0x203c] ss:$52 sps:$4 sm:$0xff]  }
 0x877   :  { %15923 = vmatpush1.bf16.msra.mxu0 %v28576_v44  ;;  %v16601_v44 = vmax.f32 %v25346_v43, 0.0  ;;  %v28669_v43 = vld [vmem:[%s38772_s5 + $0x2378] ss:$52 sps:$4 sm:$0xff]  }
 0x878   :  { %15924 = vmatprep.subr.bf16.mxu0 %v28583_v47  ;;  %v28624_v47 = vld [vmem:[%s38773_s7] ss:$28 sps:$4 sm:$0xff]  }
 0x879   :  { %25126 = vmatpush3.bf16.msra.mxu1 %v28580_v23  ;;  %v28621_v23 = vld [vmem:[%s38772_s5 + $0x2038] ss:$52 sps:$4 sm:$0xff]  }
 0x87a   :  { %25155 = vmatprep.subr.bf16.mxu1 %v28584_v54  ;;  %v28629_v54 = vld [vmem:[%s38772_s5 + $0x20a4] ss:$52 sps:$4 sm:$0xff]  }
 0x87b   :  { %15925 = vmatpush1.bf16.msra.mxu0 %v28581_v56  ;;  %v28632_v56 = vld [vmem:[%s38773_s7 + $0x3c] ss:$28 sps:$4 sm:$0xff]  }
 0x87c   :  { %16473 = vmatmul.mubr.bf16.vlgmr.msra.gmra.mrb[40].mxu1 %v33035_v0  ;;  %15926 = vmatprep.subr.bf16.mxu0 %v28588_v53  ;;  %v28598_v0 = vld [vmem:[%s38772_s5 + $0x1e34] ss:$52 sps:$4 sm:$0xff]  }
 0x87d   :  { %25156 = vmatpush3.bf16.msra.mxu1 %v28585_v39  ;;  %16552 = vmatprep.mubr.bf16.mxu1 %v33256_v50  ;;  %v36251_v39 = vpack.c.bf16 %v16601_v44, %v16601_v44  ;;  %v28627_v53 = vld [vmem:[%s38772_s5 + $0x20a0] ss:$52 sps:$4 sm:$0xff]  }
 0x87e   :  { %25157 = vmatprep.subr.bf16.mxu1 %v28589_v1  ;;  %v28630_v1 = vld [vmem:[%s38773_s7 + $0x38] ss:$28 sps:$4 sm:$0xff]  }
 0x87f   :  { %15927 = vmatpush1.bf16.msra.mxu0 %v28586_v57  ;;  %v28635_v57 = vld [vmem:[%s38772_s5 + $0x210c] ss:$52 sps:$4 sm:$0xff]   ;;  %v28678_v44 = vld [vmem:[%s38773_s7 + $0x1f8] ss:$28 sps:$4 sm:$0xff]  }
 0x880   :  { %15928 = vmatprep.subr.bf16.mxu0 %v28593_v13  ;;  %v28633_v13 = vld [vmem:[%s38772_s5 + $0x2108] ss:$52 sps:$4 sm:$0xff]  }
 0x881   :  { %25158 = vmatpush3.bf16.msra.mxu1 %v28590_v5  ;;  %v28638_v5 = vld [vmem:[%s38773_s7 + $0x74] ss:$28 sps:$4 sm:$0xff]  }
 0x882   :  { %25159 = vmatprep.subr.bf16.mxu1 %v28594_v10  ;;  %v28636_v10 = vld [vmem:[%s38773_s7 + $0x70] ss:$28 sps:$4 sm:$0xff]  }
 0x883   :  { %15929 = vmatpush1.bf16.msra.mxu0 %v28591_v15  ;;  %v28641_v15 = vld [vmem:[%s38772_s5 + $0x2174] ss:$52 sps:$4 sm:$0xff]  }
 0x884   :  { %15930 = vmatprep.subr.bf16.mxu0 %v28598_v0  ;;  %v28642_v0 = vld [vmem:[%s38773_s7 + $0xa8] ss:$28 sps:$4 sm:$0xff]  }
 0x885   :  { %25160 = vmatpush3.bf16.msra.mxu1 %v28595_v16  ;;  %v28644_v16 = vld [vmem:[%s38773_s7 + $0xac] ss:$28 sps:$4 sm:$0xff]  }
 0x886   :  { %25161 = vmatprep.subr.bf16.mxu1 %v28599_v19  ;;  %v28647_v19 = vld [vmem:[%s38772_s5 + $0x21dc] ss:$52 sps:$4 sm:$0xff]  }
 0x887   :  { %15931 = vmatpush1.bf16.msra.mxu0 %v28596_v20  ;;  %v28650_v20 = vld [vmem:[%s38773_s7 + $0xe4] ss:$28 sps:$4 sm:$0xff]  }
 0x888   :  { %15932 = vmatprep.subr.bf16.mxu0 %v28603_v21  ;;  %v28648_v21 = vld [vmem:[%s38773_s7 + $0xe0] ss:$28 sps:$4 sm:$0xff]  }
 0x889   :  { %25162 = vmatpush3.bf16.msra.mxu1 %v28600_v61  ;;  %v28645_v61 = vld [vmem:[%s38772_s5 + $0x21d8] ss:$52 sps:$4 sm:$0xff]  }
 0x88a   :  { %25163 = vmatprep.subr.bf16.mxu1 %v28604_v17  ;;  %v28653_v17 = vld [vmem:[%s38772_s5 + $0x2244] ss:$52 sps:$4 sm:$0xff]  }
 0x88b   :  { %15933 = vmatpush1.bf16.msra.mxu0 %v28601_v38  ;;  %v28656_v38 = vld [vmem:[%s38773_s7 + $0x11c] ss:$28 sps:$4 sm:$0xff]  }
 0x88c   :  { %15934 = vmatprep.subr.bf16.mxu0 %v28608_v4  ;;  %v28654_v4 = vld [vmem:[%s38773_s7 + $0x118] ss:$28 sps:$4 sm:$0xff]  }
 0x88d   :  { %25164 = vmatpush3.bf16.msra.mxu1 %v28605_v22  ;;  %v28651_v22 = vld [vmem:[%s38772_s5 + $0x2240] ss:$52 sps:$4 sm:$0xff]  }
 0x88e   :  { %25165 = vmatprep.subr.bf16.mxu1 %v28609_v63  ;;  %v28659_v63 = vld [vmem:[%s38772_s5 + $0x22ac] ss:$52 sps:$4 sm:$0xff]  }
 0x88f   :  { %15935 = vmatpush1.bf16.msra.mxu0 %v28606_v26  ;;  %v28662_v26 = vld [vmem:[%s38773_s7 + $0x154] ss:$28 sps:$4 sm:$0xff]  }
 0x890   :  { %15936 = vmatprep.subr.bf16.mxu0 %v28613_v33  ;;  %v28660_v33 = vld [vmem:[%s38773_s7 + $0x150] ss:$28 sps:$4 sm:$0xff]  }
 0x891   :  { %25166 = vmatpush3.bf16.msra.mxu1 %v28610_v35  ;;  %v28657_v35 = vld [vmem:[%s38772_s5 + $0x22a8] ss:$52 sps:$4 sm:$0xff]  }
 0x892   :  { %25167 = vmatprep.subr.bf16.mxu1 %v28614_v6  ;;  %v28665_v6 = vld [vmem:[%s38772_s5 + $0x2314] ss:$52 sps:$4 sm:$0xff]  }
 0x893   :  { %15937 = vmatpush1.bf16.msra.mxu0 %v28611_v40  ;;  %v28663_v40 = vld [vmem:[%s38772_s5 + $0x2310] ss:$52 sps:$4 sm:$0xff]  }
 0x894   :  { %15938 = vmatprep.subr.bf16.mxu0 %v28618_v41  ;;  %v28671_v41 = vld [vmem:[%s38772_s5 + $0x237c] ss:$52 sps:$4 sm:$0xff]  }
 0x895   :  { %25168 = vmatpush3.bf16.msra.mxu1 %v28615_v27  ;;  %v28666_v27 = vld [vmem:[%s38773_s7 + $0x188] ss:$28 sps:$4 sm:$0xff]  }
 0x896   :  { %25169 = vmatprep.subr.bf16.mxu1 %v28619_v11  ;;  %v28674_v11 = vld [vmem:[%s38773_s7 + $0x1c4] ss:$28 sps:$4 sm:$0xff]  }
 0x897   :  { %15939 = vmatpush1.bf16.msra.mxu0 %v28616_v2  ;;  %v28672_v2 = vld [vmem:[%s38773_s7 + $0x1c0] ss:$28 sps:$4 sm:$0xff]  }
 0x898   :  { %15940 = vmatprep.subr.bf16.mxu0 %v28623_v42  ;;  %v28680_v42 = vld [vmem:[%s38773_s7 + $0x1fc] ss:$28 sps:$4 sm:$0xff]  }
 0x899   :  { %25170 = vmatpush3.bf16.msra.mxu1 %v28620_v8  ;;  %v28677_v8 = vld [vmem:[%s38772_s5 + $0x23e4] ss:$52 sps:$4 sm:$0xff]  }
 0x89a   :  { %20978 = vmatprep.subr.bf16.mxu1 %v28626_v60  ;;  %v28675_v60 = vld [vmem:[%s38772_s5 + $0x23e0] ss:$52 sps:$4 sm:$0xff]  }
 0x89b   :  { %15941 = vmatpush1.bf16.msra.mxu0 %v28621_v23  ;;  %v28683_v23 = vld [vmem:[%s38772_s5 + $0x244c] ss:$52 sps:$4 sm:$0xff]  }
 0x89c   :  { %16553 = vmatmul.mubr.bf16.vlgmr.msra.gmra.mrb[44].mxu1 %v33452_v58  ;;  %15951 = vmatprep.subr.bf16.mxu0 %v28629_v54  ;;  %v28681_v54 = vld [vmem:[%s38772_s5 + $0x2448] ss:$52 sps:$4 sm:$0xff]  }
 0x89d   :  { %20979 = vmatpush1.bf16.msra.mxu1 %v28624_v47  ;;  %21010 = vmatprep.mubr.bf16.mxu1 %v36251_v39  ;;  %v28686_v47 = vld [vmem:[%s38773_s7 + $0x234] ss:$28 sps:$4 sm:$0xff]  }
 0x89e   :  { %15943 = vmatmul.mubr.bf16.vlgmr.msra.gmra.mrb[44].mxu0 %v33244_v51  ;;  %20980 = vmatprep.subr.bf16.mxu1 %v28632_v56  ;;  %v28684_v56 = vld [vmem:[%s38773_s7 + $0x230] ss:$28 sps:$4 sm:$0xff]  }
 0x89f   :  { %15952 = vmatpush1.bf16.msra.mxu0 %v28627_v53  ;;  %15983 = vmatprep.mubr.bf16.mxu0 %v33256_v50  ;;  %v28639_v50 = vld [vmem:[%s38772_s5 + $0x2170] ss:$52 sps:$4 sm:$0xff]   ;;  %v28689_v53 = vld [vmem:[%s38772_s5 + $0x24b4] ss:$52 sps:$4 sm:$0xff]  }
 0x8a0   :  { %15953 = vmatprep.subr.bf16.mxu0 %v28635_v57  ;;  %v28687_v57 = vld [vmem:[%s38772_s5 + $0x24b0] ss:$52 sps:$4 sm:$0xff]  }
 0x8a1   :  { %20981 = vmatpush1.bf16.msra.mxu1 %v28630_v1  ;;  %v28692_v1 = vld [vmem:[%s38773_s7 + $0x26c] ss:$28 sps:$4 sm:$0xff]  }
 0x8a2   :  { %20982 = vmatprep.subr.bf16.mxu1 %v28638_v5  ;;  %v28690_v5 = vld [vmem:[%s38773_s7 + $0x268] ss:$28 sps:$4 sm:$0xff]  }
 0x8a3   :  { %15954 = vmatpush1.bf16.msra.mxu0 %v28633_v13  ;;  %v28695_v13 = vld [vmem:[%s38772_s5 + $0x251c] ss:$52 sps:$4 sm:$0xff]  }
 0x8a4   :  { %15955 = vmatprep.subr.bf16.mxu0 %v28641_v15  ;;  %v28698_v15 = vld [vmem:[%s38773_s7 + $0x2a4] ss:$28 sps:$4 sm:$0xff]  }
 0x8a5   :  { %20983 = vmatpush1.bf16.msra.mxu1 %v28636_v10  ;;  %v28693_v10 = vld [vmem:[%s38772_s5 + $0x2518] ss:$52 sps:$4 sm:$0xff]  }
 0x8a6   :  { %20984 = vmatprep.subr.bf16.mxu1 %v28644_v16  ;;  %v28696_v16 = vld [vmem:[%s38773_s7 + $0x2a0] ss:$28 sps:$4 sm:$0xff]  }
 0x8a7   :  { %15956 = vmatpush1.bf16.msra.mxu0 %v28639_v50  ;;  %v28701_v50 = vld [vmem:[%s38772_s5 + $0x2584] ss:$52 sps:$4 sm:$0xff]  }
 0x8a8   :  { %15957 = vmatprep.subr.bf16.mxu0 %v28647_v19  ;;  %v28704_v19 = vld [vmem:[%s38773_s7 + $0x2dc] ss:$28 sps:$4 sm:$0xff]  }
 0x8a9   :  { %20985 = vmatpush1.bf16.msra.mxu1 %v28642_v0  ;;  %v28699_v0 = vld [vmem:[%s38772_s5 + $0x2580] ss:$52 sps:$4 sm:$0xff]  }
 0x8aa   :  { %20986 = vmatprep.subr.bf16.mxu1 %v28650_v20  ;;  %v28702_v20 = vld [vmem:[%s38773_s7 + $0x2d8] ss:$28 sps:$4 sm:$0xff]  }
 0x8ab   :  { %15958 = vmatpush1.bf16.msra.mxu0 %v28645_v61  ;;  %v28707_v61 = vld [vmem:[%s38772_s5 + $0x25ec] ss:$52 sps:$4 sm:$0xff]  }
 0x8ac   :  { %15959 = vmatprep.subr.bf16.mxu0 %v28653_v17  ;;  %v8064_v17 = vrot.slane %v36198_v24, %v30030_v29 }
 0x8ad   :  { %20987 = vmatpush1.bf16.msra.mxu1 %v28648_v21  ;;  %v28710_v21 = vld [vmem:[%s38773_s7 + $0x314] ss:$28 sps:$4 sm:$0xff]  }
 0x8ae   :  { %20988 = vmatprep.subr.bf16.mxu1 %v28656_v38  ;;  %v8076_v38 = vrot.slane %v36198_v24, %v30039_v32  ;;  %v25345_v24 = vadd.f32 %v34703_v25, %v8064_v17  ;;  %v28722_v25 = vld [vmem:[%s38773_s7 + $0x384] ss:$28 sps:$4 sm:$0xff]  }
 0x8af   :  { %15960 = vmatpush1.bf16.msra.mxu0 %v28651_v22  ;;  %v28705_v22 = vld [vmem:[%s38772_s5 + $0x25e8] ss:$52 sps:$4 sm:$0xff]  }
 0x8b0   :  { %15961 = vmatprep.subr.bf16.mxu0 %v28659_v63  ;;  %v28713_v63 = vld [vmem:[%s38772_s5 + $0x2654] ss:$52 sps:$4 sm:$0xff]  }
 0x8b1   :  { %20989 = vmatpush1.bf16.msra.mxu1 %v28654_v4  ;;  %v28708_v4 = vld [vmem:[%s38773_s7 + $0x310] ss:$28 sps:$4 sm:$0xff]   ;;  %v28755_v17 = vld [vmem:[%s38773_s7 + $0x508] ss:$28 sps:$4 sm:$0xff]  }
 0x8b2   :  { %20990 = vmatprep.subr.bf16.mxu1 %v28662_v26  ;;  %v28716_v26 = vld [vmem:[%s38773_s7 + $0x34c] ss:$28 sps:$4 sm:$0xff]  }
 0x8b3   :  { %15962 = vmatpush1.bf16.msra.mxu0 %v28657_v35  ;;  %v25348_v35 = vadd.f32 %v34174_v55, %v8076_v38  ;;  %v16600_v55 = vmax.f32 %v25345_v24, 0.0  ;;  %v28758_v38 = vld [vmem:[%s38772_s5 + $0x510] ss:$52 sps:$4 sm:$0xff]   ;;  %v28767_v24 = vld [vmem:[%s38773_s7 + $0x57c] ss:$28 sps:$4 sm:$0xff]  }
 0x8b4   :  { %15963 = vmatprep.subr.bf16.mxu0 %v28665_v6  ;;  %v28714_v6 = vld [vmem:[%s38773_s7 + $0x348] ss:$28 sps:$4 sm:$0xff]  }
 0x8b5   :  { %20991 = vmatpush1.bf16.msra.mxu1 %v28660_v33  ;;  %v28711_v33 = vld [vmem:[%s38772_s5 + $0x2650] ss:$52 sps:$4 sm:$0xff]  }
 0x8b6   :  { %20992 = vmatprep.subr.bf16.mxu1 %v28668_v52  ;;  %v28719_v52 = vld [vmem:[%s38772_s5 + $0x26bc] ss:$52 sps:$4 sm:$0xff]  }
 0x8b7   :  { %15964 = vmatpush1.bf16.msra.mxu0 %v28663_v40  ;;  %v16603_v40 = vmax.f32 %v25348_v35, 0.0  ;;  %v28764_v35 = vld [vmem:[%s38772_s5 + $0x238] ss:$52 sps:$4 sm:$0xff]  }
 0x8b8   :  { %15965 = vmatprep.subr.bf16.mxu0 %v28671_v41  ;;  %v28720_v41 = vld [vmem:[%s38773_s7 + $0x380] ss:$28 sps:$4 sm:$0xff]  }
 0x8b9   :  { %20993 = vmatpush1.bf16.msra.mxu1 %v28666_v27  ;;  %v28717_v27 = vld [vmem:[%s38772_s5 + $0x26b8] ss:$52 sps:$4 sm:$0xff]  }
 0x8ba   :  { %20994 = vmatprep.subr.bf16.mxu1 %v28674_v11  ;;  %v28725_v11 = vld [vmem:[%s38772_s5 + $0x2724] ss:$52 sps:$4 sm:$0xff]  }
 0x8bb   :  { %15966 = vmatpush1.bf16.msra.mxu0 %v28669_v43  ;;  %v28728_v43 = vld [vmem:[%s38773_s7 + $0x3bc] ss:$28 sps:$4 sm:$0xff]  }
 0x8bc   :  { %15967 = vmatprep.subr.bf16.mxu0 %v28677_v8  ;;  %v36457_v8 = vpack.c.bf16 %v16603_v40, %v16603_v40  ;;  %v28773_v40 = vld [vmem:[%s38772_s5 + $0x648] ss:$52 sps:$4 sm:$0xff]  }
 0x8bd   :  { %20995 = vmatpush1.bf16.msra.mxu1 %v28672_v2  ;;  %v36455_v2 = vpack.c.bf16 %v16600_v55, %v16600_v55  ;;  %v28770_v55 = vld [vmem:[%s38773_s7 + $0x5b0] ss:$28 sps:$4 sm:$0xff]  }
 0x8be   :  { %20996 = vmatprep.subr.bf16.mxu1 %v28680_v42  ;;  %v28723_v42 = vld [vmem:[%s38772_s5 + $0x2720] ss:$52 sps:$4 sm:$0xff]  }
 0x8bf   :  { %15968 = vmatpush1.bf16.msra.mxu0 %v28675_v60  ;;  %v28726_v60 = vld [vmem:[%s38773_s7 + $0x3b8] ss:$28 sps:$4 sm:$0xff]  }
 0x8c0   :  { %15969 = vmatprep.subr.bf16.mxu0 %v28683_v23  ;;  %v28734_v23 = vld [vmem:[%s38773_s7 + $0x3f4] ss:$28 sps:$4 sm:$0xff]  }
 0x8c1   :  { %20997 = vmatpush1.bf16.msra.mxu1 %v28678_v44  ;;  %v28731_v44 = vld [vmem:[%s38772_s5 + $0x278c] ss:$52 sps:$4 sm:$0xff]  }
 0x8c2   :  { %20998 = vmatprep.subr.bf16.mxu1 %v28686_v47  ;;  %v28729_v47 = vld [vmem:[%s38772_s5 + $0x2788] ss:$52 sps:$4 sm:$0xff]  }
 0x8c3   :  { %15970 = vmatpush1.bf16.msra.mxu0 %v28681_v54  ;;  %v28732_v54 = vld [vmem:[%s38773_s7 + $0x3f0] ss:$28 sps:$4 sm:$0xff]  }
 0x8c4   :  { %15971 = vmatprep.subr.bf16.mxu0 %v28689_v53  ;;  %v28735_v53 = vld [vmem:[%s38773_s7 + $0x428] ss:$28 sps:$4 sm:$0xff]  }
 0x8c5   :  { %20999 = vmatpush1.bf16.msra.mxu1 %v28684_v56  ;;  %v28738_v56 = vld [vmem:[%s38772_s5 + $0x370] ss:$52 sps:$4 sm:$0xff]  }
 0x8c6   :  { %21000 = vmatprep.subr.bf16.mxu1 %v28692_v1  ;;  %v28742_v1 = vld [vmem:[%s38773_s7 + $0x464] ss:$28 sps:$4 sm:$0xff]  }
 0x8c7   :  { %15972 = vmatpush1.bf16.msra.mxu0 %v28687_v57  ;;  %v28739_v57 = vld [vmem:[%s38772_s5 + $0x30] ss:$52 sps:$4 sm:$0xff]  }
 0x8c8   :  { %15973 = vmatprep.subr.bf16.mxu0 %v28695_v13  ;;  %v28743_v13 = vld [vmem:[%s38772_s5 + $0x3d8] ss:$52 sps:$4 sm:$0xff]  }
 0x8c9   :  { %21001 = vmatpush1.bf16.msra.mxu1 %v28690_v5  ;;  %v28740_v5 = vld [vmem:[%s38773_s7 + $0x460] ss:$28 sps:$4 sm:$0xff]  }
 0x8ca   :  { %21002 = vmatprep.subr.bf16.mxu1 %v28698_v15  ;;  %v28744_v15 = vld [vmem:[%s38772_s5 + $0x98] ss:$52 sps:$4 sm:$0xff]  }
 0x8cb   :  { %15974 = vmatpush1.bf16.msra.mxu0 %v28693_v10  ;;  %v28747_v10 = vld [vmem:[%s38773_s7 + $0x49c] ss:$28 sps:$4 sm:$0xff]  }
 0x8cc   :  { %15975 = vmatprep.subr.bf16.mxu0 %v28701_v50  ;;  %v28748_v50 = vld [vmem:[%s38772_s5 + $0x440] ss:$52 sps:$4 sm:$0xff]  }
 0x8cd   :  { %21003 = vmatpush1.bf16.msra.mxu1 %v28696_v16  ;;  %v28745_v16 = vld [vmem:[%s38773_s7 + $0x498] ss:$28 sps:$4 sm:$0xff]  }
 0x8ce   :  { %21004 = vmatprep.subr.bf16.mxu1 %v28704_v19  ;;  %v28750_v19 = vld [vmem:[%s38773_s7 + $0x4d0] ss:$28 sps:$4 sm:$0xff]  }
 0x8cf   :  { %15976 = vmatpush1.bf16.msra.mxu0 %v28699_v0  ;;  %v28752_v0 = vld [vmem:[%s38773_s7 + $0x4d4] ss:$28 sps:$4 sm:$0xff]  }
 0x8d0   :  { %15977 = vmatprep.subr.bf16.mxu0 %v28707_v61  ;;  %v28757_v61 = vld [vmem:[%s38773_s7 + $0x50c] ss:$28 sps:$4 sm:$0xff]  }
 0x8d1   :  { %21005 = vmatpush1.bf16.msra.mxu1 %v28702_v20  ;;  %v28753_v20 = vld [vmem:[%s38772_s5 + $0x4a8] ss:$52 sps:$4 sm:$0xff]  }
 0x8d2   :  { %21006 = vmatprep.subr.bf16.mxu1 %v28710_v21  ;;  %v28754_v21 = vld [vmem:[%s38772_s5 + $0x168] ss:$52 sps:$4 sm:$0xff]  }
 0x8d3   :  { %15978 = vmatpush1.bf16.msra.mxu0 %v28705_v22  ;;  %v28762_v22 = vld [vmem:[%s38773_s7 + $0x544] ss:$28 sps:$4 sm:$0xff]  }
 0x8d4   :  { %15979 = vmatprep.subr.bf16.mxu0 %v28713_v63  ;;  %v28760_v63 = vld [vmem:[%s38773_s7 + $0x540] ss:$28 sps:$4 sm:$0xff]  }
 0x8d5   :  { %21007 = vmatpush1.bf16.msra.mxu1 %v28708_v4  ;;  %v28759_v4 = vld [vmem:[%s38772_s5 + $0x1d0] ss:$52 sps:$4 sm:$0xff]  }
 0x8d6   :  { %21008 = vmatprep.subr.bf16.mxu1 %v28716_v26  ;;  %v28763_v26 = vld [vmem:[%s38772_s5 + $0x578] ss:$52 sps:$4 sm:$0xff]  }
 0x8d7   :  { %15980 = vmatpush1.bf16.msra.mxu0 %v28711_v33  ;;  %v28765_v33 = vld [vmem:[%s38773_s7 + $0x578] ss:$28 sps:$4 sm:$0xff]  }
 0x8d8   :  { %15981 = vmatprep.subr.bf16.mxu0 %v28719_v52  ;;  %v28772_v52 = vld [vmem:[%s38773_s7 + $0x5b4] ss:$28 sps:$4 sm:$0xff]  }
 0x8d9   :  { %21009 = vmatpush1.bf16.msra.mxu1 %v28714_v6  ;;  %v28768_v6 = vld [vmem:[%s38772_s5 + $0x5e0] ss:$52 sps:$4 sm:$0xff]  }
 0x8da   :  { %21019 = vmatprep.subr.bf16.mxu1 %v28722_v25  ;;  %v28769_v25 = vld [vmem:[%s38772_s5 + $0x2a0] ss:$52 sps:$4 sm:$0xff]  }
 0x8db   :  { %15982 = vmatpush1.bf16.msra.mxu0 %v28717_v27  ;;  %v28777_v27 = vld [vmem:[%s38773_s7 + $0x5ec] ss:$28 sps:$4 sm:$0xff]  }
 0x8dc   :  { %21011 = vmatmul.mubr.bf16.vlgmr.msra.gmra.mrb[48].mxu1 %v36455_v2  ;;  %15992 = vmatprep.subr.bf16.mxu0 %v28725_v11  ;;  %v28775_v11 = vld [vmem:[%s38773_s7 + $0x5e8] ss:$28 sps:$4 sm:$0xff]  }
 0x8dd   :  { %21020 = vmatpush1.bf16.msra.mxu1 %v28720_v41  ;;  %21051 = vmatprep.mubr.bf16.mxu1 %v36457_v8  ;;  %v28774_v41 = vld [vmem:[%s38772_s5 + $0x308] ss:$52 sps:$4 sm:$0xff]  }
 0x8de   :  { %15984 = vmatmul.mubr.bf16.vlgmr.msra.gmra.mrb[44].mxu0 %v33452_v58  ;;  %21021 = vmatprep.subr.bf16.mxu1 %v28728_v43  ;;  %v28737_v58 = vld [vmem:[%s38773_s7 + $0x42c] ss:$28 sps:$4 sm:$0xff]   ;;  %v28778_v43 = vld [vmem:[%s38772_s5 + $0x1070] ss:$52 sps:$4 sm:$0xff]  }
 0x8df   :  { %15993 = vmatpush1.bf16.msra.mxu0 %v28723_v42  ;;  %16024 = vmatprep.mubr.bf16.mxu0 %v29728_v3  ;;  %v28782_v42 = vld [vmem:[%s38773_s7 + $0x624] ss:$28 sps:$4 sm:$0xff]  }
 0x8e0   :  { %15994 = vmatprep.subr.bf16.mxu0 %v28731_v44  ;;  %v28780_v44 = vld [vmem:[%s38773_s7 + $0x620] ss:$28 sps:$4 sm:$0xff]  }
 0x8e1   :  { %21022 = vmatpush1.bf16.msra.mxu1 %v28726_v60  ;;  %v28779_v60 = vld [vmem:[%s38772_s5 + $0xd30] ss:$52 sps:$4 sm:$0xff]  }
 0x8e2   :  { %21023 = vmatprep.subr.bf16.mxu1 %v28734_v23  ;;  %v28783_v23 = vld [vmem:[%s38772_s5 + $0x10d8] ss:$52 sps:$4 sm:$0xff]  }
 0x8e3   :  { %15995 = vmatpush1.bf16.msra.mxu0 %v28729_v47  ;;  %v28787_v47 = vld [vmem:[%s38773_s7 + $0x65c] ss:$28 sps:$4 sm:$0xff]  }
 0x8e4   :  { %25045 = vmatprep.subr.bf16.mxu0 %v28738_v56 }
 0x8e5   :  { %21024 = vmatpush1.bf16.msra.mxu1 %v28732_v54  ;;  %v36607_v54 = vld [vmem:[%s38774_s6] sm:$0xff] }
 0x8e6   :  { %21025 = vmatprep.subr.bf16.mxu1 %v28737_v58  ;;  %v8072_v56 = vrot.slane %v36607_v54, %v30033_v30  ;;  %v8084_v58 = vrot.slane %v36607_v54, %v30050_v45 }
 0x8e9   :  { %21026 = vmatpush1.bf16.msra.mxu1 %v28735_v53  ;;  %v28784_v53 = vld [vmem:[%s38772_s5 + $0xd98] ss:$52 sps:$4 sm:$0xff]  }
 0x8ea   :  { %24264 = vmatmul.mubr.msk.bf16.vlgmr.msra.gmra.mrb[44].mxu0 %vm14594_vm2, %v33519_v48  ;;  %21027 = vmatprep.subr.bf16.mxu1 %v28742_v1  ;;  %v28785_v1 = vld [vmem:[%s38773_s7 + $0x658] ss:$28 sps:$4 sm:$0xff]  }
 0x8eb   :  { %25046 = vmatpush3.bf16.msra.mxu0 %v28739_v57  ;;  %16352 = vmatprep.mubr.bf16.mxu0 %v32201_v49  ;;  %v28749_v49 = vld [vmem:[%s38772_s5 + $0x100] ss:$52 sps:$4 sm:$0xff]  }
 0x8ec   :  { %25047 = vmatprep.subr.bf16.mxu0 %v28743_v13  ;;  %v28792_v57 = vld [vmem:[%s38773_s7 + $0x694] ss:$28 sps:$4 sm:$0xff]  }
 0x8ed   :  { %21028 = vmatpush1.bf16.msra.mxu1 %v28740_v5  ;;  %v25350_v5 = vadd.f32 %v35922_v62, %v8084_v58  ;;  %v28825_v58 = vld [vmem:[%s38773_s7 + $0x818] ss:$28 sps:$4 sm:$0xff]  }
 0x8ee   :  { %21029 = vmatprep.subr.bf16.mxu1 %v28747_v10  ;;  %v28789_v10 = vld [vmem:[%s38772_s5 + $0xe00] ss:$52 sps:$4 sm:$0xff]  }
 0x8ef   :  { %25048 = vmatpush3.bf16.msra.mxu0 %v28744_v15  ;;  %v28790_v15 = vld [vmem:[%s38773_s7 + $0x690] ss:$28 sps:$4 sm:$0xff]  }
 0x8f0   :  { %25049 = vmatprep.subr.bf16.mxu0 %v28748_v50  ;;  %v28797_v50 = vld [vmem:[%s38773_s7 + $0x6cc] ss:$28 sps:$4 sm:$0xff]  }
 0x8f1   :  { %21030 = vmatpush1.bf16.msra.mxu1 %v28745_v16 }
 0x8f2   :  { %21031 = vmatprep.subr.bf16.mxu1 %v28752_v0 }
 0x8f3   :  { %25050 = vmatpush3.bf16.msra.mxu0 %v28749_v49 }
 0x8f4   :  { %25051 = vmatprep.subr.bf16.mxu0 %v28753_v20  ;;  %v28794_v20 = vld [vmem:[%s38772_s5 + $0xe68] ss:$52 sps:$4 sm:$0xff]  }
 0x8f5   :  { %21032 = vmatpush1.bf16.msra.mxu1 %v28750_v19  ;;  %v16605_v19 = vmax.f32 %v25350_v5, 0.0 }
 0x8f6   :  { %21033 = vmatprep.subr.bf16.mxu1 %v28757_v61  ;;  %v28795_v61 = vld [vmem:[%s38773_s7 + $0x6c8] ss:$28 sps:$4 sm:$0xff]  }
 0x8f7   :  { %25052 = vmatpush3.bf16.msra.mxu0 %v28754_v21  ;;  %v28798_v21 = vld [vmem:[%s38772_s5 + $0x1210] ss:$52 sps:$4 sm:$0xff]  }
 0x8f8   :  { %25053 = vmatprep.subr.bf16.mxu0 %v28758_v38  ;;  %v28799_v38 = vld [vmem:[%s38772_s5 + $0xed0] ss:$52 sps:$4 sm:$0xff]  }
 0x8f9   :  { %21034 = vmatpush1.bf16.msra.mxu1 %v28755_v17  ;;  %v28802_v17 = vld [vmem:[%s38773_s7 + $0x704] ss:$28 sps:$4 sm:$0xff]  }
 0x8fa   :  { %21035 = vmatprep.subr.bf16.mxu1 %v28762_v22  ;;  %v28800_v22 = vld [vmem:[%s38773_s7 + $0x700] ss:$28 sps:$4 sm:$0xff]  }
 0x8fb   :  { %25054 = vmatpush3.bf16.msra.mxu0 %v28759_v4  ;;  %v28803_v4 = vld [vmem:[%s38772_s5 + $0x1278] ss:$52 sps:$4 sm:$0xff]  }
 0x8fc   :  { %25055 = vmatprep.subr.bf16.mxu0 %v28763_v26 }
 0x8fd   :  { %21036 = vmatpush1.bf16.msra.mxu1 %v28760_v63  ;;  %v28807_v63 = vld [vmem:[%s38773_s7 + $0x73c] ss:$28 sps:$4 sm:$0xff]  }
 0x8fe   :  { %21037 = vmatprep.subr.bf16.mxu1 %v28767_v24  ;;  %v36671_v24 = vpack.c.bf16 %v16605_v19, %v16605_v19  ;;  %v28839_v19 = vld [vmem:[%s38772_s5 + $0x1bd0] ss:$52 sps:$4 sm:$0xff]  }
 0x8ff   :  { %25056 = vmatpush3.bf16.msra.mxu0 %v28764_v35  ;;  %v28804_v35 = vld [vmem:[%s38772_s5 + $0xf38] ss:$52 sps:$4 sm:$0xff]  }
 0x900   :  { %25057 = vmatprep.subr.bf16.mxu0 %v28768_v6  ;;  %v28808_v6 = vld [vmem:[%s38772_s5 + $0x12e0] ss:$52 sps:$4 sm:$0xff]  }
 0x901   :  { %21038 = vmatpush1.bf16.msra.mxu1 %v28765_v33  ;;  %v28805_v33 = vld [vmem:[%s38773_s7 + $0x738] ss:$28 sps:$4 sm:$0xff]  }
 0x902   :  { %21039 = vmatprep.subr.bf16.mxu1 %v28772_v52  ;;  %v28812_v52 = vld [vmem:[%s38773_s7 + $0x774] ss:$28 sps:$4 sm:$0xff]  }
 0x903   :  { %25058 = vmatpush3.bf16.msra.mxu0 %v28769_v25  ;;  %v28809_v25 = vld [vmem:[%s38772_s5 + $0xfa0] ss:$52 sps:$4 sm:$0xff]  }
 0x904   :  { %25059 = vmatprep.subr.bf16.mxu0 %v28773_v40  ;;  %v28813_v40 = vld [vmem:[%s38772_s5 + $0x1348] ss:$52 sps:$4 sm:$0xff]  }
 0x905   :  { %21040 = vmatpush1.bf16.msra.mxu1 %v28770_v55  ;;  %v28810_v55 = vld [vmem:[%s38773_s7 + $0x770] ss:$28 sps:$4 sm:$0xff]  }
 0x906   :  { %21041 = vmatprep.subr.bf16.mxu1 %v28777_v27  ;;  %v28817_v27 = vld [vmem:[%s38773_s7 + $0x7ac] ss:$28 sps:$4 sm:$0xff]  }
 0x907   :  { %25060 = vmatpush3.bf16.msra.mxu0 %v28774_v41  ;;  %v28814_v41 = vld [vmem:[%s38772_s5 + $0x1008] ss:$52 sps:$4 sm:$0xff]  }
 0x908   :  { %25089 = vmatprep.subr.bf16.mxu0 %v28778_v43  ;;  %v28818_v43 = vld [vmem:[%s38772_s5 + $0x1d70] ss:$52 sps:$4 sm:$0xff]  }
 0x909   :  { %21042 = vmatpush1.bf16.msra.mxu1 %v28775_v11  ;;  %v28815_v11 = vld [vmem:[%s38773_s7 + $0x7a8] ss:$28 sps:$4 sm:$0xff]  }
 0x90a   :  { %16353 = vmatmul.mubr.bf16.vlgmr.msra.gmra.mrb[48].mxu0 %v32407_v34  ;;  %21043 = vmatprep.subr.bf16.mxu1 %v28782_v42  ;;  %v28788_v34 = vld [vmem:[%s38772_s5 + $0x1140] ss:$52 sps:$4 sm:$0xff]  }
 0x90b   :  { %25090 = vmatpush3.bf16.msra.mxu0 %v28779_v60  ;;  %16432 = vmatprep.mubr.bf16.mxu0 %v32619_v18  ;;  %v25347_v18 = vadd.f32 %v34169_v37, %v8072_v56  ;;  %v28793_v37 = vld [vmem:[%s38772_s5 + $0x11a8] ss:$52 sps:$4 sm:$0xff]   ;;  %v28822_v42 = vld [vmem:[%s38773_s7 + $0x7e4] ss:$28 sps:$4 sm:$0xff]   ;;  %v28824_v56 = vld [vmem:[%s38772_s5 + $0x1a98] ss:$52 sps:$4 sm:$0xff]  }
 0x90c   :  { %25091 = vmatprep.subr.bf16.mxu0 %v28783_v23  ;;  %v28819_v60 = vld [vmem:[%s38772_s5 + $0x1a30] ss:$52 sps:$4 sm:$0xff]   ;;  %v28823_v23 = vld [vmem:[%s38772_s5 + $0x1dd8] ss:$52 sps:$4 sm:$0xff]  }
 0x90d   :  { %21044 = vmatpush1.bf16.msra.mxu1 %v28780_v44  ;;  %v16602_v0 = vmax.f32 %v25347_v18, 0.0  ;;  %v28820_v44 = vld [vmem:[%s38773_s7 + $0x7e0] ss:$28 sps:$4 sm:$0xff]  }
 0x90e   :  { %21045 = vmatprep.subr.bf16.mxu1 %v28787_v47  ;;  %v28827_v47 = vld [vmem:[%s38773_s7 + $0x81c] ss:$28 sps:$4 sm:$0xff]  }
 0x90f   :  { %25092 = vmatpush3.bf16.msra.mxu0 %v28784_v53  ;;  %v36629_v13 = vpop.f32.mrb[32].mxu1  ;;  %v36669_v26 = vpack.c.bf16 %v16602_v0, %v16602_v0  ;;  %v28828_v53 = vld [vmem:[%s38772_s5 + $0x1e40] ss:$52 sps:$4 sm:$0xff]   ;;  %v28833_v18 = vld [vmem:[%s38772_s5 + $0x1ea8] ss:$52 sps:$4 sm:$0xff]  }
 0x910   :  { %v36637_v16 = vpop.f32.mrb[33].mxu1  ;;  %25093 = vmatprep.subr.bf16.mxu0 %v28788_v34  ;;  %v28830_v34 = vld [vmem:[%s38773_s7 + $0x850] ss:$28 sps:$4 sm:$0xff]  }
 0x911   :  { %21046 = vmatpush1.bf16.msra.mxu1 %v28785_v1  ;;  %v16317_v62 = vpop.f32.mrb[34].mxu1  ;;  %v28829_v1 = vld [vmem:[%s38772_s5 + $0x1b00] ss:$52 sps:$4 sm:$0xff]   ;;  %v28838_v0 = vld [vmem:[%s38772_s5 + $0x1f10] ss:$52 sps:$4 sm:$0xff]  }
 0x912   :  { %v16318_v49 = vpop.f32.mrb[35].mxu1  ;;  %21047 = vmatprep.subr.bf16.mxu1 %v28792_v57  ;;  %v28834_v62 = vld [vmem:[%s38772_s5 + $0x1b68] ss:$52 sps:$4 sm:$0xff]  }
 0x913   :  { %25094 = vmatpush3.bf16.msra.mxu0 %v28789_v10  ;;  %v28842_v49 = vld [vmem:[%s38773_s7 + $0x8c4] ss:$28 sps:$4 sm:$0xff]  }
 0x914   :  { %25095 = vmatprep.subr.bf16.mxu0 %v28793_v37 }
 0x915   :  { %21048 = vmatpush1.bf16.msra.mxu1 %v28790_v15  ;;  %v28837_v15 = vld [vmem:[%s38773_s7 + $0x88c] ss:$28 sps:$4 sm:$0xff]  }
 0x916   :  { %21049 = vmatprep.subr.bf16.mxu1 %v28797_v50  ;;  %v28835_v50 = vld [vmem:[%s38773_s7 + $0x888] ss:$28 sps:$4 sm:$0xff]  }
 0x917   :  { %25096 = vmatpush3.bf16.msra.mxu0 %v28794_v20  ;;  %v28840_v20 = vld [vmem:[%s38773_s7 + $0x8c0] ss:$28 sps:$4 sm:$0xff]  }
 0x918   :  { %25097 = vmatprep.subr.bf16.mxu0 %v28798_v21  ;;  %v28847_v21 = vld [vmem:[%s38773_s7 + $0x8fc] ss:$28 sps:$4 sm:$0xff]  }
 0x919   :  { %21050 = vmatpush1.bf16.msra.mxu1 %v28795_v61  ;;  %v28843_v61 = vld [vmem:[%s38772_s5 + $0x1f78] ss:$52 sps:$4 sm:$0xff]  }
 0x91a   :  { %21060 = vmatprep.subr.bf16.mxu1 %v28802_v17  ;;  %v28844_v17 = vld [vmem:[%s38772_s5 + $0x1c38] ss:$52 sps:$4 sm:$0xff]  }
 0x91b   :  { %25098 = vmatpush3.bf16.msra.mxu0 %v28799_v38  ;;  %v28845_v38 = vld [vmem:[%s38773_s7 + $0x8f8] ss:$28 sps:$4 sm:$0xff]  }
 0x91c   :  { %21052 = vmatmul.mubr.bf16.vlgmr.msra.gmra.mrb[48].mxu1 %v36669_v26  ;;  %25099 = vmatprep.subr.bf16.mxu0 %v28803_v4  ;;  %v28852_v4 = vld [vmem:[%s38773_s7 + $0x934] ss:$28 sps:$4 sm:$0xff]  }
 0x91d   :  { %21061 = vmatpush1.bf16.msra.mxu1 %v28800_v22  ;;  %21092 = vmatprep.mubr.bf16.mxu1 %v36671_v24  ;;  %v28848_v22 = vld [vmem:[%s38772_s5 + $0x1fe0] ss:$52 sps:$4 sm:$0xff]  }
 0x91e   :  { %21062 = vmatprep.subr.bf16.mxu1 %v28807_v63  ;;  %v28849_v63 = vld [vmem:[%s38772_s5 + $0x1ca0] ss:$52 sps:$4 sm:$0xff]  }
 0x91f   :  { %25100 = vmatpush3.bf16.msra.mxu0 %v28804_v35  ;;  %v28850_v35 = vld [vmem:[%s38773_s7 + $0x930] ss:$28 sps:$4 sm:$0xff]  }
 0x920   :  { %25101 = vmatprep.subr.bf16.mxu0 %v28808_v6  ;;  %v28857_v6 = vld [vmem:[%s38773_s7 + $0x96c] ss:$28 sps:$4 sm:$0xff]  }
 0x921   :  { %21063 = vmatpush1.bf16.msra.mxu1 %v28805_v33  ;;  %v28853_v33 = vld [vmem:[%s38772_s5 + $0x2048] ss:$52 sps:$4 sm:$0xff]  }
 0x922   :  { %21064 = vmatprep.subr.bf16.mxu1 %v28812_v52  ;;  %v28854_v52 = vld [vmem:[%s38772_s5 + $0x1d08] ss:$52 sps:$4 sm:$0xff]  }
 0x923   :  { %25102 = vmatpush3.bf16.msra.mxu0 %v28809_v25  ;;  %v28855_v25 = vld [vmem:[%s38773_s7 + $0x968] ss:$28 sps:$4 sm:$0xff]  }
 0x924   :  { %25103 = vmatprep.subr.bf16.mxu0 %v28813_v40  ;;  %v28858_v40 = vld [vmem:[%s38772_s5 + $0x2730] ss:$52 sps:$4 sm:$0xff]  }
 0x925   :  { %21065 = vmatpush1.bf16.msra.mxu1 %v28810_v55  ;;  %v28861_v55 = vld [vmem:[%s38773_s7 + $0x9a4] ss:$28 sps:$4 sm:$0xff]  }
 0x926   :  { %21066 = vmatprep.subr.bf16.mxu1 %v28817_v27  ;;  %v29729_v27 = vmov 0.0  }
 0x927   :  { %25104 = vmatpush3.bf16.msra.mxu0 %v28814_v41  ;;  %v28859_v41 = vld [vmem:[%s38773_s7 + $0x9a0] ss:$28 sps:$4 sm:$0xff]  }
 0x928   :  { %25133 = vmatprep.subr.bf16.mxu0 %v28818_v43  ;;  %v28862_v43 = vld [vmem:[%s38772_s5 + $0x2798] ss:$52 sps:$4 sm:$0xff]  }
 0x929   :  { %21067 = vmatpush1.bf16.msra.mxu1 %v28815_v11  ;;  %v28865_v11 = vld [vmem:[%s38773_s7 + $0x9dc] ss:$28 sps:$4 sm:$0xff]  }
 0x92a   :  { %16433 = vmatmul.mubr.bf16.vlgmr.msra.gmra.mrb[52].mxu0 %v32825_v46  ;;  %21068 = vmatprep.subr.bf16.mxu1 %v28822_v42  ;;  %v28832_v46 = vld [vmem:[%s38773_s7 + $0x854] ss:$28 sps:$4 sm:$0xff]  }
 0x92b   :  { %25134 = vmatpush3.bf16.msra.mxu0 %v28819_v60  ;;  %16512 = vmatprep.mubr.bf16.mxu0 %v33226_v14  ;;  %v28863_v42 = vld [vmem:[%s38773_s7 + $0x9d8] ss:$28 sps:$4 sm:$0xff]  }
 0x92c   :  { %25135 = vmatprep.subr.bf16.mxu0 %v28823_v23  ;;  %v28871_v60 = vld [vmem:[%s38773_s7 + $0xa14] ss:$28 sps:$4 sm:$0xff]   ;;  %v8092_v23 = vrot.slane %v36607_v54, %v30239_v12  ;;  %v28877_v12 = vld [vmem:[%s38773_s7 + $0xa4c] ss:$28 sps:$4 sm:$0xff]  }
 0x92d   :  { %21069 = vmatpush1.bf16.msra.mxu1 %v28820_v44  ;;  %v8080_v44 = vrot.slane %v36607_v54, %v30224_v7 }
 0x92e   :  { %21070 = vmatprep.subr.bf16.mxu1 %v28827_v47 }
 0x92f   :  { %25136 = vmatpush3.bf16.msra.mxu0 %v28824_v56  ;;  %v25083_v14 = vpop.f32.mrb[36].mxu1  ;;  %v28866_v56 = vld [vmem:[%s38773_s7 + $0x8] ss:$28 sps:$4 sm:$0xff]   ;;  %v25349_v54 = vadd.f32 %v35917_v59, %v8080_v44 }
 0x930   :  { %v25084_v57 = vpop.f32.mrb[37].mxu1  ;;  %25137 = vmatprep.subr.bf16.mxu0 %v28828_v53  ;;  %v28914_v44 = vld [vmem:[%s38773_s7 + $0x1c8] ss:$28 sps:$4 sm:$0xff]  }
 0x931   :  { %v36746_v5 = vadd.f32 %v25084_v57, %v25083_v14  ;;  %v25086_v10 = vpop.f32.mrb[38].mxu1  ;;  %21071 = vmatpush1.bf16.msra.mxu1 %v28825_v58  ;;  %v28869_v58 = vld [vmem:[%s38773_s7 + $0xa10] ss:$28 sps:$4 sm:$0xff]   ;;  %v25352_v57 = vadd.f32 %v35388_v9, %v8092_v23  ;;  %v28883_v9 = vld [vmem:[%s38773_s7 + $0xa84] ss:$28 sps:$4 sm:$0xff]   ;;  %v16604_v59 = vmax.f32 %v25349_v54, 0.0 }
 0x932   :  { %v25087_v37 = vpop.f32.mrb[39].mxu1  ;;  %21072 = vmatprep.subr.bf16.mxu1 %v28832_v46  ;;  %v28874_v46 = vld [vmem:[%s38773_s7 + $0x44] ss:$28 sps:$4 sm:$0xff]   ;;  %v28917_v23 = vld [vmem:[%s38773_s7 + $0xbd0] ss:$28 sps:$4 sm:$0xff]  }
 0x933   :  { %25138 = vmatpush3.bf16.msra.mxu0 %v28829_v1  ;;  %v28875_v10 = vld [vmem:[%s38773_s7 + $0xa48] ss:$28 sps:$4 sm:$0xff]   ;;  %v28878_v37 = vld [vmem:[%s38773_s7 + $0x78] ss:$28 sps:$4 sm:$0xff]  }
 0x934   :  { %25139 = vmatprep.subr.bf16.mxu0 %v28833_v18  ;;  %v28872_v18 = vld [vmem:[%s38773_s7 + $0x40] ss:$28 sps:$4 sm:$0xff]   ;;  %v28923_v54 = vld [vmem:[%s38773_s7 + $0xc08] ss:$28 sps:$4 sm:$0xff]  }
 0x935   :  { %21073 = vmatpush1.bf16.msra.mxu1 %v28830_v34 }
 0x936   :  { %21074 = vmatprep.subr.bf16.mxu1 %v28837_v15  ;;  %v16607_v15 = vmax.f32 %v25352_v57, 0.0  ;;  %v28931_v57 = vld [vmem:[%s38773_s7 + $0xc44] ss:$28 sps:$4 sm:$0xff]  }
 0x937   :  { %25140 = vmatpush3.bf16.msra.mxu0 %v28834_v62  ;;  %v28881_v62 = vld [vmem:[%s38773_s7 + $0xa80] ss:$28 sps:$4 sm:$0xff]  }
 0x938   :  { %25141 = vmatprep.subr.bf16.mxu0 %v28838_v0  ;;  %v28889_v0 = vld [vmem:[%s38773_s7 + $0xabc] ss:$28 sps:$4 sm:$0xff]  }
 0x939   :  { %21075 = vmatpush1.bf16.msra.mxu1 %v28835_v50  ;;  %v28886_v50 = vld [vmem:[%s38773_s7 + $0xb4] ss:$28 sps:$4 sm:$0xff]  }
 0x93a   :  { %21076 = vmatprep.subr.bf16.mxu1 %v28842_v49  ;;  %v36881_v49 = vpack.c.bf16 %v16604_v59, %v16604_v59  ;;  %v28932_v59 = vld [vmem:[%s38773_s7 + $0x270] ss:$28 sps:$4 sm:$0xff]  }
 0x93b   :  { %25142 = vmatpush3.bf16.msra.mxu0 %v28839_v19  ;;  %v36883_v19 = vpack.c.bf16 %v16607_v15, %v16607_v15  ;;  %v28935_v15 = vld [vmem:[%s38773_s7 + $0xc78] ss:$28 sps:$4 sm:$0xff]  }
 0x93c   :  { %25143 = vmatprep.subr.bf16.mxu0 %v28843_v61  ;;  %v28887_v61 = vld [vmem:[%s38773_s7 + $0xab8] ss:$28 sps:$4 sm:$0xff]  }
 0x93d   :  { %21077 = vmatpush1.bf16.msra.mxu1 %v28840_v20  ;;  %v28884_v20 = vld [vmem:[%s38773_s7 + $0xb0] ss:$28 sps:$4 sm:$0xff]  }
 0x93e   :  { %21078 = vmatprep.subr.bf16.mxu1 %v28847_v21  ;;  %v28892_v21 = vld [vmem:[%s38773_s7 + $0xec] ss:$28 sps:$4 sm:$0xff]  }
 0x93f   :  { %25144 = vmatpush3.bf16.msra.mxu0 %v28844_v17  ;;  %v28895_v17 = vld [vmem:[%s38773_s7 + $0xaf4] ss:$28 sps:$4 sm:$0xff]  }
 0x940   :  { %25145 = vmatprep.subr.bf16.mxu0 %v28848_v22  ;;  %v28893_v22 = vld [vmem:[%s38773_s7 + $0xaf0] ss:$28 sps:$4 sm:$0xff]  }
 0x941   :  { %21079 = vmatpush1.bf16.msra.mxu1 %v28845_v38  ;;  %v28890_v38 = vld [vmem:[%s38773_s7 + $0xe8] ss:$28 sps:$4 sm:$0xff]  }
 0x942   :  { %21080 = vmatprep.subr.bf16.mxu1 %v28852_v4  ;;  %v28898_v4 = vld [vmem:[%s38773_s7 + $0x124] ss:$28 sps:$4 sm:$0xff]  }
 0x943   :  { %25146 = vmatpush3.bf16.msra.mxu0 %v28849_v63  ;;  %v28901_v63 = vld [vmem:[%s38773_s7 + $0xb2c] ss:$28 sps:$4 sm:$0xff]  }
 0x944   :  { %25147 = vmatprep.subr.bf16.mxu0 %v28853_v33  ;;  %v28899_v33 = vld [vmem:[%s38773_s7 + $0xb28] ss:$28 sps:$4 sm:$0xff]  }
 0x945   :  { %21081 = vmatpush1.bf16.msra.mxu1 %v28850_v35  ;;  %v28896_v35 = vld [vmem:[%s38773_s7 + $0x120] ss:$28 sps:$4 sm:$0xff]  }
 0x946   :  { %21082 = vmatprep.subr.bf16.mxu1 %v28857_v6  ;;  %v28904_v6 = vld [vmem:[%s38773_s7 + $0x15c] ss:$28 sps:$4 sm:$0xff]  }
 0x947   :  { %25148 = vmatpush3.bf16.msra.mxu0 %v28854_v52  ;;  %v28907_v52 = vld [vmem:[%s38773_s7 + $0xb64] ss:$28 sps:$4 sm:$0xff]  }
 0x948   :  { %25315 = vmatprep.subr.bf16.mxu0 %v29729_v27 }
 0x949   :  { %21083 = vmatpush1.bf16.msra.mxu1 %v28855_v25  ;;  %v28902_v25 = vld [vmem:[%s38773_s7 + $0x158] ss:$28 sps:$4 sm:$0xff]  }
 0x94a   :  { %16513 = vmatmul.mubr.bf16.vlgmr.msra.gmra.mrb[56].mxu0 %v33244_v51  ;;  %21084 = vmatprep.subr.bf16.mxu1 %v28861_v55  ;;  %v28868_v51 = vld [vmem:[%s38773_s7 + $0xc] ss:$28 sps:$4 sm:$0xff]   ;;  %v28905_v55 = vld [vmem:[%s38773_s7 + $0xb60] ss:$28 sps:$4 sm:$0xff]  }
 0x94b   :  { %25316 = vmatpush3.bf16.msra.mxu0 %v28858_v40  ;;  %25319 = vmatprep.mubr.msk.bf16.mxu0 %vm29730_vm3, %v29729_v27  ;;  %v28910_v40 = vld [vmem:[%s38773_s7 + $0x194] ss:$28 sps:$4 sm:$0xff]  }
 0x94c   :  { %25317 = vmatprep.subr.bf16.mxu0 %v29729_v27 }
 0x94d   :  { %21085 = vmatpush1.bf16.msra.mxu1 %v28859_v41  ;;  %v28913_v41 = vld [vmem:[%s38773_s7 + $0xb9c] ss:$28 sps:$4 sm:$0xff]  }
 0x94e   :  { %21086 = vmatprep.subr.bf16.mxu1 %v28865_v11  ;;  %v28908_v11 = vld [vmem:[%s38773_s7 + $0x190] ss:$28 sps:$4 sm:$0xff]  }
 0x94f   :  { %25318 = vmatpush3.bf16.msra.mxu0 %v28862_v43  ;;  %v25127_v47 = vpop.f32.mrb[40].mxu1  ;;  %v28911_v43 = vld [vmem:[%s38773_s7 + $0xb98] ss:$28 sps:$4 sm:$0xff]  }
 0x950   :  { %v25128_v53 = vpop.f32.mrb[41].mxu1  ;;  %21265 = vmatprep.subr.bf16.mxu0 %v28868_v51  ;;  %v28919_v51 = vld [vmem:[%s38773_s7 + $0xbd4] ss:$28 sps:$4 sm:$0xff]  }
 0x951   :  { %v36847_v14 = vadd.f32 %v25128_v53, %v25127_v47  ;;  %v25130_v1 = vpop.f32.mrb[42].mxu1  ;;  %21087 = vmatpush1.bf16.msra.mxu1 %v28863_v42  ;;  %v28916_v42 = vld [vmem:[%s38773_s7 + $0x1cc] ss:$28 sps:$4 sm:$0xff]  }
 0x952   :  { %25320 = vmatmul.mubr.msk.bf16.vlgmr.msra.gmra.mrb[60].mxu0 %vm14594_vm2, %v33519_v48  ;;  %v25131_v34 = vpop.f32.mrb[43].mxu1  ;;  %21088 = vmatprep.subr.bf16.mxu1 %v28871_v60  ;;  %v28880_v48 = vld [vmem:[%s38773_s7 + $0x7c] ss:$28 sps:$4 sm:$0xff]  }
 0x953   :  { %21266 = vmatpush1.bf16.msra.mxu0 %v28866_v56  ;;  %21297 = vmatprep.mubr.bf16.mxu0 %v36251_v39  ;;  %v28922_v56 = vld [vmem:[%s38773_s7 + $0x204] ss:$28 sps:$4 sm:$0xff]   ;;  %v28928_v34 = vld [vmem:[%s38773_s7 + $0x23c] ss:$28 sps:$4 sm:$0xff]  }
 0x954   :  { %21267 = vmatprep.subr.bf16.mxu0 %v28874_v46  ;;  %v28925_v46 = vld [vmem:[%s38773_s7 + $0xc0c] ss:$28 sps:$4 sm:$0xff]  }
 0x955   :  { %21089 = vmatpush1.bf16.msra.mxu1 %v28869_v58 }
 0x956   :  { %21090 = vmatprep.subr.bf16.mxu1 %v28877_v12  ;;  %v28920_v12 = vld [vmem:[%s38773_s7 + $0x200] ss:$28 sps:$4 sm:$0xff]  }
 0x957   :  { %21268 = vmatpush1.bf16.msra.mxu0 %v28872_v18  ;;  %v28926_v18 = vld [vmem:[%s38773_s7 + $0x238] ss:$28 sps:$4 sm:$0xff]  }
 0x958   :  { %21269 = vmatprep.subr.bf16.mxu0 %v28880_v48  ;;  %v28934_v48 = vld [vmem:[%s38773_s7 + $0x274] ss:$28 sps:$4 sm:$0xff]  }
 0x959   :  { %21091 = vmatpush1.bf16.msra.mxu1 %v28875_v10  ;;  %v28929_v10 = vld [vmem:[%s38773_s7 + $0xc40] ss:$28 sps:$4 sm:$0xff]  }
 0x95a   :  { %21101 = vmatprep.subr.bf16.mxu1 %v28883_v9  ;;  %v28937_v9 = vld [vmem:[%s38773_s7 + $0xc7c] ss:$28 sps:$4 sm:$0xff]  }
 0x95b   :  { %21270 = vmatpush1.bf16.msra.mxu0 %v28878_v37  ;;  %v28940_v37 = vld [vmem:[%s38773_s7 + $0x2ac] ss:$28 sps:$4 sm:$0xff]  }
 0x95c   :  { %21093 = vmatmul.mubr.bf16.vlgmr.msra.gmra.mrb[48].mxu1 %v36881_v49  ;;  %21271 = vmatprep.subr.bf16.mxu0 %v28886_v50  ;;  %v28938_v50 = vld [vmem:[%s38773_s7 + $0x2a8] ss:$28 sps:$4 sm:$0xff]  }
 0x95d   :  { %21102 = vmatpush1.bf16.msra.mxu1 %v28881_v62  ;;  %21133 = vmatprep.mubr.bf16.mxu1 %v36883_v19  ;;  %v28943_v62 = vld [vmem:[%s38773_s7 + $0xcb4] ss:$28 sps:$4 sm:$0xff]  }
 0x95e   :  { %21103 = vmatprep.subr.bf16.mxu1 %v28889_v0  ;;  %v28941_v0 = vld [vmem:[%s38773_s7 + $0xcb0] ss:$28 sps:$4 sm:$0xff]  }
 0x95f   :  { %21272 = vmatpush1.bf16.msra.mxu0 %v28884_v20  ;;  %v28946_v20 = vld [vmem:[%s38773_s7 + $0x2e4] ss:$28 sps:$4 sm:$0xff]  }
 0x960   :  { %21273 = vmatprep.subr.bf16.mxu0 %v28892_v21  ;;  %v28944_v21 = vld [vmem:[%s38773_s7 + $0x2e0] ss:$28 sps:$4 sm:$0xff]  }
 0x961   :  { %21104 = vmatpush1.bf16.msra.mxu1 %v28887_v61  ;;  %v28949_v61 = vld [vmem:[%s38773_s7 + $0xcec] ss:$28 sps:$4 sm:$0xff]  }
 0x962   :  { %21105 = vmatprep.subr.bf16.mxu1 %v28895_v17  ;;  %v28947_v17 = vld [vmem:[%s38773_s7 + $0xce8] ss:$28 sps:$4 sm:$0xff]  }
 0x963   :  { %21274 = vmatpush1.bf16.msra.mxu0 %v28890_v38  ;;  %v28952_v38 = vld [vmem:[%s38773_s7 + $0x31c] ss:$28 sps:$4 sm:$0xff]  }
 0x964   :  { %21275 = vmatprep.subr.bf16.mxu0 %v28898_v4  ;;  %v28950_v4 = vld [vmem:[%s38773_s7 + $0x318] ss:$28 sps:$4 sm:$0xff]  }
 0x965   :  { %21106 = vmatpush1.bf16.msra.mxu1 %v28893_v22  ;;  %v28955_v22 = vld [vmem:[%s38773_s7 + $0xd24] ss:$28 sps:$4 sm:$0xff]  }
 0x966   :  { %21107 = vmatprep.subr.bf16.mxu1 %v28901_v63  ;;  %v28953_v63 = vld [vmem:[%s38773_s7 + $0xd20] ss:$28 sps:$4 sm:$0xff]  }
 0x967   :  { %21276 = vmatpush1.bf16.msra.mxu0 %v28896_v35  ;;  %v28958_v35 = vld [vmem:[%s38773_s7 + $0x354] ss:$28 sps:$4 sm:$0xff]  }
 0x968   :  { %21277 = vmatprep.subr.bf16.mxu0 %v28904_v6  ;;  %v28956_v6 = vld [vmem:[%s38773_s7 + $0x350] ss:$28 sps:$4 sm:$0xff]  }
 0x969   :  { %21108 = vmatpush1.bf16.msra.mxu1 %v28899_v33  ;;  %v28961_v33 = vld [vmem:[%s38773_s7 + $0xd5c] ss:$28 sps:$4 sm:$0xff]  }
 0x96a   :  { %21109 = vmatprep.subr.bf16.mxu1 %v28907_v52  ;;  %v28959_v52 = vld [vmem:[%s38773_s7 + $0xd58] ss:$28 sps:$4 sm:$0xff]  }
 0x96b   :  { %21278 = vmatpush1.bf16.msra.mxu0 %v28902_v25  ;;  %v28964_v25 = vld [vmem:[%s38773_s7 + $0x38c] ss:$28 sps:$4 sm:$0xff]  }
 0x96c   :  { %21279 = vmatprep.subr.bf16.mxu0 %v28910_v40  ;;  %v29727_v40 = vld [vmem:[%s38774_s6] sm:$0xff] }
 0x96d   :  { %21110 = vmatpush1.bf16.msra.mxu1 %v28905_v55  ;;  %v28967_v55 = vld [vmem:[%s38773_s7 + $0xd94] ss:$28 sps:$4 sm:$0xff]  }
 0x96e   :  { %21111 = vmatprep.subr.bf16.mxu1 %v28913_v41  ;;  %v8088_v41 = vrot.slane %v29727_v40, %v30436_v36  ;;  %v29019_v40 = vld [vmem:[%s38773_s7 + $0xf88] ss:$28 sps:$4 sm:$0xff]  }
 0x96f   :  { %21280 = vmatpush1.bf16.msra.mxu0 %v28908_v11  ;;  %v25171_v60 = vpop.f32.mrb[44].mxu1  ;;  %v28962_v11 = vld [vmem:[%s38773_s7 + $0x388] ss:$28 sps:$4 sm:$0xff]  }
 0x970   :  { %v25172_v47 = vpop.f32.mrb[45].mxu1  ;;  %21281 = vmatprep.subr.bf16.mxu0 %v28916_v42  ;;  %v28970_v42 = vld [vmem:[%s38773_s7 + $0x3c4] ss:$28 sps:$4 sm:$0xff]  }
 0x971   :  { %v36956_v58 = vadd.f32 %v25172_v47, %v25171_v60  ;;  %v25174_v53 = vpop.f32.mrb[46].mxu1  ;;  %21112 = vmatpush1.bf16.msra.mxu1 %v28911_v43  ;;  %v28965_v43 = vld [vmem:[%s38773_s7 + $0xd90] ss:$28 sps:$4 sm:$0xff]   ;;  %v25351_v60 = vadd.f32 %v35383_v28, %v8088_v41  ;;  %v28976_v47 = vld [vmem:[%s38773_s7 + $0x3fc] ss:$28 sps:$4 sm:$0xff]  }
 0x972   :  { %v25175_v1 = vpop.f32.mrb[47].mxu1  ;;  %21113 = vmatprep.subr.bf16.mxu1 %v28919_v51  ;;  %v28973_v51 = vld [vmem:[%s38773_s7 + $0xdcc] ss:$28 sps:$4 sm:$0xff]   ;;  %v28979_v28 = vld [vmem:[%s38773_s7 + $0xe04] ss:$28 sps:$4 sm:$0xff]  }
 0x973   :  { %21282 = vmatpush1.bf16.msra.mxu0 %v28914_v44  ;;  %v28968_v44 = vld [vmem:[%s38773_s7 + $0x3c0] ss:$28 sps:$4 sm:$0xff]   ;;  %v28974_v53 = vld [vmem:[%s38773_s7 + $0x3f8] ss:$28 sps:$4 sm:$0xff]  }
 0x974   :  { %21283 = vmatprep.subr.bf16.mxu0 %v28922_v56  ;;  %v16606_v56 = vmax.f32 %v25351_v60, 0.0  ;;  %v28982_v1 = vld [vmem:[%s38773_s7 + $0x434] ss:$28 sps:$4 sm:$0xff]   ;;  %v29027_v41 = vld [vmem:[%s38773_s7 + $0xfc4] ss:$28 sps:$4 sm:$0xff]  }
 0x975   :  { %21114 = vmatpush1.bf16.msra.mxu1 %v28917_v23  ;;  %v28971_v23 = vld [vmem:[%s38773_s7 + $0xdc8] ss:$28 sps:$4 sm:$0xff]   ;;  %v29033_v60 = vld [vmem:[%s38773_s7 + $0xffc] ss:$28 sps:$4 sm:$0xff]  }
 0x976   :  { %21115 = vmatprep.subr.bf16.mxu1 %v28925_v46  ;;  %v28977_v46 = vld [vmem:[%s38773_s7 + $0xe00] ss:$28 sps:$4 sm:$0xff]  }
 0x977   :  { %21284 = vmatpush1.bf16.msra.mxu0 %v28920_v12  ;;  %v28980_v12 = vld [vmem:[%s38773_s7 + $0x430] ss:$28 sps:$4 sm:$0xff]  }
 0x978   :  { %21285 = vmatprep.subr.bf16.mxu0 %v28928_v34  ;;  %v37091_v34 = vpack.c.bf16 %v16606_v56, %v16606_v56  ;;  %v29031_v56 = vld [vmem:[%s38773_s7 + $0xff8] ss:$28 sps:$4 sm:$0xff]  }
 0x979   :  { %21116 = vmatpush1.bf16.msra.mxu1 %v28923_v54  ;;  %v28985_v54 = vld [vmem:[%s38773_s7 + $0xe3c] ss:$28 sps:$4 sm:$0xff]  }
 0x97a   :  { %21117 = vmatprep.subr.bf16.mxu1 %v28931_v57  ;;  %v28983_v57 = vld [vmem:[%s38773_s7 + $0xe38] ss:$28 sps:$4 sm:$0xff]  }
 0x97b   :  { %21286 = vmatpush1.bf16.msra.mxu0 %v28926_v18  ;;  %v28988_v18 = vld [vmem:[%s38773_s7 + $0x46c] ss:$28 sps:$4 sm:$0xff]  }
 0x97c   :  { %21287 = vmatprep.subr.bf16.mxu0 %v28934_v48  ;;  %v28986_v48 = vld [vmem:[%s38773_s7 + $0x468] ss:$28 sps:$4 sm:$0xff]  }
 0x97d   :  { %21118 = vmatpush1.bf16.msra.mxu1 %v28929_v10  ;;  %v28991_v10 = vld [vmem:[%s38773_s7 + $0xe74] ss:$28 sps:$4 sm:$0xff]  }
 0x97e   :  { %21119 = vmatprep.subr.bf16.mxu1 %v28937_v9  ;;  %v28994_v9 = vld [vmem:[%s38773_s7 + $0x4a4] ss:$28 sps:$4 sm:$0xff]  }
 0x97f   :  { %21288 = vmatpush1.bf16.msra.mxu0 %v28932_v59  ;;  %v28989_v59 = vld [vmem:[%s38773_s7 + $0xe70] ss:$28 sps:$4 sm:$0xff]  }
 0x980   :  { %21289 = vmatprep.subr.bf16.mxu0 %v28940_v37  ;;  %v28992_v37 = vld [vmem:[%s38773_s7 + $0x4a0] ss:$28 sps:$4 sm:$0xff]  }
 0x981   :  { %21120 = vmatpush1.bf16.msra.mxu1 %v28935_v15  ;;  %v28997_v15 = vld [vmem:[%s38773_s7 + $0xeac] ss:$28 sps:$4 sm:$0xff]  }
 0x982   :  { %21121 = vmatprep.subr.bf16.mxu1 %v28943_v62  ;;  %v29000_v62 = vld [vmem:[%s38773_s7 + $0x4dc] ss:$28 sps:$4 sm:$0xff]  }
 0x983   :  { %21290 = vmatpush1.bf16.msra.mxu0 %v28938_v50  ;;  %v28995_v50 = vld [vmem:[%s38773_s7 + $0xea8] ss:$28 sps:$4 sm:$0xff]  }
 0x984   :  { %21291 = vmatprep.subr.bf16.mxu0 %v28946_v20  ;;  %v28998_v20 = vld [vmem:[%s38773_s7 + $0x4d8] ss:$28 sps:$4 sm:$0xff]  }
 0x985   :  { %21122 = vmatpush1.bf16.msra.mxu1 %v28941_v0  ;;  %v29003_v0 = vld [vmem:[%s38773_s7 + $0xee4] ss:$28 sps:$4 sm:$0xff]  }
 0x986   :  { %21123 = vmatprep.subr.bf16.mxu1 %v28949_v61  ;;  %v29006_v61 = vld [vmem:[%s38773_s7 + $0x514] ss:$28 sps:$4 sm:$0xff]  }
 0x987   :  { %21292 = vmatpush1.bf16.msra.mxu0 %v28944_v21  ;;  %v29001_v21 = vld [vmem:[%s38773_s7 + $0xee0] ss:$28 sps:$4 sm:$0xff]  }
 0x988   :  { %21293 = vmatprep.subr.bf16.mxu0 %v28952_v38  ;;  %v29004_v38 = vld [vmem:[%s38773_s7 + $0x510] ss:$28 sps:$4 sm:$0xff]  }
 0x989   :  { %21124 = vmatpush1.bf16.msra.mxu1 %v28947_v17  ;;  %v29009_v17 = vld [vmem:[%s38773_s7 + $0xf1c] ss:$28 sps:$4 sm:$0xff]  }
 0x98a   :  { %21125 = vmatprep.subr.bf16.mxu1 %v28955_v22  ;;  %v29012_v22 = vld [vmem:[%s38773_s7 + $0x54c] ss:$28 sps:$4 sm:$0xff]  }
 0x98b   :  { %21294 = vmatpush1.bf16.msra.mxu0 %v28950_v4  ;;  %v29007_v4 = vld [vmem:[%s38773_s7 + $0xf18] ss:$28 sps:$4 sm:$0xff]  }
 0x98c   :  { %21295 = vmatprep.subr.bf16.mxu0 %v28958_v35  ;;  %v29010_v35 = vld [vmem:[%s38773_s7 + $0x548] ss:$28 sps:$4 sm:$0xff]  }
 0x98d   :  { %21126 = vmatpush1.bf16.msra.mxu1 %v28953_v63  ;;  %v29015_v63 = vld [vmem:[%s38773_s7 + $0xf54] ss:$28 sps:$4 sm:$0xff]  }
 0x98e   :  { %21127 = vmatprep.subr.bf16.mxu1 %v28961_v33  ;;  %v29018_v33 = vld [vmem:[%s38773_s7 + $0x584] ss:$28 sps:$4 sm:$0xff]  }
 0x98f   :  { %21296 = vmatpush1.bf16.msra.mxu0 %v28956_v6  ;;  %v29013_v6 = vld [vmem:[%s38773_s7 + $0xf50] ss:$28 sps:$4 sm:$0xff]  }
 0x990   :  { %21306 = vmatprep.subr.bf16.mxu0 %v28964_v25  ;;  %v29016_v25 = vld [vmem:[%s38773_s7 + $0x580] ss:$28 sps:$4 sm:$0xff]  }
 0x991   :  { %21128 = vmatpush1.bf16.msra.mxu1 %v28959_v52  ;;  %v29021_v52 = vld [vmem:[%s38773_s7 + $0xf8c] ss:$28 sps:$4 sm:$0xff]  }
 0x992   :  { %21298 = vmatmul.mubr.bf16.vlgmr.msra.gmra.mrb[64].mxu0 %v36455_v2  ;;  %21129 = vmatprep.subr.bf16.mxu1 %v28967_v55  ;;  %v29024_v55 = vld [vmem:[%s38773_s7 + $0x5bc] ss:$28 sps:$4 sm:$0xff]  }
 0x993   :  { %21307 = vmatpush1.bf16.msra.mxu0 %v28962_v11  ;;  %21338 = vmatprep.mubr.bf16.mxu0 %v36457_v8  ;;  %v29022_v11 = vld [vmem:[%s38773_s7 + $0x5b8] ss:$28 sps:$4 sm:$0xff]  }
 0x994   :  { %21308 = vmatprep.subr.bf16.mxu0 %v28970_v42  ;;  %v29025_v42 = vld [vmem:[%s38773_s7 + $0xfc0] ss:$28 sps:$4 sm:$0xff]  }
 0x995   :  { %21130 = vmatpush1.bf16.msra.mxu1 %v28965_v43  ;;  %v29030_v43 = vld [vmem:[%s38773_s7 + $0x5f4] ss:$28 sps:$4 sm:$0xff]  }
 0x996   :  { %21131 = vmatprep.subr.bf16.mxu1 %v28973_v51  ;;  %v37187_v51 = vld [vmem:[%s38774_s6 + $0x8] sm:$0x1f] }
 0x997   :  { %21309 = vmatpush1.bf16.msra.mxu0 %v28968_v44  ;;  %v29028_v44 = vld [vmem:[%s38773_s7 + $0x5f0] ss:$28 sps:$4 sm:$0xff]  }
 0x998   :  { %21310 = vmatprep.subr.bf16.mxu0 %v28976_v47  ;;  %v29036_v47 = vld [vmem:[%s38773_s7 + $0x62c] ss:$28 sps:$4 sm:$0xff]  }
 0x999   :  { %21132 = vmatpush1.bf16.msra.mxu1 %v28971_v23  ;;  %v8100_v23 = vrot.slane %v37187_v51, %v30036_v31 }
 0x99a   :  { %21142 = vmatprep.subr.bf16.mxu1 %v28979_v28 }
 0x99b   :  { %21311 = vmatpush1.bf16.msra.mxu0 %v28974_v53 }
 0x99c   :  { %21134 = vmatmul.mubr.bf16.vlgmr.msra.gmra.mrb[48].mxu1 %v37091_v34  ;;  %21312 = vmatprep.subr.bf16.mxu0 %v28982_v1 }
 0x99d   :  { %21143 = vmatpush1.bf16.msra.mxu1 %v28977_v46  ;;  %v29039_v46 = vld [vmem:[%s38773_s7 + $0x1034] ss:$28 sps:$4 sm:$0xff]  }
 0x99e   :  { %21144 = vmatprep.subr.bf16.mxu1 %v28985_v54  ;;  %v29034_v54 = vld [vmem:[%s38773_s7 + $0x628] ss:$28 sps:$4 sm:$0xff]  }
 0x99f   :  { %21313 = vmatpush1.bf16.msra.mxu0 %v28980_v12 }
 0x9a0   :  { %21314 = vmatprep.subr.bf16.mxu0 %v28988_v18  ;;  %v29042_v18 = vld [vmem:[%s38773_s7 + $0x664] ss:$28 sps:$4 sm:$0xff]  }
 0x9a1   :  { %21145 = vmatpush1.bf16.msra.mxu1 %v28983_v57 }
 0x9a2   :  { %21146 = vmatprep.subr.bf16.mxu1 %v28991_v10 }
 0x9a3   :  { %21315 = vmatpush1.bf16.msra.mxu0 %v28986_v48  ;;  %v29037_v48 = vld [vmem:[%s38773_s7 + $0x1030] ss:$28 sps:$4 sm:$0xff]  }
 0x9a4   :  { %21316 = vmatprep.subr.bf16.mxu0 %v28994_v9  ;;  %v29045_v9 = vld [vmem:[%s38773_s7 + $0x106c] ss:$28 sps:$4 sm:$0xff]  }
 0x9a5   :  { %21147 = vmatpush1.bf16.msra.mxu1 %v28989_v59 }
 0x9a6   :  { %21148 = vmatprep.subr.bf16.mxu1 %v28997_v15  ;;  %v29040_v15 = vld [vmem:[%s38773_s7 + $0x660] ss:$28 sps:$4 sm:$0xff]  }
 0x9a7   :  { %21317 = vmatpush1.bf16.msra.mxu0 %v28992_v37  ;;  %v29048_v37 = vld [vmem:[%s38773_s7 + $0x69c] ss:$28 sps:$4 sm:$0xff]  }
 0x9a8   :  { %21318 = vmatprep.subr.bf16.mxu0 %v29000_v62  ;;  %v29043_v62 = vld [vmem:[%s38773_s7 + $0x1068] ss:$28 sps:$4 sm:$0xff]  }
 0x9a9   :  { %21149 = vmatpush1.bf16.msra.mxu1 %v28995_v50  ;;  %v29051_v50 = vld [vmem:[%s38773_s7 + $0x10a4] ss:$28 sps:$4 sm:$0xff]  }
 0x9aa   :  { %21150 = vmatprep.subr.bf16.mxu1 %v29003_v0  ;;  %v29046_v0 = vld [vmem:[%s38773_s7 + $0x698] ss:$28 sps:$4 sm:$0xff]  }
 0x9ab   :  { %21319 = vmatpush1.bf16.msra.mxu0 %v28998_v20  ;;  %v29054_v20 = vld [vmem:[%s38773_s7 + $0x6d4] ss:$28 sps:$4 sm:$0xff]  }
 0x9ac   :  { %21320 = vmatprep.subr.bf16.mxu0 %v29006_v61  ;;  %v29049_v61 = vld [vmem:[%s38773_s7 + $0x10a0] ss:$28 sps:$4 sm:$0xff]  }
 0x9ad   :  { %21151 = vmatpush1.bf16.msra.mxu1 %v29001_v21  ;;  %v29057_v21 = vld [vmem:[%s38773_s7 + $0x10dc] ss:$28 sps:$4 sm:$0xff]  }
 0x9ae   :  { %21152 = vmatprep.subr.bf16.mxu1 %v29009_v17  ;;  %v29052_v17 = vld [vmem:[%s38773_s7 + $0x6d0] ss:$28 sps:$4 sm:$0xff]  }
 0x9af   :  { %21321 = vmatpush1.bf16.msra.mxu0 %v29004_v38  ;;  %v29060_v38 = vld [vmem:[%s38773_s7 + $0x70c] ss:$28 sps:$4 sm:$0xff]  }
 0x9b0   :  { %21322 = vmatprep.subr.bf16.mxu0 %v29012_v22  ;;  %v29055_v22 = vld [vmem:[%s38773_s7 + $0x10d8] ss:$28 sps:$4 sm:$0xff]  }
 0x9b1   :  { %21153 = vmatpush1.bf16.msra.mxu1 %v29007_v4  ;;  %v8096_v4 = vrot.slane %v37187_v51, %v30030_v29 }
 0x9b2   :  { %21154 = vmatprep.subr.bf16.mxu1 %v29015_v63  ;;  %v29063_v63 = vld [vmem:[%s38773_s7 + $0x1114] ss:$28 sps:$4 sm:$0xff]  }
 0x9b3   :  { %21323 = vmatpush1.bf16.msra.mxu0 %v29010_v35  ;;  %v8108_v35 = vrot.slane %v37187_v51, %v30039_v32 }
 0x9b4   :  { %21324 = vmatprep.subr.bf16.mxu0 %v29018_v33  ;;  %v29058_v33 = vld [vmem:[%s38773_s7 + $0x708] ss:$28 sps:$4 sm:$0xff]  }
 0x9b5   :  { %21155 = vmatpush1.bf16.msra.mxu1 %v29013_v6  ;;  %v29066_v6 = vld [vmem:[%s38773_s7 + $0x744] ss:$28 sps:$4 sm:$0xff]  }
 0x9b6   :  { %21156 = vmatprep.subr.bf16.mxu1 %v29021_v52  ;;  %v29061_v52 = vld [vmem:[%s38773_s7 + $0x1110] ss:$28 sps:$4 sm:$0xff]  }
 0x9b7   :  { %21325 = vmatpush1.bf16.msra.mxu0 %v29016_v25 }
 0x9b8   :  { %21326 = vmatprep.subr.bf16.mxu0 %v29024_v55  ;;  %v29069_v55 = vld [vmem:[%s38773_s7 + $0x114c] ss:$28 sps:$4 sm:$0xff]  }
 0x9b9   :  { %21157 = vmatpush1.bf16.msra.mxu1 %v29019_v40  ;;  %v25356_v40 = vadd.f32 %v36637_v16, %v8108_v35  ;;  %v29075_v16 = vld [vmem:[%s38773_s7 + $0x1184] ss:$28 sps:$4 sm:$0xff]   ;;  %v29105_v35 = vld [vmem:[%s38773_s7 + $0x129c] ss:$28 sps:$4 sm:$0xff]  }
 0x9ba   :  { %21158 = vmatprep.subr.bf16.mxu1 %v29027_v41  ;;  %v29064_v41 = vld [vmem:[%s38773_s7 + $0x740] ss:$28 sps:$4 sm:$0xff]  }
 0x9bb   :  { %21327 = vmatpush1.bf16.msra.mxu0 %v29022_v11  ;;  %v29072_v11 = vld [vmem:[%s38773_s7 + $0x77c] ss:$28 sps:$4 sm:$0xff]  }
 0x9bc   :  { %21328 = vmatprep.subr.bf16.mxu0 %v29030_v43  ;;  %v29067_v43 = vld [vmem:[%s38773_s7 + $0x1148] ss:$28 sps:$4 sm:$0xff]  }
 0x9bd   :  { %v16026_v28 = vpop.f32.mrb[44].mxu0  ;;  %21159 = vmatpush1.bf16.msra.mxu1 %v29025_v42 }
 0x9be   :  { %v16028_v53 = vpop.f32.mrb[45].mxu0  ;;  %21160 = vmatprep.subr.bf16.mxu1 %v29033_v60  ;;  %v25353_v25 = vadd.f32 %v16026_v28, %v8096_v4  ;;  %v16611_v60 = vmax.f32 %v25356_v40, 0.0  ;;  %v29102_v4 = vld [vmem:[%s38773_s7 + $0x894] ss:$28 sps:$4 sm:$0xff]   ;;  %v29114_v40 = vld [vmem:[%s38773_s7 + $0x904] ss:$28 sps:$4 sm:$0xff]  }
 0x9bf   :  { %v25354_v1 = vadd.f32 %v16028_v53, %v8100_v23  ;;  %21329 = vmatpush1.bf16.msra.mxu0 %v29028_v44  ;;  %v16030_v12 = vpop.f32.mrb[46].mxu0  ;;  %v29070_v44 = vld [vmem:[%s38773_s7 + $0x778] ss:$28 sps:$4 sm:$0xff]  }
 0x9c0   :  { %v16031_v57 = vpop.f32.mrb[47].mxu0  ;;  %21330 = vmatprep.subr.bf16.mxu0 %v29036_v47  ;;  %v16608_v42 = vmax.f32 %v25353_v25, 0.0  ;;  %v29078_v23 = vld [vmem:[%s38773_s7 + $0x7b4] ss:$28 sps:$4 sm:$0xff]   ;;  %v29073_v47 = vld [vmem:[%s38773_s7 + $0x1180] ss:$28 sps:$4 sm:$0xff]   ;;  %v37302_v53 = vpack.c.bf16 %v16611_v60, %v16611_v60 }
 0x9c1   :  { %v16609_v10 = vmax.f32 %v25354_v1, 0.0  ;;  %21161 = vmatpush1.bf16.msra.mxu1 %v29031_v56  ;;  %v29081_v56 = vld [vmem:[%s38773_s7 + $0x11bc] ss:$28 sps:$4 sm:$0xff]   ;;  %v29084_v1 = vld [vmem:[%s38773_s7 + $0x7ec] ss:$28 sps:$4 sm:$0xff]  }
 0x9c2   :  { %21162 = vmatprep.subr.bf16.mxu1 %v29039_v46  ;;  %v37297_v28 = vpack.c.bf16 %v16608_v42, %v16608_v42  ;;  %v29076_v46 = vld [vmem:[%s38773_s7 + $0x7b0] ss:$28 sps:$4 sm:$0xff]   ;;  %v29079_v57 = vld [vmem:[%s38773_s7 + $0x11b8] ss:$28 sps:$4 sm:$0xff]   ;;  %v29123_v60 = vld [vmem:[%s38773_s7 + $0x1344] ss:$28 sps:$4 sm:$0xff]  }
 0x9c3   :  { %v37218_v59 = vpack.c.bf16 %v16609_v10, %v16609_v10  ;;  %21331 = vmatpush1.bf16.msra.mxu0 %v29034_v54  ;;  %v8112_v54 = vrot.slane %v37187_v51, %v30224_v7  ;;  %v29087_v10 = vld [vmem:[%s38773_s7 + $0x11f4] ss:$28 sps:$4 sm:$0xff]   ;;  %v29120_v42 = vld [vmem:[%s38773_s7 + $0x93c] ss:$28 sps:$4 sm:$0xff]  }
 0x9c4   :  { %21332 = vmatprep.subr.bf16.mxu0 %v29042_v18  ;;  %v29111_v25 = vld [vmem:[%s38773_s7 + $0x12d4] ss:$28 sps:$4 sm:$0xff]  }
 0x9c5   :  { %21163 = vmatpush1.bf16.msra.mxu1 %v29037_v48  ;;  %21174 = vmatprep.mubr.bf16.mxu1 %v37218_v59 }
 0x9c6   :  { %21164 = vmatprep.subr.bf16.mxu1 %v29045_v9 }
 0x9c7   :  { %21333 = vmatpush1.bf16.msra.mxu0 %v29040_v15  ;;  %v29082_v15 = vld [vmem:[%s38773_s7 + $0x7e8] ss:$28 sps:$4 sm:$0xff]  }
 0x9c8   :  { %21334 = vmatprep.subr.bf16.mxu0 %v29048_v37 }
 0x9c9   :  { %21165 = vmatpush1.bf16.msra.mxu1 %v29043_v62  ;;  %v29090_v62 = vld [vmem:[%s38773_s7 + $0x824] ss:$28 sps:$4 sm:$0xff]  }
 0x9ca   :  { %21166 = vmatprep.subr.bf16.mxu1 %v29051_v50 }
 0x9cb   :  { %21335 = vmatpush1.bf16.msra.mxu0 %v29046_v0  ;;  %v29085_v0 = vld [vmem:[%s38773_s7 + $0x11f0] ss:$28 sps:$4 sm:$0xff]  }
 0x9cc   :  { %21336 = vmatprep.subr.bf16.mxu0 %v29054_v20  ;;  %v29093_v20 = vld [vmem:[%s38773_s7 + $0x122c] ss:$28 sps:$4 sm:$0xff]  }
 0x9cd   :  { %21167 = vmatpush1.bf16.msra.mxu1 %v29049_v61  ;;  %v29088_v61 = vld [vmem:[%s38773_s7 + $0x820] ss:$28 sps:$4 sm:$0xff]  }
 0x9ce   :  { %21168 = vmatprep.subr.bf16.mxu1 %v29057_v21 }
 0x9cf   :  { %21337 = vmatpush1.bf16.msra.mxu0 %v29052_v17  ;;  %v29096_v17 = vld [vmem:[%s38773_s7 + $0x85c] ss:$28 sps:$4 sm:$0xff]  }
 0x9d0   :  { %21347 = vmatprep.subr.bf16.mxu0 %v29060_v38  ;;  %v29091_v38 = vld [vmem:[%s38773_s7 + $0x1228] ss:$28 sps:$4 sm:$0xff]  }
 0x9d1   :  { %21169 = vmatpush1.bf16.msra.mxu1 %v29055_v22  ;;  %v29099_v22 = vld [vmem:[%s38773_s7 + $0x1264] ss:$28 sps:$4 sm:$0xff]  }
 0x9d2   :  { %21339 = vmatmul.mubr.bf16.vlgmr.msra.gmra.mrb[64].mxu0 %v36669_v26  ;;  %21170 = vmatprep.subr.bf16.mxu1 %v29063_v63  ;;  %v29097_v63 = vld [vmem:[%s38773_s7 + $0x1260] ss:$28 sps:$4 sm:$0xff]  }
 0x9d3   :  { %21348 = vmatpush1.bf16.msra.mxu0 %v29058_v33  ;;  %21379 = vmatprep.mubr.bf16.mxu0 %v36671_v24  ;;  %v29100_v33 = vld [vmem:[%s38773_s7 + $0x890] ss:$28 sps:$4 sm:$0xff]  }
 0x9d4   :  { %21349 = vmatprep.subr.bf16.mxu0 %v29066_v6  ;;  %v29108_v6 = vld [vmem:[%s38773_s7 + $0x8cc] ss:$28 sps:$4 sm:$0xff]  }
 0x9d5   :  { %21171 = vmatpush1.bf16.msra.mxu1 %v29061_v52  ;;  %v29103_v52 = vld [vmem:[%s38773_s7 + $0x1298] ss:$28 sps:$4 sm:$0xff]  }
 0x9d6   :  { %21172 = vmatprep.subr.bf16.mxu1 %v29069_v55  ;;  %v29106_v55 = vld [vmem:[%s38773_s7 + $0x8c8] ss:$28 sps:$4 sm:$0xff]  }
 0x9d7   :  { %21350 = vmatpush1.bf16.msra.mxu0 %v29064_v41  ;;  %v29109_v41 = vld [vmem:[%s38773_s7 + $0x12d0] ss:$28 sps:$4 sm:$0xff]  }
 0x9d8   :  { %21351 = vmatprep.subr.bf16.mxu0 %v29072_v11  ;;  %v29117_v11 = vld [vmem:[%s38773_s7 + $0x130c] ss:$28 sps:$4 sm:$0xff]  }
 0x9d9   :  { %21173 = vmatpush1.bf16.msra.mxu1 %v29067_v43  ;;  %v29112_v43 = vld [vmem:[%s38773_s7 + $0x900] ss:$28 sps:$4 sm:$0xff]  }
 0x9da   :  { %21183 = vmatprep.subr.bf16.mxu1 %v29075_v16  ;;  %v29115_v16 = vld [vmem:[%s38773_s7 + $0x1308] ss:$28 sps:$4 sm:$0xff]  }
 0x9db   :  { %21352 = vmatpush1.bf16.msra.mxu0 %v29070_v44  ;;  %v29118_v44 = vld [vmem:[%s38773_s7 + $0x938] ss:$28 sps:$4 sm:$0xff]  }
 0x9dc   :  { %21175 = vmatmul.mubr.bf16.vlgmr.msra.gmra.mrb[48].mxu1 %v37297_v28  ;;  %21353 = vmatprep.subr.bf16.mxu0 %v29078_v23  ;;  %v29126_v23 = vld [vmem:[%s38773_s7 + $0x974] ss:$28 sps:$4 sm:$0xff]  }
 0x9dd   :  { %v25061_v12 = vpop.f32.mrb[48].mxu0  ;;  %21184 = vmatpush1.bf16.msra.mxu1 %v29073_v47  ;;  %21215 = vmatprep.mubr.bf16.mxu1 %v37302_v53  ;;  %v29121_v47 = vld [vmem:[%s38773_s7 + $0x1340] ss:$28 sps:$4 sm:$0xff]  }
 0x9de   :  { %v25062_v18 = vpop.f32.mrb[49].mxu0  ;;  %21185 = vmatprep.subr.bf16.mxu1 %v29081_v56  ;;  %v29129_v56 = vld [vmem:[%s38773_s7 + $0x137c] ss:$28 sps:$4 sm:$0xff]  }
 0x9df   :  { %v25063_v48 = vadd.f32 %v25062_v18, %v25061_v12  ;;  %v25064_v9 = vpop.f32.mrb[50].mxu0  ;;  %21354 = vmatpush1.bf16.msra.mxu0 %v29076_v46  ;;  %v29124_v46 = vld [vmem:[%s38773_s7 + $0x970] ss:$28 sps:$4 sm:$0xff]  }
 0x9e0   :  { %v25065_v37 = vpop.f32.mrb[51].mxu0  ;;  %21355 = vmatprep.subr.bf16.mxu0 %v29084_v1  ;;  %v29132_v1 = vld [vmem:[%s38773_s7 + $0x9ac] ss:$28 sps:$4 sm:$0xff]   ;;  %v29135_v18 = vld [vmem:[%s38773_s7 + $0x13b4] ss:$28 sps:$4 sm:$0xff]  }
 0x9e1   :  { %v16355_v50 = vadd.f32 %v25063_v48, %v8112_v54  ;;  %21186 = vmatpush1.bf16.msra.mxu1 %v29079_v57  ;;  %v29127_v54 = vld [vmem:[%s38773_s7 + $0x1378] ss:$28 sps:$4 sm:$0xff]   ;;  %v29130_v9 = vld [vmem:[%s38773_s7 + $0x9a8] ss:$28 sps:$4 sm:$0xff]  }
 0x9e2   :  { %21187 = vmatprep.subr.bf16.mxu1 %v29087_v10  ;;  %v29138_v37 = vld [vmem:[%s38773_s7 + $0x9e4] ss:$28 sps:$4 sm:$0xff]  }
 0x9e3   :  { %21356 = vmatpush1.bf16.msra.mxu0 %v29082_v15  ;;  %v37336_v21 = vadd.f32 %v36746_v5, %v16355_v50  ;;  %v29094_v5 = vld [vmem:[%s38773_s7 + $0x858] ss:$28 sps:$4 sm:$0xff]   ;;  %v29133_v50 = vld [vmem:[%s38773_s7 + $0x13b0] ss:$28 sps:$4 sm:$0xff]  }
 0x9e4   :  { %21357 = vmatprep.subr.bf16.mxu0 %v29090_v62 }
 0x9e5   :  { %21188 = vmatpush1.bf16.msra.mxu1 %v29085_v0  ;;  %v29141_v0 = vld [vmem:[%s38773_s7 + $0x13ec] ss:$28 sps:$4 sm:$0xff]  }
 0x9e6   :  { %21189 = vmatprep.subr.bf16.mxu1 %v29093_v20  ;;  %v29136_v20 = vld [vmem:[%s38773_s7 + $0x9e0] ss:$28 sps:$4 sm:$0xff]  }
 0x9e7   :  { %21358 = vmatpush1.bf16.msra.mxu0 %v29088_v61 }
 0x9e8   :  { %21359 = vmatprep.subr.bf16.mxu0 %v29096_v17  ;;  %v29139_v17 = vld [vmem:[%s38773_s7 + $0x13e8] ss:$28 sps:$4 sm:$0xff]  }
 0x9e9   :  { %21190 = vmatpush1.bf16.msra.mxu1 %v29091_v38  ;;  %v29147_v38 = vld [vmem:[%s38773_s7 + $0x1424] ss:$28 sps:$4 sm:$0xff]  }
 0x9ea   :  { %21191 = vmatprep.subr.bf16.mxu1 %v29099_v22  ;;  %v29150_v22 = vld [vmem:[%s38773_s7 + $0xa54] ss:$28 sps:$4 sm:$0xff]  }
 0x9eb   :  { %21360 = vmatpush1.bf16.msra.mxu0 %v29094_v5  ;;  %v29145_v5 = vld [vmem:[%s38773_s7 + $0x1420] ss:$28 sps:$4 sm:$0xff]  }
 0x9ec   :  { %21361 = vmatprep.subr.bf16.mxu0 %v29102_v4  ;;  %v29153_v4 = vld [vmem:[%s38773_s7 + $0x145c] ss:$28 sps:$4 sm:$0xff]  }
 0x9ed   :  { %21192 = vmatpush1.bf16.msra.mxu1 %v29097_v63  ;;  %v29148_v63 = vld [vmem:[%s38773_s7 + $0xa50] ss:$28 sps:$4 sm:$0xff]  }
 0x9ee   :  { %21193 = vmatprep.subr.bf16.mxu1 %v29105_v35  ;;  %v29156_v35 = vld [vmem:[%s38773_s7 + $0xa8c] ss:$28 sps:$4 sm:$0xff]  }
 0x9ef   :  { %21362 = vmatpush1.bf16.msra.mxu0 %v29100_v33  ;;  %v29151_v33 = vld [vmem:[%s38773_s7 + $0x1458] ss:$28 sps:$4 sm:$0xff]  }
 0x9f0   :  { %21363 = vmatprep.subr.bf16.mxu0 %v29108_v6  ;;  %v8104_v6 = vrot.slane %v37187_v51, %v30033_v30  ;;  %v29157_v51 = vld [vmem:[%s38773_s7 + $0x1490] ss:$28 sps:$4 sm:$0xff]  }
 0x9f1   :  { %21194 = vmatpush1.bf16.msra.mxu1 %v29103_v52  ;;  %v29159_v52 = vld [vmem:[%s38773_s7 + $0x1494] ss:$28 sps:$4 sm:$0xff]  }
 0x9f2   :  { %21195 = vmatprep.subr.bf16.mxu1 %v29111_v25  ;;  %v29154_v25 = vld [vmem:[%s38773_s7 + $0xa88] ss:$28 sps:$4 sm:$0xff]  }
 0x9f3   :  { %21364 = vmatpush1.bf16.msra.mxu0 %v29106_v55  ;;  %v29162_v55 = vld [vmem:[%s38773_s7 + $0xac4] ss:$28 sps:$4 sm:$0xff]  }
 0x9f4   :  { %21365 = vmatprep.subr.bf16.mxu0 %v29114_v40  ;;  %v25355_v40 = vadd.f32 %v36629_v13, %v8104_v6  ;;  %v29163_v13 = vld [vmem:[%s38773_s7 + $0x14c8] ss:$28 sps:$4 sm:$0xff]  }
 0x9f5   :  { %21196 = vmatpush1.bf16.msra.mxu1 %v29109_v41  ;;  %v29165_v41 = vld [vmem:[%s38773_s7 + $0x14cc] ss:$28 sps:$4 sm:$0xff]  }
 0x9f6   :  { %21197 = vmatprep.subr.bf16.mxu1 %v29117_v11  ;;  %v29160_v11 = vld [vmem:[%s38773_s7 + $0xac0] ss:$28 sps:$4 sm:$0xff]   ;;  %v29198_v6 = vld [vmem:[%s38773_s7 + $0xc4c] ss:$28 sps:$4 sm:$0xff]  }
 0x9f7   :  { %21366 = vmatpush1.bf16.msra.mxu0 %v29112_v43  ;;  %v29168_v43 = vld [vmem:[%s38773_s7 + $0xafc] ss:$28 sps:$4 sm:$0xff]  }
 0x9f8   :  { %21367 = vmatprep.subr.bf16.mxu0 %v29120_v42  ;;  %v16610_v42 = vmax.f32 %v25355_v40, 0.0  ;;  %v29199_v40 = vld [vmem:[%s38773_s7 + $0x80] ss:$28 sps:$4 sm:$0xff]  }
 0x9f9   :  { %21198 = vmatpush1.bf16.msra.mxu1 %v29115_v16  ;;  %v29174_v16 = vld [vmem:[%s38773_s7 + $0x1504] ss:$28 sps:$4 sm:$0xff]  }
 0x9fa   :  { %21199 = vmatprep.subr.bf16.mxu1 %v29123_v60  ;;  %v29166_v60 = vld [vmem:[%s38773_s7 + $0xaf8] ss:$28 sps:$4 sm:$0xff]  }
 0x9fb   :  { %21368 = vmatpush1.bf16.msra.mxu0 %v29118_v44  ;;  %v29171_v44 = vld [vmem:[%s38773_s7 + $0xb34] ss:$28 sps:$4 sm:$0xff]  }
 0x9fc   :  { %21369 = vmatprep.subr.bf16.mxu0 %v29126_v23  ;;  %v29172_v23 = vld [vmem:[%s38773_s7 + $0x1500] ss:$28 sps:$4 sm:$0xff]  }
 0x9fd   :  { %v25105_v12 = vpop.f32.mrb[52].mxu0  ;;  %21200 = vmatpush1.bf16.msra.mxu1 %v29121_v47  ;;  %v37509_v47 = vpack.c.bf16 %v16610_v42, %v16610_v42  ;;  %v29213_v42 = vld [vmem:[%s38773_s7 + $0xf4] ss:$28 sps:$4 sm:$0xff]  }
 0x9fe   :  { %v25106_v57 = vpop.f32.mrb[53].mxu0  ;;  %21201 = vmatprep.subr.bf16.mxu1 %v29129_v56  ;;  %v29180_v56 = vld [vmem:[%s38773_s7 + $0x153c] ss:$28 sps:$4 sm:$0xff]  }
 0x9ff   :  { %v25107_v10 = vadd.f32 %v25106_v57, %v25105_v12  ;;  %v25108_v48 = vpop.f32.mrb[54].mxu0  ;;  %21370 = vmatpush1.bf16.msra.mxu0 %v29124_v46  ;;  %v29169_v46 = vld [vmem:[%s38773_s7 + $0xb30] ss:$28 sps:$4 sm:$0xff]  }
 0xa00   :  { %v25109_v15 = vpop.f32.mrb[55].mxu0  ;;  %21371 = vmatprep.subr.bf16.mxu0 %v29132_v1  ;;  %v29177_v1 = vld [vmem:[%s38773_s7 + $0xb6c] ss:$28 sps:$4 sm:$0xff]  }
 0xa01   :  { %v16435_v62 = vadd.f32 %v25107_v10, %v37336_v21  ;;  %21202 = vmatpush1.bf16.msra.mxu1 %v29127_v54  ;;  %v29144_v21 = vld [vmem:[%s38773_s7 + $0xa1c] ss:$28 sps:$4 sm:$0xff]  }
 0xa02   :  { %21203 = vmatprep.subr.bf16.mxu1 %v29135_v18  ;;  %v29178_v54 = vld [vmem:[%s38773_s7 + $0x1538] ss:$28 sps:$4 sm:$0xff]  }
 0xa03   :  { %21372 = vmatpush1.bf16.msra.mxu0 %v29130_v9  ;;  %v37436_v61 = vadd.f32 %v36847_v14, %v16435_v62  ;;  %v29142_v14 = vld [vmem:[%s38773_s7 + $0xa18] ss:$28 sps:$4 sm:$0xff]   ;;  %v29175_v9 = vld [vmem:[%s38773_s7 + $0xb68] ss:$28 sps:$4 sm:$0xff]  }
 0xa04   :  { %21373 = vmatprep.subr.bf16.mxu0 %v29138_v37  ;;  %v29189_v18 = vld [vmem:[%s38773_s7 + $0x14] ss:$28 sps:$4 sm:$0xff]   ;;  %v29183_v37 = vld [vmem:[%s38773_s7 + $0xba4] ss:$28 sps:$4 sm:$0xff]  }
 0xa05   :  { %21204 = vmatpush1.bf16.msra.mxu1 %v29133_v50 }
 0xa06   :  { %21205 = vmatprep.subr.bf16.mxu1 %v29141_v0  ;;  %v29181_v0 = vld [vmem:[%s38773_s7 + $0xba0] ss:$28 sps:$4 sm:$0xff]  }
 0xa07   :  { %21374 = vmatpush1.bf16.msra.mxu0 %v29136_v20  ;;  %v29186_v20 = vld [vmem:[%s38773_s7 + $0xbdc] ss:$28 sps:$4 sm:$0xff]  }
 0xa08   :  { %21375 = vmatprep.subr.bf16.mxu0 %v29144_v21 }
 0xa09   :  { %21206 = vmatpush1.bf16.msra.mxu1 %v29139_v17 }
 0xa0a   :  { %21207 = vmatprep.subr.bf16.mxu1 %v29147_v38 }
 0xa0b   :  { %21376 = vmatpush1.bf16.msra.mxu0 %v29142_v14 }
 0xa0c   :  { %21377 = vmatprep.subr.bf16.mxu0 %v29150_v22 }
 0xa0d   :  { %21208 = vmatpush1.bf16.msra.mxu1 %v29145_v5  ;;  %v29192_v5 = vld [vmem:[%s38773_s7 + $0xc14] ss:$28 sps:$4 sm:$0xff]  }
 0xa0e   :  { %21209 = vmatprep.subr.bf16.mxu1 %v29153_v4  ;;  %v29187_v4 = vld [vmem:[%s38773_s7 + $0x10] ss:$28 sps:$4 sm:$0xff]  }
 0xa0f   :  { %21378 = vmatpush1.bf16.msra.mxu0 %v29148_v63 }
 0xa10   :  { %21388 = vmatprep.subr.bf16.mxu0 %v29156_v35  ;;  %v29195_v35 = vld [vmem:[%s38773_s7 + $0x4c] ss:$28 sps:$4 sm:$0xff]  }
 0xa11   :  { %21210 = vmatpush1.bf16.msra.mxu1 %v29151_v33  ;;  %v29190_v33 = vld [vmem:[%s38773_s7 + $0xc10] ss:$28 sps:$4 sm:$0xff]  }
 0xa12   :  { %21380 = vmatmul.mubr.bf16.vlgmr.msra.gmra.mrb[64].mxu0 %v36881_v49  ;;  %21211 = vmatprep.subr.bf16.mxu1 %v29159_v52  ;;  %v29193_v52 = vld [vmem:[%s38773_s7 + $0x48] ss:$28 sps:$4 sm:$0xff]  }
 0xa13   :  { %21389 = vmatpush1.bf16.msra.mxu0 %v29154_v25  ;;  %21420 = vmatprep.mubr.bf16.mxu0 %v36883_v19  ;;  %v29201_v25 = vld [vmem:[%s38773_s7 + $0x84] ss:$28 sps:$4 sm:$0xff]  }
 0xa14   :  { %21390 = vmatprep.subr.bf16.mxu0 %v29162_v55  ;;  %v29196_v55 = vld [vmem:[%s38773_s7 + $0xc48] ss:$28 sps:$4 sm:$0xff]  }
 0xa15   :  { %21212 = vmatpush1.bf16.msra.mxu1 %v29157_v51  ;;  %v29204_v51 = vld [vmem:[%s38773_s7 + $0xc84] ss:$28 sps:$4 sm:$0xff]  }
 0xa16   :  { %21213 = vmatprep.subr.bf16.mxu1 %v29165_v41  ;;  %v29207_v41 = vld [vmem:[%s38773_s7 + $0xbc] ss:$28 sps:$4 sm:$0xff]  }
 0xa17   :  { %21391 = vmatpush1.bf16.msra.mxu0 %v29160_v11  ;;  %v29202_v11 = vld [vmem:[%s38773_s7 + $0xc80] ss:$28 sps:$4 sm:$0xff]  }
 0xa18   :  { %21392 = vmatprep.subr.bf16.mxu0 %v29168_v43  ;;  %v29210_v43 = vld [vmem:[%s38773_s7 + $0xcbc] ss:$28 sps:$4 sm:$0xff]  }
 0xa19   :  { %21214 = vmatpush1.bf16.msra.mxu1 %v29163_v13  ;;  %v29205_v13 = vld [vmem:[%s38773_s7 + $0xb8] ss:$28 sps:$4 sm:$0xff]  }
 0xa1a   :  { %21224 = vmatprep.subr.bf16.mxu1 %v29174_v16  ;;  %v29208_v16 = vld [vmem:[%s38773_s7 + $0xcb8] ss:$28 sps:$4 sm:$0xff]  }
 0xa1b   :  { %21393 = vmatpush1.bf16.msra.mxu0 %v29166_v60  ;;  %v29216_v60 = vld [vmem:[%s38773_s7 + $0xcf4] ss:$28 sps:$4 sm:$0xff]  }
 0xa1c   :  { %21216 = vmatmul.mubr.bf16.vlgmr.msra.gmra.mrb[48].mxu1 %v37509_v47  ;;  %21394 = vmatprep.subr.bf16.mxu0 %v29171_v44  ;;  %v29211_v44 = vld [vmem:[%s38773_s7 + $0xf0] ss:$28 sps:$4 sm:$0xff]  }
 0xa1d   :  { %v25149_v12 = vpop.f32.mrb[56].mxu0  ;;  %21225 = vmatpush1.bf16.msra.mxu1 %v29172_v23  ;;  %21256 = vmatprep.mubr.bf16.mxu1 %v29728_v3  ;;  %v29219_v23 = vld [vmem:[%s38773_s7 + $0x12c] ss:$28 sps:$4 sm:$0xff]  }
 0xa1e   :  { %v25150_v57 = vpop.f32.mrb[57].mxu0  ;;  %21226 = vmatprep.subr.bf16.mxu1 %v29180_v56  ;;  %v29214_v56 = vld [vmem:[%s38773_s7 + $0xcf0] ss:$28 sps:$4 sm:$0xff]  }
 0xa1f   :  { %v25151_v10 = vadd.f32 %v25150_v57, %v25149_v12  ;;  %v25152_v48 = vpop.f32.mrb[58].mxu0  ;;  %21395 = vmatpush1.bf16.msra.mxu0 %v29169_v46  ;;  %v29222_v46 = vld [vmem:[%s38773_s7 + $0xd2c] ss:$28 sps:$4 sm:$0xff]   ;;  %v29225_v12 = vld [vmem:[%s38773_s7 + $0x164] ss:$28 sps:$4 sm:$0xff]  }
 0xa20   :  { %v25153_v15 = vpop.f32.mrb[59].mxu0  ;;  %21396 = vmatprep.subr.bf16.mxu0 %v29177_v1  ;;  %v29217_v1 = vld [vmem:[%s38773_s7 + $0x128] ss:$28 sps:$4 sm:$0xff]   ;;  %v29226_v48 = vld [vmem:[%s38773_s7 + $0xd60] ss:$28 sps:$4 sm:$0xff]  }
 0xa21   :  { %v16515_v62 = vadd.f32 %v25151_v10, %v37436_v61  ;;  %21227 = vmatpush1.bf16.msra.mxu1 %v29178_v54  ;;  %v29184_v61 = vld [vmem:[%s38773_s7 + $0xbd8] ss:$28 sps:$4 sm:$0xff]   ;;  %v29220_v54 = vld [vmem:[%s38773_s7 + $0xd28] ss:$28 sps:$4 sm:$0xff]  }
 0xa22   :  { %21552 = vmatprep.subr.bf16.mxu1 %v29189_v18  ;;  %v29228_v57 = vld [vmem:[%s38773_s7 + $0xd64] ss:$28 sps:$4 sm:$0xff]   ;;  %v29231_v10 = vld [vmem:[%s38773_s7 + $0x19c] ss:$28 sps:$4 sm:$0xff]  }
 0xa23   :  { %21397 = vmatpush1.bf16.msra.mxu0 %v29175_v9  ;;  %v16555_v50 = vadd.f32 %v36956_v58, %v16515_v62  ;;  %v29223_v18 = vld [vmem:[%s38773_s7 + $0x160] ss:$28 sps:$4 sm:$0xff]   ;;  %v29229_v15 = vld [vmem:[%s38773_s7 + $0x198] ss:$28 sps:$4 sm:$0xff]  }
 0xa24   :  { %21398 = vmatprep.subr.bf16.mxu0 %v29183_v37  ;;  %v29234_v9 = vld [vmem:[%s38773_s7 + $0xd9c] ss:$28 sps:$4 sm:$0xff]   ;;  %v29237_v37 = vld [vmem:[%s38773_s7 + $0x1d4] ss:$28 sps:$4 sm:$0xff]  }
 0xa25   :  { %v16594_v21 = vpop.f32.mrb[60].mxu0  ;;  %v29232_v62 = vld [vmem:[%s38773_s7 + $0xd98] ss:$28 sps:$4 sm:$0xff]  }
 0xa26   :  { %v16595_v17 = vadd.f32 %v16594_v21, %v16555_v50  ;;  %v25321_v38 = vpop.f32.mrb[61].mxu0  ;;  %v29240_v50 = vld [vmem:[%s38773_s7 + $0xdd4] ss:$28 sps:$4 sm:$0xff]  }
 0xa27   :  { %v16597_v14 = vpop.f32.mrb[62].mxu0  ;;  %21399 = vmatpush1.bf16.msra.mxu0 %v29181_v0  ;;  %v29235_v0 = vld [vmem:[%s38773_s7 + $0x1d0] ss:$28 sps:$4 sm:$0xff]   ;;  %v29241_v38 = vld [vmem:[%s38773_s7 + $0x208] ss:$28 sps:$4 sm:$0xff]  }
 0xa28   :  { %v16612_v22 = vmax.f32 %v16595_v17, 0.0  ;;  %v25322_v58 = vpop.f32.mrb[63].mxu0  ;;  %21400 = vmatprep.subr.bf16.mxu0 %v29186_v20  ;;  %v29243_v20 = vld [vmem:[%s38773_s7 + $0x20c] ss:$28 sps:$4 sm:$0xff]   ;;  %v29249_v14 = vld [vmem:[%s38773_s7 + $0x244] ss:$28 sps:$4 sm:$0xff]  }
 0xa29   :  { %v29238_v21 = vld [vmem:[%s38773_s7 + $0xdd0] ss:$28 sps:$4 sm:$0xff]   ;;  %v29247_v58 = vld [vmem:[%s38773_s7 + $0x240] ss:$28 sps:$4 sm:$0xff]  }
 0xa2a   :  { %v37551_v63 = vpack.c.bf16 %v16612_v22, %v16612_v22  ;;  %v29246_v17 = vld [vmem:[%s38773_s7 + $0xe0c] ss:$28 sps:$4 sm:$0xff]   ;;  %v29252_v22 = vld [vmem:[%s38773_s7 + $0xe44] ss:$28 sps:$4 sm:$0xff]  }
 0xa2b   :  { %21401 = vmatpush1.bf16.msra.mxu0 %v29184_v61  ;;  %v29244_v61 = vld [vmem:[%s38773_s7 + $0xe08] ss:$28 sps:$4 sm:$0xff]  }
 0xa2c   :  { %24953 = vmatmul.mubr.msk.bf16.vlgmr.msra.gmra.mrb[48].mxu1 %vm14594_vm2, %v37551_v63  ;;  %21402 = vmatprep.subr.bf16.mxu0 %v29192_v5  ;;  %v29255_v5 = vld [vmem:[%s38773_s7 + $0x27c] ss:$28 sps:$4 sm:$0xff]  }
 0xa2d   :  { %21553 = vmatpush1.bf16.msra.mxu1 %v29187_v4  ;;  %21584 = vmatprep.mubr.bf16.mxu1 %v36251_v39  ;;  %v29250_v4 = vld [vmem:[%s38773_s7 + $0xe40] ss:$28 sps:$4 sm:$0xff]  }
 0xa2e   :  { %21554 = vmatprep.subr.bf16.mxu1 %v29195_v35  ;;  %v29258_v35 = vld [vmem:[%s38773_s7 + $0xe7c] ss:$28 sps:$4 sm:$0xff]  }
 0xa2f   :  { %21403 = vmatpush1.bf16.msra.mxu0 %v29190_v33  ;;  %v29253_v33 = vld [vmem:[%s38773_s7 + $0x278] ss:$28 sps:$4 sm:$0xff]  }
 0xa30   :  { %21404 = vmatprep.subr.bf16.mxu0 %v29198_v6  ;;  %v29261_v6 = vld [vmem:[%s38773_s7 + $0x2b4] ss:$28 sps:$4 sm:$0xff]  }
 0xa31   :  { %21555 = vmatpush1.bf16.msra.mxu1 %v29193_v52  ;;  %v29256_v52 = vld [vmem:[%s38773_s7 + $0xe78] ss:$28 sps:$4 sm:$0xff]  }
 0xa32   :  { %21556 = vmatprep.subr.bf16.mxu1 %v29201_v25  ;;  %v29264_v25 = vld [vmem:[%s38773_s7 + $0xeb4] ss:$28 sps:$4 sm:$0xff]  }
 0xa33   :  { %21405 = vmatpush1.bf16.msra.mxu0 %v29196_v55  ;;  %v29259_v55 = vld [vmem:[%s38773_s7 + $0x2b0] ss:$28 sps:$4 sm:$0xff]  }
 0xa34   :  { %21406 = vmatprep.subr.bf16.mxu0 %v29204_v51  ;;  %v29267_v51 = vld [vmem:[%s38773_s7 + $0x2ec] ss:$28 sps:$4 sm:$0xff]  }
 0xa35   :  { %21557 = vmatpush1.bf16.msra.mxu1 %v29199_v40  ;;  %v29262_v40 = vld [vmem:[%s38773_s7 + $0xeb0] ss:$28 sps:$4 sm:$0xff]  }
 0xa36   :  { %21558 = vmatprep.subr.bf16.mxu1 %v29207_v41  ;;  %v29270_v41 = vld [vmem:[%s38773_s7 + $0xeec] ss:$28 sps:$4 sm:$0xff]  }
 0xa37   :  { %21407 = vmatpush1.bf16.msra.mxu0 %v29202_v11  ;;  %v29265_v11 = vld [vmem:[%s38773_s7 + $0x2e8] ss:$28 sps:$4 sm:$0xff]  }
 0xa38   :  { %21408 = vmatprep.subr.bf16.mxu0 %v29210_v43  ;;  %v29273_v43 = vld [vmem:[%s38773_s7 + $0x324] ss:$28 sps:$4 sm:$0xff]  }
 0xa39   :  { %21559 = vmatpush1.bf16.msra.mxu1 %v29205_v13  ;;  %v29268_v13 = vld [vmem:[%s38773_s7 + $0xee8] ss:$28 sps:$4 sm:$0xff]  }
 0xa3a   :  { %21560 = vmatprep.subr.bf16.mxu1 %v29213_v42  ;;  %v29276_v42 = vld [vmem:[%s38773_s7 + $0xf24] ss:$28 sps:$4 sm:$0xff]  }
 0xa3b   :  { %21409 = vmatpush1.bf16.msra.mxu0 %v29208_v16  ;;  %v29271_v16 = vld [vmem:[%s38773_s7 + $0x320] ss:$28 sps:$4 sm:$0xff]  }
 0xa3c   :  { %21410 = vmatprep.subr.bf16.mxu0 %v29216_v60  ;;  %v29279_v60 = vld [vmem:[%s38773_s7 + $0x35c] ss:$28 sps:$4 sm:$0xff]  }
 0xa3d   :  { %21561 = vmatpush1.bf16.msra.mxu1 %v29211_v44  ;;  %v29274_v44 = vld [vmem:[%s38773_s7 + $0xf20] ss:$28 sps:$4 sm:$0xff]  }
 0xa3e   :  { %21562 = vmatprep.subr.bf16.mxu1 %v29219_v23  ;;  %v29282_v23 = vld [vmem:[%s38773_s7 + $0xf5c] ss:$28 sps:$4 sm:$0xff]  }
 0xa3f   :  { %21411 = vmatpush1.bf16.msra.mxu0 %v29214_v56  ;;  %v29277_v56 = vld [vmem:[%s38773_s7 + $0x358] ss:$28 sps:$4 sm:$0xff]  }
 0xa40   :  { %21412 = vmatprep.subr.bf16.mxu0 %v29222_v46  ;;  %v29285_v46 = vld [vmem:[%s38773_s7 + $0x394] ss:$28 sps:$4 sm:$0xff]  }
 0xa41   :  { %21563 = vmatpush1.bf16.msra.mxu1 %v29217_v1  ;;  %v29280_v1 = vld [vmem:[%s38773_s7 + $0xf58] ss:$28 sps:$4 sm:$0xff]  }
 0xa42   :  { %21564 = vmatprep.subr.bf16.mxu1 %v29225_v12  ;;  %v29288_v12 = vld [vmem:[%s38773_s7 + $0xf94] ss:$28 sps:$4 sm:$0xff]  }
 0xa43   :  { %21413 = vmatpush1.bf16.msra.mxu0 %v29220_v54  ;;  %v29283_v54 = vld [vmem:[%s38773_s7 + $0x390] ss:$28 sps:$4 sm:$0xff]  }
 0xa44   :  { %21414 = vmatprep.subr.bf16.mxu0 %v29228_v57  ;;  %v29291_v57 = vld [vmem:[%s38773_s7 + $0x3cc] ss:$28 sps:$4 sm:$0xff]  }
 0xa45   :  { %21565 = vmatpush1.bf16.msra.mxu1 %v29223_v18  ;;  %v29286_v18 = vld [vmem:[%s38773_s7 + $0xf90] ss:$28 sps:$4 sm:$0xff]  }
 0xa46   :  { %21566 = vmatprep.subr.bf16.mxu1 %v29231_v10  ;;  %v29294_v10 = vld [vmem:[%s38773_s7 + $0xfcc] ss:$28 sps:$4 sm:$0xff]  }
 0xa47   :  { %21415 = vmatpush1.bf16.msra.mxu0 %v29226_v48  ;;  %v29289_v48 = vld [vmem:[%s38773_s7 + $0x3c8] ss:$28 sps:$4 sm:$0xff]  }
 0xa48   :  { %21416 = vmatprep.subr.bf16.mxu0 %v29234_v9  ;;  %v29297_v9 = vld [vmem:[%s38773_s7 + $0x404] ss:$28 sps:$4 sm:$0xff]  }
 0xa49   :  { %21567 = vmatpush1.bf16.msra.mxu1 %v29229_v15  ;;  %v29292_v15 = vld [vmem:[%s38773_s7 + $0xfc8] ss:$28 sps:$4 sm:$0xff]  }
 0xa4a   :  { %21568 = vmatprep.subr.bf16.mxu1 %v29237_v37  ;;  %v29300_v37 = vld [vmem:[%s38773_s7 + $0x1004] ss:$28 sps:$4 sm:$0xff]  }
 0xa4b   :  { %21417 = vmatpush1.bf16.msra.mxu0 %v29232_v62  ;;  %v29295_v62 = vld [vmem:[%s38773_s7 + $0x400] ss:$28 sps:$4 sm:$0xff]  }
 0xa4c   :  { %21418 = vmatprep.subr.bf16.mxu0 %v29240_v50  ;;  %v29303_v50 = vld [vmem:[%s38773_s7 + $0x43c] ss:$28 sps:$4 sm:$0xff]  }
 0xa4d   :  { %21569 = vmatpush1.bf16.msra.mxu1 %v29235_v0  ;;  %v29298_v0 = vld [vmem:[%s38773_s7 + $0x1000] ss:$28 sps:$4 sm:$0xff]  }
 0xa4e   :  { %21570 = vmatprep.subr.bf16.mxu1 %v29243_v20  ;;  %v29306_v20 = vld [vmem:[%s38773_s7 + $0x103c] ss:$28 sps:$4 sm:$0xff]  }
 0xa4f   :  { %21419 = vmatpush1.bf16.msra.mxu0 %v29238_v21  ;;  %v29301_v21 = vld [vmem:[%s38773_s7 + $0x438] ss:$28 sps:$4 sm:$0xff]  }
 0xa50   :  { %21429 = vmatprep.subr.bf16.mxu0 %v29246_v17  ;;  %v29309_v17 = vld [vmem:[%s38773_s7 + $0x474] ss:$28 sps:$4 sm:$0xff]  }
 0xa51   :  { %21571 = vmatpush1.bf16.msra.mxu1 %v29241_v38  ;;  %v29304_v38 = vld [vmem:[%s38773_s7 + $0x1038] ss:$28 sps:$4 sm:$0xff]  }
 0xa52   :  { %21421 = vmatmul.mubr.bf16.vlgmr.msra.gmra.mrb[64].mxu0 %v37091_v34  ;;  %21572 = vmatprep.subr.bf16.mxu1 %v29249_v14  ;;  %v29312_v14 = vld [vmem:[%s38773_s7 + $0x1074] ss:$28 sps:$4 sm:$0xff]  }
 0xa53   :  { %21430 = vmatpush1.bf16.msra.mxu0 %v29244_v61  ;;  %21461 = vmatprep.mubr.bf16.mxu0 %v37218_v59  ;;  %v29307_v61 = vld [vmem:[%s38773_s7 + $0x470] ss:$28 sps:$4 sm:$0xff]  }
 0xa54   :  { %21431 = vmatprep.subr.bf16.mxu0 %v29252_v22  ;;  %v29315_v22 = vld [vmem:[%s38773_s7 + $0x4ac] ss:$28 sps:$4 sm:$0xff]  }
 0xa55   :  { %21573 = vmatpush1.bf16.msra.mxu1 %v29247_v58  ;;  %v29310_v58 = vld [vmem:[%s38773_s7 + $0x1070] ss:$28 sps:$4 sm:$0xff]  }
 0xa56   :  { %21574 = vmatprep.subr.bf16.mxu1 %v29255_v5  ;;  %v29318_v5 = vld [vmem:[%s38773_s7 + $0x10ac] ss:$28 sps:$4 sm:$0xff]  }
 0xa57   :  { %21432 = vmatpush1.bf16.msra.mxu0 %v29250_v4  ;;  %v29313_v4 = vld [vmem:[%s38773_s7 + $0x4a8] ss:$28 sps:$4 sm:$0xff]  }
 0xa58   :  { %21433 = vmatprep.subr.bf16.mxu0 %v29258_v35  ;;  %v29321_v35 = vld [vmem:[%s38773_s7 + $0x4e4] ss:$28 sps:$4 sm:$0xff]  }
 0xa59   :  { %21575 = vmatpush1.bf16.msra.mxu1 %v29253_v33  ;;  %v29316_v33 = vld [vmem:[%s38773_s7 + $0x10a8] ss:$28 sps:$4 sm:$0xff]  }
 0xa5a   :  { %21576 = vmatprep.subr.bf16.mxu1 %v29261_v6  ;;  %v29324_v6 = vld [vmem:[%s38773_s7 + $0x10e4] ss:$28 sps:$4 sm:$0xff]  }
 0xa5b   :  { %21434 = vmatpush1.bf16.msra.mxu0 %v29256_v52  ;;  %v29319_v52 = vld [vmem:[%s38773_s7 + $0x4e0] ss:$28 sps:$4 sm:$0xff]  }
 0xa5c   :  { %21435 = vmatprep.subr.bf16.mxu0 %v29264_v25  ;;  %v29327_v25 = vld [vmem:[%s38773_s7 + $0x51c] ss:$28 sps:$4 sm:$0xff]  }
 0xa5d   :  { %21577 = vmatpush1.bf16.msra.mxu1 %v29259_v55  ;;  %v29322_v55 = vld [vmem:[%s38773_s7 + $0x10e0] ss:$28 sps:$4 sm:$0xff]  }
 0xa5e   :  { %21578 = vmatprep.subr.bf16.mxu1 %v29267_v51  ;;  %v29330_v51 = vld [vmem:[%s38773_s7 + $0x111c] ss:$28 sps:$4 sm:$0xff]  }
 0xa5f   :  { %21436 = vmatpush1.bf16.msra.mxu0 %v29262_v40  ;;  %v29325_v40 = vld [vmem:[%s38773_s7 + $0x518] ss:$28 sps:$4 sm:$0xff]  }
 0xa60   :  { %21437 = vmatprep.subr.bf16.mxu0 %v29270_v41  ;;  %v29333_v41 = vld [vmem:[%s38773_s7 + $0x554] ss:$28 sps:$4 sm:$0xff]  }
 0xa61   :  { %21579 = vmatpush1.bf16.msra.mxu1 %v29265_v11  ;;  %v29328_v11 = vld [vmem:[%s38773_s7 + $0x1118] ss:$28 sps:$4 sm:$0xff]  }
 0xa62   :  { %21580 = vmatprep.subr.bf16.mxu1 %v29273_v43  ;;  %v29336_v43 = vld [vmem:[%s38773_s7 + $0x1154] ss:$28 sps:$4 sm:$0xff]  }
 0xa63   :  { %21438 = vmatpush1.bf16.msra.mxu0 %v29268_v13  ;;  %v29331_v13 = vld [vmem:[%s38773_s7 + $0x550] ss:$28 sps:$4 sm:$0xff]  }
 0xa64   :  { %21439 = vmatprep.subr.bf16.mxu0 %v29276_v42  ;;  %v29339_v42 = vld [vmem:[%s38773_s7 + $0x58c] ss:$28 sps:$4 sm:$0xff]  }
 0xa65   :  { %21581 = vmatpush1.bf16.msra.mxu1 %v29271_v16  ;;  %v29334_v16 = vld [vmem:[%s38773_s7 + $0x1150] ss:$28 sps:$4 sm:$0xff]  }
 0xa66   :  { %21582 = vmatprep.subr.bf16.mxu1 %v29279_v60  ;;  %v29342_v60 = vld [vmem:[%s38773_s7 + $0x118c] ss:$28 sps:$4 sm:$0xff]  }
 0xa67   :  { %21440 = vmatpush1.bf16.msra.mxu0 %v29274_v44  ;;  %v29337_v44 = vld [vmem:[%s38773_s7 + $0x588] ss:$28 sps:$4 sm:$0xff]  }
 0xa68   :  { %21441 = vmatprep.subr.bf16.mxu0 %v29282_v23  ;;  %v29345_v23 = vld [vmem:[%s38773_s7 + $0x5c4] ss:$28 sps:$4 sm:$0xff]  }
 0xa69   :  { %21583 = vmatpush1.bf16.msra.mxu1 %v29277_v56  ;;  %v29340_v56 = vld [vmem:[%s38773_s7 + $0x1188] ss:$28 sps:$4 sm:$0xff]  }
 0xa6a   :  { %21593 = vmatprep.subr.bf16.mxu1 %v29285_v46  ;;  %v29348_v46 = vld [vmem:[%s38773_s7 + $0x11c4] ss:$28 sps:$4 sm:$0xff]  }
 0xa6b   :  { %21442 = vmatpush1.bf16.msra.mxu0 %v29280_v1  ;;  %v29343_v1 = vld [vmem:[%s38773_s7 + $0x5c0] ss:$28 sps:$4 sm:$0xff]  }
 0xa6c   :  { %21585 = vmatmul.mubr.bf16.vlgmr.msra.gmra.mrb[52].mxu1 %v36455_v2  ;;  %21443 = vmatprep.subr.bf16.mxu0 %v29288_v12  ;;  %v29351_v12 = vld [vmem:[%s38773_s7 + $0x5fc] ss:$28 sps:$4 sm:$0xff]  }
 0xa6d   :  { %21594 = vmatpush1.bf16.msra.mxu1 %v29283_v54  ;;  %21625 = vmatprep.mubr.bf16.mxu1 %v36457_v8  ;;  %v29346_v54 = vld [vmem:[%s38773_s7 + $0x11c0] ss:$28 sps:$4 sm:$0xff]  }
 0xa6e   :  { %21595 = vmatprep.subr.bf16.mxu1 %v29291_v57  ;;  %v29354_v57 = vld [vmem:[%s38773_s7 + $0x11fc] ss:$28 sps:$4 sm:$0xff]  }
 0xa6f   :  { %21444 = vmatpush1.bf16.msra.mxu0 %v29286_v18  ;;  %v29349_v18 = vld [vmem:[%s38773_s7 + $0x5f8] ss:$28 sps:$4 sm:$0xff]  }
 0xa70   :  { %21445 = vmatprep.subr.bf16.mxu0 %v29294_v10  ;;  %v29357_v10 = vld [vmem:[%s38773_s7 + $0x634] ss:$28 sps:$4 sm:$0xff]  }
 0xa71   :  { %21596 = vmatpush1.bf16.msra.mxu1 %v29289_v48  ;;  %v29352_v48 = vld [vmem:[%s38773_s7 + $0x11f8] ss:$28 sps:$4 sm:$0xff]  }
 0xa72   :  { %21597 = vmatprep.subr.bf16.mxu1 %v29297_v9  ;;  %v29360_v9 = vld [vmem:[%s38773_s7 + $0x1234] ss:$28 sps:$4 sm:$0xff]  }
 0xa73   :  { %21446 = vmatpush1.bf16.msra.mxu0 %v29292_v15  ;;  %v29355_v15 = vld [vmem:[%s38773_s7 + $0x630] ss:$28 sps:$4 sm:$0xff]  }
 0xa74   :  { %21447 = vmatprep.subr.bf16.mxu0 %v29300_v37  ;;  %v29363_v37 = vld [vmem:[%s38773_s7 + $0x66c] ss:$28 sps:$4 sm:$0xff]  }
 0xa75   :  { %21598 = vmatpush1.bf16.msra.mxu1 %v29295_v62  ;;  %v29358_v62 = vld [vmem:[%s38773_s7 + $0x1230] ss:$28 sps:$4 sm:$0xff]  }
 0xa76   :  { %21599 = vmatprep.subr.bf16.mxu1 %v29303_v50  ;;  %v29366_v50 = vld [vmem:[%s38773_s7 + $0x126c] ss:$28 sps:$4 sm:$0xff]  }
 0xa77   :  { %21448 = vmatpush1.bf16.msra.mxu0 %v29298_v0  ;;  %v29361_v0 = vld [vmem:[%s38773_s7 + $0x668] ss:$28 sps:$4 sm:$0xff]  }
 0xa78   :  { %21449 = vmatprep.subr.bf16.mxu0 %v29306_v20  ;;  %v29369_v20 = vld [vmem:[%s38773_s7 + $0x6a4] ss:$28 sps:$4 sm:$0xff]  }
 0xa79   :  { %21600 = vmatpush1.bf16.msra.mxu1 %v29301_v21  ;;  %v29364_v21 = vld [vmem:[%s38773_s7 + $0x1268] ss:$28 sps:$4 sm:$0xff]  }
 0xa7a   :  { %21601 = vmatprep.subr.bf16.mxu1 %v29309_v17  ;;  %v29372_v17 = vld [vmem:[%s38773_s7 + $0x12a4] ss:$28 sps:$4 sm:$0xff]  }
 0xa7b   :  { %21450 = vmatpush1.bf16.msra.mxu0 %v29304_v38  ;;  %v29367_v38 = vld [vmem:[%s38773_s7 + $0x6a0] ss:$28 sps:$4 sm:$0xff]  }
 0xa7c   :  { %21451 = vmatprep.subr.bf16.mxu0 %v29312_v14  ;;  %v29375_v14 = vld [vmem:[%s38773_s7 + $0x6dc] ss:$28 sps:$4 sm:$0xff]  }
 0xa7d   :  { %21602 = vmatpush1.bf16.msra.mxu1 %v29307_v61  ;;  %v29370_v61 = vld [vmem:[%s38773_s7 + $0x12a0] ss:$28 sps:$4 sm:$0xff]  }
 0xa7e   :  { %21603 = vmatprep.subr.bf16.mxu1 %v29315_v22  ;;  %v29378_v22 = vld [vmem:[%s38773_s7 + $0x12dc] ss:$28 sps:$4 sm:$0xff]  }
 0xa7f   :  { %21452 = vmatpush1.bf16.msra.mxu0 %v29310_v58  ;;  %v29373_v58 = vld [vmem:[%s38773_s7 + $0x6d8] ss:$28 sps:$4 sm:$0xff]  }
 0xa80   :  { %21453 = vmatprep.subr.bf16.mxu0 %v29318_v5  ;;  %v29381_v5 = vld [vmem:[%s38773_s7 + $0x714] ss:$28 sps:$4 sm:$0xff]  }
 0xa81   :  { %21604 = vmatpush1.bf16.msra.mxu1 %v29313_v4  ;;  %v29376_v4 = vld [vmem:[%s38773_s7 + $0x12d8] ss:$28 sps:$4 sm:$0xff]  }
 0xa82   :  { %21605 = vmatprep.subr.bf16.mxu1 %v29321_v35  ;;  %v29384_v35 = vld [vmem:[%s38773_s7 + $0x1314] ss:$28 sps:$4 sm:$0xff]  }
 0xa83   :  { %21454 = vmatpush1.bf16.msra.mxu0 %v29316_v33  ;;  %v29379_v33 = vld [vmem:[%s38773_s7 + $0x710] ss:$28 sps:$4 sm:$0xff]  }
 0xa84   :  { %21455 = vmatprep.subr.bf16.mxu0 %v29324_v6  ;;  %v29387_v6 = vld [vmem:[%s38773_s7 + $0x74c] ss:$28 sps:$4 sm:$0xff]  }
 0xa85   :  { %21606 = vmatpush1.bf16.msra.mxu1 %v29319_v52  ;;  %v29382_v52 = vld [vmem:[%s38773_s7 + $0x1310] ss:$28 sps:$4 sm:$0xff]  }
 0xa86   :  { %21607 = vmatprep.subr.bf16.mxu1 %v29327_v25  ;;  %v29390_v25 = vld [vmem:[%s38773_s7 + $0x134c] ss:$28 sps:$4 sm:$0xff]  }
 0xa87   :  { %21456 = vmatpush1.bf16.msra.mxu0 %v29322_v55  ;;  %v29385_v55 = vld [vmem:[%s38773_s7 + $0x748] ss:$28 sps:$4 sm:$0xff]  }
 0xa88   :  { %21457 = vmatprep.subr.bf16.mxu0 %v29330_v51  ;;  %v29393_v51 = vld [vmem:[%s38773_s7 + $0x784] ss:$28 sps:$4 sm:$0xff]  }
 0xa89   :  { %21608 = vmatpush1.bf16.msra.mxu1 %v29325_v40  ;;  %v29388_v40 = vld [vmem:[%s38773_s7 + $0x1348] ss:$28 sps:$4 sm:$0xff]  }
 0xa8a   :  { %21609 = vmatprep.subr.bf16.mxu1 %v29333_v41  ;;  %v29396_v41 = vld [vmem:[%s38773_s7 + $0x1384] ss:$28 sps:$4 sm:$0xff]  }
 0xa8b   :  { %21458 = vmatpush1.bf16.msra.mxu0 %v29328_v11  ;;  %v29391_v11 = vld [vmem:[%s38773_s7 + $0x780] ss:$28 sps:$4 sm:$0xff]  }
 0xa8c   :  { %21459 = vmatprep.subr.bf16.mxu0 %v29336_v43  ;;  %v29399_v43 = vld [vmem:[%s38773_s7 + $0x7bc] ss:$28 sps:$4 sm:$0xff]  }
 0xa8d   :  { %21610 = vmatpush1.bf16.msra.mxu1 %v29331_v13  ;;  %v29394_v13 = vld [vmem:[%s38773_s7 + $0x1380] ss:$28 sps:$4 sm:$0xff]  }
 0xa8e   :  { %21611 = vmatprep.subr.bf16.mxu1 %v29339_v42  ;;  %v29402_v42 = vld [vmem:[%s38773_s7 + $0x13bc] ss:$28 sps:$4 sm:$0xff]  }
 0xa8f   :  { %21460 = vmatpush1.bf16.msra.mxu0 %v29334_v16  ;;  %v29397_v16 = vld [vmem:[%s38773_s7 + $0x7b8] ss:$28 sps:$4 sm:$0xff]  }
 0xa90   :  { %21470 = vmatprep.subr.bf16.mxu0 %v29342_v60  ;;  %v29405_v60 = vld [vmem:[%s38773_s7 + $0x7f4] ss:$28 sps:$4 sm:$0xff]  }
 0xa91   :  { %21612 = vmatpush1.bf16.msra.mxu1 %v29337_v44  ;;  %v29400_v44 = vld [vmem:[%s38773_s7 + $0x13b8] ss:$28 sps:$4 sm:$0xff]  }
 0xa92   :  { %21462 = vmatmul.mubr.bf16.vlgmr.msra.gmra.mrb[64].mxu0 %v37297_v28  ;;  %21613 = vmatprep.subr.bf16.mxu1 %v29345_v23  ;;  %v29408_v23 = vld [vmem:[%s38773_s7 + $0x13f4] ss:$28 sps:$4 sm:$0xff]  }
 0xa93   :  { %21471 = vmatpush1.bf16.msra.mxu0 %v29340_v56  ;;  %21502 = vmatprep.mubr.bf16.mxu0 %v37302_v53  ;;  %v29403_v56 = vld [vmem:[%s38773_s7 + $0x7f0] ss:$28 sps:$4 sm:$0xff]  }
 0xa94   :  { %21472 = vmatprep.subr.bf16.mxu0 %v29348_v46  ;;  %v29411_v46 = vld [vmem:[%s38773_s7 + $0x82c] ss:$28 sps:$4 sm:$0xff]  }
 0xa95   :  { %21614 = vmatpush1.bf16.msra.mxu1 %v29343_v1  ;;  %v29406_v1 = vld [vmem:[%s38773_s7 + $0x13f0] ss:$28 sps:$4 sm:$0xff]  }
 0xa96   :  { %21615 = vmatprep.subr.bf16.mxu1 %v29351_v12  ;;  %v29414_v12 = vld [vmem:[%s38773_s7 + $0x142c] ss:$28 sps:$4 sm:$0xff]  }
 0xa97   :  { %21473 = vmatpush1.bf16.msra.mxu0 %v29346_v54  ;;  %v29409_v54 = vld [vmem:[%s38773_s7 + $0x828] ss:$28 sps:$4 sm:$0xff]  }
 0xa98   :  { %21474 = vmatprep.subr.bf16.mxu0 %v29354_v57  ;;  %v29417_v57 = vld [vmem:[%s38773_s7 + $0x864] ss:$28 sps:$4 sm:$0xff]  }
 0xa99   :  { %21616 = vmatpush1.bf16.msra.mxu1 %v29349_v18  ;;  %v29412_v18 = vld [vmem:[%s38773_s7 + $0x1428] ss:$28 sps:$4 sm:$0xff]  }
 0xa9a   :  { %21617 = vmatprep.subr.bf16.mxu1 %v29357_v10  ;;  %v29420_v10 = vld [vmem:[%s38773_s7 + $0x1464] ss:$28 sps:$4 sm:$0xff]  }
 0xa9b   :  { %21475 = vmatpush1.bf16.msra.mxu0 %v29352_v48  ;;  %v29415_v48 = vld [vmem:[%s38773_s7 + $0x860] ss:$28 sps:$4 sm:$0xff]  }
 0xa9c   :  { %21476 = vmatprep.subr.bf16.mxu0 %v29360_v9  ;;  %v29423_v9 = vld [vmem:[%s38773_s7 + $0x89c] ss:$28 sps:$4 sm:$0xff]  }
 0xa9d   :  { %21618 = vmatpush1.bf16.msra.mxu1 %v29355_v15  ;;  %v29418_v15 = vld [vmem:[%s38773_s7 + $0x1460] ss:$28 sps:$4 sm:$0xff]  }
 0xa9e   :  { %21619 = vmatprep.subr.bf16.mxu1 %v29363_v37  ;;  %v29426_v37 = vld [vmem:[%s38773_s7 + $0x149c] ss:$28 sps:$4 sm:$0xff]  }
 0xa9f   :  { %21477 = vmatpush1.bf16.msra.mxu0 %v29358_v62  ;;  %v29421_v62 = vld [vmem:[%s38773_s7 + $0x898] ss:$28 sps:$4 sm:$0xff]  }
 0xaa0   :  { %21478 = vmatprep.subr.bf16.mxu0 %v29366_v50  ;;  %v29429_v50 = vld [vmem:[%s38773_s7 + $0x8d4] ss:$28 sps:$4 sm:$0xff]  }
 0xaa1   :  { %21620 = vmatpush1.bf16.msra.mxu1 %v29361_v0  ;;  %v29424_v0 = vld [vmem:[%s38773_s7 + $0x1498] ss:$28 sps:$4 sm:$0xff]  }
 0xaa2   :  { %21621 = vmatprep.subr.bf16.mxu1 %v29369_v20  ;;  %v29432_v20 = vld [vmem:[%s38773_s7 + $0x14d4] ss:$28 sps:$4 sm:$0xff]  }
 0xaa3   :  { %21479 = vmatpush1.bf16.msra.mxu0 %v29364_v21  ;;  %v29427_v21 = vld [vmem:[%s38773_s7 + $0x8d0] ss:$28 sps:$4 sm:$0xff]  }
 0xaa4   :  { %21480 = vmatprep.subr.bf16.mxu0 %v29372_v17  ;;  %v29435_v17 = vld [vmem:[%s38773_s7 + $0x90c] ss:$28 sps:$4 sm:$0xff]  }
 0xaa5   :  { %21622 = vmatpush1.bf16.msra.mxu1 %v29367_v38  ;;  %v29430_v38 = vld [vmem:[%s38773_s7 + $0x14d0] ss:$28 sps:$4 sm:$0xff]  }
 0xaa6   :  { %21623 = vmatprep.subr.bf16.mxu1 %v29375_v14  ;;  %v29441_v14 = vld [vmem:[%s38773_s7 + $0x150c] ss:$28 sps:$4 sm:$0xff]  }
 0xaa7   :  { %21481 = vmatpush1.bf16.msra.mxu0 %v29370_v61  ;;  %v29433_v61 = vld [vmem:[%s38773_s7 + $0x908] ss:$28 sps:$4 sm:$0xff]  }
 0xaa8   :  { %21482 = vmatprep.subr.bf16.mxu0 %v29378_v22  ;;  %v29438_v22 = vld [vmem:[%s38773_s7 + $0x944] ss:$28 sps:$4 sm:$0xff]  }
 0xaa9   :  { %21624 = vmatpush1.bf16.msra.mxu1 %v29373_v58  ;;  %v29439_v58 = vld [vmem:[%s38773_s7 + $0x1508] ss:$28 sps:$4 sm:$0xff]  }
 0xaaa   :  { %21634 = vmatprep.subr.bf16.mxu1 %v29381_v5  ;;  %v29447_v5 = vld [vmem:[%s38773_s7 + $0x1544] ss:$28 sps:$4 sm:$0xff]  }
 0xaab   :  { %21483 = vmatpush1.bf16.msra.mxu0 %v29376_v4  ;;  %v29436_v4 = vld [vmem:[%s38773_s7 + $0x940] ss:$28 sps:$4 sm:$0xff]  }
 0xaac   :  { %21626 = vmatmul.mubr.bf16.vlgmr.msra.gmra.mrb[52].mxu1 %v36669_v26  ;;  %21484 = vmatprep.subr.bf16.mxu0 %v29384_v35  ;;  %v29444_v35 = vld [vmem:[%s38773_s7 + $0x97c] ss:$28 sps:$4 sm:$0xff]  }
 0xaad   :  { %21635 = vmatpush1.bf16.msra.mxu1 %v29379_v33  ;;  %21666 = vmatprep.mubr.bf16.mxu1 %v36671_v24  ;;  %v29445_v33 = vld [vmem:[%s38773_s7 + $0x1540] ss:$28 sps:$4 sm:$0xff]  }
 0xaae   :  { %21636 = vmatprep.subr.bf16.mxu1 %v29387_v6  ;;  %v29451_v6 = vld [vmem:[%s38773_s7 + $0x1d8] ss:$28 sps:$4 sm:$0xff]  }
 0xaaf   :  { %21485 = vmatpush1.bf16.msra.mxu0 %v29382_v52  ;;  %v29442_v52 = vld [vmem:[%s38773_s7 + $0x978] ss:$28 sps:$4 sm:$0xff]  }
 0xab0   :  { %21486 = vmatprep.subr.bf16.mxu0 %v29390_v25  ;;  %v29450_v25 = vld [vmem:[%s38773_s7 + $0x9b4] ss:$28 sps:$4 sm:$0xff]  }
 0xab1   :  { %21637 = vmatpush1.bf16.msra.mxu1 %v29385_v55  ;;  %v29448_v55 = vld [vmem:[%s38773_s7 + $0x9b0] ss:$28 sps:$4 sm:$0xff]  }
 0xab2   :  { %21638 = vmatprep.subr.bf16.mxu1 %v29393_v51  ;;  %v29455_v51 = vld [vmem:[%s38773_s7 + $0x9ec] ss:$28 sps:$4 sm:$0xff]  }
 0xab3   :  { %21487 = vmatpush1.bf16.msra.mxu0 %v29388_v40  ;;  %v29452_v40 = vld [vmem:[%s38773_s7 + $0x18] ss:$28 sps:$4 sm:$0xff]  }
 0xab4   :  { %21488 = vmatprep.subr.bf16.mxu0 %v29396_v41  ;;  %v29456_v41 = vld [vmem:[%s38773_s7 + $0x210] ss:$28 sps:$4 sm:$0xff]  }
 0xab5   :  { %21639 = vmatpush1.bf16.msra.mxu1 %v29391_v11  ;;  %v29453_v11 = vld [vmem:[%s38773_s7 + $0x9e8] ss:$28 sps:$4 sm:$0xff]  }
 0xab6   :  { %21640 = vmatprep.subr.bf16.mxu1 %v29399_v43  ;;  %v29460_v43 = vld [vmem:[%s38773_s7 + $0xa24] ss:$28 sps:$4 sm:$0xff]  }
 0xab7   :  { %21489 = vmatpush1.bf16.msra.mxu0 %v29394_v13  ;;  %v29457_v13 = vld [vmem:[%s38773_s7 + $0x50] ss:$28 sps:$4 sm:$0xff]  }
 0xab8   :  { %21490 = vmatprep.subr.bf16.mxu0 %v29402_v42  ;;  %v29461_v42 = vld [vmem:[%s38773_s7 + $0x248] ss:$28 sps:$4 sm:$0xff]  }
 0xab9   :  { %21641 = vmatpush1.bf16.msra.mxu1 %v29397_v16  ;;  %v29458_v16 = vld [vmem:[%s38773_s7 + $0xa20] ss:$28 sps:$4 sm:$0xff]  }
 0xaba   :  { %21642 = vmatprep.subr.bf16.mxu1 %v29405_v60  ;;  %v29465_v60 = vld [vmem:[%s38773_s7 + $0xa5c] ss:$28 sps:$4 sm:$0xff]  }
 0xabb   :  { %21491 = vmatpush1.bf16.msra.mxu0 %v29400_v44  ;;  %v29466_v44 = vld [vmem:[%s38773_s7 + $0x280] ss:$28 sps:$4 sm:$0xff]  }
 0xabc   :  { %21492 = vmatprep.subr.bf16.mxu0 %v29408_v23  ;;  %v29463_v23 = vld [vmem:[%s38773_s7 + $0xa58] ss:$28 sps:$4 sm:$0xff]  }
 0xabd   :  { %21643 = vmatpush1.bf16.msra.mxu1 %v29403_v56  ;;  %v29470_v56 = vld [vmem:[%s38773_s7 + $0xa94] ss:$28 sps:$4 sm:$0xff]  }
 0xabe   :  { %21644 = vmatprep.subr.bf16.mxu1 %v29411_v46  ;;  %v29467_v46 = vld [vmem:[%s38773_s7 + $0xc0] ss:$28 sps:$4 sm:$0xff]  }
 0xabf   :  { %21493 = vmatpush1.bf16.msra.mxu0 %v29406_v1  ;;  %v29471_v1 = vld [vmem:[%s38773_s7 + $0x2b8] ss:$28 sps:$4 sm:$0xff]  }
 0xac0   :  { %21494 = vmatprep.subr.bf16.mxu0 %v29414_v12  ;;  %v29468_v12 = vld [vmem:[%s38773_s7 + $0xa90] ss:$28 sps:$4 sm:$0xff]  }
 0xac1   :  { %21645 = vmatpush1.bf16.msra.mxu1 %v29409_v54  ;;  %v29475_v54 = vld [vmem:[%s38773_s7 + $0xacc] ss:$28 sps:$4 sm:$0xff]  }
 0xac2   :  { %21646 = vmatprep.subr.bf16.mxu1 %v29417_v57  ;;  %v29472_v57 = vld [vmem:[%s38773_s7 + $0xf8] ss:$28 sps:$4 sm:$0xff]  }
 0xac3   :  { %21495 = vmatpush1.bf16.msra.mxu0 %v29412_v18  ;;  %v29476_v18 = vld [vmem:[%s38773_s7 + $0x2f0] ss:$28 sps:$4 sm:$0xff]  }
 0xac4   :  { %21496 = vmatprep.subr.bf16.mxu0 %v29420_v10  ;;  %v29473_v10 = vld [vmem:[%s38773_s7 + $0xac8] ss:$28 sps:$4 sm:$0xff]  }
 0xac5   :  { %21647 = vmatpush1.bf16.msra.mxu1 %v29415_v48  ;;  %v29480_v48 = vld [vmem:[%s38773_s7 + $0xb04] ss:$28 sps:$4 sm:$0xff]  }
 0xac6   :  { %21648 = vmatprep.subr.bf16.mxu1 %v29423_v9  ;;  %v29477_v9 = vld [vmem:[%s38773_s7 + $0x130] ss:$28 sps:$4 sm:$0xff]  }
 0xac7   :  { %21497 = vmatpush1.bf16.msra.mxu0 %v29418_v15  ;;  %v29481_v15 = vld [vmem:[%s38773_s7 + $0x328] ss:$28 sps:$4 sm:$0xff]  }
 0xac8   :  { %21498 = vmatprep.subr.bf16.mxu0 %v29426_v37  ;;  %v29478_v37 = vld [vmem:[%s38773_s7 + $0xb00] ss:$28 sps:$4 sm:$0xff]  }
 0xac9   :  { %21649 = vmatpush1.bf16.msra.mxu1 %v29421_v62  ;;  %v29485_v62 = vld [vmem:[%s38773_s7 + $0xb3c] ss:$28 sps:$4 sm:$0xff]  }
 0xaca   :  { %21650 = vmatprep.subr.bf16.mxu1 %v29429_v50  ;;  %v29482_v50 = vld [vmem:[%s38773_s7 + $0x168] ss:$28 sps:$4 sm:$0xff]  }
 0xacb   :  { %21499 = vmatpush1.bf16.msra.mxu0 %v29424_v0  ;;  %v29486_v0 = vld [vmem:[%s38773_s7 + $0x360] ss:$28 sps:$4 sm:$0xff]  }
 0xacc   :  { %21500 = vmatprep.subr.bf16.mxu0 %v29432_v20  ;;  %v29483_v20 = vld [vmem:[%s38773_s7 + $0xb38] ss:$28 sps:$4 sm:$0xff]  }
 0xacd   :  { %21651 = vmatpush1.bf16.msra.mxu1 %v29427_v21  ;;  %v29490_v21 = vld [vmem:[%s38773_s7 + $0xb74] ss:$28 sps:$4 sm:$0xff]  }
 0xace   :  { %21652 = vmatprep.subr.bf16.mxu1 %v29435_v17  ;;  %v29487_v17 = vld [vmem:[%s38773_s7 + $0x1a0] ss:$28 sps:$4 sm:$0xff]  }
 0xacf   :  { %21501 = vmatpush1.bf16.msra.mxu0 %v29430_v38  ;;  %v29491_v38 = vld [vmem:[%s38773_s7 + $0x558] ss:$28 sps:$4 sm:$0xff]  }
 0xad0   :  { %21511 = vmatprep.subr.bf16.mxu0 %v29441_v14  ;;  %v29488_v14 = vld [vmem:[%s38773_s7 + $0xb70] ss:$28 sps:$4 sm:$0xff]  }
 0xad1   :  { %21653 = vmatpush1.bf16.msra.mxu1 %v29433_v61  ;;  %v38192_v61 = vld [vmem:[%s38775_s8] sm:$0x7f] }
 0xad2   :  { %21503 = vmatmul.mubr.bf16.vlgmr.msra.gmra.mrb[64].mxu0 %v37509_v47  ;;  %21654 = vmatprep.subr.bf16.mxu1 %v29438_v22  ;;  %v29495_v22 = vld [vmem:[%s38773_s7 + $0xbac] ss:$28 sps:$4 sm:$0xff]  }
 0xad3   :  { %21512 = vmatpush1.bf16.msra.mxu0 %v29439_v58  ;;  %21543 = vmatprep.mubr.bf16.mxu0 %v29728_v3  ;;  %v29492_v58 = vld [vmem:[%s38773_s7 + $0x398] ss:$28 sps:$4 sm:$0xff]  }
 0xad4   :  { %21513 = vmatprep.subr.bf16.mxu0 %v29447_v5  ;;  %v17415_v5 = vrot.slane %v38192_v61, %v30030_v29 }
 0xad5   :  { %21655 = vmatpush1.bf16.msra.mxu1 %v29436_v4  ;;  %v29496_v4 = vld [vmem:[%s38773_s7 + $0x590] ss:$28 sps:$4 sm:$0xff]  }
 0xad6   :  { %21656 = vmatprep.subr.bf16.mxu1 %v29444_v35  ;;  %v29493_v35 = vld [vmem:[%s38773_s7 + $0xba8] ss:$28 sps:$4 sm:$0xff]  }
 0xad7   :  { %21514 = vmatpush1.bf16.msra.mxu0 %v29445_v33  ;;  %v17419_v33 = vrot.slane %v38192_v61, %v30036_v31  ;;  %v29501_v31 = vld [vmem:[%s38773_s7 + $0x5c8] ss:$28 sps:$4 sm:$0xff]  }
 0xad8   :  { %25180 = vmatprep.subr.bf16.mxu0 %v29451_v6  ;;  %v29500_v6 = vld [vmem:[%s38773_s7 + $0xbe4] ss:$28 sps:$4 sm:$0xff]  }
 0xad9   :  { %21657 = vmatpush1.bf16.msra.mxu1 %v29442_v52  ;;  %v29497_v52 = vld [vmem:[%s38773_s7 + $0x3d0] ss:$28 sps:$4 sm:$0xff]  }
 0xada   :  { %21658 = vmatprep.subr.bf16.mxu1 %v29450_v25 }
 0xadd   :  { %21659 = vmatpush1.bf16.msra.mxu1 %v29448_v55 }
 0xade   :  { %24954 = vmatmul.mubr.msk.bf16.vlgmr.msra.gmra.mrb[64].mxu0 %vm14594_vm2, %v37551_v63  ;;  %21660 = vmatprep.subr.bf16.mxu1 %v29455_v51 }
 0xadf   :  { %25181 = vmatpush3.bf16.msra.mxu0 %v29452_v40  ;;  %21871 = vmatprep.mubr.bf16.mxu0 %v36251_v39  ;;  %v29462_v39 = vld [vmem:[%s38773_s7 + $0x88] ss:$28 sps:$4 sm:$0xff]   ;;  %v29498_v40 = vld [vmem:[%s38773_s7 + $0xbe0] ss:$28 sps:$4 sm:$0xff]  }
 0xae0   :  { %25182 = vmatprep.subr.bf16.mxu0 %v29456_v41  ;;  %v29505_v41 = vld [vmem:[%s38773_s7 + $0xc1c] ss:$28 sps:$4 sm:$0xff]  }
 0xae1   :  { %21661 = vmatpush1.bf16.msra.mxu1 %v29453_v11  ;;  %v29502_v11 = vld [vmem:[%s38773_s7 + $0x408] ss:$28 sps:$4 sm:$0xff]  }
 0xae2   :  { %21662 = vmatprep.subr.bf16.mxu1 %v29460_v43  ;;  %v29506_v43 = vld [vmem:[%s38773_s7 + $0x600] ss:$28 sps:$4 sm:$0xff]  }
 0xae3   :  { %25183 = vmatpush3.bf16.msra.mxu0 %v29457_v13  ;;  %v29503_v13 = vld [vmem:[%s38773_s7 + $0xc18] ss:$28 sps:$4 sm:$0xff]  }
 0xae4   :  { %25184 = vmatprep.subr.bf16.mxu0 %v29461_v42  ;;  %v29510_v42 = vld [vmem:[%s38773_s7 + $0xc54] ss:$28 sps:$4 sm:$0xff]  }
 0xae5   :  { %21663 = vmatpush1.bf16.msra.mxu1 %v29458_v16  ;;  %v29507_v16 = vld [vmem:[%s38773_s7 + $0x440] ss:$28 sps:$4 sm:$0xff]  }
 0xae6   :  { %21664 = vmatprep.subr.bf16.mxu1 %v29465_v60  ;;  %v29511_v60 = vld [vmem:[%s38773_s7 + $0x638] ss:$28 sps:$4 sm:$0xff]  }
 0xae7   :  { %25185 = vmatpush3.bf16.msra.mxu0 %v29462_v39  ;;  %v29508_v39 = vld [vmem:[%s38773_s7 + $0xc50] ss:$28 sps:$4 sm:$0xff]  }
 0xae8   :  { %25186 = vmatprep.subr.bf16.mxu0 %v29466_v44  ;;  %v29515_v44 = vld [vmem:[%s38773_s7 + $0xc8c] ss:$28 sps:$4 sm:$0xff]  }
 0xae9   :  { %21665 = vmatpush1.bf16.msra.mxu1 %v29463_v23  ;;  %v29512_v23 = vld [vmem:[%s38773_s7 + $0x478] ss:$28 sps:$4 sm:$0xff]  }
 0xaea   :  { %21675 = vmatprep.subr.bf16.mxu1 %v29470_v56 }
 0xaeb   :  { %25187 = vmatpush3.bf16.msra.mxu0 %v29467_v46  ;;  %v29516_v46 = vld [vmem:[%s38773_s7 + $0x670] ss:$28 sps:$4 sm:$0xff]  }
 0xaec   :  { %21667 = vmatmul.mubr.bf16.vlgmr.msra.gmra.mrb[52].mxu1 %v36881_v49  ;;  %25188 = vmatprep.subr.bf16.mxu0 %v29471_v1 }
 0xaed   :  { %21676 = vmatpush1.bf16.msra.mxu1 %v29468_v12  ;;  %21707 = vmatprep.mubr.bf16.mxu1 %v36883_v19  ;;  %v29513_v12 = vld [vmem:[%s38773_s7 + $0xc88] ss:$28 sps:$4 sm:$0xff]  }
 0xaee   :  { %21677 = vmatprep.subr.bf16.mxu1 %v29475_v54  ;;  %v29520_v54 = vld [vmem:[%s38773_s7 + $0xcc4] ss:$28 sps:$4 sm:$0xff]  }
 0xaef   :  { %25189 = vmatpush3.bf16.msra.mxu0 %v29472_v57  ;;  %v29517_v57 = vld [vmem:[%s38773_s7 + $0x4b0] ss:$28 sps:$4 sm:$0xff]  }
 0xaf0   :  { %25190 = vmatprep.subr.bf16.mxu0 %v29476_v18  ;;  %v29521_v18 = vld [vmem:[%s38773_s7 + $0x6a8] ss:$28 sps:$4 sm:$0xff]  }
 0xaf1   :  { %21678 = vmatpush1.bf16.msra.mxu1 %v29473_v10  ;;  %v29518_v10 = vld [vmem:[%s38773_s7 + $0xcc0] ss:$28 sps:$4 sm:$0xff]  }
 0xaf2   :  { %21679 = vmatprep.subr.bf16.mxu1 %v29480_v48  ;;  %v29525_v48 = vld [vmem:[%s38773_s7 + $0xcfc] ss:$28 sps:$4 sm:$0xff]  }
 0xaf3   :  { %25191 = vmatpush3.bf16.msra.mxu0 %v29477_v9  ;;  %v29522_v9 = vld [vmem:[%s38773_s7 + $0x4e8] ss:$28 sps:$4 sm:$0xff]  }
 0xaf4   :  { %25192 = vmatprep.subr.bf16.mxu0 %v29481_v15  ;;  %v29526_v15 = vld [vmem:[%s38773_s7 + $0x6e0] ss:$28 sps:$4 sm:$0xff]  }
 0xaf5   :  { %21680 = vmatpush1.bf16.msra.mxu1 %v29478_v37  ;;  %v29523_v37 = vld [vmem:[%s38773_s7 + $0xcf8] ss:$28 sps:$4 sm:$0xff]  }
 0xaf6   :  { %21681 = vmatprep.subr.bf16.mxu1 %v29485_v62  ;;  %v29530_v62 = vld [vmem:[%s38773_s7 + $0xd34] ss:$28 sps:$4 sm:$0xff]  }
 0xaf7   :  { %25193 = vmatpush3.bf16.msra.mxu0 %v29482_v50  ;;  %v29527_v50 = vld [vmem:[%s38773_s7 + $0x520] ss:$28 sps:$4 sm:$0xff]  }
 0xaf8   :  { %25194 = vmatprep.subr.bf16.mxu0 %v29486_v0  ;;  %v29531_v0 = vld [vmem:[%s38773_s7 + $0x8d8] ss:$28 sps:$4 sm:$0xff]  }
 0xaf9   :  { %21682 = vmatpush1.bf16.msra.mxu1 %v29483_v20  ;;  %v29528_v20 = vld [vmem:[%s38773_s7 + $0xd30] ss:$28 sps:$4 sm:$0xff]  }
 0xafa   :  { %21683 = vmatprep.subr.bf16.mxu1 %v29490_v21  ;;  %v29535_v21 = vld [vmem:[%s38773_s7 + $0xd6c] ss:$28 sps:$4 sm:$0xff]  }
 0xafb   :  { %25195 = vmatpush3.bf16.msra.mxu0 %v29487_v17  ;;  %v29532_v17 = vld [vmem:[%s38773_s7 + $0x718] ss:$28 sps:$4 sm:$0xff]  }
 0xafc   :  { %25202 = vmatprep.subr.bf16.mxu0 %v29491_v38  ;;  %v29536_v38 = vld [vmem:[%s38773_s7 + $0x910] ss:$28 sps:$4 sm:$0xff]  }
 0xafd   :  { %21684 = vmatpush1.bf16.msra.mxu1 %v29488_v14  ;;  %v29533_v14 = vld [vmem:[%s38773_s7 + $0xd68] ss:$28 sps:$4 sm:$0xff]  }
 0xafe   :  { %21872 = vmatmul.mubr.bf16.vlgmr.msra.gmra.mrb[68].mxu0 %v36455_v2  ;;  %21685 = vmatprep.subr.bf16.mxu1 %v29495_v22  ;;  %v29540_v22 = vld [vmem:[%s38773_s7 + $0xda4] ss:$28 sps:$4 sm:$0xff]  }
 0xaff   :  { %25203 = vmatpush3.bf16.msra.mxu0 %v29492_v58  ;;  %21911 = vmatprep.mubr.bf16.mxu0 %v36457_v8  ;;  %v21258_v29 = vpop.f32.mrb[48].mxu1  ;;  %v29537_v58 = vld [vmem:[%s38773_s7 + $0x750] ss:$28 sps:$4 sm:$0xff]  }
 0xb00   :  { %v25357_v25 = vadd.f32 %v21258_v29, %v17415_v5  ;;  %v21260_v55 = vpop.f32.mrb[49].mxu1  ;;  %25204 = vmatprep.subr.bf16.mxu0 %v29496_v4  ;;  %v29541_v5 = vld [vmem:[%s38773_s7 + $0x948] ss:$28 sps:$4 sm:$0xff]   ;;  %v29545_v4 = vld [vmem:[%s38773_s7 + $0xddc] ss:$28 sps:$4 sm:$0xff]  }
 0xb01   :  { %v25358_v2 = vadd.f32 %v21260_v55, %v17419_v33  ;;  %21686 = vmatpush1.bf16.msra.mxu1 %v29493_v35  ;;  %v21262_v51 = vpop.f32.mrb[50].mxu1  ;;  %v29546_v35 = vld [vmem:[%s38773_s7 + $0x980] ss:$28 sps:$4 sm:$0xff]   ;;  %v29543_v33 = vld [vmem:[%s38773_s7 + $0xdd8] ss:$28 sps:$4 sm:$0xff]  }
 0xb02   :  { %29708 = vtanh.f32 %v25357_v25  ;;  %v21263_v8 = vpop.f32.mrb[51].mxu1  ;;  %21687 = vmatprep.subr.bf16.mxu1 %v29500_v6  ;;  %v29550_v6 = vld [vmem:[%s38773_s7 + $0xe14] ss:$28 sps:$4 sm:$0xff]   ;;  %v29547_v29 = vld [vmem:[%s38773_s7 + $0x7c0] ss:$28 sps:$4 sm:$0xff]  }
 0xb03   :  { %29710 = vtanh.f32 %v25358_v2  ;;  %25205 = vmatpush3.bf16.msra.mxu0 %v29497_v52  ;;  %v29551_v52 = vld [vmem:[%s38773_s7 + $0x9b8] ss:$28 sps:$4 sm:$0xff]   ;;  %v29548_v25 = vld [vmem:[%s38773_s7 + $0xe10] ss:$28 sps:$4 sm:$0xff]   ;;  %v29553_v51 = vld [vmem:[%s38773_s7 + $0xe48] ss:$28 sps:$4 sm:$0xff]  }
 0xb04   :  { %25206 = vmatprep.subr.bf16.mxu0 %v29501_v31  ;;  %v29555_v55 = vld [vmem:[%s38773_s7 + $0xe4c] ss:$28 sps:$4 sm:$0xff]   ;;  %v29552_v31 = vld [vmem:[%s38773_s7 + $0x7f8] ss:$28 sps:$4 sm:$0xff]  }
 0xb05   :  { %21688 = vmatpush1.bf16.msra.mxu1 %v29498_v40  ;;  %v29556_v2 = vld [vmem:[%s38773_s7 + $0x9f0] ss:$28 sps:$4 sm:$0xff]   ;;  %v29560_v40 = vld [vmem:[%s38773_s7 + $0xe84] ss:$28 sps:$4 sm:$0xff]  }
 0xb06   :  { %21689 = vmatprep.subr.bf16.mxu1 %v29505_v41  ;;  %v29557_v8 = vld [vmem:[%s38773_s7 + $0x830] ss:$28 sps:$4 sm:$0xff]   ;;  %v29561_v41 = vld [vmem:[%s38773_s7 + $0xa28] ss:$28 sps:$4 sm:$0xff]  }
 0xb07   :  { %25207 = vmatpush3.bf16.msra.mxu0 %v29502_v11  ;;  %v29558_v11 = vld [vmem:[%s38773_s7 + $0xe80] ss:$28 sps:$4 sm:$0xff]  }
 0xb08   :  { %25208 = vmatprep.subr.bf16.mxu0 %v29506_v43  ;;  %v29565_v43 = vld [vmem:[%s38773_s7 + $0xebc] ss:$28 sps:$4 sm:$0xff]  }
 0xb09   :  { %21690 = vmatpush1.bf16.msra.mxu1 %v29503_v13  ;;  %v29562_v13 = vld [vmem:[%s38773_s7 + $0x868] ss:$28 sps:$4 sm:$0xff]  }
 0xb0a   :  { %21691 = vmatprep.subr.bf16.mxu1 %v29510_v42  ;;  %v29566_v42 = vld [vmem:[%s38773_s7 + $0xa60] ss:$28 sps:$4 sm:$0xff]  }
 0xb0b   :  { %25209 = vmatpush3.bf16.msra.mxu0 %v29507_v16  ;;  %v29563_v16 = vld [vmem:[%s38773_s7 + $0xeb8] ss:$28 sps:$4 sm:$0xff]  }
 0xb0c   :  { %v29709_v56 = vpop.eup %29708  ;;  %25210 = vmatprep.subr.bf16.mxu0 %v29511_v60  ;;  %v29570_v60 = vld [vmem:[%s38773_s7 + $0xef4] ss:$28 sps:$4 sm:$0xff]  }
 0xb0d   :  { %v29711_v1 = vpop.eup %29710  ;;  %22126 = vst [vmem:[%s38776_s9] sm:$0xff] %v29709_v56  ;;  %21692 = vmatpush1.bf16.msra.mxu1 %v29508_v39  ;;  %v29567_v39 = vld [vmem:[%s38773_s7 + $0x8a0] ss:$28 sps:$4 sm:$0xff]   ;;  %v29575_v56 = vld [vmem:[%s38773_s7 + $0xf2c] ss:$28 sps:$4 sm:$0xff]  }
 0xb0e   :  { %22127 = vst [vmem:[%s38776_s9 + $0x8] sm:$0xff] %v29711_v1  ;;  %21693 = vmatprep.subr.bf16.mxu1 %v29515_v44  ;;  %v29571_v44 = vld [vmem:[%s38773_s7 + $0xc58] ss:$28 sps:$4 sm:$0xff]   ;;  %v29576_v1 = vld [vmem:[%s38773_s7 + $0xc90] ss:$28 sps:$4 sm:$0xff]  }
 0xb0f   :  { %25211 = vmatpush3.bf16.msra.mxu0 %v29512_v23  ;;  %v29568_v23 = vld [vmem:[%s38773_s7 + $0xef0] ss:$28 sps:$4 sm:$0xff]  }
 0xb10   :  { %25212 = vmatprep.subr.bf16.mxu0 %v29516_v46  ;;  %v29572_v46 = vld [vmem:[%s38773_s7 + $0xa98] ss:$28 sps:$4 sm:$0xff]  }
 0xb11   :  { %21694 = vmatpush1.bf16.msra.mxu1 %v29513_v12  ;;  %v29573_v12 = vld [vmem:[%s38773_s7 + $0xf28] ss:$28 sps:$4 sm:$0xff]  }
 0xb12   :  { %21695 = vmatprep.subr.bf16.mxu1 %v29520_v54  ;;  %v29580_v54 = vld [vmem:[%s38773_s7 + $0xf64] ss:$28 sps:$4 sm:$0xff]  }
 0xb13   :  { %25213 = vmatpush3.bf16.msra.mxu0 %v29517_v57  ;;  %v29577_v57 = vld [vmem:[%s38773_s7 + $0xad0] ss:$28 sps:$4 sm:$0xff]  }
 0xb14   :  { %25214 = vmatprep.subr.bf16.mxu0 %v29521_v18  ;;  %v29581_v18 = vld [vmem:[%s38773_s7 + $0xcc8] ss:$28 sps:$4 sm:$0xff]  }
 0xb15   :  { %21696 = vmatpush1.bf16.msra.mxu1 %v29518_v10  ;;  %v29585_v10 = vld [vmem:[%s38773_s7 + $0xf9c] ss:$28 sps:$4 sm:$0xff]  }
 0xb16   :  { %21697 = vmatprep.subr.bf16.mxu1 %v29525_v48  ;;  %v29586_v48 = vld [vmem:[%s38773_s7 + $0xd00] ss:$28 sps:$4 sm:$0xff]  }
 0xb17   :  { %25215 = vmatpush3.bf16.msra.mxu0 %v29522_v9  ;;  %v29583_v9 = vld [vmem:[%s38773_s7 + $0xf98] ss:$28 sps:$4 sm:$0xff]  }
 0xb18   :  { %25216 = vmatprep.subr.bf16.mxu0 %v29526_v15  ;;  %v29590_v15 = vld [vmem:[%s38773_s7 + $0xfd4] ss:$28 sps:$4 sm:$0xff]  }
 0xb19   :  { %21698 = vmatpush1.bf16.msra.mxu1 %v29523_v37  ;;  %v29587_v37 = vld [vmem:[%s38773_s7 + $0xb40] ss:$28 sps:$4 sm:$0xff]  }
 0xb1a   :  { %21699 = vmatprep.subr.bf16.mxu1 %v29530_v62  ;;  %v29591_v62 = vld [vmem:[%s38773_s7 + $0xd38] ss:$28 sps:$4 sm:$0xff]  }
 0xb1b   :  { %25217 = vmatpush3.bf16.msra.mxu0 %v29527_v50  ;;  %v29588_v50 = vld [vmem:[%s38773_s7 + $0xfd0] ss:$28 sps:$4 sm:$0xff]  }
 0xb1c   :  { %25224 = vmatprep.subr.bf16.mxu0 %v29531_v0  ;;  %v29595_v0 = vld [vmem:[%s38773_s7 + $0x100c] ss:$28 sps:$4 sm:$0xff]  }
 0xb1d   :  { %21700 = vmatpush1.bf16.msra.mxu1 %v29528_v20  ;;  %v29592_v20 = vld [vmem:[%s38773_s7 + $0xb78] ss:$28 sps:$4 sm:$0xff]  }
 0xb1e   :  { %21912 = vmatmul.mubr.bf16.vlgmr.msra.gmra.mrb[72].mxu0 %v36669_v26  ;;  %21701 = vmatprep.subr.bf16.mxu1 %v29535_v21  ;;  %v29538_v26 = vld [vmem:[%s38773_s7 + $0xda0] ss:$28 sps:$4 sm:$0xff]   ;;  %v29596_v21 = vld [vmem:[%s38773_s7 + $0xd70] ss:$28 sps:$4 sm:$0xff]  }
 0xb1f   :  { %25225 = vmatpush3.bf16.msra.mxu0 %v29532_v17  ;;  %21951 = vmatprep.mubr.bf16.mxu0 %v36671_v24  ;;  %v29542_v24 = vld [vmem:[%s38773_s7 + $0x788] ss:$28 sps:$4 sm:$0xff]  }
 0xb20   :  { %25226 = vmatprep.subr.bf16.mxu0 %v29536_v38  ;;  %v29593_v17 = vld [vmem:[%s38773_s7 + $0x1008] ss:$28 sps:$4 sm:$0xff]  }
 0xb21   :  { %21702 = vmatpush1.bf16.msra.mxu1 %v29533_v14  ;;  %v29600_v38 = vld [vmem:[%s38773_s7 + $0x1044] ss:$28 sps:$4 sm:$0xff]   ;;  %v29597_v14 = vld [vmem:[%s38773_s7 + $0xbb0] ss:$28 sps:$4 sm:$0xff]  }
 0xb22   :  { %21703 = vmatprep.subr.bf16.mxu1 %v29540_v22  ;;  %v29601_v22 = vld [vmem:[%s38773_s7 + $0xda8] ss:$28 sps:$4 sm:$0xff]  }
 0xb23   :  { %25227 = vmatpush3.bf16.msra.mxu0 %v29537_v58  ;;  %v29598_v58 = vld [vmem:[%s38773_s7 + $0x1040] ss:$28 sps:$4 sm:$0xff]  }
 0xb24   :  { %25228 = vmatprep.subr.bf16.mxu0 %v29541_v5  ;;  %v29605_v5 = vld [vmem:[%s38773_s7 + $0x107c] ss:$28 sps:$4 sm:$0xff]  }
 0xb25   :  { %21704 = vmatpush1.bf16.msra.mxu1 %v29538_v26  ;;  %v29602_v26 = vld [vmem:[%s38773_s7 + $0xbe8] ss:$28 sps:$4 sm:$0xff]  }
 0xb26   :  { %21705 = vmatprep.subr.bf16.mxu1 %v29545_v4  ;;  %v29606_v4 = vld [vmem:[%s38773_s7 + $0xde0] ss:$28 sps:$4 sm:$0xff]  }
 0xb27   :  { %25229 = vmatpush3.bf16.msra.mxu0 %v29542_v24  ;;  %v29603_v24 = vld [vmem:[%s38773_s7 + $0x1078] ss:$28 sps:$4 sm:$0xff]  }
 0xb28   :  { %25230 = vmatprep.subr.bf16.mxu0 %v29546_v35  ;;  %v29610_v35 = vld [vmem:[%s38773_s7 + $0x10b4] ss:$28 sps:$4 sm:$0xff]  }
 0xb29   :  { %21706 = vmatpush1.bf16.msra.mxu1 %v29543_v33  ;;  %v29607_v33 = vld [vmem:[%s38773_s7 + $0xc20] ss:$28 sps:$4 sm:$0xff]  }
 0xb2a   :  { %21716 = vmatprep.subr.bf16.mxu1 %v29550_v6  ;;  %v29611_v6 = vld [vmem:[%s38773_s7 + $0xfd8] ss:$28 sps:$4 sm:$0xff]  }
 0xb2b   :  { %25231 = vmatpush3.bf16.msra.mxu0 %v29547_v29  ;;  %v29608_v29 = vld [vmem:[%s38773_s7 + $0x10b0] ss:$28 sps:$4 sm:$0xff]  }
 0xb2c   :  { %21708 = vmatmul.mubr.bf16.vlgmr.msra.gmra.mrb[52].mxu1 %v37091_v34  ;;  %25232 = vmatprep.subr.bf16.mxu0 %v29551_v52  ;;  %v29615_v52 = vld [vmem:[%s38773_s7 + $0x10ec] ss:$28 sps:$4 sm:$0xff]  }
 0xb2d   :  { %21717 = vmatpush1.bf16.msra.mxu1 %v29548_v25  ;;  %21748 = vmatprep.mubr.bf16.mxu1 %v37218_v59  ;;  %v29612_v25 = vld [vmem:[%s38773_s7 + $0xe18] ss:$28 sps:$4 sm:$0xff]  }
 0xb2e   :  { %21718 = vmatprep.subr.bf16.mxu1 %v29555_v55  ;;  %v29616_v55 = vld [vmem:[%s38773_s7 + $0x1010] ss:$28 sps:$4 sm:$0xff]  }
 0xb2f   :  { %25233 = vmatpush3.bf16.msra.mxu0 %v29552_v31  ;;  %v29613_v31 = vld [vmem:[%s38773_s7 + $0x10e8] ss:$28 sps:$4 sm:$0xff]  }
 0xb30   :  { %25234 = vmatprep.subr.bf16.mxu0 %v29556_v2  ;;  %v29620_v2 = vld [vmem:[%s38773_s7 + $0x1124] ss:$28 sps:$4 sm:$0xff]  }
 0xb31   :  { %21719 = vmatpush1.bf16.msra.mxu1 %v29553_v51  ;;  %v29617_v51 = vld [vmem:[%s38773_s7 + $0xe50] ss:$28 sps:$4 sm:$0xff]  }
 0xb32   :  { %21720 = vmatprep.subr.bf16.mxu1 %v29560_v40  ;;  %v29621_v40 = vld [vmem:[%s38773_s7 + $0x1048] ss:$28 sps:$4 sm:$0xff]  }
 0xb33   :  { %25235 = vmatpush3.bf16.msra.mxu0 %v29557_v8  ;;  %v29625_v8 = vld [vmem:[%s38773_s7 + $0x115c] ss:$28 sps:$4 sm:$0xff]  }
 0xb34   :  { %25236 = vmatprep.subr.bf16.mxu0 %v29561_v41  ;;  %v29626_v41 = vld [vmem:[%s38773_s7 + $0x1080] ss:$28 sps:$4 sm:$0xff]  }
 0xb35   :  { %21721 = vmatpush1.bf16.msra.mxu1 %v29558_v11  ;;  %v29623_v11 = vld [vmem:[%s38773_s7 + $0x1158] ss:$28 sps:$4 sm:$0xff]  }
 0xb36   :  { %21722 = vmatprep.subr.bf16.mxu1 %v29565_v43  ;;  %v29630_v43 = vld [vmem:[%s38773_s7 + $0x1194] ss:$28 sps:$4 sm:$0xff]  }
 0xb37   :  { %25237 = vmatpush3.bf16.msra.mxu0 %v29562_v13  ;;  %v29627_v13 = vld [vmem:[%s38773_s7 + $0xec0] ss:$28 sps:$4 sm:$0xff]  }
 0xb38   :  { %25238 = vmatprep.subr.bf16.mxu0 %v29566_v42  ;;  %v29631_v42 = vld [vmem:[%s38773_s7 + $0x10b8] ss:$28 sps:$4 sm:$0xff]  }
 0xb39   :  { %21723 = vmatpush1.bf16.msra.mxu1 %v29563_v16  ;;  %v29628_v16 = vld [vmem:[%s38773_s7 + $0x1190] ss:$28 sps:$4 sm:$0xff]  }
 0xb3a   :  { %21724 = vmatprep.subr.bf16.mxu1 %v29570_v60  ;;  %v29635_v60 = vld [vmem:[%s38773_s7 + $0x11cc] ss:$28 sps:$4 sm:$0xff]  }
 0xb3b   :  { %25239 = vmatpush3.bf16.msra.mxu0 %v29567_v39  ;;  %v29632_v39 = vld [vmem:[%s38773_s7 + $0xef8] ss:$28 sps:$4 sm:$0xff]  }
 0xb3c   :  { %25246 = vmatprep.subr.bf16.mxu0 %v29571_v44  ;;  %v29636_v44 = vld [vmem:[%s38773_s7 + $0x10f0] ss:$28 sps:$4 sm:$0xff]  }
 0xb3d   :  { %21725 = vmatpush1.bf16.msra.mxu1 %v29568_v23  ;;  %v29633_v23 = vld [vmem:[%s38773_s7 + $0x11c8] ss:$28 sps:$4 sm:$0xff]  }
 0xb3e   :  { %21952 = vmatmul.mubr.bf16.vlgmr.msra.gmra.mrb[76].mxu0 %v36881_v49  ;;  %21726 = vmatprep.subr.bf16.mxu1 %v29575_v56  ;;  %v29578_v49 = vld [vmem:[%s38773_s7 + $0xf60] ss:$28 sps:$4 sm:$0xff]  }
 0xb3f   :  { %25247 = vmatpush3.bf16.msra.mxu0 %v29572_v46  ;;  %21991 = vmatprep.mubr.bf16.mxu0 %v36883_v19  ;;  %v29582_v19 = vld [vmem:[%s38773_s7 + $0xb08] ss:$28 sps:$4 sm:$0xff]   ;;  %v29637_v46 = vld [vmem:[%s38773_s7 + $0xf30] ss:$28 sps:$4 sm:$0xff]  }
 0xb40   :  { %25248 = vmatprep.subr.bf16.mxu0 %v29576_v1  ;;  %v29640_v56 = vld [vmem:[%s38773_s7 + $0x1204] ss:$28 sps:$4 sm:$0xff]  }
 0xb41   :  { %21727 = vmatpush1.bf16.msra.mxu1 %v29573_v12  ;;  %v29641_v1 = vld [vmem:[%s38773_s7 + $0x1128] ss:$28 sps:$4 sm:$0xff]   ;;  %v29638_v12 = vld [vmem:[%s38773_s7 + $0x1200] ss:$28 sps:$4 sm:$0xff]  }
 0xb42   :  { %21728 = vmatprep.subr.bf16.mxu1 %v29580_v54  ;;  %v29645_v54 = vld [vmem:[%s38773_s7 + $0x123c] ss:$28 sps:$4 sm:$0xff]  }
 0xb43   :  { %25249 = vmatpush3.bf16.msra.mxu0 %v29577_v57  ;;  %v29642_v57 = vld [vmem:[%s38773_s7 + $0xf68] ss:$28 sps:$4 sm:$0xff]  }
 0xb44   :  { %25250 = vmatprep.subr.bf16.mxu0 %v29581_v18  ;;  %v29646_v18 = vld [vmem:[%s38773_s7 + $0x1160] ss:$28 sps:$4 sm:$0xff]  }
 0xb45   :  { %21729 = vmatpush1.bf16.msra.mxu1 %v29578_v49  ;;  %v29643_v49 = vld [vmem:[%s38773_s7 + $0x1238] ss:$28 sps:$4 sm:$0xff]  }
 0xb46   :  { %21730 = vmatprep.subr.bf16.mxu1 %v29585_v10  ;;  %v29650_v10 = vld [vmem:[%s38773_s7 + $0x1274] ss:$28 sps:$4 sm:$0xff]  }
 0xb47   :  { %25251 = vmatpush3.bf16.msra.mxu0 %v29582_v19  ;;  %v29647_v19 = vld [vmem:[%s38773_s7 + $0xfa0] ss:$28 sps:$4 sm:$0xff]  }
 0xb48   :  { %25252 = vmatprep.subr.bf16.mxu0 %v29586_v48  ;;  %v29651_v48 = vld [vmem:[%s38773_s7 + $0x1358] ss:$28 sps:$4 sm:$0xff]  }
 0xb49   :  { %21731 = vmatpush1.bf16.msra.mxu1 %v29583_v9  ;;  %v29648_v9 = vld [vmem:[%s38773_s7 + $0x1270] ss:$28 sps:$4 sm:$0xff]  }
 0xb4a   :  { %21732 = vmatprep.subr.bf16.mxu1 %v29590_v15  ;;  %v29655_v15 = vld [vmem:[%s38773_s7 + $0x12ac] ss:$28 sps:$4 sm:$0xff]  }
 0xb4b   :  { %25253 = vmatpush3.bf16.msra.mxu0 %v29587_v37  ;;  %v29652_v37 = vld [vmem:[%s38773_s7 + $0x1198] ss:$28 sps:$4 sm:$0xff]  }
 0xb4c   :  { %25254 = vmatprep.subr.bf16.mxu0 %v29591_v62  ;;  %v29656_v62 = vld [vmem:[%s38773_s7 + $0x1390] ss:$28 sps:$4 sm:$0xff]  }
 0xb4d   :  { %21733 = vmatpush1.bf16.msra.mxu1 %v29588_v50  ;;  %v29653_v50 = vld [vmem:[%s38773_s7 + $0x12a8] ss:$28 sps:$4 sm:$0xff]  }
 0xb4e   :  { %21734 = vmatprep.subr.bf16.mxu1 %v29595_v0  ;;  %v29660_v0 = vld [vmem:[%s38773_s7 + $0x12e4] ss:$28 sps:$4 sm:$0xff]  }
 0xb4f   :  { %25255 = vmatpush3.bf16.msra.mxu0 %v29592_v20  ;;  %v29657_v20 = vld [vmem:[%s38773_s7 + $0x11d0] ss:$28 sps:$4 sm:$0xff]  }
 0xb50   :  { %25256 = vmatprep.subr.bf16.mxu0 %v29596_v21  ;;  %v29661_v21 = vld [vmem:[%s38773_s7 + $0x13c8] ss:$28 sps:$4 sm:$0xff]  }
 0xb51   :  { %21735 = vmatpush1.bf16.msra.mxu1 %v29593_v17  ;;  %v29665_v17 = vld [vmem:[%s38773_s7 + $0x131c] ss:$28 sps:$4 sm:$0xff]  }
 0xb52   :  { %21736 = vmatprep.subr.bf16.mxu1 %v29600_v38  ;;  %v29666_v38 = vld [vmem:[%s38773_s7 + $0x1400] ss:$28 sps:$4 sm:$0xff]  }
 0xb53   :  { %25257 = vmatpush3.bf16.msra.mxu0 %v29597_v14  ;;  %v29663_v14 = vld [vmem:[%s38773_s7 + $0x1318] ss:$28 sps:$4 sm:$0xff]  }
 0xb54   :  { %25258 = vmatprep.subr.bf16.mxu0 %v29601_v22  ;;  %v29670_v22 = vld [vmem:[%s38773_s7 + $0x1354] ss:$28 sps:$4 sm:$0xff]  }
 0xb55   :  { %21737 = vmatpush1.bf16.msra.mxu1 %v29598_v58  ;;  %v29667_v58 = vld [vmem:[%s38773_s7 + $0x1240] ss:$28 sps:$4 sm:$0xff]  }
 0xb56   :  { %21738 = vmatprep.subr.bf16.mxu1 %v29605_v5  ;;  %v29671_v5 = vld [vmem:[%s38773_s7 + $0x1438] ss:$28 sps:$4 sm:$0xff]  }
 0xb57   :  { %25259 = vmatpush3.bf16.msra.mxu0 %v29602_v26  ;;  %v29668_v26 = vld [vmem:[%s38773_s7 + $0x1350] ss:$28 sps:$4 sm:$0xff]  }
 0xb58   :  { %25260 = vmatprep.subr.bf16.mxu0 %v29606_v4  ;;  %v29675_v4 = vld [vmem:[%s38773_s7 + $0x138c] ss:$28 sps:$4 sm:$0xff]  }
 0xb59   :  { %21739 = vmatpush1.bf16.msra.mxu1 %v29603_v24  ;;  %v29672_v24 = vld [vmem:[%s38773_s7 + $0x1278] ss:$28 sps:$4 sm:$0xff]  }
 0xb5a   :  { %21740 = vmatprep.subr.bf16.mxu1 %v29610_v35  ;;  %v29676_v35 = vld [vmem:[%s38773_s7 + $0x1470] ss:$28 sps:$4 sm:$0xff]  }
 0xb5b   :  { %25261 = vmatpush3.bf16.msra.mxu0 %v29607_v33  ;;  %v29673_v33 = vld [vmem:[%s38773_s7 + $0x1388] ss:$28 sps:$4 sm:$0xff]  }
 0xb5c   :  { %25268 = vmatprep.subr.bf16.mxu0 %v29611_v6  ;;  %v29680_v6 = vld [vmem:[%s38773_s7 + $0x13c4] ss:$28 sps:$4 sm:$0xff]  }
 0xb5d   :  { %21741 = vmatpush1.bf16.msra.mxu1 %v29608_v29  ;;  %v29677_v29 = vld [vmem:[%s38773_s7 + $0x12b0] ss:$28 sps:$4 sm:$0xff]  }
 0xb5e   :  { %21992 = vmatmul.mubr.bf16.vlgmr.msra.gmra.mrb[80].mxu0 %v37091_v34  ;;  %21742 = vmatprep.subr.bf16.mxu1 %v29615_v52  ;;  %v29618_v34 = vld [vmem:[%s38773_s7 + $0x1120] ss:$28 sps:$4 sm:$0xff]   ;;  %v29681_v52 = vld [vmem:[%s38773_s7 + $0x14a8] ss:$28 sps:$4 sm:$0xff]  }
 0xb5f   :  { %25269 = vmatpush3.bf16.msra.mxu0 %v29612_v25  ;;  %22031 = vmatprep.mubr.bf16.mxu0 %v37218_v59  ;;  %v29622_v59 = vld [vmem:[%s38773_s7 + $0xe88] ss:$28 sps:$4 sm:$0xff]   ;;  %v29678_v25 = vld [vmem:[%s38773_s7 + $0x13c0] ss:$28 sps:$4 sm:$0xff]  }
 0xb60   :  { %25270 = vmatprep.subr.bf16.mxu0 %v29616_v55  ;;  %v29685_v55 = vld [vmem:[%s38773_s7 + $0x13fc] ss:$28 sps:$4 sm:$0xff]  }
 0xb61   :  { %21743 = vmatpush1.bf16.msra.mxu1 %v29613_v31  ;;  %v29682_v31 = vld [vmem:[%s38773_s7 + $0x12e8] ss:$28 sps:$4 sm:$0xff]  }
 0xb62   :  { %21744 = vmatprep.subr.bf16.mxu1 %v29620_v2  ;;  %v29686_v2 = vld [vmem:[%s38773_s7 + $0x14e0] ss:$28 sps:$4 sm:$0xff]  }
 0xb63   :  { %25271 = vmatpush3.bf16.msra.mxu0 %v29617_v51  ;;  %v29683_v51 = vld [vmem:[%s38773_s7 + $0x13f8] ss:$28 sps:$4 sm:$0xff]  }
 0xb64   :  { %25272 = vmatprep.subr.bf16.mxu0 %v29621_v40  ;;  %v29690_v40 = vld [vmem:[%s38773_s7 + $0x1434] ss:$28 sps:$4 sm:$0xff]  }
 0xb65   :  { %21745 = vmatpush1.bf16.msra.mxu1 %v29618_v34  ;;  %v29687_v34 = vld [vmem:[%s38773_s7 + $0x1320] ss:$28 sps:$4 sm:$0xff]  }
 0xb66   :  { %21746 = vmatprep.subr.bf16.mxu1 %v29625_v8  ;;  %v29688_v8 = vld [vmem:[%s38773_s7 + $0x1430] ss:$28 sps:$4 sm:$0xff]  }
 0xb67   :  { %25273 = vmatpush3.bf16.msra.mxu0 %v29622_v59  ;;  %v29694_v59 = vld [vmem:[%s38773_s7 + $0x146c] ss:$28 sps:$4 sm:$0xff]  }
 0xb68   :  { %25274 = vmatprep.subr.bf16.mxu0 %v29626_v41  ;;  %v29691_v41 = vld [vmem:[%s38773_s7 + $0x1518] ss:$28 sps:$4 sm:$0xff]  }
 0xb69   :  { %21747 = vmatpush1.bf16.msra.mxu1 %v29623_v11  ;;  %v29692_v11 = vld [vmem:[%s38773_s7 + $0x1468] ss:$28 sps:$4 sm:$0xff]  }
 0xb6a   :  { %21757 = vmatprep.subr.bf16.mxu1 %v29630_v43  ;;  %v29698_v43 = vld [vmem:[%s38773_s7 + $0x14a4] ss:$28 sps:$4 sm:$0xff]  }
 0xb6b   :  { %25275 = vmatpush3.bf16.msra.mxu0 %v29627_v13  ;;  %v29695_v13 = vld [vmem:[%s38773_s7 + $0x1550] ss:$28 sps:$4 sm:$0xff]  }
 0xb6c   :  { %21749 = vmatmul.mubr.bf16.vlgmr.msra.gmra.mrb[52].mxu1 %v37297_v28  ;;  %25276 = vmatprep.subr.bf16.mxu0 %v29631_v42  ;;  %v29696_v42 = vld [vmem:[%s38773_s7 + $0x14a0] ss:$28 sps:$4 sm:$0xff]  }
 0xb6d   :  { %21758 = vmatpush1.bf16.msra.mxu1 %v29628_v16  ;;  %21789 = vmatprep.mubr.bf16.mxu1 %v37302_v53  ;;  %v29701_v16 = vld [vmem:[%s38773_s7 + $0x14dc] ss:$28 sps:$4 sm:$0xff]  }
 0xb6e   :  { %21759 = vmatprep.subr.bf16.mxu1 %v29635_v60  ;;  %v29699_v60 = vld [vmem:[%s38773_s7 + $0x14d8] ss:$28 sps:$4 sm:$0xff]  }
 0xb6f   :  { %25277 = vmatpush3.bf16.msra.mxu0 %v29632_v39  ;;  %v29702_v39 = vld [vmem:[%s38773_s7 + $0x1510] ss:$28 sps:$4 sm:$0xff]  }
 0xb70   :  { %25278 = vmatprep.subr.bf16.mxu0 %v29636_v44  ;;  %v29707_v44 = vld [vmem:[%s38773_s7 + $0x154c] ss:$28 sps:$4 sm:$0xff]  }
 0xb71   :  { %21760 = vmatpush1.bf16.msra.mxu1 %v29633_v23  ;;  %v29705_v23 = vld [vmem:[%s38773_s7 + $0x1548] ss:$28 sps:$4 sm:$0xff]  }
 0xb72   :  { %21761 = vmatprep.subr.bf16.mxu1 %v29640_v56  ;;  %v17423_v56 = vrot.slane %v38192_v61, %v30033_v30 }
 0xb73   :  { %25279 = vmatpush3.bf16.msra.mxu0 %v29637_v46  ;;  %v17427_v46 = vrot.slane %v38192_v61, %v30039_v32 }
 0xb74   :  { %25280 = vmatprep.subr.bf16.mxu0 %v29641_v1 }
 0xb75   :  { %21762 = vmatpush1.bf16.msra.mxu1 %v29638_v12 }
 0xb76   :  { %21763 = vmatprep.subr.bf16.mxu1 %v29645_v54 }
 0xb77   :  { %25281 = vmatpush3.bf16.msra.mxu0 %v29642_v57 }
 0xb78   :  { %25282 = vmatprep.subr.bf16.mxu0 %v29646_v18 }
 0xb79   :  { %21764 = vmatpush1.bf16.msra.mxu1 %v29643_v49 }
 0xb7a   :  { %21765 = vmatprep.subr.bf16.mxu1 %v29650_v10 }
 0xb7b   :  { %25283 = vmatpush3.bf16.msra.mxu0 %v29647_v19 }
 0xb7c   :  { %25290 = vmatprep.subr.bf16.mxu0 %v29651_v48 }
 0xb7d   :  { %21766 = vmatpush1.bf16.msra.mxu1 %v29648_v9  ;;  %v17439_v9 = vrot.slane %v38192_v61, %v30436_v36 }
 0xb7e   :  { %22032 = vmatmul.mubr.bf16.vlgmr.msra.gmra.mrb[84].mxu0 %v37297_v28  ;;  %21767 = vmatprep.subr.bf16.mxu1 %v29655_v15  ;;  %v29658_v28 = vld [vmem:[%s38773_s7 + $0x12e0] ss:$28 sps:$4 sm:$0xff]  }
 0xb7f   :  { %25291 = vmatpush3.bf16.msra.mxu0 %v29652_v37  ;;  %22071 = vmatprep.mubr.bf16.mxu0 %v37302_v53  ;;  %v29662_v53 = vld [vmem:[%s38773_s7 + $0x1208] ss:$28 sps:$4 sm:$0xff]  }
 0xb80   :  { %25292 = vmatprep.subr.bf16.mxu0 %v29656_v62 }
 0xb81   :  { %21768 = vmatpush1.bf16.msra.mxu1 %v29653_v50 }
 0xb82   :  { %21769 = vmatprep.subr.bf16.mxu1 %v29660_v0 }
 0xb83   :  { %25293 = vmatpush3.bf16.msra.mxu0 %v29657_v20 }
 0xb84   :  { %25294 = vmatprep.subr.bf16.mxu0 %v29661_v21 }
 0xb85   :  { %21770 = vmatpush1.bf16.msra.mxu1 %v29658_v28 }
 0xb86   :  { %21771 = vmatprep.subr.bf16.mxu1 %v29665_v17 }
 0xb87   :  { %25295 = vmatpush3.bf16.msra.mxu0 %v29662_v53 }
 0xb88   :  { %25296 = vmatprep.subr.bf16.mxu0 %v29666_v38 }
 0xb89   :  { %21772 = vmatpush1.bf16.msra.mxu1 %v29663_v14 }
 0xb8a   :  { %21773 = vmatprep.subr.bf16.mxu1 %v29670_v22 }
 0xb8b   :  { %25297 = vmatpush3.bf16.msra.mxu0 %v29667_v58 }
 0xb8c   :  { %25298 = vmatprep.subr.bf16.mxu0 %v29671_v5 }
 0xb8d   :  { %21774 = vmatpush1.bf16.msra.mxu1 %v29668_v26 }
 0xb8e   :  { %21775 = vmatprep.subr.bf16.mxu1 %v29675_v4 }
 0xb8f   :  { %25299 = vmatpush3.bf16.msra.mxu0 %v29672_v24 }
 0xb90   :  { %25300 = vmatprep.subr.bf16.mxu0 %v29676_v35 }
 0xb91   :  { %21776 = vmatpush1.bf16.msra.mxu1 %v29673_v33 }
 0xb92   :  { %21777 = vmatprep.subr.bf16.mxu1 %v29680_v6 }
 0xb93   :  { %25301 = vmatpush3.bf16.msra.mxu0 %v29677_v29 }
 0xb94   :  { %25302 = vmatprep.subr.bf16.mxu0 %v29681_v52 }
 0xb95   :  { %21778 = vmatpush1.bf16.msra.mxu1 %v29678_v25 }
 0xb96   :  { %21779 = vmatprep.subr.bf16.mxu1 %v29685_v55 }
 0xb97   :  { %25303 = vmatpush3.bf16.msra.mxu0 %v29682_v31 }
 0xb98   :  { %25304 = vmatprep.subr.bf16.mxu0 %v29686_v2 }
 0xb99   :  { %21780 = vmatpush1.bf16.msra.mxu1 %v29683_v51 }
 0xb9a   :  { %21781 = vmatprep.subr.bf16.mxu1 %v29690_v40 }
 0xb9b   :  { %25305 = vmatpush3.bf16.msra.mxu0 %v29687_v34 }
 0xb9c   :  { %25323 = vmatprep.subr.bf16.mxu0 %v29729_v27 }
 0xb9d   :  { %21782 = vmatpush1.bf16.msra.mxu1 %v29688_v8 }
 0xb9e   :  { %22072 = vmatmul.mubr.bf16.vlgmr.msra.gmra.mrb[88].mxu0 %v37509_v47  ;;  %21783 = vmatprep.subr.bf16.mxu1 %v29694_v59 }
 0xb9f   :  { %25324 = vmatpush3.bf16.msra.mxu0 %v29691_v41  ;;  %25327 = vmatprep.mubr.msk.bf16.mxu0 %vm29730_vm3, %v29729_v27 }
 0xba0   :  { %25325 = vmatprep.subr.bf16.mxu0 %v29729_v27  ;;  %v29704_v27 = vld [vmem:[%s38773_s7 + $0x1514] ss:$28 sps:$4 sm:$0xff]  }
 0xba1   :  { %21784 = vmatpush1.bf16.msra.mxu1 %v29692_v11 }
 0xba2   :  { %21785 = vmatprep.subr.bf16.mxu1 %v29698_v43 }
 0xba3   :  { %25326 = vmatpush3.bf16.msra.mxu0 %v29695_v13  ;;  %v17431_v13 = vrot.slane %v38192_v61, %v30224_v7 }
 0xba5   :  { %21786 = vmatpush1.bf16.msra.mxu1 %v29696_v42  ;;  %v17435_v42 = vrot.slane %v38192_v61, %v30050_v45 }
 0xba6   :  { %25328 = vmatmul.mubr.msk.bf16.vlgmr.msra.gmra.mrb[92].mxu0 %vm14594_vm2, %v37551_v63  ;;  %21787 = vmatprep.subr.bf16.mxu1 %v29701_v16 }
 0xba9   :  { %21788 = vmatpush1.bf16.msra.mxu1 %v29699_v60 }
 0xbaa   :  { %21798 = vmatprep.subr.bf16.mxu1 %v29704_v27 }
 0xbac   :  { %21790 = vmatmul.mubr.bf16.vlgmr.msra.gmra.mrb[52].mxu1 %v37509_v47 }
 0xbad   :  { %21799 = vmatpush1.bf16.msra.mxu1 %v29702_v39  ;;  %21830 = vmatprep.mubr.bf16.mxu1 %v29728_v3 }
 0xbae   :  { %21800 = vmatprep.subr.bf16.mxu1 %v29707_v44 }
 0xbb1   :  { %v21545_v1 = vpop.f32.mrb[64].mxu0  ;;  %21801 = vmatpush1.bf16.msra.mxu1 %v29705_v23 }
 0xbb2   :  { %v25359_v12 = vadd.f32 %v21545_v1, %v17423_v56  ;;  %v21547_v54 = vpop.f32.mrb[65].mxu0 }
 0xbb3   :  { %v25360_v57 = vadd.f32 %v21547_v54, %v17427_v46  ;;  %v21549_v47 = vpop.f32.mrb[66].mxu0 }
 0xbb4   :  { %29712 = vtanh.f32 %v25359_v12  ;;  %v21550_v18 = vpop.f32.mrb[67].mxu0 }
 0xbb5   :  { %29714 = vtanh.f32 %v25360_v57 }
 0xbb8   :  { %24955 = vmatmul.mubr.msk.bf16.vlgmr.msra.gmra.mrb[52].mxu1 %vm14594_vm2, %v37551_v63 }
 0xbbe   :  { %v29713_v3 = vpop.eup %29712 }
 0xbbf   :  { %v29715_v49 = vpop.eup %29714  ;;  %22128 = vst [vmem:[%s38776_s9 + $0x10] sm:$0xff] %v29713_v3 }
 0xbc0   :  { %22129 = vst [vmem:[%s38776_s9 + $0x18] sm:$0xff] %v29715_v49 }
 0xbd1   :  { %v25196_v30 = vpop.f32.mrb[68].mxu0 }
 0xbd2   :  { %v25197_v32 = vpop.f32.mrb[69].mxu0 }
 0xbd3   :  { %v25198_v10 = vadd.f32 %v25197_v32, %v25196_v30  ;;  %v25199_v19 = vpop.f32.mrb[70].mxu0 }
 0xbd4   :  { %v25200_v48 = vpop.f32.mrb[71].mxu0 }
 0xbd5   :  { %v21874_v37 = vadd.f32 %v25198_v10, %v17439_v9 }
 0xbf1   :  { %v25218_v15 = vpop.f32.mrb[72].mxu0 }
 0xbf2   :  { %v25219_v63 = vpop.f32.mrb[73].mxu0 }
 0xbf3   :  { %v25220_v62 = vadd.f32 %v25219_v63, %v25218_v15  ;;  %v25221_v50 = vpop.f32.mrb[74].mxu0 }
 0xbf4   :  { %v25222_v0 = vpop.f32.mrb[75].mxu0 }
 0xbf5   :  { %v21914_v20 = vadd.f32 %v25220_v62, %v21874_v37 }
 0xc11   :  { %v25240_v21 = vpop.f32.mrb[76].mxu0 }
 0xc12   :  { %v25241_v28 = vpop.f32.mrb[77].mxu0 }
 0xc13   :  { %v25242_v17 = vadd.f32 %v25241_v28, %v25240_v21  ;;  %v25243_v53 = vpop.f32.mrb[78].mxu0 }
 0xc14   :  { %v25244_v38 = vpop.f32.mrb[79].mxu0 }
 0xc15   :  { %v21954_v14 = vadd.f32 %v25242_v17, %v21914_v20 }
 0xc31   :  { %v25262_v22 = vpop.f32.mrb[80].mxu0 }
 0xc32   :  { %v25263_v58 = vpop.f32.mrb[81].mxu0 }
 0xc33   :  { %v25264_v5 = vadd.f32 %v25263_v58, %v25262_v22  ;;  %v25265_v26 = vpop.f32.mrb[82].mxu0 }
 0xc34   :  { %v25266_v4 = vpop.f32.mrb[83].mxu0 }
 0xc35   :  { %v21994_v24 = vadd.f32 %v25264_v5, %v21954_v14 }
 0xc51   :  { %v25284_v36 = vpop.f32.mrb[84].mxu0 }
 0xc52   :  { %v25285_v35 = vpop.f32.mrb[85].mxu0 }
 0xc53   :  { %v25286_v33 = vadd.f32 %v25285_v35, %v25284_v36  ;;  %v25287_v6 = vpop.f32.mrb[86].mxu0 }
 0xc54   :  { %v25288_v29 = vpop.f32.mrb[87].mxu0 }
 0xc55   :  { %v22034_v52 = vadd.f32 %v25286_v33, %v21994_v24 }
 0xc71   :  { %v25306_v25 = vpop.f32.mrb[88].mxu0 }
 0xc72   :  { %v25307_v55 = vpop.f32.mrb[89].mxu0 }
 0xc73   :  { %v25308_v31 = vadd.f32 %v25307_v55, %v25306_v25  ;;  %v25309_v2 = vpop.f32.mrb[90].mxu0 }
 0xc74   :  { %v25310_v51 = vpop.f32.mrb[91].mxu0 }
 0xc75   :  { %v22074_v40 = vadd.f32 %v25308_v31, %v22034_v52 }
 0xc79   :  { %v22113_v34 = vpop.f32.mrb[92].mxu0 }
 0xc7a   :  { %v22114_v8 = vadd.f32 %v22113_v34, %v22074_v40  ;;  %v25329_v59 = vpop.f32.mrb[93].mxu0 }
 0xc7b   :  { %v22116_v41 = vpop.f32.mrb[94].mxu0 }
 0xc7c   :  { %29716 = vtanh.f32 %v22114_v8  ;;  %v25330_v11 = vpop.f32.mrb[95].mxu0 }
 0xc86   :  { %v29717_v43 = vpop.eup %29716 }
 0xc87   :  { %22133 = vst.msk [vmem:[%s38776_s9 + $0x30] sm:$0xff] %vm22132_vm4, %v29717_v43 }
 0xc8b   :  { %v21832_v16 = vpop.f32.mrb[52].mxu1 }
 0xc8c   :  { %v25361_v60 = vadd.f32 %v21832_v16, %v17431_v13  ;;  %v21834_v27 = vpop.f32.mrb[53].mxu1 }
 0xc8d   :  { %v25362_v39 = vadd.f32 %v21834_v27, %v17435_v42  ;;  %v21836_v44 = vpop.f32.mrb[54].mxu1 }
 0xc8e   :  { %29718 = vtanh.f32 %v25361_v60  ;;  %v21837_v23 = vpop.f32.mrb[55].mxu1 }
 0xc8f   :  { %29720 = vtanh.f32 %v25362_v39 }
 0xc98   :  { %v29719_v56 = vpop.eup %29718 }
 0xc99   :  { %v29721_v46 = vpop.eup %29720  ;;  %22130 = vst [vmem:[%s38776_s9 + $0x20] sm:$0xff] %v29719_v56 }
 0xc9a   :  { %22131 = vst [vmem:[%s38776_s9 + $0x28] sm:$0xff] %v29721_v46 }

</bundles_post_ra>
